<compile_context>
chip_gen: v6e
topology: v6e:2x2x1
jax: 0.10.0
libtpu: 0.0.40
codegen_flags: <defaults>
</compile_context>

<pallas_src>
import functools

import jax
import jax.numpy as jnp
from jax.experimental import pallas as pl
from jax.experimental.pallas import tpu as pltpu


# ------------------------------ in-kernel helpers ----------------------------

def _bdot(a, b):
    """a @ b on the MXU: bf16 inputs, f32 accumulation."""
    return jnp.dot(a.astype(jnp.bfloat16), b.astype(jnp.bfloat16),
                   preferred_element_type=jnp.float32)


def _bdot_nt(a, b):
    """a @ b.T (contract last dims of both) on the MXU: bf16 in, f32 acc."""
    return jax.lax.dot_general(
        a.astype(jnp.bfloat16), b.astype(jnp.bfloat16),
        dimension_numbers=(((1,), (1,)), ((), ())),
        preferred_element_type=jnp.float32)


def _softmax_last(x):
    """Softmax over the last axis; f32 math, EUP reciprocal for the denom."""
    x = x - jnp.max(x, axis=-1, keepdims=True)
    e = jnp.exp(x)
    return e * pl.reciprocal(jnp.sum(e, axis=-1, keepdims=True), approx=True)


# ------------------------- kernel A: conv front-end ---------------------------

def _conv_stage_kernel(xp_ref, w1_ref, b1_ref, w2_ref, b2_ref,
                       caw1_ref, cab1_ref, caw2_ref, cab2_ref,
                       paw1_ref, pab1_ref, paw2_ref, pab2_ref,
                       f1_ref, f2_ref, pad_ref):
    """conv1+ReLU+res -> conv2 -> CALayer -> PALayer -> +res (one image)."""
    Hp, Wp, C = xp_ref.shape[1], xp_ref.shape[2], xp_ref.shape[3]
    H, W = Hp - 2, Wp - 2
    HW = H * W

    xp = xp_ref[0]                                        # (H+2, W+2, C) f32
    x_tok = xp[1:H + 1, 1:W + 1, :].reshape(HW, C)

    def conv3x3(padded, w):                               # 9 shifted-tap matmuls
        acc = jnp.zeros((HW, C), jnp.float32)
        for ky in range(3):
            for kx in range(3):
                tap = padded[ky:ky + H, kx:kx + W, :].reshape(HW, C)
                acc = acc + _bdot(tap, w[ky, kx])
        return acc

    # conv1 -> ReLU -> + x                 (fussion_1)
    f1 = jnp.maximum(conv3x3(xp, w1_ref[...]) + b1_ref[...], 0.0) + x_tok
    f1_ref[0] = f1

    # conv2 on f1: zero-pad f1 in the VMEM scratch, then 9 taps again
    pad_ref[...] = jnp.zeros((Hp, Wp, C), jnp.float32)
    pad_ref[1:H + 1, 1:W + 1, :] = f1.reshape(H, W, C)
    r = conv3x3(pad_ref[...], w2_ref[...]) + b2_ref[...]

    # CALayer: global average pool -> 1x1 convs -> sigmoid channel gate
    y = jnp.mean(r, axis=0, keepdims=True)                # (1, C)
    y = jnp.maximum(_bdot(y, caw1_ref[...]) + cab1_ref[...], 0.0)
    y = jax.nn.sigmoid(_bdot(y, caw2_ref[...]) + cab2_ref[...])
    r = r * y

    # PALayer: per-pixel sigmoid gate
    t = jnp.maximum(_bdot(r, paw1_ref[...]) + pab1_ref[...], 0.0)
    s = jax.nn.sigmoid(jnp.sum(t * paw2_ref[...], axis=-1, keepdims=True)
                       + pab2_ref[...])

    # + x                                  (fussion_2)
    f2_ref[0] = r * s + x_tok


def conv_stage(xp, p):
    B, Hp, Wp, C = xp.shape
    H, W = Hp - 2, Wp - 2
    HW = H * W
    C8 = p['ca_w1'].shape[1]
    bf = lambda w: w.astype(jnp.bfloat16)
    full = lambda shape: pl.BlockSpec(shape, lambda i: (0,) * len(shape))
    out_sd = jax.ShapeDtypeStruct((B, HW, C), jnp.float32)
    tok_out = pl.BlockSpec((1, HW, C), lambda i: (i, 0, 0))
    return pl.pallas_call(
        _conv_stage_kernel,
        grid=(B,),
        in_specs=[
            pl.BlockSpec((1, Hp, Wp, C), lambda i: (i, 0, 0, 0)),
            full((3, 3, C, C)), full((1, C)),
            full((3, 3, C, C)), full((1, C)),
            full((C, C8)), full((1, C8)),
            full((C8, C)), full((1, C)),
            full((C, C8)), full((1, C8)),
            full((1, C8)), full((1, 1)),
        ],
        out_specs=(tok_out, tok_out),
        out_shape=(out_sd, out_sd),
        scratch_shapes=[pltpu.VMEM((Hp, Wp, C), jnp.float32)],
        compiler_params=pltpu.CompilerParams(dimension_semantics=("parallel",)),
    )(xp,
      bf(p['conv1_w']), p['conv1_b'].reshape(1, C),
      bf(p['conv2_w']), p['conv2_b'].reshape(1, C),
      bf(p['ca_w1']), p['ca_b1'].reshape(1, C8),
      bf(p['ca_w2']), p['ca_b2'].reshape(1, C),
      bf(p['pa_w1']), p['pa_b1'].reshape(1, C8),
      p['pa_w2'].reshape(1, C8), p['pa_b2'].reshape(1, 1))


# ------------------- kernel B: LAM_Module_v2 + conv_fuss + proj_in -----------

def _lam_stage_kernel(x_ref, f1_ref, f2_ref,
                      qkvw_ref, qkvb_ref, dww_ref, dwb_ref, temp_ref,
                      projw_ref, projb_ref, fussw_ref, pinw_ref, pinb_ref,
                      res_ref, pad_ref):
    """LAM layer-attention + project_out + residual + conv_fuss + proj_in."""
    HW, C = x_ref.shape[1], x_ref.shape[2]
    C3, C9 = 3 * C, 9 * C
    H, W = pad_ref.shape[0] - 2, pad_ref.shape[1] - 2

    cat = jnp.concatenate([x_ref[0], f1_ref[0], f2_ref[0]], axis=-1)   # (HW, 3C)

    # qkv 1x1 conv
    qkv = _bdot(cat, qkvw_ref[...]) + qkvb_ref[...]                    # (HW, 9C)

    # depthwise 3x3 conv (same padding), accumulated in VMEM, bias hoisted
    pad_ref[...] = jnp.zeros((H + 2, W + 2, C9), jnp.float32)
    pad_ref[1:H + 1, 1:W + 1, :] = qkv.reshape(H, W, C9)
    padded = pad_ref[...]
    dww = dww_ref[...]                                                 # (3, 3, 9C)
    acc = jnp.zeros((H, W, C9), jnp.float32)
    for ky in range(3):
        for kx in range(3):
            acc = acc + padded[ky:ky + H, kx:kx + W, :] * dww[ky:ky + 1, kx:kx + 1, :]
    qkv_dw = (acc + dwb_ref[...]).reshape(HW, C9)

    # layer attention over the N=3 stacked feature maps.  The 3x3 Gram matrix
    # is built from full reductions, so no (H*W*C)-wide lane reshapes needed.
    q_g = [qkv_dw[:, g * C:(g + 1) * C] for g in range(3)]
    k_g = [qkv_dw[:, C3 + g * C:C3 + (g + 1) * C] for g in range(3)]
    v_g = [qkv_dw[:, 2 * C3 + g * C:2 * C3 + (g + 1) * C] for g in range(3)]

    def inv_norm(t):   # 1 / max(||t||_F, eps)  -> (1, 1)
        ss = jnp.sum(t * t, axis=(0, 1), keepdims=True)
        return jax.lax.rsqrt(jnp.maximum(ss, 1e-24))

    inv_q = [inv_norm(t) for t in q_g]
    inv_k = [inv_norm(t) for t in k_g]
    temp = temp_ref[0, 0]

    out_groups = []
    for n in range(3):
        row = jnp.concatenate(
            [jnp.sum(q_g[n] * k_g[m], axis=(0, 1), keepdims=True)
             * (inv_q[n] * inv_k[m]) for m in range(3)], axis=1) * temp   # (1, 3)
        a = _softmax_last(row)
        out_groups.append(a[:, 0:1] * v_g[0] + a[:, 1:2] * v_g[1]
                          + a[:, 2:3] * v_g[2])                           # (HW, C)
    o = jnp.concatenate(out_groups, axis=-1)                              # (HW, 3C)

    # project_out (1x1) + LAM residual (+cat), then conv_fuss and proj_in
    o = _bdot(o, projw_ref[...]) + projb_ref[...] + cat
    fused = _bdot(o, fussw_ref[...])                                      # (HW, C)
    res_ref[0] = _bdot(fused, pinw_ref[...]) + pinb_ref[...]


def lam_stage(x_tok, f1, f2, p, H, W):
    B, HW, C = x_tok.shape
    C3, C9 = 3 * C, 9 * C
    bf = lambda w: w.astype(jnp.bfloat16)
    full = lambda shape: pl.BlockSpec(shape, lambda i: (0,) * len(shape))
    tok = pl.BlockSpec((1, HW, C), lambda i: (i, 0, 0))
    return pl.pallas_call(
        _lam_stage_kernel,
        grid=(B,),
        in_specs=[
            tok, tok, tok,
            full((C3, C9)), full((1, C9)),
            full((3, 3, C9)), full((1, 1, C9)),
            full((1, 1)),
            full((C3, C3)), full((1, C3)),
            full((C3, C)),
            full((C, C)), full((1, C)),
        ],
        out_specs=pl.BlockSpec((1, HW, C), lambda i: (i, 0, 0)),
        out_shape=jax.ShapeDtypeStruct((B, HW, C), jnp.float32),
        scratch_shapes=[pltpu.VMEM((H + 2, W + 2, C9), jnp.float32)],
        compiler_params=pltpu.CompilerParams(dimension_semantics=("parallel",)),
    )(x_tok, f1, f2,
      bf(p['lam_qkv_w']), p['lam_qkv_b'].reshape(1, C9),
      p['lam_dw_w'], p['lam_dw_b'].reshape(1, 1, C9),
      p['lam_temp'].reshape(1, 1),
      bf(p['lam_proj_w']), p['lam_proj_b'].reshape(1, C3),
      bf(p['fuss_w']),
      bf(p['proj_in_w']), p['proj_in_b'].reshape(1, C))


# ---------------- kernel C: transformer tail (attn + FF + proj_out) ----------

def _tail_kernel(res_ref, x_ref, ctx_ref, lng_ref, lnb_ref,
                 qw_ref, kw_ref, vw_ref, ow_ref, ob_ref,
                 w1a_ref, b1a_ref, w1g_ref, b1g_ref, w2_ref, b2_ref,
                 pow_ref, pob_ref, out_ref, *, heads, dim_head):
    """norm -> cross-attn -> +res -> norm -> GEGLU FF -> +res -> proj_out -> +x."""
    res = res_ref[0]                      # (HW, C) f32
    x = x_ref[0]
    ctx = ctx_ref[0]                      # (n_ctx, 8C) f32
    scale = dim_head ** -0.5

    def layernorm(a):                     # the module reuses ONE nn.LayerNorm
        mu = jnp.mean(a, axis=-1, keepdims=True)
        d = a - mu
        var = jnp.mean(d * d, axis=-1, keepdims=True)
        return d * jax.lax.rsqrt(var + 1e-5) * lng_ref[...] + lnb_ref[...]

    # cross attention against the (tiny) text context
    rn = layernorm(res)
    q = _bdot(rn, qw_ref[...])            # (HW, heads*dim_head)
    k = _bdot(ctx, kw_ref[...])           # (n_ctx, heads*dim_head)
    v = _bdot(ctx, vw_ref[...])

    head_outs = []
    for h in range(heads):                # static unroll, dim_head is tiny (8)
        sl = slice(h * dim_head, (h + 1) * dim_head)
        prob = _softmax_last(_bdot_nt(q[:, sl], k[:, sl]) * scale)    # (HW, n_ctx)
        head_outs.append(_bdot(prob, v[:, sl]))                       # (HW, dh)
    attn = jnp.concatenate(head_outs, axis=-1)                        # (HW, inner)
    res = _bdot(attn, ow_ref[...]) + ob_ref[...] + res

    # GEGLU feed-forward (pre-split value / gate weights)
    rn2 = layernorm(res)
    val = _bdot(rn2, w1a_ref[...]) + b1a_ref[...]
    gate = _bdot(rn2, w1g_ref[...]) + b1g_ref[...]
    # TODO(synk): PyTorch F.gelu is the exact erf GELU; tanh approximation is
    # used for Mosaic-safe lowering (max abs diff ~1e-3).
    res = _bdot(val * jax.nn.gelu(gate, approximate=True), w2_ref[...]) \
        + b2_ref[...] + res

    # zero-initialized proj_out + outer residual (+ x_in)
    out_ref[0] = _bdot(res, pow_ref[...]) + pob_ref[...] + x


def tail_stage(res0, x_tok, context, p, heads=8, dim_head=8):
    B, HW, C = res0.shape
    n_ctx, ctx_dim = context.shape[1], context.shape[2]
    inner = heads * dim_head
    ffi = p['ff_w1a'].shape[1]
    bf = lambda w: w.astype(jnp.bfloat16)
    full = lambda shape: pl.BlockSpec(shape, lambda i: (0,) * len(shape))
    tok = pl.BlockSpec((1, HW, C), lambda i: (i, 0, 0))
    return pl.pallas_call(
        functools.partial(_tail_kernel, heads=heads, dim_head=dim_head),
        grid=(B,),
        in_specs=[
            tok, tok,
            pl.BlockSpec((1, n_ctx, ctx_dim), lambda i: (i, 0, 0)),
            full((1, C)), full((1, C)),
            full((C, inner)), full((ctx_dim, inner)), full((ctx_dim, inner)),
            full((inner, C)), full((1, C)),
            full((C, ffi)), full((1, ffi)), full((C, ffi)), full((1, ffi)),
            full((ffi, C)), full((1, C)),
            full((C, C)), full((1, C)),
        ],
        out_specs=pl.BlockSpec((1, HW, C), lambda i: (i, 0, 0)),
        out_shape=jax.ShapeDtypeStruct((B, HW, C), jnp.float32),
        compiler_params=pltpu.CompilerParams(dimension_semantics=("parallel",)),
    )(res0, x_tok, context.astype(jnp.float32),
      p['ln_g'].reshape(1, C), p['ln_b'].reshape(1, C),
      bf(p['to_q_w']), bf(p['to_k_w']), bf(p['to_v_w']),
      bf(p['to_out_w']), p['to_out_b'].reshape(1, C),
      bf(p['ff_w1a']), p['ff_b1a'].reshape(1, ffi),
      bf(p['ff_w1g']), p['ff_b1g'].reshape(1, ffi),
      bf(p['ff_w2']), p['ff_b2'].reshape(1, C),
      bf(p['proj_out_w']), p['proj_out_b'].reshape(1, C))


# ------------------------------ parameter init ------------------------------

def init_params(key, dim):
    s = 0.05
    c8 = dim // 8
    ffi = 4 * dim

    def nrm(k, shape):
        return jax.random.normal(k, shape, jnp.float32) * s

    ks = jax.random.split(key, 24)
    p = dict(
        conv1_w=nrm(ks[0], (3, 3, dim, dim)), conv1_b=nrm(ks[1], (dim,)),
        conv2_w=nrm(ks[2], (3, 3, dim, dim)), conv2_b=nrm(ks[3], (dim,)),
        ca_w1=nrm(ks[4], (dim, c8)), ca_b1=nrm(ks[5], (c8,)),
        ca_w2=nrm(ks[6], (c8, dim)), ca_b2=nrm(ks[7], (dim,)),
        pa_w1=nrm(ks[8], (dim, c8)), pa_b1=nrm(ks[9], (c8,)),
        pa_w2=nrm(ks[10], (c8, 1)), pa_b2=nrm(ks[11], (1,)),
        lam_temp=jnp.ones((1,), jnp.float32),
        lam_qkv_w=nrm(ks[12], (3 * dim, 9 * dim)), lam_qkv_b=nrm(ks[13], (9 * dim,)),
        lam_dw_w=nrm(ks[14], (3, 3, 9 * dim)), lam_dw_b=nrm(ks[15], (9 * dim,)),
        lam_proj_w=nrm(ks[16], (3 * dim, 3 * dim)), lam_proj_b=nrm(ks[17], (3 * dim,)),
        fuss_w=nrm(ks[18], (3 * dim, dim)),
        proj_in_w=nrm(ks[19], (dim, dim)), proj_in_b=nrm(ks[20], (dim,)),
        proj_out_w=jnp.zeros((dim, dim), jnp.float32),   # zero_module
        proj_out_b=jnp.zeros((dim,), jnp.float32),
        # the PyTorch Block applies the SAME self.norm before attention and FF
        ln_g=jnp.ones((dim,), jnp.float32), ln_b=jnp.zeros((dim,), jnp.float32),
        to_q_w=nrm(ks[21], (dim, 64)),
        to_k_w=nrm(ks[22], (8 * dim, 64)),
        to_v_w=nrm(ks[23], (8 * dim, 64)),
    )
    ks2 = jax.random.split(jax.random.fold_in(key, 1), 8)
    p.update(
        to_out_w=nrm(ks2[0], (64, dim)), to_out_b=nrm(ks2[1], (dim,)),
        # GEGLU proj weight stored pre-split into value / gate halves
        ff_w1a=nrm(ks2[2], (dim, ffi)), ff_b1a=nrm(ks2[3], (ffi,)),
        ff_w1g=nrm(ks2[4], (dim, ffi)), ff_b1g=nrm(ks2[5], (ffi,)),
        ff_w2=nrm(ks2[6], (ffi, dim)), ff_b2=nrm(ks2[7], (dim,)),
    )
    return p


# ------------------------------- Block forward ------------------------------

def block_forward(x_nchw, context, p):
    B, C, H, W = x_nchw.shape
    HW = H * W
    x = jnp.transpose(x_nchw, (0, 2, 3, 1)).astype(jnp.float32)     # NHWC
    xp = jnp.pad(x, ((0, 0), (1, 1), (1, 1), (0, 0)))
    x_tok = x.reshape(B, HW, C)

    f1, f2 = conv_stage(xp, p)                   # (B, HW, C) each
    res = lam_stage(x_tok, f1, f2, p, H, W)      # (B, HW, C)  (after proj_in)
    out = tail_stage(res, x_tok, context, p)     # (B, HW, C)  (includes + x)

    return jnp.transpose(out.reshape(B, H, W, C), (0, 3, 1, 2))     # back to NCHW


# ----------------------------------- main ------------------------------------

if __name__ == "__main__":
    key = jax.random.PRNGKey(0)
    B, dim, H, W = 2, 16, 8, 8
    n_ctx = 8
    kx, kc, kp = jax.random.split(key, 3)
    x = jax.random.normal(kx, (B, dim, H, W), jnp.float32)
    # TODO(synk): CLIP text encoder (CLIP(self.text_feature)) has no Pallas
    # equivalent; it is replaced by a deterministic synthetic context of shape
    # (B, n_ctx, dim*8), broadcast to the image batch.
    context = jax.random.normal(kc, (B, n_ctx, dim * 8), jnp.float32)
    params = init_params(kp, dim)

    out = jax.jit(block_forward)(x, context, params)
    jax.block_until_ready(out)
    assert out.shape == x.shape and out.dtype == jnp.float32
    print("KERNEL_OK")
</pallas_src>

<mosaic_0001>
module attributes {stable_mosaic.version = 11 : i64} {
  func.func @_conv_stage_kernel(%arg0: i32, %arg1: memref<1x10x10x16xf32, #tpu.memory_space<vmem>>, %arg2: memref<3x3x16x16xbf16, #tpu.memory_space<vmem>>, %arg3: memref<1x16xf32, #tpu.memory_space<vmem>>, %arg4: memref<3x3x16x16xbf16, #tpu.memory_space<vmem>>, %arg5: memref<1x16xf32, #tpu.memory_space<vmem>>, %arg6: memref<16x2xbf16, #tpu.memory_space<vmem>>, %arg7: memref<1x2xf32, #tpu.memory_space<vmem>>, %arg8: memref<2x16xbf16, #tpu.memory_space<vmem>>, %arg9: memref<1x16xf32, #tpu.memory_space<vmem>>, %arg10: memref<16x2xbf16, #tpu.memory_space<vmem>>, %arg11: memref<1x2xf32, #tpu.memory_space<vmem>>, %arg12: memref<1x2xf32, #tpu.memory_space<vmem>>, %arg13: memref<1x1xf32, #tpu.memory_space<vmem>>, %arg14: memref<1x64x16xf32, #tpu.memory_space<vmem>>, %arg15: memref<1x64x16xf32, #tpu.memory_space<vmem>>, %arg16: memref<10x10x16xf32, #tpu.memory_space<vmem>>) attributes {dimension_semantics = [#tpu.dimension_semantics<parallel>], iteration_bounds = array<i64: 2>, scalar_prefetch = 0 : i64, scratch_operands = 1 : i64, tpu.core_type = #tpu.core_type<tc>, window_params = [{transform_indices = @transform_0, window_bounds = array<i64: 1, 10, 10, 16>}, {pipeline_mode = #tpu.pipeline_mode<synchronous>, transform_indices = @transform_1, window_bounds = array<i64: 3, 3, 16, 16>}, {pipeline_mode = #tpu.pipeline_mode<synchronous>, transform_indices = @transform_2, window_bounds = array<i64: 1, 16>}, {pipeline_mode = #tpu.pipeline_mode<synchronous>, transform_indices = @transform_3, window_bounds = array<i64: 3, 3, 16, 16>}, {pipeline_mode = #tpu.pipeline_mode<synchronous>, transform_indices = @transform_4, window_bounds = array<i64: 1, 16>}, {pipeline_mode = #tpu.pipeline_mode<synchronous>, transform_indices = @transform_5, window_bounds = array<i64: 16, 2>}, {pipeline_mode = #tpu.pipeline_mode<synchronous>, transform_indices = @transform_6, window_bounds = array<i64: 1, 2>}, {pipeline_mode = #tpu.pipeline_mode<synchronous>, transform_indices = @transform_7, window_bounds = array<i64: 2, 16>}, {pipeline_mode = #tpu.pipeline_mode<synchronous>, transform_indices = @transform_8, window_bounds = array<i64: 1, 16>}, {pipeline_mode = #tpu.pipeline_mode<synchronous>, transform_indices = @transform_9, window_bounds = array<i64: 16, 2>}, {pipeline_mode = #tpu.pipeline_mode<synchronous>, transform_indices = @transform_10, window_bounds = array<i64: 1, 2>}, {pipeline_mode = #tpu.pipeline_mode<synchronous>, transform_indices = @transform_11, window_bounds = array<i64: 1, 2>}, {pipeline_mode = #tpu.pipeline_mode<synchronous>, transform_indices = @transform_12, window_bounds = array<i64: 1, 1>}, {transform_indices = @transform_13, window_bounds = array<i64: 1, 64, 16>}, {transform_indices = @transform_14, window_bounds = array<i64: 1, 64, 16>}]} {
    %c0 = arith.constant 0 : index
    %c0_0 = arith.constant 0 : index
    %c0_1 = arith.constant 0 : index
    %c0_2 = arith.constant 0 : index
    %0 = vector.load %arg1[%c0, %c0_0, %c0_1, %c0_2] : memref<1x10x10x16xf32, #tpu.memory_space<vmem>>, vector<1x10x10x16xf32>
    %1 = vector.shape_cast %0 : vector<1x10x10x16xf32> to vector<10x10x16xf32>
    %2 = vector.extract_strided_slice %1 {offsets = [1, 1, 0], sizes = [8, 8, 16], strides = [1, 1, 1]} : vector<10x10x16xf32> to vector<8x8x16xf32>
    %3 = vector.shape_cast %2 : vector<8x8x16xf32> to vector<64x16xf32>
    %c0_3 = arith.constant 0 : index
    %c0_4 = arith.constant 0 : index
    %c0_5 = arith.constant 0 : index
    %c0_6 = arith.constant 0 : index
    %4 = vector.load %arg2[%c0_3, %c0_4, %c0_5, %c0_6] : memref<3x3x16x16xbf16, #tpu.memory_space<vmem>>, vector<3x3x16x16xbf16>
    %cst = arith.constant 0.000000e+00 : f32
    %5 = vector.broadcast %cst : f32 to vector<64x16xf32>
    %6 = vector.extract_strided_slice %1 {offsets = [0, 0, 0], sizes = [8, 8, 16], strides = [1, 1, 1]} : vector<10x10x16xf32> to vector<8x8x16xf32>
    %7 = vector.shape_cast %6 : vector<8x8x16xf32> to vector<64x16xf32>
    %8 = vector.extract_strided_slice %4 {offsets = [0, 0, 0, 0], sizes = [1, 1, 16, 16], strides = [1, 1, 1, 1]} : vector<3x3x16x16xbf16> to vector<1x1x16x16xbf16>
    %9 = vector.shape_cast %8 : vector<1x1x16x16xbf16> to vector<16x16xbf16>
    %10 = arith.truncf %7 : vector<64x16xf32> to vector<64x16xbf16>
    %cst_7 = arith.constant dense<0.000000e+00> : vector<64x16xf32>
    %11 = tpu.matmul %10, %9, %cst_7 {dimension_numbers = #tpu.dot_dimension_numbers<[1], [0], [0], [1], [0, 0, 1, 1], [], []>} : vector<64x16xbf16>, vector<16x16xbf16>, vector<64x16xf32> -> vector<64x16xf32>
    %12 = arith.addf %5, %11 : vector<64x16xf32>
    %13 = vector.extract_strided_slice %1 {offsets = [0, 1, 0], sizes = [8, 8, 16], strides = [1, 1, 1]} : vector<10x10x16xf32> to vector<8x8x16xf32>
    %14 = vector.shape_cast %13 : vector<8x8x16xf32> to vector<64x16xf32>
    %15 = vector.extract_strided_slice %4 {offsets = [0, 1, 0, 0], sizes = [1, 1, 16, 16], strides = [1, 1, 1, 1]} : vector<3x3x16x16xbf16> to vector<1x1x16x16xbf16>
    %16 = vector.shape_cast %15 : vector<1x1x16x16xbf16> to vector<16x16xbf16>
    %17 = arith.truncf %14 : vector<64x16xf32> to vector<64x16xbf16>
    %cst_8 = arith.constant dense<0.000000e+00> : vector<64x16xf32>
    %18 = tpu.matmul %17, %16, %cst_8 {dimension_numbers = #tpu.dot_dimension_numbers<[1], [0], [0], [1], [0, 0, 1, 1], [], []>} : vector<64x16xbf16>, vector<16x16xbf16>, vector<64x16xf32> -> vector<64x16xf32>
    %19 = arith.addf %12, %18 : vector<64x16xf32>
    %20 = vector.extract_strided_slice %1 {offsets = [0, 2, 0], sizes = [8, 8, 16], strides = [1, 1, 1]} : vector<10x10x16xf32> to vector<8x8x16xf32>
    %21 = vector.shape_cast %20 : vector<8x8x16xf32> to vector<64x16xf32>
    %22 = vector.extract_strided_slice %4 {offsets = [0, 2, 0, 0], sizes = [1, 1, 16, 16], strides = [1, 1, 1, 1]} : vector<3x3x16x16xbf16> to vector<1x1x16x16xbf16>
    %23 = vector.shape_cast %22 : vector<1x1x16x16xbf16> to vector<16x16xbf16>
    %24 = arith.truncf %21 : vector<64x16xf32> to vector<64x16xbf16>
    %cst_9 = arith.constant dense<0.000000e+00> : vector<64x16xf32>
    %25 = tpu.matmul %24, %23, %cst_9 {dimension_numbers = #tpu.dot_dimension_numbers<[1], [0], [0], [1], [0, 0, 1, 1], [], []>} : vector<64x16xbf16>, vector<16x16xbf16>, vector<64x16xf32> -> vector<64x16xf32>
    %26 = arith.addf %19, %25 : vector<64x16xf32>
    %27 = vector.extract_strided_slice %1 {offsets = [1, 0, 0], sizes = [8, 8, 16], strides = [1, 1, 1]} : vector<10x10x16xf32> to vector<8x8x16xf32>
    %28 = vector.shape_cast %27 : vector<8x8x16xf32> to vector<64x16xf32>
    %29 = vector.extract_strided_slice %4 {offsets = [1, 0, 0, 0], sizes = [1, 1, 16, 16], strides = [1, 1, 1, 1]} : vector<3x3x16x16xbf16> to vector<1x1x16x16xbf16>
    %30 = vector.shape_cast %29 : vector<1x1x16x16xbf16> to vector<16x16xbf16>
    %31 = arith.truncf %28 : vector<64x16xf32> to vector<64x16xbf16>
    %cst_10 = arith.constant dense<0.000000e+00> : vector<64x16xf32>
    %32 = tpu.matmul %31, %30, %cst_10 {dimension_numbers = #tpu.dot_dimension_numbers<[1], [0], [0], [1], [0, 0, 1, 1], [], []>} : vector<64x16xbf16>, vector<16x16xbf16>, vector<64x16xf32> -> vector<64x16xf32>
    %33 = arith.addf %26, %32 : vector<64x16xf32>
    %34 = vector.extract_strided_slice %1 {offsets = [1, 1, 0], sizes = [8, 8, 16], strides = [1, 1, 1]} : vector<10x10x16xf32> to vector<8x8x16xf32>
    %35 = vector.shape_cast %34 : vector<8x8x16xf32> to vector<64x16xf32>
    %36 = vector.extract_strided_slice %4 {offsets = [1, 1, 0, 0], sizes = [1, 1, 16, 16], strides = [1, 1, 1, 1]} : vector<3x3x16x16xbf16> to vector<1x1x16x16xbf16>
    %37 = vector.shape_cast %36 : vector<1x1x16x16xbf16> to vector<16x16xbf16>
    %38 = arith.truncf %35 : vector<64x16xf32> to vector<64x16xbf16>
    %cst_11 = arith.constant dense<0.000000e+00> : vector<64x16xf32>
    %39 = tpu.matmul %38, %37, %cst_11 {dimension_numbers = #tpu.dot_dimension_numbers<[1], [0], [0], [1], [0, 0, 1, 1], [], []>} : vector<64x16xbf16>, vector<16x16xbf16>, vector<64x16xf32> -> vector<64x16xf32>
    %40 = arith.addf %33, %39 : vector<64x16xf32>
    %41 = vector.extract_strided_slice %1 {offsets = [1, 2, 0], sizes = [8, 8, 16], strides = [1, 1, 1]} : vector<10x10x16xf32> to vector<8x8x16xf32>
    %42 = vector.shape_cast %41 : vector<8x8x16xf32> to vector<64x16xf32>
    %43 = vector.extract_strided_slice %4 {offsets = [1, 2, 0, 0], sizes = [1, 1, 16, 16], strides = [1, 1, 1, 1]} : vector<3x3x16x16xbf16> to vector<1x1x16x16xbf16>
    %44 = vector.shape_cast %43 : vector<1x1x16x16xbf16> to vector<16x16xbf16>
    %45 = arith.truncf %42 : vector<64x16xf32> to vector<64x16xbf16>
    %cst_12 = arith.constant dense<0.000000e+00> : vector<64x16xf32>
    %46 = tpu.matmul %45, %44, %cst_12 {dimension_numbers = #tpu.dot_dimension_numbers<[1], [0], [0], [1], [0, 0, 1, 1], [], []>} : vector<64x16xbf16>, vector<16x16xbf16>, vector<64x16xf32> -> vector<64x16xf32>
    %47 = arith.addf %40, %46 : vector<64x16xf32>
    %48 = vector.extract_strided_slice %1 {offsets = [2, 0, 0], sizes = [8, 8, 16], strides = [1, 1, 1]} : vector<10x10x16xf32> to vector<8x8x16xf32>
    %49 = vector.shape_cast %48 : vector<8x8x16xf32> to vector<64x16xf32>
    %50 = vector.extract_strided_slice %4 {offsets = [2, 0, 0, 0], sizes = [1, 1, 16, 16], strides = [1, 1, 1, 1]} : vector<3x3x16x16xbf16> to vector<1x1x16x16xbf16>
    %51 = vector.shape_cast %50 : vector<1x1x16x16xbf16> to vector<16x16xbf16>
    %52 = arith.truncf %49 : vector<64x16xf32> to vector<64x16xbf16>
    %cst_13 = arith.constant dense<0.000000e+00> : vector<64x16xf32>
    %53 = tpu.matmul %52, %51, %cst_13 {dimension_numbers = #tpu.dot_dimension_numbers<[1], [0], [0], [1], [0, 0, 1, 1], [], []>} : vector<64x16xbf16>, vector<16x16xbf16>, vector<64x16xf32> -> vector<64x16xf32>
    %54 = arith.addf %47, %53 : vector<64x16xf32>
    %55 = vector.extract_strided_slice %1 {offsets = [2, 1, 0], sizes = [8, 8, 16], strides = [1, 1, 1]} : vector<10x10x16xf32> to vector<8x8x16xf32>
    %56 = vector.shape_cast %55 : vector<8x8x16xf32> to vector<64x16xf32>
    %57 = vector.extract_strided_slice %4 {offsets = [2, 1, 0, 0], sizes = [1, 1, 16, 16], strides = [1, 1, 1, 1]} : vector<3x3x16x16xbf16> to vector<1x1x16x16xbf16>
    %58 = vector.shape_cast %57 : vector<1x1x16x16xbf16> to vector<16x16xbf16>
    %59 = arith.truncf %56 : vector<64x16xf32> to vector<64x16xbf16>
    %cst_14 = arith.constant dense<0.000000e+00> : vector<64x16xf32>
    %60 = tpu.matmul %59, %58, %cst_14 {dimension_numbers = #tpu.dot_dimension_numbers<[1], [0], [0], [1], [0, 0, 1, 1], [], []>} : vector<64x16xbf16>, vector<16x16xbf16>, vector<64x16xf32> -> vector<64x16xf32>
    %61 = arith.addf %54, %60 : vector<64x16xf32>
    %62 = vector.extract_strided_slice %1 {offsets = [2, 2, 0], sizes = [8, 8, 16], strides = [1, 1, 1]} : vector<10x10x16xf32> to vector<8x8x16xf32>
    %63 = vector.shape_cast %62 : vector<8x8x16xf32> to vector<64x16xf32>
    %64 = vector.extract_strided_slice %4 {offsets = [2, 2, 0, 0], sizes = [1, 1, 16, 16], strides = [1, 1, 1, 1]} : vector<3x3x16x16xbf16> to vector<1x1x16x16xbf16>
    %65 = vector.shape_cast %64 : vector<1x1x16x16xbf16> to vector<16x16xbf16>
    %66 = arith.truncf %63 : vector<64x16xf32> to vector<64x16xbf16>
    %cst_15 = arith.constant dense<0.000000e+00> : vector<64x16xf32>
    %67 = tpu.matmul %66, %65, %cst_15 {dimension_numbers = #tpu.dot_dimension_numbers<[1], [0], [0], [1], [0, 0, 1, 1], [], []>} : vector<64x16xbf16>, vector<16x16xbf16>, vector<64x16xf32> -> vector<64x16xf32>
    %68 = arith.addf %61, %67 : vector<64x16xf32>
    %c0_16 = arith.constant 0 : index
    %c0_17 = arith.constant 0 : index
    %69 = vector.load %arg3[%c0_16, %c0_17] : memref<1x16xf32, #tpu.memory_space<vmem>>, vector<1x16xf32>
    %70 = vector.broadcast %69 : vector<1x16xf32> to vector<64x16xf32>
    %71 = arith.addf %68, %70 : vector<64x16xf32>
    %cst_18 = arith.constant 0.000000e+00 : f32
    %72 = vector.broadcast %cst_18 : f32 to vector<64x16xf32>
    %73 = arith.maximumf %71, %72 : vector<64x16xf32>
    %74 = arith.addf %73, %3 : vector<64x16xf32>
    %c0_19 = arith.constant 0 : index
    %c0_20 = arith.constant 0 : index
    %c0_21 = arith.constant 0 : index
    %75 = vector.load %arg14[%c0_19, %c0_20, %c0_21] : memref<1x64x16xf32, #tpu.memory_space<vmem>>, vector<1x64x16xf32>
    %76 = vector.shape_cast %75 : vector<1x64x16xf32> to vector<64x16xf32>
    %77 = vector.shape_cast %74 : vector<64x16xf32> to vector<1x64x16xf32>
    tpu.vector_store %arg14[%c0_19, %c0_20, %c0_21], %77 {strides = array<i32>} : memref<1x64x16xf32, #tpu.memory_space<vmem>>, vector<1x64x16xf32>,
    %cst_22 = arith.constant 0.000000e+00 : f32
    %78 = vector.broadcast %cst_22 : f32 to vector<10x10x16xf32>
    %c0_23 = arith.constant 0 : index
    %c0_24 = arith.constant 0 : index
    %c0_25 = arith.constant 0 : index
    %79 = vector.load %arg16[%c0_23, %c0_24, %c0_25] : memref<10x10x16xf32, #tpu.memory_space<vmem>>, vector<10x10x16xf32>
    tpu.vector_store %arg16[%c0_23, %c0_24, %c0_25], %78 {strides = array<i32>} : memref<10x10x16xf32, #tpu.memory_space<vmem>>, vector<10x10x16xf32>,
    %80 = vector.shape_cast %74 : vector<64x16xf32> to vector<8x8x16xf32>
    %c1 = arith.constant 1 : index
    %c1_26 = arith.constant 1 : index
    %c0_27 = arith.constant 0 : index
    %81 = vector.load %arg16[%c1, %c1_26, %c0_27] : memref<10x10x16xf32, #tpu.memory_space<vmem>>, vector<8x8x16xf32>
    tpu.vector_store %arg16[%c1, %c1_26, %c0_27], %80 {strides = array<i32>} : memref<10x10x16xf32, #tpu.memory_space<vmem>>, vector<8x8x16xf32>,
    %c0_28 = arith.constant 0 : index
    %c0_29 = arith.constant 0 : index
    %c0_30 = arith.constant 0 : index
    %82 = vector.load %arg16[%c0_28, %c0_29, %c0_30] : memref<10x10x16xf32, #tpu.memory_space<vmem>>, vector<10x10x16xf32>
    %c0_31 = arith.constant 0 : index
    %c0_32 = arith.constant 0 : index
    %c0_33 = arith.constant 0 : index
    %c0_34 = arith.constant 0 : index
    %83 = vector.load %arg4[%c0_31, %c0_32, %c0_33, %c0_34] : memref<3x3x16x16xbf16, #tpu.memory_space<vmem>>, vector<3x3x16x16xbf16>
    %cst_35 = arith.constant 0.000000e+00 : f32
    %84 = vector.broadcast %cst_35 : f32 to vector<64x16xf32>
    %85 = vector.extract_strided_slice %82 {offsets = [0, 0, 0], sizes = [8, 8, 16], strides = [1, 1, 1]} : vector<10x10x16xf32> to vector<8x8x16xf32>
    %86 = vector.shape_cast %85 : vector<8x8x16xf32> to vector<64x16xf32>
    %87 = vector.extract_strided_slice %83 {offsets = [0, 0, 0, 0], sizes = [1, 1, 16, 16], strides = [1, 1, 1, 1]} : vector<3x3x16x16xbf16> to vector<1x1x16x16xbf16>
    %88 = vector.shape_cast %87 : vector<1x1x16x16xbf16> to vector<16x16xbf16>
    %89 = arith.truncf %86 : vector<64x16xf32> to vector<64x16xbf16>
    %cst_36 = arith.constant dense<0.000000e+00> : vector<64x16xf32>
    %90 = tpu.matmul %89, %88, %cst_36 {dimension_numbers = #tpu.dot_dimension_numbers<[1], [0], [0], [1], [0, 0, 1, 1], [], []>} : vector<64x16xbf16>, vector<16x16xbf16>, vector<64x16xf32> -> vector<64x16xf32>
    %91 = arith.addf %84, %90 : vector<64x16xf32>
    %92 = vector.extract_strided_slice %82 {offsets = [0, 1, 0], sizes = [8, 8, 16], strides = [1, 1, 1]} : vector<10x10x16xf32> to vector<8x8x16xf32>
    %93 = vector.shape_cast %92 : vector<8x8x16xf32> to vector<64x16xf32>
    %94 = vector.extract_strided_slice %83 {offsets = [0, 1, 0, 0], sizes = [1, 1, 16, 16], strides = [1, 1, 1, 1]} : vector<3x3x16x16xbf16> to vector<1x1x16x16xbf16>
    %95 = vector.shape_cast %94 : vector<1x1x16x16xbf16> to vector<16x16xbf16>
    %96 = arith.truncf %93 : vector<64x16xf32> to vector<64x16xbf16>
    %cst_37 = arith.constant dense<0.000000e+00> : vector<64x16xf32>
    %97 = tpu.matmul %96, %95, %cst_37 {dimension_numbers = #tpu.dot_dimension_numbers<[1], [0], [0], [1], [0, 0, 1, 1], [], []>} : vector<64x16xbf16>, vector<16x16xbf16>, vector<64x16xf32> -> vector<64x16xf32>
    %98 = arith.addf %91, %97 : vector<64x16xf32>
    %99 = vector.extract_strided_slice %82 {offsets = [0, 2, 0], sizes = [8, 8, 16], strides = [1, 1, 1]} : vector<10x10x16xf32> to vector<8x8x16xf32>
    %100 = vector.shape_cast %99 : vector<8x8x16xf32> to vector<64x16xf32>
    %101 = vector.extract_strided_slice %83 {offsets = [0, 2, 0, 0], sizes = [1, 1, 16, 16], strides = [1, 1, 1, 1]} : vector<3x3x16x16xbf16> to vector<1x1x16x16xbf16>
    %102 = vector.shape_cast %101 : vector<1x1x16x16xbf16> to vector<16x16xbf16>
    %103 = arith.truncf %100 : vector<64x16xf32> to vector<64x16xbf16>
    %cst_38 = arith.constant dense<0.000000e+00> : vector<64x16xf32>
    %104 = tpu.matmul %103, %102, %cst_38 {dimension_numbers = #tpu.dot_dimension_numbers<[1], [0], [0], [1], [0, 0, 1, 1], [], []>} : vector<64x16xbf16>, vector<16x16xbf16>, vector<64x16xf32> -> vector<64x16xf32>
    %105 = arith.addf %98, %104 : vector<64x16xf32>
    %106 = vector.extract_strided_slice %82 {offsets = [1, 0, 0], sizes = [8, 8, 16], strides = [1, 1, 1]} : vector<10x10x16xf32> to vector<8x8x16xf32>
    %107 = vector.shape_cast %106 : vector<8x8x16xf32> to vector<64x16xf32>
    %108 = vector.extract_strided_slice %83 {offsets = [1, 0, 0, 0], sizes = [1, 1, 16, 16], strides = [1, 1, 1, 1]} : vector<3x3x16x16xbf16> to vector<1x1x16x16xbf16>
    %109 = vector.shape_cast %108 : vector<1x1x16x16xbf16> to vector<16x16xbf16>
    %110 = arith.truncf %107 : vector<64x16xf32> to vector<64x16xbf16>
    %cst_39 = arith.constant dense<0.000000e+00> : vector<64x16xf32>
    %111 = tpu.matmul %110, %109, %cst_39 {dimension_numbers = #tpu.dot_dimension_numbers<[1], [0], [0], [1], [0, 0, 1, 1], [], []>} : vector<64x16xbf16>, vector<16x16xbf16>, vector<64x16xf32> -> vector<64x16xf32>
    %112 = arith.addf %105, %111 : vector<64x16xf32>
    %113 = vector.extract_strided_slice %82 {offsets = [1, 1, 0], sizes = [8, 8, 16], strides = [1, 1, 1]} : vector<10x10x16xf32> to vector<8x8x16xf32>
    %114 = vector.shape_cast %113 : vector<8x8x16xf32> to vector<64x16xf32>
    %115 = vector.extract_strided_slice %83 {offsets = [1, 1, 0, 0], sizes = [1, 1, 16, 16], strides = [1, 1, 1, 1]} : vector<3x3x16x16xbf16> to vector<1x1x16x16xbf16>
    %116 = vector.shape_cast %115 : vector<1x1x16x16xbf16> to vector<16x16xbf16>
    %117 = arith.truncf %114 : vector<64x16xf32> to vector<64x16xbf16>
    %cst_40 = arith.constant dense<0.000000e+00> : vector<64x16xf32>
    %118 = tpu.matmul %117, %116, %cst_40 {dimension_numbers = #tpu.dot_dimension_numbers<[1], [0], [0], [1], [0, 0, 1, 1], [], []>} : vector<64x16xbf16>, vector<16x16xbf16>, vector<64x16xf32> -> vector<64x16xf32>
    %119 = arith.addf %112, %118 : vector<64x16xf32>
    %120 = vector.extract_strided_slice %82 {offsets = [1, 2, 0], sizes = [8, 8, 16], strides = [1, 1, 1]} : vector<10x10x16xf32> to vector<8x8x16xf32>
    %121 = vector.shape_cast %120 : vector<8x8x16xf32> to vector<64x16xf32>
    %122 = vector.extract_strided_slice %83 {offsets = [1, 2, 0, 0], sizes = [1, 1, 16, 16], strides = [1, 1, 1, 1]} : vector<3x3x16x16xbf16> to vector<1x1x16x16xbf16>
    %123 = vector.shape_cast %122 : vector<1x1x16x16xbf16> to vector<16x16xbf16>
    %124 = arith.truncf %121 : vector<64x16xf32> to vector<64x16xbf16>
    %cst_41 = arith.constant dense<0.000000e+00> : vector<64x16xf32>
    %125 = tpu.matmul %124, %123, %cst_41 {dimension_numbers = #tpu.dot_dimension_numbers<[1], [0], [0], [1], [0, 0, 1, 1], [], []>} : vector<64x16xbf16>, vector<16x16xbf16>, vector<64x16xf32> -> vector<64x16xf32>
    %126 = arith.addf %119, %125 : vector<64x16xf32>
    %127 = vector.extract_strided_slice %82 {offsets = [2, 0, 0], sizes = [8, 8, 16], strides = [1, 1, 1]} : vector<10x10x16xf32> to vector<8x8x16xf32>
    %128 = vector.shape_cast %127 : vector<8x8x16xf32> to vector<64x16xf32>
    %129 = vector.extract_strided_slice %83 {offsets = [2, 0, 0, 0], sizes = [1, 1, 16, 16], strides = [1, 1, 1, 1]} : vector<3x3x16x16xbf16> to vector<1x1x16x16xbf16>
    %130 = vector.shape_cast %129 : vector<1x1x16x16xbf16> to vector<16x16xbf16>
    %131 = arith.truncf %128 : vector<64x16xf32> to vector<64x16xbf16>
    %cst_42 = arith.constant dense<0.000000e+00> : vector<64x16xf32>
    %132 = tpu.matmul %131, %130, %cst_42 {dimension_numbers = #tpu.dot_dimension_numbers<[1], [0], [0], [1], [0, 0, 1, 1], [], []>} : vector<64x16xbf16>, vector<16x16xbf16>, vector<64x16xf32> -> vector<64x16xf32>
    %133 = arith.addf %126, %132 : vector<64x16xf32>
    %134 = vector.extract_strided_slice %82 {offsets = [2, 1, 0], sizes = [8, 8, 16], strides = [1, 1, 1]} : vector<10x10x16xf32> to vector<8x8x16xf32>
    %135 = vector.shape_cast %134 : vector<8x8x16xf32> to vector<64x16xf32>
    %136 = vector.extract_strided_slice %83 {offsets = [2, 1, 0, 0], sizes = [1, 1, 16, 16], strides = [1, 1, 1, 1]} : vector<3x3x16x16xbf16> to vector<1x1x16x16xbf16>
    %137 = vector.shape_cast %136 : vector<1x1x16x16xbf16> to vector<16x16xbf16>
    %138 = arith.truncf %135 : vector<64x16xf32> to vector<64x16xbf16>
    %cst_43 = arith.constant dense<0.000000e+00> : vector<64x16xf32>
    %139 = tpu.matmul %138, %137, %cst_43 {dimension_numbers = #tpu.dot_dimension_numbers<[1], [0], [0], [1], [0, 0, 1, 1], [], []>} : vector<64x16xbf16>, vector<16x16xbf16>, vector<64x16xf32> -> vector<64x16xf32>
    %140 = arith.addf %133, %139 : vector<64x16xf32>
    %141 = vector.extract_strided_slice %82 {offsets = [2, 2, 0], sizes = [8, 8, 16], strides = [1, 1, 1]} : vector<10x10x16xf32> to vector<8x8x16xf32>
    %142 = vector.shape_cast %141 : vector<8x8x16xf32> to vector<64x16xf32>
    %143 = vector.extract_strided_slice %83 {offsets = [2, 2, 0, 0], sizes = [1, 1, 16, 16], strides = [1, 1, 1, 1]} : vector<3x3x16x16xbf16> to vector<1x1x16x16xbf16>
    %144 = vector.shape_cast %143 : vector<1x1x16x16xbf16> to vector<16x16xbf16>
    %145 = arith.truncf %142 : vector<64x16xf32> to vector<64x16xbf16>
    %cst_44 = arith.constant dense<0.000000e+00> : vector<64x16xf32>
    %146 = tpu.matmul %145, %144, %cst_44 {dimension_numbers = #tpu.dot_dimension_numbers<[1], [0], [0], [1], [0, 0, 1, 1], [], []>} : vector<64x16xbf16>, vector<16x16xbf16>, vector<64x16xf32> -> vector<64x16xf32>
    %147 = arith.addf %140, %146 : vector<64x16xf32>
    %c0_45 = arith.constant 0 : index
    %c0_46 = arith.constant 0 : index
    %148 = vector.load %arg5[%c0_45, %c0_46] : memref<1x16xf32, #tpu.memory_space<vmem>>, vector<1x16xf32>
    %149 = vector.broadcast %148 : vector<1x16xf32> to vector<64x16xf32>
    %150 = arith.addf %147, %149 : vector<64x16xf32>
    %cst_47 = arith.constant dense<0.000000e+00> : vector<16xf32>
    %151 = vector.multi_reduction <add>, %150, %cst_47 [0] : vector<64x16xf32> to vector<16xf32>
    %152 = vector.shape_cast %151 : vector<16xf32> to vector<1x16xf32>
    %cst_48 = arith.constant 6.400000e+01 : f32
    %153 = vector.broadcast %cst_48 : f32 to vector<1x16xf32>
    %154 = arith.divf %152, %153 : vector<1x16xf32>
    %c0_49 = arith.constant 0 : index
    %c0_50 = arith.constant 0 : index
    %155 = vector.load %arg6[%c0_49, %c0_50] : memref<16x2xbf16, #tpu.memory_space<vmem>>, vector<16x2xbf16>
    %156 = arith.truncf %154 : vector<1x16xf32> to vector<1x16xbf16>
    %cst_51 = arith.constant dense<0.000000e+00> : vector<1x2xf32>
    %157 = tpu.matmul %156, %155, %cst_51 {dimension_numbers = #tpu.dot_dimension_numbers<[1], [0], [0], [1], [0, 0, 1, 1], [], []>} : vector<1x16xbf16>, vector<16x2xbf16>, vector<1x2xf32> -> vector<1x2xf32>
    %c0_52 = arith.constant 0 : index
    %c0_53 = arith.constant 0 : index
    %158 = vector.load %arg7[%c0_52, %c0_53] : memref<1x2xf32, #tpu.memory_space<vmem>>, vector<1x2xf32>
    %159 = arith.addf %157, %158 : vector<1x2xf32>
    %cst_54 = arith.constant 0.000000e+00 : f32
    %160 = vector.broadcast %cst_54 : f32 to vector<1x2xf32>
    %161 = arith.maximumf %159, %160 : vector<1x2xf32>
    %c0_55 = arith.constant 0 : index
    %c0_56 = arith.constant 0 : index
    %162 = vector.load %arg8[%c0_55, %c0_56] : memref<2x16xbf16, #tpu.memory_space<vmem>>, vector<2x16xbf16>
    %163 = arith.truncf %161 : vector<1x2xf32> to vector<1x2xbf16>
    %cst_57 = arith.constant dense<0.000000e+00> : vector<1x16xf32>
    %164 = tpu.matmul %163, %162, %cst_57 {dimension_numbers = #tpu.dot_dimension_numbers<[1], [0], [0], [1], [0, 0, 1, 1], [], []>} : vector<1x2xbf16>, vector<2x16xbf16>, vector<1x16xf32> -> vector<1x16xf32>
    %c0_58 = arith.constant 0 : index
    %c0_59 = arith.constant 0 : index
    %165 = vector.load %arg9[%c0_58, %c0_59] : memref<1x16xf32, #tpu.memory_space<vmem>>, vector<1x16xf32>
    %166 = arith.addf %164, %165 : vector<1x16xf32>
    %167 = arith.negf %166 : vector<1x16xf32>
    %168 = math.exp %167 : vector<1x16xf32>
    %cst_60 = arith.constant 1.000000e+00 : f32
    %169 = vector.broadcast %cst_60 : f32 to vector<1x16xf32>
    %170 = arith.addf %169, %168 : vector<1x16xf32>
    %171 = arith.divf %169, %170 : vector<1x16xf32>
    %172 = vector.broadcast %171 : vector<1x16xf32> to vector<64x16xf32>
    %173 = arith.mulf %150, %172 : vector<64x16xf32>
    %c0_61 = arith.constant 0 : index
    %c0_62 = arith.constant 0 : index
    %174 = vector.load %arg10[%c0_61, %c0_62] : memref<16x2xbf16, #tpu.memory_space<vmem>>, vector<16x2xbf16>
    %175 = arith.truncf %173 : vector<64x16xf32> to vector<64x16xbf16>
    %cst_63 = arith.constant dense<0.000000e+00> : vector<64x2xf32>
    %176 = tpu.matmul %175, %174, %cst_63 {dimension_numbers = #tpu.dot_dimension_numbers<[1], [0], [0], [1], [0, 0, 1, 1], [], []>} : vector<64x16xbf16>, vector<16x2xbf16>, vector<64x2xf32> -> vector<64x2xf32>
    %c0_64 = arith.constant 0 : index
    %c0_65 = arith.constant 0 : index
    %177 = vector.load %arg11[%c0_64, %c0_65] : memref<1x2xf32, #tpu.memory_space<vmem>>, vector<1x2xf32>
    %178 = vector.broadcast %177 : vector<1x2xf32> to vector<64x2xf32>
    %179 = arith.addf %176, %178 : vector<64x2xf32>
    %cst_66 = arith.constant 0.000000e+00 : f32
    %180 = vector.broadcast %cst_66 : f32 to vector<64x2xf32>
    %181 = arith.maximumf %179, %180 : vector<64x2xf32>
    %c0_67 = arith.constant 0 : index
    %c0_68 = arith.constant 0 : index
    %182 = vector.load %arg12[%c0_67, %c0_68] : memref<1x2xf32, #tpu.memory_space<vmem>>, vector<1x2xf32>
    %183 = vector.broadcast %182 : vector<1x2xf32> to vector<64x2xf32>
    %184 = arith.mulf %181, %183 : vector<64x2xf32>
    %cst_69 = arith.constant dense<0.000000e+00> : vector<64xf32>
    %185 = vector.multi_reduction <add>, %184, %cst_69 [1] : vector<64x2xf32> to vector<64xf32>
    %186 = vector.shape_cast %185 : vector<64xf32> to vector<64x1xf32>
    %c0_70 = arith.constant 0 : index
    %c0_71 = arith.constant 0 : index
    %187 = vector.load %arg13[%c0_70, %c0_71] : memref<1x1xf32, #tpu.memory_space<vmem>>, vector<1x1xf32>
    %188 = vector.broadcast %187 : vector<1x1xf32> to vector<64x1xf32>
    %189 = arith.addf %186, %188 : vector<64x1xf32>
    %190 = arith.negf %189 : vector<64x1xf32>
    %191 = math.exp %190 : vector<64x1xf32>
    %cst_72 = arith.constant 1.000000e+00 : f32
    %192 = vector.broadcast %cst_72 : f32 to vector<64x1xf32>
    %193 = arith.addf %192, %191 : vector<64x1xf32>
    %194 = arith.divf %192, %193 : vector<64x1xf32>
    %195 = vector.broadcast %194 : vector<64x1xf32> to vector<64x16xf32>
    %196 = arith.mulf %173, %195 : vector<64x16xf32>
    %197 = arith.addf %196, %3 : vector<64x16xf32>
    %c0_73 = arith.constant 0 : index
    %c0_74 = arith.constant 0 : index
    %c0_75 = arith.constant 0 : index
    %198 = vector.load %arg15[%c0_73, %c0_74, %c0_75] : memref<1x64x16xf32, #tpu.memory_space<vmem>>, vector<1x64x16xf32>
    %199 = vector.shape_cast %198 : vector<1x64x16xf32> to vector<64x16xf32>
    %200 = vector.shape_cast %197 : vector<64x16xf32> to vector<1x64x16xf32>
    tpu.vector_store %arg15[%c0_73, %c0_74, %c0_75], %200 {strides = array<i32>} : memref<1x64x16xf32, #tpu.memory_space<vmem>>, vector<1x64x16xf32>,
    return
  }
  func.func @transform_0(%arg0: i32) -> (i32, i32, i32, i32) {
    %c0_i32 = arith.constant 0 : i32
    %c0_i32_0 = arith.constant 0 : i32
    %c0_i32_1 = arith.constant 0 : i32
    %c0_i32_2 = arith.constant 0 : i32
    return %arg0, %c0_i32, %c0_i32_0, %c0_i32_1 : i32, i32, i32, i32
  }
  func.func @transform_1(%arg0: i32) -> (i32, i32, i32, i32) {
    %c0_i32 = arith.constant 0 : i32
    %c0_i32_0 = arith.constant 0 : i32
    %c0_i32_1 = arith.constant 0 : i32
    %c0_i32_2 = arith.constant 0 : i32
    %c0_i32_3 = arith.constant 0 : i32
    return %c0_i32, %c0_i32_0, %c0_i32_1, %c0_i32_2 : i32, i32, i32, i32
  }
  func.func @transform_2(%arg0: i32) -> (i32, i32) {
    %c0_i32 = arith.constant 0 : i32
    %c0_i32_0 = arith.constant 0 : i32
    %c0_i32_1 = arith.constant 0 : i32
    return %c0_i32, %c0_i32_0 : i32, i32
  }
  func.func @transform_3(%arg0: i32) -> (i32, i32, i32, i32) {
    %c0_i32 = arith.constant 0 : i32
    %c0_i32_0 = arith.constant 0 : i32
    %c0_i32_1 = arith.constant 0 : i32
    %c0_i32_2 = arith.constant 0 : i32
    %c0_i32_3 = arith.constant 0 : i32
    return %c0_i32, %c0_i32_0, %c0_i32_1, %c0_i32_2 : i32, i32, i32, i32
  }
  func.func @transform_4(%arg0: i32) -> (i32, i32) {
    %c0_i32 = arith.constant 0 : i32
    %c0_i32_0 = arith.constant 0 : i32
    %c0_i32_1 = arith.constant 0 : i32
    return %c0_i32, %c0_i32_0 : i32, i32
  }
  func.func @transform_5(%arg0: i32) -> (i32, i32) {
    %c0_i32 = arith.constant 0 : i32
    %c0_i32_0 = arith.constant 0 : i32
    %c0_i32_1 = arith.constant 0 : i32
    return %c0_i32, %c0_i32_0 : i32, i32
  }
  func.func @transform_6(%arg0: i32) -> (i32, i32) {
    %c0_i32 = arith.constant 0 : i32
    %c0_i32_0 = arith.constant 0 : i32
    %c0_i32_1 = arith.constant 0 : i32
    return %c0_i32, %c0_i32_0 : i32, i32
  }
  func.func @transform_7(%arg0: i32) -> (i32, i32) {
    %c0_i32 = arith.constant 0 : i32
    %c0_i32_0 = arith.constant 0 : i32
    %c0_i32_1 = arith.constant 0 : i32
    return %c0_i32, %c0_i32_0 : i32, i32
  }
  func.func @transform_8(%arg0: i32) -> (i32, i32) {
    %c0_i32 = arith.constant 0 : i32
    %c0_i32_0 = arith.constant 0 : i32
    %c0_i32_1 = arith.constant 0 : i32
    return %c0_i32, %c0_i32_0 : i32, i32
  }
  func.func @transform_9(%arg0: i32) -> (i32, i32) {
    %c0_i32 = arith.constant 0 : i32
    %c0_i32_0 = arith.constant 0 : i32
    %c0_i32_1 = arith.constant 0 : i32
    return %c0_i32, %c0_i32_0 : i32, i32
  }
  func.func @transform_10(%arg0: i32) -> (i32, i32) {
    %c0_i32 = arith.constant 0 : i32
    %c0_i32_0 = arith.constant 0 : i32
    %c0_i32_1 = arith.constant 0 : i32
    return %c0_i32, %c0_i32_0 : i32, i32
  }
  func.func @transform_11(%arg0: i32) -> (i32, i32) {
    %c0_i32 = arith.constant 0 : i32
    %c0_i32_0 = arith.constant 0 : i32
    %c0_i32_1 = arith.constant 0 : i32
    return %c0_i32, %c0_i32_0 : i32, i32
  }
  func.func @transform_12(%arg0: i32) -> (i32, i32) {
    %c0_i32 = arith.constant 0 : i32
    %c0_i32_0 = arith.constant 0 : i32
    %c0_i32_1 = arith.constant 0 : i32
    return %c0_i32, %c0_i32_0 : i32, i32
  }
  func.func @transform_13(%arg0: i32) -> (i32, i32, i32) {
    %c0_i32 = arith.constant 0 : i32
    %c0_i32_0 = arith.constant 0 : i32
    %c0_i32_1 = arith.constant 0 : i32
    return %arg0, %c0_i32, %c0_i32_0 : i32, i32, i32
  }
  func.func @transform_14(%arg0: i32) -> (i32, i32, i32) {
    %c0_i32 = arith.constant 0 : i32
    %c0_i32_0 = arith.constant 0 : i32
    %c0_i32_1 = arith.constant 0 : i32
    return %arg0, %c0_i32, %c0_i32_0 : i32, i32, i32
  }
}

module attributes {stable_mosaic.version = 11 : i64} {
  func.func @_lam_stage_kernel(%arg0: i32, %arg1: memref<1x64x16xf32, #tpu.memory_space<vmem>>, %arg2: memref<1x64x16xf32, #tpu.memory_space<vmem>>, %arg3: memref<1x64x16xf32, #tpu.memory_space<vmem>>, %arg4: memref<48x144xbf16, #tpu.memory_space<vmem>>, %arg5: memref<1x144xf32, #tpu.memory_space<vmem>>, %arg6: memref<3x3x144xf32, #tpu.memory_space<vmem>>, %arg7: memref<1x1x144xf32, #tpu.memory_space<vmem>>, %arg8: memref<1x1xf32, #tpu.memory_space<vmem>>, %arg9: memref<48x48xbf16, #tpu.memory_space<vmem>>, %arg10: memref<1x48xf32, #tpu.memory_space<vmem>>, %arg11: memref<48x16xbf16, #tpu.memory_space<vmem>>, %arg12: memref<16x16xbf16, #tpu.memory_space<vmem>>, %arg13: memref<1x16xf32, #tpu.memory_space<vmem>>, %arg14: memref<1x64x16xf32, #tpu.memory_space<vmem>>, %arg15: memref<10x10x144xf32, #tpu.memory_space<vmem>>) attributes {dimension_semantics = [#tpu.dimension_semantics<parallel>], iteration_bounds = array<i64: 2>, scalar_prefetch = 0 : i64, scratch_operands = 1 : i64, tpu.core_type = #tpu.core_type<tc>, window_params = [{transform_indices = @transform_0, window_bounds = array<i64: 1, 64, 16>}, {transform_indices = @transform_1, window_bounds = array<i64: 1, 64, 16>}, {transform_indices = @transform_2, window_bounds = array<i64: 1, 64, 16>}, {pipeline_mode = #tpu.pipeline_mode<synchronous>, transform_indices = @transform_3, window_bounds = array<i64: 48, 144>}, {pipeline_mode = #tpu.pipeline_mode<synchronous>, transform_indices = @transform_4, window_bounds = array<i64: 1, 144>}, {pipeline_mode = #tpu.pipeline_mode<synchronous>, transform_indices = @transform_5, window_bounds = array<i64: 3, 3, 144>}, {pipeline_mode = #tpu.pipeline_mode<synchronous>, transform_indices = @transform_6, window_bounds = array<i64: 1, 1, 144>}, {pipeline_mode = #tpu.pipeline_mode<synchronous>, transform_indices = @transform_7, window_bounds = array<i64: 1, 1>}, {pipeline_mode = #tpu.pipeline_mode<synchronous>, transform_indices = @transform_8, window_bounds = array<i64: 48, 48>}, {pipeline_mode = #tpu.pipeline_mode<synchronous>, transform_indices = @transform_9, window_bounds = array<i64: 1, 48>}, {pipeline_mode = #tpu.pipeline_mode<synchronous>, transform_indices = @transform_10, window_bounds = array<i64: 48, 16>}, {pipeline_mode = #tpu.pipeline_mode<synchronous>, transform_indices = @transform_11, window_bounds = array<i64: 16, 16>}, {pipeline_mode = #tpu.pipeline_mode<synchronous>, transform_indices = @transform_12, window_bounds = array<i64: 1, 16>}, {transform_indices = @transform_13, window_bounds = array<i64: 1, 64, 16>}]} {
    %c0 = arith.constant 0 : index
    %c0_0 = arith.constant 0 : index
    %c0_1 = arith.constant 0 : index
    %0 = vector.load %arg1[%c0, %c0_0, %c0_1] : memref<1x64x16xf32, #tpu.memory_space<vmem>>, vector<1x64x16xf32>
    %1 = vector.shape_cast %0 : vector<1x64x16xf32> to vector<64x16xf32>
    %c0_2 = arith.constant 0 : index
    %c0_3 = arith.constant 0 : index
    %c0_4 = arith.constant 0 : index
    %2 = vector.load %arg2[%c0_2, %c0_3, %c0_4] : memref<1x64x16xf32, #tpu.memory_space<vmem>>, vector<1x64x16xf32>
    %3 = vector.shape_cast %2 : vector<1x64x16xf32> to vector<64x16xf32>
    %c0_5 = arith.constant 0 : index
    %c0_6 = arith.constant 0 : index
    %c0_7 = arith.constant 0 : index
    %4 = vector.load %arg3[%c0_5, %c0_6, %c0_7] : memref<1x64x16xf32, #tpu.memory_space<vmem>>, vector<1x64x16xf32>
    %5 = vector.shape_cast %4 : vector<1x64x16xf32> to vector<64x16xf32>
    %6 = tpu.concatenate %1, %3, %5 in 1 : vector<64x16xf32>, vector<64x16xf32>, vector<64x16xf32> -> vector<64x48xf32>
    %c0_8 = arith.constant 0 : index
    %c0_9 = arith.constant 0 : index
    %7 = vector.load %arg4[%c0_8, %c0_9] : memref<48x144xbf16, #tpu.memory_space<vmem>>, vector<48x144xbf16>
    %8 = arith.truncf %6 : vector<64x48xf32> to vector<64x48xbf16>
    %cst = arith.constant dense<0.000000e+00> : vector<64x144xf32>
    %9 = tpu.matmul %8, %7, %cst {dimension_numbers = #tpu.dot_dimension_numbers<[1], [0], [0], [1], [0, 0, 1, 1], [], []>} : vector<64x48xbf16>, vector<48x144xbf16>, vector<64x144xf32> -> vector<64x144xf32>
    %c0_10 = arith.constant 0 : index
    %c0_11 = arith.constant 0 : index
    %10 = vector.load %arg5[%c0_10, %c0_11] : memref<1x144xf32, #tpu.memory_space<vmem>>, vector<1x144xf32>
    %11 = vector.broadcast %10 : vector<1x144xf32> to vector<64x144xf32>
    %12 = arith.addf %9, %11 : vector<64x144xf32>
    %cst_12 = arith.constant 0.000000e+00 : f32
    %13 = vector.broadcast %cst_12 : f32 to vector<10x10x144xf32>
    %c0_13 = arith.constant 0 : index
    %c0_14 = arith.constant 0 : index
    %c0_15 = arith.constant 0 : index
    %14 = vector.load %arg15[%c0_13, %c0_14, %c0_15] : memref<10x10x144xf32, #tpu.memory_space<vmem>>, vector<10x10x144xf32>
    tpu.vector_store %arg15[%c0_13, %c0_14, %c0_15], %13 {strides = array<i32>} : memref<10x10x144xf32, #tpu.memory_space<vmem>>, vector<10x10x144xf32>,
    %15 = vector.shape_cast %12 : vector<64x144xf32> to vector<8x8x144xf32>
    %c1 = arith.constant 1 : index
    %c1_16 = arith.constant 1 : index
    %c0_17 = arith.constant 0 : index
    %16 = vector.load %arg15[%c1, %c1_16, %c0_17] : memref<10x10x144xf32, #tpu.memory_space<vmem>>, vector<8x8x144xf32>
    tpu.vector_store %arg15[%c1, %c1_16, %c0_17], %15 {strides = array<i32>} : memref<10x10x144xf32, #tpu.memory_space<vmem>>, vector<8x8x144xf32>,
    %c0_18 = arith.constant 0 : index
    %c0_19 = arith.constant 0 : index
    %c0_20 = arith.constant 0 : index
    %17 = vector.load %arg15[%c0_18, %c0_19, %c0_20] : memref<10x10x144xf32, #tpu.memory_space<vmem>>, vector<10x10x144xf32>
    %c0_21 = arith.constant 0 : index
    %c0_22 = arith.constant 0 : index
    %c0_23 = arith.constant 0 : index
    %18 = vector.load %arg6[%c0_21, %c0_22, %c0_23] : memref<3x3x144xf32, #tpu.memory_space<vmem>>, vector<3x3x144xf32>
    %cst_24 = arith.constant 0.000000e+00 : f32
    %19 = vector.broadcast %cst_24 : f32 to vector<8x8x144xf32>
    %20 = vector.extract_strided_slice %17 {offsets = [0, 0, 0], sizes = [8, 8, 144], strides = [1, 1, 1]} : vector<10x10x144xf32> to vector<8x8x144xf32>
    %21 = vector.extract_strided_slice %18 {offsets = [0, 0, 0], sizes = [1, 1, 144], strides = [1, 1, 1]} : vector<3x3x144xf32> to vector<1x1x144xf32>
    %22 = vector.broadcast %21 : vector<1x1x144xf32> to vector<8x8x144xf32>
    %23 = arith.mulf %20, %22 : vector<8x8x144xf32>
    %24 = arith.addf %19, %23 : vector<8x8x144xf32>
    %25 = vector.extract_strided_slice %17 {offsets = [0, 1, 0], sizes = [8, 8, 144], strides = [1, 1, 1]} : vector<10x10x144xf32> to vector<8x8x144xf32>
    %26 = vector.extract_strided_slice %18 {offsets = [0, 1, 0], sizes = [1, 1, 144], strides = [1, 1, 1]} : vector<3x3x144xf32> to vector<1x1x144xf32>
    %27 = vector.broadcast %26 : vector<1x1x144xf32> to vector<8x8x144xf32>
    %28 = arith.mulf %25, %27 : vector<8x8x144xf32>
    %29 = arith.addf %24, %28 : vector<8x8x144xf32>
    %30 = vector.extract_strided_slice %17 {offsets = [0, 2, 0], sizes = [8, 8, 144], strides = [1, 1, 1]} : vector<10x10x144xf32> to vector<8x8x144xf32>
    %31 = vector.extract_strided_slice %18 {offsets = [0, 2, 0], sizes = [1, 1, 144], strides = [1, 1, 1]} : vector<3x3x144xf32> to vector<1x1x144xf32>
    %32 = vector.broadcast %31 : vector<1x1x144xf32> to vector<8x8x144xf32>
    %33 = arith.mulf %30, %32 : vector<8x8x144xf32>
    %34 = arith.addf %29, %33 : vector<8x8x144xf32>
    %35 = vector.extract_strided_slice %17 {offsets = [1, 0, 0], sizes = [8, 8, 144], strides = [1, 1, 1]} : vector<10x10x144xf32> to vector<8x8x144xf32>
    %36 = vector.extract_strided_slice %18 {offsets = [1, 0, 0], sizes = [1, 1, 144], strides = [1, 1, 1]} : vector<3x3x144xf32> to vector<1x1x144xf32>
    %37 = vector.broadcast %36 : vector<1x1x144xf32> to vector<8x8x144xf32>
    %38 = arith.mulf %35, %37 : vector<8x8x144xf32>
    %39 = arith.addf %34, %38 : vector<8x8x144xf32>
    %40 = vector.extract_strided_slice %17 {offsets = [1, 1, 0], sizes = [8, 8, 144], strides = [1, 1, 1]} : vector<10x10x144xf32> to vector<8x8x144xf32>
    %41 = vector.extract_strided_slice %18 {offsets = [1, 1, 0], sizes = [1, 1, 144], strides = [1, 1, 1]} : vector<3x3x144xf32> to vector<1x1x144xf32>
    %42 = vector.broadcast %41 : vector<1x1x144xf32> to vector<8x8x144xf32>
    %43 = arith.mulf %40, %42 : vector<8x8x144xf32>
    %44 = arith.addf %39, %43 : vector<8x8x144xf32>
    %45 = vector.extract_strided_slice %17 {offsets = [1, 2, 0], sizes = [8, 8, 144], strides = [1, 1, 1]} : vector<10x10x144xf32> to vector<8x8x144xf32>
    %46 = vector.extract_strided_slice %18 {offsets = [1, 2, 0], sizes = [1, 1, 144], strides = [1, 1, 1]} : vector<3x3x144xf32> to vector<1x1x144xf32>
    %47 = vector.broadcast %46 : vector<1x1x144xf32> to vector<8x8x144xf32>
    %48 = arith.mulf %45, %47 : vector<8x8x144xf32>
    %49 = arith.addf %44, %48 : vector<8x8x144xf32>
    %50 = vector.extract_strided_slice %17 {offsets = [2, 0, 0], sizes = [8, 8, 144], strides = [1, 1, 1]} : vector<10x10x144xf32> to vector<8x8x144xf32>
    %51 = vector.extract_strided_slice %18 {offsets = [2, 0, 0], sizes = [1, 1, 144], strides = [1, 1, 1]} : vector<3x3x144xf32> to vector<1x1x144xf32>
    %52 = vector.broadcast %51 : vector<1x1x144xf32> to vector<8x8x144xf32>
    %53 = arith.mulf %50, %52 : vector<8x8x144xf32>
    %54 = arith.addf %49, %53 : vector<8x8x144xf32>
    %55 = vector.extract_strided_slice %17 {offsets = [2, 1, 0], sizes = [8, 8, 144], strides = [1, 1, 1]} : vector<10x10x144xf32> to vector<8x8x144xf32>
    %56 = vector.extract_strided_slice %18 {offsets = [2, 1, 0], sizes = [1, 1, 144], strides = [1, 1, 1]} : vector<3x3x144xf32> to vector<1x1x144xf32>
    %57 = vector.broadcast %56 : vector<1x1x144xf32> to vector<8x8x144xf32>
    %58 = arith.mulf %55, %57 : vector<8x8x144xf32>
    %59 = arith.addf %54, %58 : vector<8x8x144xf32>
    %60 = vector.extract_strided_slice %17 {offsets = [2, 2, 0], sizes = [8, 8, 144], strides = [1, 1, 1]} : vector<10x10x144xf32> to vector<8x8x144xf32>
    %61 = vector.extract_strided_slice %18 {offsets = [2, 2, 0], sizes = [1, 1, 144], strides = [1, 1, 1]} : vector<3x3x144xf32> to vector<1x1x144xf32>
    %62 = vector.broadcast %61 : vector<1x1x144xf32> to vector<8x8x144xf32>
    %63 = arith.mulf %60, %62 : vector<8x8x144xf32>
    %64 = arith.addf %59, %63 : vector<8x8x144xf32>
    %c0_25 = arith.constant 0 : index
    %c0_26 = arith.constant 0 : index
    %c0_27 = arith.constant 0 : index
    %65 = vector.load %arg7[%c0_25, %c0_26, %c0_27] : memref<1x1x144xf32, #tpu.memory_space<vmem>>, vector<1x1x144xf32>
    %66 = vector.broadcast %65 : vector<1x1x144xf32> to vector<8x8x144xf32>
    %67 = arith.addf %64, %66 : vector<8x8x144xf32>
    %68 = vector.shape_cast %67 : vector<8x8x144xf32> to vector<64x144xf32>
    %69 = vector.extract_strided_slice %68 {offsets = [0, 0], sizes = [64, 16], strides = [1, 1]} : vector<64x144xf32> to vector<64x16xf32>
    %70 = vector.extract_strided_slice %68 {offsets = [0, 16], sizes = [64, 16], strides = [1, 1]} : vector<64x144xf32> to vector<64x16xf32>
    %71 = vector.extract_strided_slice %68 {offsets = [0, 32], sizes = [64, 16], strides = [1, 1]} : vector<64x144xf32> to vector<64x16xf32>
    %72 = vector.extract_strided_slice %68 {offsets = [0, 48], sizes = [64, 16], strides = [1, 1]} : vector<64x144xf32> to vector<64x16xf32>
    %73 = vector.extract_strided_slice %68 {offsets = [0, 64], sizes = [64, 16], strides = [1, 1]} : vector<64x144xf32> to vector<64x16xf32>
    %74 = vector.extract_strided_slice %68 {offsets = [0, 80], sizes = [64, 16], strides = [1, 1]} : vector<64x144xf32> to vector<64x16xf32>
    %75 = vector.extract_strided_slice %68 {offsets = [0, 96], sizes = [64, 16], strides = [1, 1]} : vector<64x144xf32> to vector<64x16xf32>
    %76 = vector.extract_strided_slice %68 {offsets = [0, 112], sizes = [64, 16], strides = [1, 1]} : vector<64x144xf32> to vector<64x16xf32>
    %77 = vector.extract_strided_slice %68 {offsets = [0, 128], sizes = [64, 16], strides = [1, 1]} : vector<64x144xf32> to vector<64x16xf32>
    %78 = arith.mulf %69, %69 : vector<64x16xf32>
    %79 = vector.shape_cast %78 : vector<64x16xf32> to vector<1x64x16xf32>
    %cst_28 = arith.constant dense<0.000000e+00> : vector<1xf32>
    %80 = vector.multi_reduction <add>, %79, %cst_28 [1, 2] : vector<1x64x16xf32> to vector<1xf32>
    %81 = vector.shape_cast %80 : vector<1xf32> to vector<1x1x1xf32>
    %82 = vector.extract %81[0, 0, 0] : f32 from vector<1x1x1xf32>
    %83 = vector.broadcast %82 : f32 to vector<1x1xf32>
    %cst_29 = arith.constant 1.000000e-24 : f32
    %84 = vector.broadcast %cst_29 : f32 to vector<1x1xf32>
    %85 = arith.maximumf %83, %84 : vector<1x1xf32>
    %86 = math.rsqrt %85 : vector<1x1xf32>
    %87 = arith.mulf %70, %70 : vector<64x16xf32>
    %88 = vector.shape_cast %87 : vector<64x16xf32> to vector<1x64x16xf32>
    %cst_30 = arith.constant dense<0.000000e+00> : vector<1xf32>
    %89 = vector.multi_reduction <add>, %88, %cst_30 [1, 2] : vector<1x64x16xf32> to vector<1xf32>
    %90 = vector.shape_cast %89 : vector<1xf32> to vector<1x1x1xf32>
    %91 = vector.extract %90[0, 0, 0] : f32 from vector<1x1x1xf32>
    %92 = vector.broadcast %91 : f32 to vector<1x1xf32>
    %cst_31 = arith.constant 1.000000e-24 : f32
    %93 = vector.broadcast %cst_31 : f32 to vector<1x1xf32>
    %94 = arith.maximumf %92, %93 : vector<1x1xf32>
    %95 = math.rsqrt %94 : vector<1x1xf32>
    %96 = arith.mulf %71, %71 : vector<64x16xf32>
    %97 = vector.shape_cast %96 : vector<64x16xf32> to vector<1x64x16xf32>
    %cst_32 = arith.constant dense<0.000000e+00> : vector<1xf32>
    %98 = vector.multi_reduction <add>, %97, %cst_32 [1, 2] : vector<1x64x16xf32> to vector<1xf32>
    %99 = vector.shape_cast %98 : vector<1xf32> to vector<1x1x1xf32>
    %100 = vector.extract %99[0, 0, 0] : f32 from vector<1x1x1xf32>
    %101 = vector.broadcast %100 : f32 to vector<1x1xf32>
    %cst_33 = arith.constant 1.000000e-24 : f32
    %102 = vector.broadcast %cst_33 : f32 to vector<1x1xf32>
    %103 = arith.maximumf %101, %102 : vector<1x1xf32>
    %104 = math.rsqrt %103 : vector<1x1xf32>
    %105 = arith.mulf %72, %72 : vector<64x16xf32>
    %106 = vector.shape_cast %105 : vector<64x16xf32> to vector<1x64x16xf32>
    %cst_34 = arith.constant dense<0.000000e+00> : vector<1xf32>
    %107 = vector.multi_reduction <add>, %106, %cst_34 [1, 2] : vector<1x64x16xf32> to vector<1xf32>
    %108 = vector.shape_cast %107 : vector<1xf32> to vector<1x1x1xf32>
    %109 = vector.extract %108[0, 0, 0] : f32 from vector<1x1x1xf32>
    %110 = vector.broadcast %109 : f32 to vector<1x1xf32>
    %cst_35 = arith.constant 1.000000e-24 : f32
    %111 = vector.broadcast %cst_35 : f32 to vector<1x1xf32>
    %112 = arith.maximumf %110, %111 : vector<1x1xf32>
    %113 = math.rsqrt %112 : vector<1x1xf32>
    %114 = arith.mulf %73, %73 : vector<64x16xf32>
    %115 = vector.shape_cast %114 : vector<64x16xf32> to vector<1x64x16xf32>
    %cst_36 = arith.constant dense<0.000000e+00> : vector<1xf32>
    %116 = vector.multi_reduction <add>, %115, %cst_36 [1, 2] : vector<1x64x16xf32> to vector<1xf32>
    %117 = vector.shape_cast %116 : vector<1xf32> to vector<1x1x1xf32>
    %118 = vector.extract %117[0, 0, 0] : f32 from vector<1x1x1xf32>
    %119 = vector.broadcast %118 : f32 to vector<1x1xf32>
    %cst_37 = arith.constant 1.000000e-24 : f32
    %120 = vector.broadcast %cst_37 : f32 to vector<1x1xf32>
    %121 = arith.maximumf %119, %120 : vector<1x1xf32>
    %122 = math.rsqrt %121 : vector<1x1xf32>
    %123 = arith.mulf %74, %74 : vector<64x16xf32>
    %124 = vector.shape_cast %123 : vector<64x16xf32> to vector<1x64x16xf32>
    %cst_38 = arith.constant dense<0.000000e+00> : vector<1xf32>
    %125 = vector.multi_reduction <add>, %124, %cst_38 [1, 2] : vector<1x64x16xf32> to vector<1xf32>
    %126 = vector.shape_cast %125 : vector<1xf32> to vector<1x1x1xf32>
    %127 = vector.extract %126[0, 0, 0] : f32 from vector<1x1x1xf32>
    %128 = vector.broadcast %127 : f32 to vector<1x1xf32>
    %cst_39 = arith.constant 1.000000e-24 : f32
    %129 = vector.broadcast %cst_39 : f32 to vector<1x1xf32>
    %130 = arith.maximumf %128, %129 : vector<1x1xf32>
    %131 = math.rsqrt %130 : vector<1x1xf32>
    %c0_40 = arith.constant 0 : index
    %c0_41 = arith.constant 0 : index
    %132 = vector.load %arg8[%c0_40, %c0_41] : memref<1x1xf32, #tpu.memory_space<vmem>>, vector<1x1xf32>
    %133 = vector.extract %132[0, 0] : f32 from vector<1x1xf32>
    %134 = arith.mulf %69, %72 : vector<64x16xf32>
    %135 = vector.shape_cast %134 : vector<64x16xf32> to vector<1x64x16xf32>
    %cst_42 = arith.constant dense<0.000000e+00> : vector<1xf32>
    %136 = vector.multi_reduction <add>, %135, %cst_42 [1, 2] : vector<1x64x16xf32> to vector<1xf32>
    %137 = vector.shape_cast %136 : vector<1xf32> to vector<1x1x1xf32>
    %138 = vector.extract %137[0, 0, 0] : f32 from vector<1x1x1xf32>
    %139 = vector.broadcast %138 : f32 to vector<1x1xf32>
    %140 = arith.mulf %86, %113 : vector<1x1xf32>
    %141 = arith.mulf %139, %140 : vector<1x1xf32>
    %142 = arith.mulf %69, %73 : vector<64x16xf32>
    %143 = vector.shape_cast %142 : vector<64x16xf32> to vector<1x64x16xf32>
    %cst_43 = arith.constant dense<0.000000e+00> : vector<1xf32>
    %144 = vector.multi_reduction <add>, %143, %cst_43 [1, 2] : vector<1x64x16xf32> to vector<1xf32>
    %145 = vector.shape_cast %144 : vector<1xf32> to vector<1x1x1xf32>
    %146 = vector.extract %145[0, 0, 0] : f32 from vector<1x1x1xf32>
    %147 = vector.broadcast %146 : f32 to vector<1x1xf32>
    %148 = arith.mulf %86, %122 : vector<1x1xf32>
    %149 = arith.mulf %147, %148 : vector<1x1xf32>
    %150 = arith.mulf %69, %74 : vector<64x16xf32>
    %151 = vector.shape_cast %150 : vector<64x16xf32> to vector<1x64x16xf32>
    %cst_44 = arith.constant dense<0.000000e+00> : vector<1xf32>
    %152 = vector.multi_reduction <add>, %151, %cst_44 [1, 2] : vector<1x64x16xf32> to vector<1xf32>
    %153 = vector.shape_cast %152 : vector<1xf32> to vector<1x1x1xf32>
    %154 = vector.extract %153[0, 0, 0] : f32 from vector<1x1x1xf32>
    %155 = vector.broadcast %154 : f32 to vector<1x1xf32>
    %156 = arith.mulf %86, %131 : vector<1x1xf32>
    %157 = arith.mulf %155, %156 : vector<1x1xf32>
    %158 = tpu.concatenate %141, %149, %157 in 1 : vector<1x1xf32>, vector<1x1xf32>, vector<1x1xf32> -> vector<1x3xf32>
    %159 = vector.broadcast %133 : f32 to vector<1x3xf32>
    %160 = arith.mulf %158, %159 : vector<1x3xf32>
    %cst_45 = arith.constant dense<0xFF800000> : vector<1xf32>
    %161 = vector.multi_reduction <maximumf>, %160, %cst_45 [1] : vector<1x3xf32> to vector<1xf32>
    %162 = vector.shape_cast %161 : vector<1xf32> to vector<1x1xf32>
    %163 = vector.broadcast %162 : vector<1x1xf32> to vector<1x3xf32>
    %164 = arith.subf %160, %163 : vector<1x3xf32>
    %165 = math.exp %164 : vector<1x3xf32>
    %cst_46 = arith.constant dense<0.000000e+00> : vector<1xf32>
    %166 = vector.multi_reduction <add>, %165, %cst_46 [1] : vector<1x3xf32> to vector<1xf32>
    %167 = vector.shape_cast %166 : vector<1xf32> to vector<1x1xf32>
    %168 = tpu.reciprocal %167 {approx = true} : vector<1x1xf32> -> vector<1x1xf32>
    %169 = vector.broadcast %168 : vector<1x1xf32> to vector<1x3xf32>
    %170 = arith.mulf %165, %169 : vector<1x3xf32>
    %171 = vector.extract_strided_slice %170 {offsets = [0, 0], sizes = [1, 1], strides = [1, 1]} : vector<1x3xf32> to vector<1x1xf32>
    %172 = vector.broadcast %171 : vector<1x1xf32> to vector<64x16xf32>
    %173 = arith.mulf %172, %75 : vector<64x16xf32>
    %174 = vector.extract_strided_slice %170 {offsets = [0, 1], sizes = [1, 1], strides = [1, 1]} : vector<1x3xf32> to vector<1x1xf32>
    %175 = vector.broadcast %174 : vector<1x1xf32> to vector<64x16xf32>
    %176 = arith.mulf %175, %76 : vector<64x16xf32>
    %177 = arith.addf %173, %176 : vector<64x16xf32>
    %178 = vector.extract_strided_slice %170 {offsets = [0, 2], sizes = [1, 1], strides = [1, 1]} : vector<1x3xf32> to vector<1x1xf32>
    %179 = vector.broadcast %178 : vector<1x1xf32> to vector<64x16xf32>
    %180 = arith.mulf %179, %77 : vector<64x16xf32>
    %181 = arith.addf %177, %180 : vector<64x16xf32>
    %182 = arith.mulf %70, %72 : vector<64x16xf32>
    %183 = vector.shape_cast %182 : vector<64x16xf32> to vector<1x64x16xf32>
    %cst_47 = arith.constant dense<0.000000e+00> : vector<1xf32>
    %184 = vector.multi_reduction <add>, %183, %cst_47 [1, 2] : vector<1x64x16xf32> to vector<1xf32>
    %185 = vector.shape_cast %184 : vector<1xf32> to vector<1x1x1xf32>
    %186 = vector.extract %185[0, 0, 0] : f32 from vector<1x1x1xf32>
    %187 = vector.broadcast %186 : f32 to vector<1x1xf32>
    %188 = arith.mulf %95, %113 : vector<1x1xf32>
    %189 = arith.mulf %187, %188 : vector<1x1xf32>
    %190 = arith.mulf %70, %73 : vector<64x16xf32>
    %191 = vector.shape_cast %190 : vector<64x16xf32> to vector<1x64x16xf32>
    %cst_48 = arith.constant dense<0.000000e+00> : vector<1xf32>
    %192 = vector.multi_reduction <add>, %191, %cst_48 [1, 2] : vector<1x64x16xf32> to vector<1xf32>
    %193 = vector.shape_cast %192 : vector<1xf32> to vector<1x1x1xf32>
    %194 = vector.extract %193[0, 0, 0] : f32 from vector<1x1x1xf32>
    %195 = vector.broadcast %194 : f32 to vector<1x1xf32>
    %196 = arith.mulf %95, %122 : vector<1x1xf32>
    %197 = arith.mulf %195, %196 : vector<1x1xf32>
    %198 = arith.mulf %70, %74 : vector<64x16xf32>
    %199 = vector.shape_cast %198 : vector<64x16xf32> to vector<1x64x16xf32>
    %cst_49 = arith.constant dense<0.000000e+00> : vector<1xf32>
    %200 = vector.multi_reduction <add>, %199, %cst_49 [1, 2] : vector<1x64x16xf32> to vector<1xf32>
    %201 = vector.shape_cast %200 : vector<1xf32> to vector<1x1x1xf32>
    %202 = vector.extract %201[0, 0, 0] : f32 from vector<1x1x1xf32>
    %203 = vector.broadcast %202 : f32 to vector<1x1xf32>
    %204 = arith.mulf %95, %131 : vector<1x1xf32>
    %205 = arith.mulf %203, %204 : vector<1x1xf32>
    %206 = tpu.concatenate %189, %197, %205 in 1 : vector<1x1xf32>, vector<1x1xf32>, vector<1x1xf32> -> vector<1x3xf32>
    %207 = vector.broadcast %133 : f32 to vector<1x3xf32>
    %208 = arith.mulf %206, %207 : vector<1x3xf32>
    %cst_50 = arith.constant dense<0xFF800000> : vector<1xf32>
    %209 = vector.multi_reduction <maximumf>, %208, %cst_50 [1] : vector<1x3xf32> to vector<1xf32>
    %210 = vector.shape_cast %209 : vector<1xf32> to vector<1x1xf32>
    %211 = vector.broadcast %210 : vector<1x1xf32> to vector<1x3xf32>
    %212 = arith.subf %208, %211 : vector<1x3xf32>
    %213 = math.exp %212 : vector<1x3xf32>
    %cst_51 = arith.constant dense<0.000000e+00> : vector<1xf32>
    %214 = vector.multi_reduction <add>, %213, %cst_51 [1] : vector<1x3xf32> to vector<1xf32>
    %215 = vector.shape_cast %214 : vector<1xf32> to vector<1x1xf32>
    %216 = tpu.reciprocal %215 {approx = true} : vector<1x1xf32> -> vector<1x1xf32>
    %217 = vector.broadcast %216 : vector<1x1xf32> to vector<1x3xf32>
    %218 = arith.mulf %213, %217 : vector<1x3xf32>
    %219 = vector.extract_strided_slice %218 {offsets = [0, 0], sizes = [1, 1], strides = [1, 1]} : vector<1x3xf32> to vector<1x1xf32>
    %220 = vector.broadcast %219 : vector<1x1xf32> to vector<64x16xf32>
    %221 = arith.mulf %220, %75 : vector<64x16xf32>
    %222 = vector.extract_strided_slice %218 {offsets = [0, 1], sizes = [1, 1], strides = [1, 1]} : vector<1x3xf32> to vector<1x1xf32>
    %223 = vector.broadcast %222 : vector<1x1xf32> to vector<64x16xf32>
    %224 = arith.mulf %223, %76 : vector<64x16xf32>
    %225 = arith.addf %221, %224 : vector<64x16xf32>
    %226 = vector.extract_strided_slice %218 {offsets = [0, 2], sizes = [1, 1], strides = [1, 1]} : vector<1x3xf32> to vector<1x1xf32>
    %227 = vector.broadcast %226 : vector<1x1xf32> to vector<64x16xf32>
    %228 = arith.mulf %227, %77 : vector<64x16xf32>
    %229 = arith.addf %225, %228 : vector<64x16xf32>
    %230 = arith.mulf %71, %72 : vector<64x16xf32>
    %231 = vector.shape_cast %230 : vector<64x16xf32> to vector<1x64x16xf32>
    %cst_52 = arith.constant dense<0.000000e+00> : vector<1xf32>
    %232 = vector.multi_reduction <add>, %231, %cst_52 [1, 2] : vector<1x64x16xf32> to vector<1xf32>
    %233 = vector.shape_cast %232 : vector<1xf32> to vector<1x1x1xf32>
    %234 = vector.extract %233[0, 0, 0] : f32 from vector<1x1x1xf32>
    %235 = vector.broadcast %234 : f32 to vector<1x1xf32>
    %236 = arith.mulf %104, %113 : vector<1x1xf32>
    %237 = arith.mulf %235, %236 : vector<1x1xf32>
    %238 = arith.mulf %71, %73 : vector<64x16xf32>
    %239 = vector.shape_cast %238 : vector<64x16xf32> to vector<1x64x16xf32>
    %cst_53 = arith.constant dense<0.000000e+00> : vector<1xf32>
    %240 = vector.multi_reduction <add>, %239, %cst_53 [1, 2] : vector<1x64x16xf32> to vector<1xf32>
    %241 = vector.shape_cast %240 : vector<1xf32> to vector<1x1x1xf32>
    %242 = vector.extract %241[0, 0, 0] : f32 from vector<1x1x1xf32>
    %243 = vector.broadcast %242 : f32 to vector<1x1xf32>
    %244 = arith.mulf %104, %122 : vector<1x1xf32>
    %245 = arith.mulf %243, %244 : vector<1x1xf32>
    %246 = arith.mulf %71, %74 : vector<64x16xf32>
    %247 = vector.shape_cast %246 : vector<64x16xf32> to vector<1x64x16xf32>
    %cst_54 = arith.constant dense<0.000000e+00> : vector<1xf32>
    %248 = vector.multi_reduction <add>, %247, %cst_54 [1, 2] : vector<1x64x16xf32> to vector<1xf32>
    %249 = vector.shape_cast %248 : vector<1xf32> to vector<1x1x1xf32>
    %250 = vector.extract %249[0, 0, 0] : f32 from vector<1x1x1xf32>
    %251 = vector.broadcast %250 : f32 to vector<1x1xf32>
    %252 = arith.mulf %104, %131 : vector<1x1xf32>
    %253 = arith.mulf %251, %252 : vector<1x1xf32>
    %254 = tpu.concatenate %237, %245, %253 in 1 : vector<1x1xf32>, vector<1x1xf32>, vector<1x1xf32> -> vector<1x3xf32>
    %255 = vector.broadcast %133 : f32 to vector<1x3xf32>
    %256 = arith.mulf %254, %255 : vector<1x3xf32>
    %cst_55 = arith.constant dense<0xFF800000> : vector<1xf32>
    %257 = vector.multi_reduction <maximumf>, %256, %cst_55 [1] : vector<1x3xf32> to vector<1xf32>
    %258 = vector.shape_cast %257 : vector<1xf32> to vector<1x1xf32>
    %259 = vector.broadcast %258 : vector<1x1xf32> to vector<1x3xf32>
    %260 = arith.subf %256, %259 : vector<1x3xf32>
    %261 = math.exp %260 : vector<1x3xf32>
    %cst_56 = arith.constant dense<0.000000e+00> : vector<1xf32>
    %262 = vector.multi_reduction <add>, %261, %cst_56 [1] : vector<1x3xf32> to vector<1xf32>
    %263 = vector.shape_cast %262 : vector<1xf32> to vector<1x1xf32>
    %264 = tpu.reciprocal %263 {approx = true} : vector<1x1xf32> -> vector<1x1xf32>
    %265 = vector.broadcast %264 : vector<1x1xf32> to vector<1x3xf32>
    %266 = arith.mulf %261, %265 : vector<1x3xf32>
    %267 = vector.extract_strided_slice %266 {offsets = [0, 0], sizes = [1, 1], strides = [1, 1]} : vector<1x3xf32> to vector<1x1xf32>
    %268 = vector.broadcast %267 : vector<1x1xf32> to vector<64x16xf32>
    %269 = arith.mulf %268, %75 : vector<64x16xf32>
    %270 = vector.extract_strided_slice %266 {offsets = [0, 1], sizes = [1, 1], strides = [1, 1]} : vector<1x3xf32> to vector<1x1xf32>
    %271 = vector.broadcast %270 : vector<1x1xf32> to vector<64x16xf32>
    %272 = arith.mulf %271, %76 : vector<64x16xf32>
    %273 = arith.addf %269, %272 : vector<64x16xf32>
    %274 = vector.extract_strided_slice %266 {offsets = [0, 2], sizes = [1, 1], strides = [1, 1]} : vector<1x3xf32> to vector<1x1xf32>
    %275 = vector.broadcast %274 : vector<1x1xf32> to vector<64x16xf32>
    %276 = arith.mulf %275, %77 : vector<64x16xf32>
    %277 = arith.addf %273, %276 : vector<64x16xf32>
    %278 = tpu.concatenate %181, %229, %277 in 1 : vector<64x16xf32>, vector<64x16xf32>, vector<64x16xf32> -> vector<64x48xf32>
    %c0_57 = arith.constant 0 : index
    %c0_58 = arith.constant 0 : index
    %279 = vector.load %arg9[%c0_57, %c0_58] : memref<48x48xbf16, #tpu.memory_space<vmem>>, vector<48x48xbf16>
    %280 = arith.truncf %278 : vector<64x48xf32> to vector<64x48xbf16>
    %cst_59 = arith.constant dense<0.000000e+00> : vector<64x48xf32>
    %281 = tpu.matmul %280, %279, %cst_59 {dimension_numbers = #tpu.dot_dimension_numbers<[1], [0], [0], [1], [0, 0, 1, 1], [], []>} : vector<64x48xbf16>, vector<48x48xbf16>, vector<64x48xf32> -> vector<64x48xf32>
    %c0_60 = arith.constant 0 : index
    %c0_61 = arith.constant 0 : index
    %282 = vector.load %arg10[%c0_60, %c0_61] : memref<1x48xf32, #tpu.memory_space<vmem>>, vector<1x48xf32>
    %283 = vector.broadcast %282 : vector<1x48xf32> to vector<64x48xf32>
    %284 = arith.addf %281, %283 : vector<64x48xf32>
    %285 = arith.addf %284, %6 : vector<64x48xf32>
    %c0_62 = arith.constant 0 : index
    %c0_63 = arith.constant 0 : index
    %286 = vector.load %arg11[%c0_62, %c0_63] : memref<48x16xbf16, #tpu.memory_space<vmem>>, vector<48x16xbf16>
    %287 = arith.truncf %285 : vector<64x48xf32> to vector<64x48xbf16>
    %cst_64 = arith.constant dense<0.000000e+00> : vector<64x16xf32>
    %288 = tpu.matmul %287, %286, %cst_64 {dimension_numbers = #tpu.dot_dimension_numbers<[1], [0], [0], [1], [0, 0, 1, 1], [], []>} : vector<64x48xbf16>, vector<48x16xbf16>, vector<64x16xf32> -> vector<64x16xf32>
    %c0_65 = arith.constant 0 : index
    %c0_66 = arith.constant 0 : index
    %289 = vector.load %arg12[%c0_65, %c0_66] : memref<16x16xbf16, #tpu.memory_space<vmem>>, vector<16x16xbf16>
    %290 = arith.truncf %288 : vector<64x16xf32> to vector<64x16xbf16>
    %cst_67 = arith.constant dense<0.000000e+00> : vector<64x16xf32>
    %291 = tpu.matmul %290, %289, %cst_67 {dimension_numbers = #tpu.dot_dimension_numbers<[1], [0], [0], [1], [0, 0, 1, 1], [], []>} : vector<64x16xbf16>, vector<16x16xbf16>, vector<64x16xf32> -> vector<64x16xf32>
    %c0_68 = arith.constant 0 : index
    %c0_69 = arith.constant 0 : index
    %292 = vector.load %arg13[%c0_68, %c0_69] : memref<1x16xf32, #tpu.memory_space<vmem>>, vector<1x16xf32>
    %293 = vector.broadcast %292 : vector<1x16xf32> to vector<64x16xf32>
    %294 = arith.addf %291, %293 : vector<64x16xf32>
    %c0_70 = arith.constant 0 : index
    %c0_71 = arith.constant 0 : index
    %c0_72 = arith.constant 0 : index
    %295 = vector.load %arg14[%c0_70, %c0_71, %c0_72] : memref<1x64x16xf32, #tpu.memory_space<vmem>>, vector<1x64x16xf32>
    %296 = vector.shape_cast %295 : vector<1x64x16xf32> to vector<64x16xf32>
    %297 = vector.shape_cast %294 : vector<64x16xf32> to vector<1x64x16xf32>
    tpu.vector_store %arg14[%c0_70, %c0_71, %c0_72], %297 {strides = array<i32>} : memref<1x64x16xf32, #tpu.memory_space<vmem>>, vector<1x64x16xf32>,
    return
  }
  func.func @transform_0(%arg0: i32) -> (i32, i32, i32) {
    %c0_i32 = arith.constant 0 : i32
    %c0_i32_0 = arith.constant 0 : i32
    %c0_i32_1 = arith.constant 0 : i32
    return %arg0, %c0_i32, %c0_i32_0 : i32, i32, i32
  }
  func.func @transform_1(%arg0: i32) -> (i32, i32, i32) {
    %c0_i32 = arith.constant 0 : i32
    %c0_i32_0 = arith.constant 0 : i32
    %c0_i32_1 = arith.constant 0 : i32
    return %arg0, %c0_i32, %c0_i32_0 : i32, i32, i32
  }
  func.func @transform_2(%arg0: i32) -> (i32, i32, i32) {
    %c0_i32 = arith.constant 0 : i32
    %c0_i32_0 = arith.constant 0 : i32
    %c0_i32_1 = arith.constant 0 : i32
    return %arg0, %c0_i32, %c0_i32_0 : i32, i32, i32
  }
  func.func @transform_3(%arg0: i32) -> (i32, i32) {
    %c0_i32 = arith.constant 0 : i32
    %c0_i32_0 = arith.constant 0 : i32
    %c0_i32_1 = arith.constant 0 : i32
    return %c0_i32, %c0_i32_0 : i32, i32
  }
  func.func @transform_4(%arg0: i32) -> (i32, i32) {
    %c0_i32 = arith.constant 0 : i32
    %c0_i32_0 = arith.constant 0 : i32
    %c0_i32_1 = arith.constant 0 : i32
    return %c0_i32, %c0_i32_0 : i32, i32
  }
  func.func @transform_5(%arg0: i32) -> (i32, i32, i32) {
    %c0_i32 = arith.constant 0 : i32
    %c0_i32_0 = arith.constant 0 : i32
    %c0_i32_1 = arith.constant 0 : i32
    %c0_i32_2 = arith.constant 0 : i32
    return %c0_i32, %c0_i32_0, %c0_i32_1 : i32, i32, i32
  }
  func.func @transform_6(%arg0: i32) -> (i32, i32, i32) {
    %c0_i32 = arith.constant 0 : i32
    %c0_i32_0 = arith.constant 0 : i32
    %c0_i32_1 = arith.constant 0 : i32
    %c0_i32_2 = arith.constant 0 : i32
    return %c0_i32, %c0_i32_0, %c0_i32_1 : i32, i32, i32
  }
  func.func @transform_7(%arg0: i32) -> (i32, i32) {
    %c0_i32 = arith.constant 0 : i32
    %c0_i32_0 = arith.constant 0 : i32
    %c0_i32_1 = arith.constant 0 : i32
    return %c0_i32, %c0_i32_0 : i32, i32
  }
  func.func @transform_8(%arg0: i32) -> (i32, i32) {
    %c0_i32 = arith.constant 0 : i32
    %c0_i32_0 = arith.constant 0 : i32
    %c0_i32_1 = arith.constant 0 : i32
    return %c0_i32, %c0_i32_0 : i32, i32
  }
  func.func @transform_9(%arg0: i32) -> (i32, i32) {
    %c0_i32 = arith.constant 0 : i32
    %c0_i32_0 = arith.constant 0 : i32
    %c0_i32_1 = arith.constant 0 : i32
    return %c0_i32, %c0_i32_0 : i32, i32
  }
  func.func @transform_10(%arg0: i32) -> (i32, i32) {
    %c0_i32 = arith.constant 0 : i32
    %c0_i32_0 = arith.constant 0 : i32
    %c0_i32_1 = arith.constant 0 : i32
    return %c0_i32, %c0_i32_0 : i32, i32
  }
  func.func @transform_11(%arg0: i32) -> (i32, i32) {
    %c0_i32 = arith.constant 0 : i32
    %c0_i32_0 = arith.constant 0 : i32
    %c0_i32_1 = arith.constant 0 : i32
    return %c0_i32, %c0_i32_0 : i32, i32
  }
  func.func @transform_12(%arg0: i32) -> (i32, i32) {
    %c0_i32 = arith.constant 0 : i32
    %c0_i32_0 = arith.constant 0 : i32
    %c0_i32_1 = arith.constant 0 : i32
    return %c0_i32, %c0_i32_0 : i32, i32
  }
  func.func @transform_13(%arg0: i32) -> (i32, i32, i32) {
    %c0_i32 = arith.constant 0 : i32
    %c0_i32_0 = arith.constant 0 : i32
    %c0_i32_1 = arith.constant 0 : i32
    return %arg0, %c0_i32, %c0_i32_0 : i32, i32, i32
  }
}

module attributes {stable_mosaic.version = 11 : i64} {
  func.func @_tail_kernel(%arg0: i32, %arg1: memref<1x64x16xf32, #tpu.memory_space<vmem>>, %arg2: memref<1x64x16xf32, #tpu.memory_space<vmem>>, %arg3: memref<1x8x128xf32, #tpu.memory_space<vmem>>, %arg4: memref<1x16xf32, #tpu.memory_space<vmem>>, %arg5: memref<1x16xf32, #tpu.memory_space<vmem>>, %arg6: memref<16x64xbf16, #tpu.memory_space<vmem>>, %arg7: memref<128x64xbf16, #tpu.memory_space<vmem>>, %arg8: memref<128x64xbf16, #tpu.memory_space<vmem>>, %arg9: memref<64x16xbf16, #tpu.memory_space<vmem>>, %arg10: memref<1x16xf32, #tpu.memory_space<vmem>>, %arg11: memref<16x64xbf16, #tpu.memory_space<vmem>>, %arg12: memref<1x64xf32, #tpu.memory_space<vmem>>, %arg13: memref<16x64xbf16, #tpu.memory_space<vmem>>, %arg14: memref<1x64xf32, #tpu.memory_space<vmem>>, %arg15: memref<64x16xbf16, #tpu.memory_space<vmem>>, %arg16: memref<1x16xf32, #tpu.memory_space<vmem>>, %arg17: memref<16x16xbf16, #tpu.memory_space<vmem>>, %arg18: memref<1x16xf32, #tpu.memory_space<vmem>>, %arg19: memref<1x64x16xf32, #tpu.memory_space<vmem>>) attributes {dimension_semantics = [#tpu.dimension_semantics<parallel>], iteration_bounds = array<i64: 2>, scalar_prefetch = 0 : i64, scratch_operands = 0 : i64, tpu.core_type = #tpu.core_type<tc>, window_params = [{transform_indices = @transform_0, window_bounds = array<i64: 1, 64, 16>}, {transform_indices = @transform_1, window_bounds = array<i64: 1, 64, 16>}, {transform_indices = @transform_2, window_bounds = array<i64: 1, 8, 128>}, {pipeline_mode = #tpu.pipeline_mode<synchronous>, transform_indices = @transform_3, window_bounds = array<i64: 1, 16>}, {pipeline_mode = #tpu.pipeline_mode<synchronous>, transform_indices = @transform_4, window_bounds = array<i64: 1, 16>}, {pipeline_mode = #tpu.pipeline_mode<synchronous>, transform_indices = @transform_5, window_bounds = array<i64: 16, 64>}, {pipeline_mode = #tpu.pipeline_mode<synchronous>, transform_indices = @transform_6, window_bounds = array<i64: 128, 64>}, {pipeline_mode = #tpu.pipeline_mode<synchronous>, transform_indices = @transform_7, window_bounds = array<i64: 128, 64>}, {pipeline_mode = #tpu.pipeline_mode<synchronous>, transform_indices = @transform_8, window_bounds = array<i64: 64, 16>}, {pipeline_mode = #tpu.pipeline_mode<synchronous>, transform_indices = @transform_9, window_bounds = array<i64: 1, 16>}, {pipeline_mode = #tpu.pipeline_mode<synchronous>, transform_indices = @transform_10, window_bounds = array<i64: 16, 64>}, {pipeline_mode = #tpu.pipeline_mode<synchronous>, transform_indices = @transform_11, window_bounds = array<i64: 1, 64>}, {pipeline_mode = #tpu.pipeline_mode<synchronous>, transform_indices = @transform_12, window_bounds = array<i64: 16, 64>}, {pipeline_mode = #tpu.pipeline_mode<synchronous>, transform_indices = @transform_13, window_bounds = array<i64: 1, 64>}, {pipeline_mode = #tpu.pipeline_mode<synchronous>, transform_indices = @transform_14, window_bounds = array<i64: 64, 16>}, {pipeline_mode = #tpu.pipeline_mode<synchronous>, transform_indices = @transform_15, window_bounds = array<i64: 1, 16>}, {pipeline_mode = #tpu.pipeline_mode<synchronous>, transform_indices = @transform_16, window_bounds = array<i64: 16, 16>}, {pipeline_mode = #tpu.pipeline_mode<synchronous>, transform_indices = @transform_17, window_bounds = array<i64: 1, 16>}, {transform_indices = @transform_18, window_bounds = array<i64: 1, 64, 16>}]} {
    %c0 = arith.constant 0 : index
    %c0_0 = arith.constant 0 : index
    %c0_1 = arith.constant 0 : index
    %0 = vector.load %arg1[%c0, %c0_0, %c0_1] : memref<1x64x16xf32, #tpu.memory_space<vmem>>, vector<1x64x16xf32>
    %1 = vector.shape_cast %0 : vector<1x64x16xf32> to vector<64x16xf32>
    %c0_2 = arith.constant 0 : index
    %c0_3 = arith.constant 0 : index
    %c0_4 = arith.constant 0 : index
    %2 = vector.load %arg2[%c0_2, %c0_3, %c0_4] : memref<1x64x16xf32, #tpu.memory_space<vmem>>, vector<1x64x16xf32>
    %3 = vector.shape_cast %2 : vector<1x64x16xf32> to vector<64x16xf32>
    %c0_5 = arith.constant 0 : index
    %c0_6 = arith.constant 0 : index
    %c0_7 = arith.constant 0 : index
    %4 = vector.load %arg3[%c0_5, %c0_6, %c0_7] : memref<1x8x128xf32, #tpu.memory_space<vmem>>, vector<1x8x128xf32>
    %5 = vector.shape_cast %4 : vector<1x8x128xf32> to vector<8x128xf32>
    %cst = arith.constant dense<0.000000e+00> : vector<64xf32>
    %6 = vector.multi_reduction <add>, %1, %cst [1] : vector<64x16xf32> to vector<64xf32>
    %7 = vector.shape_cast %6 : vector<64xf32> to vector<64x1xf32>
    %cst_8 = arith.constant 1.600000e+01 : f32
    %8 = vector.broadcast %cst_8 : f32 to vector<64x1xf32>
    %9 = arith.divf %7, %8 : vector<64x1xf32>
    %10 = vector.broadcast %9 : vector<64x1xf32> to vector<64x16xf32>
    %11 = arith.subf %1, %10 : vector<64x16xf32>
    %12 = arith.mulf %11, %11 : vector<64x16xf32>
    %cst_9 = arith.constant dense<0.000000e+00> : vector<64xf32>
    %13 = vector.multi_reduction <add>, %12, %cst_9 [1] : vector<64x16xf32> to vector<64xf32>
    %14 = vector.shape_cast %13 : vector<64xf32> to vector<64x1xf32>
    %cst_10 = arith.constant 1.600000e+01 : f32
    %15 = vector.broadcast %cst_10 : f32 to vector<64x1xf32>
    %16 = arith.divf %14, %15 : vector<64x1xf32>
    %cst_11 = arith.constant 9.99999974E-6 : f32
    %17 = vector.broadcast %cst_11 : f32 to vector<64x1xf32>
    %18 = arith.addf %16, %17 : vector<64x1xf32>
    %19 = math.rsqrt %18 : vector<64x1xf32>
    %20 = vector.broadcast %19 : vector<64x1xf32> to vector<64x16xf32>
    %21 = arith.mulf %11, %20 : vector<64x16xf32>
    %c0_12 = arith.constant 0 : index
    %c0_13 = arith.constant 0 : index
    %22 = vector.load %arg4[%c0_12, %c0_13] : memref<1x16xf32, #tpu.memory_space<vmem>>, vector<1x16xf32>
    %23 = vector.broadcast %22 : vector<1x16xf32> to vector<64x16xf32>
    %24 = arith.mulf %21, %23 : vector<64x16xf32>
    %c0_14 = arith.constant 0 : index
    %c0_15 = arith.constant 0 : index
    %25 = vector.load %arg5[%c0_14, %c0_15] : memref<1x16xf32, #tpu.memory_space<vmem>>, vector<1x16xf32>
    %26 = vector.broadcast %25 : vector<1x16xf32> to vector<64x16xf32>
    %27 = arith.addf %24, %26 : vector<64x16xf32>
    %c0_16 = arith.constant 0 : index
    %c0_17 = arith.constant 0 : index
    %28 = vector.load %arg6[%c0_16, %c0_17] : memref<16x64xbf16, #tpu.memory_space<vmem>>, vector<16x64xbf16>
    %29 = arith.truncf %27 : vector<64x16xf32> to vector<64x16xbf16>
    %cst_18 = arith.constant dense<0.000000e+00> : vector<64x64xf32>
    %30 = tpu.matmul %29, %28, %cst_18 {dimension_numbers = #tpu.dot_dimension_numbers<[1], [0], [0], [1], [0, 0, 1, 1], [], []>} : vector<64x16xbf16>, vector<16x64xbf16>, vector<64x64xf32> -> vector<64x64xf32>
    %c0_19 = arith.constant 0 : index
    %c0_20 = arith.constant 0 : index
    %31 = vector.load %arg7[%c0_19, %c0_20] : memref<128x64xbf16, #tpu.memory_space<vmem>>, vector<128x64xbf16>
    %32 = arith.truncf %5 : vector<8x128xf32> to vector<8x128xbf16>
    %cst_21 = arith.constant dense<0.000000e+00> : vector<8x64xf32>
    %33 = tpu.matmul %32, %31, %cst_21 {dimension_numbers = #tpu.dot_dimension_numbers<[1], [0], [0], [1], [0, 0, 1, 1], [], []>} : vector<8x128xbf16>, vector<128x64xbf16>, vector<8x64xf32> -> vector<8x64xf32>
    %c0_22 = arith.constant 0 : index
    %c0_23 = arith.constant 0 : index
    %34 = vector.load %arg8[%c0_22, %c0_23] : memref<128x64xbf16, #tpu.memory_space<vmem>>, vector<128x64xbf16>
    %35 = arith.truncf %5 : vector<8x128xf32> to vector<8x128xbf16>
    %cst_24 = arith.constant dense<0.000000e+00> : vector<8x64xf32>
    %36 = tpu.matmul %35, %34, %cst_24 {dimension_numbers = #tpu.dot_dimension_numbers<[1], [0], [0], [1], [0, 0, 1, 1], [], []>} : vector<8x128xbf16>, vector<128x64xbf16>, vector<8x64xf32> -> vector<8x64xf32>
    %37 = vector.extract_strided_slice %30 {offsets = [0, 0], sizes = [64, 8], strides = [1, 1]} : vector<64x64xf32> to vector<64x8xf32>
    %38 = vector.extract_strided_slice %33 {offsets = [0, 0], sizes = [8, 8], strides = [1, 1]} : vector<8x64xf32> to vector<8x8xf32>
    %39 = arith.truncf %37 : vector<64x8xf32> to vector<64x8xbf16>
    %40 = arith.truncf %38 : vector<8x8xf32> to vector<8x8xbf16>
    %cst_25 = arith.constant dense<0.000000e+00> : vector<64x8xf32>
    %41 = tpu.matmul %39, %40, %cst_25 {dimension_numbers = #tpu.dot_dimension_numbers<[1], [1], [0], [0], [0, 0, 1, 0], [], []>} : vector<64x8xbf16>, vector<8x8xbf16>, vector<64x8xf32> -> vector<64x8xf32>
    %cst_26 = arith.constant 0.353553385 : f32
    %42 = vector.broadcast %cst_26 : f32 to vector<64x8xf32>
    %43 = arith.mulf %41, %42 : vector<64x8xf32>
    %cst_27 = arith.constant dense<0xFF800000> : vector<64xf32>
    %44 = vector.multi_reduction <maximumf>, %43, %cst_27 [1] : vector<64x8xf32> to vector<64xf32>
    %45 = vector.shape_cast %44 : vector<64xf32> to vector<64x1xf32>
    %46 = vector.broadcast %45 : vector<64x1xf32> to vector<64x8xf32>
    %47 = arith.subf %43, %46 : vector<64x8xf32>
    %48 = math.exp %47 : vector<64x8xf32>
    %cst_28 = arith.constant dense<0.000000e+00> : vector<64xf32>
    %49 = vector.multi_reduction <add>, %48, %cst_28 [1] : vector<64x8xf32> to vector<64xf32>
    %50 = vector.shape_cast %49 : vector<64xf32> to vector<64x1xf32>
    %51 = tpu.reciprocal %50 {approx = true} : vector<64x1xf32> -> vector<64x1xf32>
    %52 = vector.broadcast %51 : vector<64x1xf32> to vector<64x8xf32>
    %53 = arith.mulf %48, %52 : vector<64x8xf32>
    %54 = vector.extract_strided_slice %36 {offsets = [0, 0], sizes = [8, 8], strides = [1, 1]} : vector<8x64xf32> to vector<8x8xf32>
    %55 = arith.truncf %53 : vector<64x8xf32> to vector<64x8xbf16>
    %56 = arith.truncf %54 : vector<8x8xf32> to vector<8x8xbf16>
    %cst_29 = arith.constant dense<0.000000e+00> : vector<64x8xf32>
    %57 = tpu.matmul %55, %56, %cst_29 {dimension_numbers = #tpu.dot_dimension_numbers<[1], [0], [0], [1], [0, 0, 1, 1], [], []>} : vector<64x8xbf16>, vector<8x8xbf16>, vector<64x8xf32> -> vector<64x8xf32>
    %58 = vector.extract_strided_slice %30 {offsets = [0, 8], sizes = [64, 8], strides = [1, 1]} : vector<64x64xf32> to vector<64x8xf32>
    %59 = vector.extract_strided_slice %33 {offsets = [0, 8], sizes = [8, 8], strides = [1, 1]} : vector<8x64xf32> to vector<8x8xf32>
    %60 = arith.truncf %58 : vector<64x8xf32> to vector<64x8xbf16>
    %61 = arith.truncf %59 : vector<8x8xf32> to vector<8x8xbf16>
    %cst_30 = arith.constant dense<0.000000e+00> : vector<64x8xf32>
    %62 = tpu.matmul %60, %61, %cst_30 {dimension_numbers = #tpu.dot_dimension_numbers<[1], [1], [0], [0], [0, 0, 1, 0], [], []>} : vector<64x8xbf16>, vector<8x8xbf16>, vector<64x8xf32> -> vector<64x8xf32>
    %cst_31 = arith.constant 0.353553385 : f32
    %63 = vector.broadcast %cst_31 : f32 to vector<64x8xf32>
    %64 = arith.mulf %62, %63 : vector<64x8xf32>
    %cst_32 = arith.constant dense<0xFF800000> : vector<64xf32>
    %65 = vector.multi_reduction <maximumf>, %64, %cst_32 [1] : vector<64x8xf32> to vector<64xf32>
    %66 = vector.shape_cast %65 : vector<64xf32> to vector<64x1xf32>
    %67 = vector.broadcast %66 : vector<64x1xf32> to vector<64x8xf32>
    %68 = arith.subf %64, %67 : vector<64x8xf32>
    %69 = math.exp %68 : vector<64x8xf32>
    %cst_33 = arith.constant dense<0.000000e+00> : vector<64xf32>
    %70 = vector.multi_reduction <add>, %69, %cst_33 [1] : vector<64x8xf32> to vector<64xf32>
    %71 = vector.shape_cast %70 : vector<64xf32> to vector<64x1xf32>
    %72 = tpu.reciprocal %71 {approx = true} : vector<64x1xf32> -> vector<64x1xf32>
    %73 = vector.broadcast %72 : vector<64x1xf32> to vector<64x8xf32>
    %74 = arith.mulf %69, %73 : vector<64x8xf32>
    %75 = vector.extract_strided_slice %36 {offsets = [0, 8], sizes = [8, 8], strides = [1, 1]} : vector<8x64xf32> to vector<8x8xf32>
    %76 = arith.truncf %74 : vector<64x8xf32> to vector<64x8xbf16>
    %77 = arith.truncf %75 : vector<8x8xf32> to vector<8x8xbf16>
    %cst_34 = arith.constant dense<0.000000e+00> : vector<64x8xf32>
    %78 = tpu.matmul %76, %77, %cst_34 {dimension_numbers = #tpu.dot_dimension_numbers<[1], [0], [0], [1], [0, 0, 1, 1], [], []>} : vector<64x8xbf16>, vector<8x8xbf16>, vector<64x8xf32> -> vector<64x8xf32>
    %79 = vector.extract_strided_slice %30 {offsets = [0, 16], sizes = [64, 8], strides = [1, 1]} : vector<64x64xf32> to vector<64x8xf32>
    %80 = vector.extract_strided_slice %33 {offsets = [0, 16], sizes = [8, 8], strides = [1, 1]} : vector<8x64xf32> to vector<8x8xf32>
    %81 = arith.truncf %79 : vector<64x8xf32> to vector<64x8xbf16>
    %82 = arith.truncf %80 : vector<8x8xf32> to vector<8x8xbf16>
    %cst_35 = arith.constant dense<0.000000e+00> : vector<64x8xf32>
    %83 = tpu.matmul %81, %82, %cst_35 {dimension_numbers = #tpu.dot_dimension_numbers<[1], [1], [0], [0], [0, 0, 1, 0], [], []>} : vector<64x8xbf16>, vector<8x8xbf16>, vector<64x8xf32> -> vector<64x8xf32>
    %cst_36 = arith.constant 0.353553385 : f32
    %84 = vector.broadcast %cst_36 : f32 to vector<64x8xf32>
    %85 = arith.mulf %83, %84 : vector<64x8xf32>
    %cst_37 = arith.constant dense<0xFF800000> : vector<64xf32>
    %86 = vector.multi_reduction <maximumf>, %85, %cst_37 [1] : vector<64x8xf32> to vector<64xf32>
    %87 = vector.shape_cast %86 : vector<64xf32> to vector<64x1xf32>
    %88 = vector.broadcast %87 : vector<64x1xf32> to vector<64x8xf32>
    %89 = arith.subf %85, %88 : vector<64x8xf32>
    %90 = math.exp %89 : vector<64x8xf32>
    %cst_38 = arith.constant dense<0.000000e+00> : vector<64xf32>
    %91 = vector.multi_reduction <add>, %90, %cst_38 [1] : vector<64x8xf32> to vector<64xf32>
    %92 = vector.shape_cast %91 : vector<64xf32> to vector<64x1xf32>
    %93 = tpu.reciprocal %92 {approx = true} : vector<64x1xf32> -> vector<64x1xf32>
    %94 = vector.broadcast %93 : vector<64x1xf32> to vector<64x8xf32>
    %95 = arith.mulf %90, %94 : vector<64x8xf32>
    %96 = vector.extract_strided_slice %36 {offsets = [0, 16], sizes = [8, 8], strides = [1, 1]} : vector<8x64xf32> to vector<8x8xf32>
    %97 = arith.truncf %95 : vector<64x8xf32> to vector<64x8xbf16>
    %98 = arith.truncf %96 : vector<8x8xf32> to vector<8x8xbf16>
    %cst_39 = arith.constant dense<0.000000e+00> : vector<64x8xf32>
    %99 = tpu.matmul %97, %98, %cst_39 {dimension_numbers = #tpu.dot_dimension_numbers<[1], [0], [0], [1], [0, 0, 1, 1], [], []>} : vector<64x8xbf16>, vector<8x8xbf16>, vector<64x8xf32> -> vector<64x8xf32>
    %100 = vector.extract_strided_slice %30 {offsets = [0, 24], sizes = [64, 8], strides = [1, 1]} : vector<64x64xf32> to vector<64x8xf32>
    %101 = vector.extract_strided_slice %33 {offsets = [0, 24], sizes = [8, 8], strides = [1, 1]} : vector<8x64xf32> to vector<8x8xf32>
    %102 = arith.truncf %100 : vector<64x8xf32> to vector<64x8xbf16>
    %103 = arith.truncf %101 : vector<8x8xf32> to vector<8x8xbf16>
    %cst_40 = arith.constant dense<0.000000e+00> : vector<64x8xf32>
    %104 = tpu.matmul %102, %103, %cst_40 {dimension_numbers = #tpu.dot_dimension_numbers<[1], [1], [0], [0], [0, 0, 1, 0], [], []>} : vector<64x8xbf16>, vector<8x8xbf16>, vector<64x8xf32> -> vector<64x8xf32>
    %cst_41 = arith.constant 0.353553385 : f32
    %105 = vector.broadcast %cst_41 : f32 to vector<64x8xf32>
    %106 = arith.mulf %104, %105 : vector<64x8xf32>
    %cst_42 = arith.constant dense<0xFF800000> : vector<64xf32>
    %107 = vector.multi_reduction <maximumf>, %106, %cst_42 [1] : vector<64x8xf32> to vector<64xf32>
    %108 = vector.shape_cast %107 : vector<64xf32> to vector<64x1xf32>
    %109 = vector.broadcast %108 : vector<64x1xf32> to vector<64x8xf32>
    %110 = arith.subf %106, %109 : vector<64x8xf32>
    %111 = math.exp %110 : vector<64x8xf32>
    %cst_43 = arith.constant dense<0.000000e+00> : vector<64xf32>
    %112 = vector.multi_reduction <add>, %111, %cst_43 [1] : vector<64x8xf32> to vector<64xf32>
    %113 = vector.shape_cast %112 : vector<64xf32> to vector<64x1xf32>
    %114 = tpu.reciprocal %113 {approx = true} : vector<64x1xf32> -> vector<64x1xf32>
    %115 = vector.broadcast %114 : vector<64x1xf32> to vector<64x8xf32>
    %116 = arith.mulf %111, %115 : vector<64x8xf32>
    %117 = vector.extract_strided_slice %36 {offsets = [0, 24], sizes = [8, 8], strides = [1, 1]} : vector<8x64xf32> to vector<8x8xf32>
    %118 = arith.truncf %116 : vector<64x8xf32> to vector<64x8xbf16>
    %119 = arith.truncf %117 : vector<8x8xf32> to vector<8x8xbf16>
    %cst_44 = arith.constant dense<0.000000e+00> : vector<64x8xf32>
    %120 = tpu.matmul %118, %119, %cst_44 {dimension_numbers = #tpu.dot_dimension_numbers<[1], [0], [0], [1], [0, 0, 1, 1], [], []>} : vector<64x8xbf16>, vector<8x8xbf16>, vector<64x8xf32> -> vector<64x8xf32>
    %121 = vector.extract_strided_slice %30 {offsets = [0, 32], sizes = [64, 8], strides = [1, 1]} : vector<64x64xf32> to vector<64x8xf32>
    %122 = vector.extract_strided_slice %33 {offsets = [0, 32], sizes = [8, 8], strides = [1, 1]} : vector<8x64xf32> to vector<8x8xf32>
    %123 = arith.truncf %121 : vector<64x8xf32> to vector<64x8xbf16>
    %124 = arith.truncf %122 : vector<8x8xf32> to vector<8x8xbf16>
    %cst_45 = arith.constant dense<0.000000e+00> : vector<64x8xf32>
    %125 = tpu.matmul %123, %124, %cst_45 {dimension_numbers = #tpu.dot_dimension_numbers<[1], [1], [0], [0], [0, 0, 1, 0], [], []>} : vector<64x8xbf16>, vector<8x8xbf16>, vector<64x8xf32> -> vector<64x8xf32>
    %cst_46 = arith.constant 0.353553385 : f32
    %126 = vector.broadcast %cst_46 : f32 to vector<64x8xf32>
    %127 = arith.mulf %125, %126 : vector<64x8xf32>
    %cst_47 = arith.constant dense<0xFF800000> : vector<64xf32>
    %128 = vector.multi_reduction <maximumf>, %127, %cst_47 [1] : vector<64x8xf32> to vector<64xf32>
    %129 = vector.shape_cast %128 : vector<64xf32> to vector<64x1xf32>
    %130 = vector.broadcast %129 : vector<64x1xf32> to vector<64x8xf32>
    %131 = arith.subf %127, %130 : vector<64x8xf32>
    %132 = math.exp %131 : vector<64x8xf32>
    %cst_48 = arith.constant dense<0.000000e+00> : vector<64xf32>
    %133 = vector.multi_reduction <add>, %132, %cst_48 [1] : vector<64x8xf32> to vector<64xf32>
    %134 = vector.shape_cast %133 : vector<64xf32> to vector<64x1xf32>
    %135 = tpu.reciprocal %134 {approx = true} : vector<64x1xf32> -> vector<64x1xf32>
    %136 = vector.broadcast %135 : vector<64x1xf32> to vector<64x8xf32>
    %137 = arith.mulf %132, %136 : vector<64x8xf32>
    %138 = vector.extract_strided_slice %36 {offsets = [0, 32], sizes = [8, 8], strides = [1, 1]} : vector<8x64xf32> to vector<8x8xf32>
    %139 = arith.truncf %137 : vector<64x8xf32> to vector<64x8xbf16>
    %140 = arith.truncf %138 : vector<8x8xf32> to vector<8x8xbf16>
    %cst_49 = arith.constant dense<0.000000e+00> : vector<64x8xf32>
    %141 = tpu.matmul %139, %140, %cst_49 {dimension_numbers = #tpu.dot_dimension_numbers<[1], [0], [0], [1], [0, 0, 1, 1], [], []>} : vector<64x8xbf16>, vector<8x8xbf16>, vector<64x8xf32> -> vector<64x8xf32>
    %142 = vector.extract_strided_slice %30 {offsets = [0, 40], sizes = [64, 8], strides = [1, 1]} : vector<64x64xf32> to vector<64x8xf32>
    %143 = vector.extract_strided_slice %33 {offsets = [0, 40], sizes = [8, 8], strides = [1, 1]} : vector<8x64xf32> to vector<8x8xf32>
    %144 = arith.truncf %142 : vector<64x8xf32> to vector<64x8xbf16>
    %145 = arith.truncf %143 : vector<8x8xf32> to vector<8x8xbf16>
    %cst_50 = arith.constant dense<0.000000e+00> : vector<64x8xf32>
    %146 = tpu.matmul %144, %145, %cst_50 {dimension_numbers = #tpu.dot_dimension_numbers<[1], [1], [0], [0], [0, 0, 1, 0], [], []>} : vector<64x8xbf16>, vector<8x8xbf16>, vector<64x8xf32> -> vector<64x8xf32>
    %cst_51 = arith.constant 0.353553385 : f32
    %147 = vector.broadcast %cst_51 : f32 to vector<64x8xf32>
    %148 = arith.mulf %146, %147 : vector<64x8xf32>
    %cst_52 = arith.constant dense<0xFF800000> : vector<64xf32>
    %149 = vector.multi_reduction <maximumf>, %148, %cst_52 [1] : vector<64x8xf32> to vector<64xf32>
    %150 = vector.shape_cast %149 : vector<64xf32> to vector<64x1xf32>
    %151 = vector.broadcast %150 : vector<64x1xf32> to vector<64x8xf32>
    %152 = arith.subf %148, %151 : vector<64x8xf32>
    %153 = math.exp %152 : vector<64x8xf32>
    %cst_53 = arith.constant dense<0.000000e+00> : vector<64xf32>
    %154 = vector.multi_reduction <add>, %153, %cst_53 [1] : vector<64x8xf32> to vector<64xf32>
    %155 = vector.shape_cast %154 : vector<64xf32> to vector<64x1xf32>
    %156 = tpu.reciprocal %155 {approx = true} : vector<64x1xf32> -> vector<64x1xf32>
    %157 = vector.broadcast %156 : vector<64x1xf32> to vector<64x8xf32>
    %158 = arith.mulf %153, %157 : vector<64x8xf32>
    %159 = vector.extract_strided_slice %36 {offsets = [0, 40], sizes = [8, 8], strides = [1, 1]} : vector<8x64xf32> to vector<8x8xf32>
    %160 = arith.truncf %158 : vector<64x8xf32> to vector<64x8xbf16>
    %161 = arith.truncf %159 : vector<8x8xf32> to vector<8x8xbf16>
    %cst_54 = arith.constant dense<0.000000e+00> : vector<64x8xf32>
    %162 = tpu.matmul %160, %161, %cst_54 {dimension_numbers = #tpu.dot_dimension_numbers<[1], [0], [0], [1], [0, 0, 1, 1], [], []>} : vector<64x8xbf16>, vector<8x8xbf16>, vector<64x8xf32> -> vector<64x8xf32>
    %163 = vector.extract_strided_slice %30 {offsets = [0, 48], sizes = [64, 8], strides = [1, 1]} : vector<64x64xf32> to vector<64x8xf32>
    %164 = vector.extract_strided_slice %33 {offsets = [0, 48], sizes = [8, 8], strides = [1, 1]} : vector<8x64xf32> to vector<8x8xf32>
    %165 = arith.truncf %163 : vector<64x8xf32> to vector<64x8xbf16>
    %166 = arith.truncf %164 : vector<8x8xf32> to vector<8x8xbf16>
    %cst_55 = arith.constant dense<0.000000e+00> : vector<64x8xf32>
    %167 = tpu.matmul %165, %166, %cst_55 {dimension_numbers = #tpu.dot_dimension_numbers<[1], [1], [0], [0], [0, 0, 1, 0], [], []>} : vector<64x8xbf16>, vector<8x8xbf16>, vector<64x8xf32> -> vector<64x8xf32>
    %cst_56 = arith.constant 0.353553385 : f32
    %168 = vector.broadcast %cst_56 : f32 to vector<64x8xf32>
    %169 = arith.mulf %167, %168 : vector<64x8xf32>
    %cst_57 = arith.constant dense<0xFF800000> : vector<64xf32>
    %170 = vector.multi_reduction <maximumf>, %169, %cst_57 [1] : vector<64x8xf32> to vector<64xf32>
    %171 = vector.shape_cast %170 : vector<64xf32> to vector<64x1xf32>
    %172 = vector.broadcast %171 : vector<64x1xf32> to vector<64x8xf32>
    %173 = arith.subf %169, %172 : vector<64x8xf32>
    %174 = math.exp %173 : vector<64x8xf32>
    %cst_58 = arith.constant dense<0.000000e+00> : vector<64xf32>
    %175 = vector.multi_reduction <add>, %174, %cst_58 [1] : vector<64x8xf32> to vector<64xf32>
    %176 = vector.shape_cast %175 : vector<64xf32> to vector<64x1xf32>
    %177 = tpu.reciprocal %176 {approx = true} : vector<64x1xf32> -> vector<64x1xf32>
    %178 = vector.broadcast %177 : vector<64x1xf32> to vector<64x8xf32>
    %179 = arith.mulf %174, %178 : vector<64x8xf32>
    %180 = vector.extract_strided_slice %36 {offsets = [0, 48], sizes = [8, 8], strides = [1, 1]} : vector<8x64xf32> to vector<8x8xf32>
    %181 = arith.truncf %179 : vector<64x8xf32> to vector<64x8xbf16>
    %182 = arith.truncf %180 : vector<8x8xf32> to vector<8x8xbf16>
    %cst_59 = arith.constant dense<0.000000e+00> : vector<64x8xf32>
    %183 = tpu.matmul %181, %182, %cst_59 {dimension_numbers = #tpu.dot_dimension_numbers<[1], [0], [0], [1], [0, 0, 1, 1], [], []>} : vector<64x8xbf16>, vector<8x8xbf16>, vector<64x8xf32> -> vector<64x8xf32>
    %184 = vector.extract_strided_slice %30 {offsets = [0, 56], sizes = [64, 8], strides = [1, 1]} : vector<64x64xf32> to vector<64x8xf32>
    %185 = vector.extract_strided_slice %33 {offsets = [0, 56], sizes = [8, 8], strides = [1, 1]} : vector<8x64xf32> to vector<8x8xf32>
    %186 = arith.truncf %184 : vector<64x8xf32> to vector<64x8xbf16>
    %187 = arith.truncf %185 : vector<8x8xf32> to vector<8x8xbf16>
    %cst_60 = arith.constant dense<0.000000e+00> : vector<64x8xf32>
    %188 = tpu.matmul %186, %187, %cst_60 {dimension_numbers = #tpu.dot_dimension_numbers<[1], [1], [0], [0], [0, 0, 1, 0], [], []>} : vector<64x8xbf16>, vector<8x8xbf16>, vector<64x8xf32> -> vector<64x8xf32>
    %cst_61 = arith.constant 0.353553385 : f32
    %189 = vector.broadcast %cst_61 : f32 to vector<64x8xf32>
    %190 = arith.mulf %188, %189 : vector<64x8xf32>
    %cst_62 = arith.constant dense<0xFF800000> : vector<64xf32>
    %191 = vector.multi_reduction <maximumf>, %190, %cst_62 [1] : vector<64x8xf32> to vector<64xf32>
    %192 = vector.shape_cast %191 : vector<64xf32> to vector<64x1xf32>
    %193 = vector.broadcast %192 : vector<64x1xf32> to vector<64x8xf32>
    %194 = arith.subf %190, %193 : vector<64x8xf32>
    %195 = math.exp %194 : vector<64x8xf32>
    %cst_63 = arith.constant dense<0.000000e+00> : vector<64xf32>
    %196 = vector.multi_reduction <add>, %195, %cst_63 [1] : vector<64x8xf32> to vector<64xf32>
    %197 = vector.shape_cast %196 : vector<64xf32> to vector<64x1xf32>
    %198 = tpu.reciprocal %197 {approx = true} : vector<64x1xf32> -> vector<64x1xf32>
    %199 = vector.broadcast %198 : vector<64x1xf32> to vector<64x8xf32>
    %200 = arith.mulf %195, %199 : vector<64x8xf32>
    %201 = vector.extract_strided_slice %36 {offsets = [0, 56], sizes = [8, 8], strides = [1, 1]} : vector<8x64xf32> to vector<8x8xf32>
    %202 = arith.truncf %200 : vector<64x8xf32> to vector<64x8xbf16>
    %203 = arith.truncf %201 : vector<8x8xf32> to vector<8x8xbf16>
    %cst_64 = arith.constant dense<0.000000e+00> : vector<64x8xf32>
    %204 = tpu.matmul %202, %203, %cst_64 {dimension_numbers = #tpu.dot_dimension_numbers<[1], [0], [0], [1], [0, 0, 1, 1], [], []>} : vector<64x8xbf16>, vector<8x8xbf16>, vector<64x8xf32> -> vector<64x8xf32>
    %205 = tpu.concatenate %57, %78, %99, %120, %141, %162, %183, %204 in 1 : vector<64x8xf32>, vector<64x8xf32>, vector<64x8xf32>, vector<64x8xf32>, vector<64x8xf32>, vector<64x8xf32>, vector<64x8xf32>, vector<64x8xf32> -> vector<64x64xf32>
    %c0_65 = arith.constant 0 : index
    %c0_66 = arith.constant 0 : index
    %206 = vector.load %arg9[%c0_65, %c0_66] : memref<64x16xbf16, #tpu.memory_space<vmem>>, vector<64x16xbf16>
    %207 = arith.truncf %205 : vector<64x64xf32> to vector<64x64xbf16>
    %cst_67 = arith.constant dense<0.000000e+00> : vector<64x16xf32>
    %208 = tpu.matmul %207, %206, %cst_67 {dimension_numbers = #tpu.dot_dimension_numbers<[1], [0], [0], [1], [0, 0, 1, 1], [], []>} : vector<64x64xbf16>, vector<64x16xbf16>, vector<64x16xf32> -> vector<64x16xf32>
    %c0_68 = arith.constant 0 : index
    %c0_69 = arith.constant 0 : index
    %209 = vector.load %arg10[%c0_68, %c0_69] : memref<1x16xf32, #tpu.memory_space<vmem>>, vector<1x16xf32>
    %210 = vector.broadcast %209 : vector<1x16xf32> to vector<64x16xf32>
    %211 = arith.addf %208, %210 : vector<64x16xf32>
    %212 = arith.addf %211, %1 : vector<64x16xf32>
    %cst_70 = arith.constant dense<0.000000e+00> : vector<64xf32>
    %213 = vector.multi_reduction <add>, %212, %cst_70 [1] : vector<64x16xf32> to vector<64xf32>
    %214 = vector.shape_cast %213 : vector<64xf32> to vector<64x1xf32>
    %cst_71 = arith.constant 1.600000e+01 : f32
    %215 = vector.broadcast %cst_71 : f32 to vector<64x1xf32>
    %216 = arith.divf %214, %215 : vector<64x1xf32>
    %217 = vector.broadcast %216 : vector<64x1xf32> to vector<64x16xf32>
    %218 = arith.subf %212, %217 : vector<64x16xf32>
    %219 = arith.mulf %218, %218 : vector<64x16xf32>
    %cst_72 = arith.constant dense<0.000000e+00> : vector<64xf32>
    %220 = vector.multi_reduction <add>, %219, %cst_72 [1] : vector<64x16xf32> to vector<64xf32>
    %221 = vector.shape_cast %220 : vector<64xf32> to vector<64x1xf32>
    %cst_73 = arith.constant 1.600000e+01 : f32
    %222 = vector.broadcast %cst_73 : f32 to vector<64x1xf32>
    %223 = arith.divf %221, %222 : vector<64x1xf32>
    %cst_74 = arith.constant 9.99999974E-6 : f32
    %224 = vector.broadcast %cst_74 : f32 to vector<64x1xf32>
    %225 = arith.addf %223, %224 : vector<64x1xf32>
    %226 = math.rsqrt %225 : vector<64x1xf32>
    %227 = vector.broadcast %226 : vector<64x1xf32> to vector<64x16xf32>
    %228 = arith.mulf %218, %227 : vector<64x16xf32>
    %c0_75 = arith.constant 0 : index
    %c0_76 = arith.constant 0 : index
    %229 = vector.load %arg4[%c0_75, %c0_76] : memref<1x16xf32, #tpu.memory_space<vmem>>, vector<1x16xf32>
    %230 = vector.broadcast %229 : vector<1x16xf32> to vector<64x16xf32>
    %231 = arith.mulf %228, %230 : vector<64x16xf32>
    %c0_77 = arith.constant 0 : index
    %c0_78 = arith.constant 0 : index
    %232 = vector.load %arg5[%c0_77, %c0_78] : memref<1x16xf32, #tpu.memory_space<vmem>>, vector<1x16xf32>
    %233 = vector.broadcast %232 : vector<1x16xf32> to vector<64x16xf32>
    %234 = arith.addf %231, %233 : vector<64x16xf32>
    %c0_79 = arith.constant 0 : index
    %c0_80 = arith.constant 0 : index
    %235 = vector.load %arg11[%c0_79, %c0_80] : memref<16x64xbf16, #tpu.memory_space<vmem>>, vector<16x64xbf16>
    %236 = arith.truncf %234 : vector<64x16xf32> to vector<64x16xbf16>
    %cst_81 = arith.constant dense<0.000000e+00> : vector<64x64xf32>
    %237 = tpu.matmul %236, %235, %cst_81 {dimension_numbers = #tpu.dot_dimension_numbers<[1], [0], [0], [1], [0, 0, 1, 1], [], []>} : vector<64x16xbf16>, vector<16x64xbf16>, vector<64x64xf32> -> vector<64x64xf32>
    %c0_82 = arith.constant 0 : index
    %c0_83 = arith.constant 0 : index
    %238 = vector.load %arg12[%c0_82, %c0_83] : memref<1x64xf32, #tpu.memory_space<vmem>>, vector<1x64xf32>
    %239 = vector.broadcast %238 : vector<1x64xf32> to vector<64x64xf32>
    %240 = arith.addf %237, %239 : vector<64x64xf32>
    %c0_84 = arith.constant 0 : index
    %c0_85 = arith.constant 0 : index
    %241 = vector.load %arg13[%c0_84, %c0_85] : memref<16x64xbf16, #tpu.memory_space<vmem>>, vector<16x64xbf16>
    %242 = arith.truncf %234 : vector<64x16xf32> to vector<64x16xbf16>
    %cst_86 = arith.constant dense<0.000000e+00> : vector<64x64xf32>
    %243 = tpu.matmul %242, %241, %cst_86 {dimension_numbers = #tpu.dot_dimension_numbers<[1], [0], [0], [1], [0, 0, 1, 1], [], []>} : vector<64x16xbf16>, vector<16x64xbf16>, vector<64x64xf32> -> vector<64x64xf32>
    %c0_87 = arith.constant 0 : index
    %c0_88 = arith.constant 0 : index
    %244 = vector.load %arg14[%c0_87, %c0_88] : memref<1x64xf32, #tpu.memory_space<vmem>>, vector<1x64xf32>
    %245 = vector.broadcast %244 : vector<1x64xf32> to vector<64x64xf32>
    %246 = arith.addf %243, %245 : vector<64x64xf32>
    %247 = arith.mulf %246, %246 : vector<64x64xf32>
    %248 = arith.mulf %246, %247 : vector<64x64xf32>
    %cst_89 = arith.constant 4.471500e-02 : f32
    %249 = vector.broadcast %cst_89 : f32 to vector<64x64xf32>
    %250 = arith.mulf %249, %248 : vector<64x64xf32>
    %251 = arith.addf %246, %250 : vector<64x64xf32>
    %cst_90 = arith.constant 0.797884583 : f32
    %252 = vector.broadcast %cst_90 : f32 to vector<64x64xf32>
    %253 = arith.mulf %252, %251 : vector<64x64xf32>
    %254 = math.tanh %253 : vector<64x64xf32>
    %cst_91 = arith.constant 1.000000e+00 : f32
    %255 = vector.broadcast %cst_91 : f32 to vector<64x64xf32>
    %256 = arith.addf %255, %254 : vector<64x64xf32>
    %cst_92 = arith.constant 5.000000e-01 : f32
    %257 = vector.broadcast %cst_92 : f32 to vector<64x64xf32>
    %258 = arith.mulf %257, %256 : vector<64x64xf32>
    %259 = arith.mulf %246, %258 : vector<64x64xf32>
    %260 = arith.mulf %240, %259 : vector<64x64xf32>
    %c0_93 = arith.constant 0 : index
    %c0_94 = arith.constant 0 : index
    %261 = vector.load %arg15[%c0_93, %c0_94] : memref<64x16xbf16, #tpu.memory_space<vmem>>, vector<64x16xbf16>
    %262 = arith.truncf %260 : vector<64x64xf32> to vector<64x64xbf16>
    %cst_95 = arith.constant dense<0.000000e+00> : vector<64x16xf32>
    %263 = tpu.matmul %262, %261, %cst_95 {dimension_numbers = #tpu.dot_dimension_numbers<[1], [0], [0], [1], [0, 0, 1, 1], [], []>} : vector<64x64xbf16>, vector<64x16xbf16>, vector<64x16xf32> -> vector<64x16xf32>
    %c0_96 = arith.constant 0 : index
    %c0_97 = arith.constant 0 : index
    %264 = vector.load %arg16[%c0_96, %c0_97] : memref<1x16xf32, #tpu.memory_space<vmem>>, vector<1x16xf32>
    %265 = vector.broadcast %264 : vector<1x16xf32> to vector<64x16xf32>
    %266 = arith.addf %263, %265 : vector<64x16xf32>
    %267 = arith.addf %266, %212 : vector<64x16xf32>
    %c0_98 = arith.constant 0 : index
    %c0_99 = arith.constant 0 : index
    %268 = vector.load %arg17[%c0_98, %c0_99] : memref<16x16xbf16, #tpu.memory_space<vmem>>, vector<16x16xbf16>
    %269 = arith.truncf %267 : vector<64x16xf32> to vector<64x16xbf16>
    %cst_100 = arith.constant dense<0.000000e+00> : vector<64x16xf32>
    %270 = tpu.matmul %269, %268, %cst_100 {dimension_numbers = #tpu.dot_dimension_numbers<[1], [0], [0], [1], [0, 0, 1, 1], [], []>} : vector<64x16xbf16>, vector<16x16xbf16>, vector<64x16xf32> -> vector<64x16xf32>
    %c0_101 = arith.constant 0 : index
    %c0_102 = arith.constant 0 : index
    %271 = vector.load %arg18[%c0_101, %c0_102] : memref<1x16xf32, #tpu.memory_space<vmem>>, vector<1x16xf32>
    %272 = vector.broadcast %271 : vector<1x16xf32> to vector<64x16xf32>
    %273 = arith.addf %270, %272 : vector<64x16xf32>
    %274 = arith.addf %273, %3 : vector<64x16xf32>
    %c0_103 = arith.constant 0 : index
    %c0_104 = arith.constant 0 : index
    %c0_105 = arith.constant 0 : index
    %275 = vector.load %arg19[%c0_103, %c0_104, %c0_105] : memref<1x64x16xf32, #tpu.memory_space<vmem>>, vector<1x64x16xf32>
    %276 = vector.shape_cast %275 : vector<1x64x16xf32> to vector<64x16xf32>
    %277 = vector.shape_cast %274 : vector<64x16xf32> to vector<1x64x16xf32>
    tpu.vector_store %arg19[%c0_103, %c0_104, %c0_105], %277 {strides = array<i32>} : memref<1x64x16xf32, #tpu.memory_space<vmem>>, vector<1x64x16xf32>,
    return
  }
  func.func @transform_0(%arg0: i32) -> (i32, i32, i32) {
    %c0_i32 = arith.constant 0 : i32
    %c0_i32_0 = arith.constant 0 : i32
    %c0_i32_1 = arith.constant 0 : i32
    return %arg0, %c0_i32, %c0_i32_0 : i32, i32, i32
  }
  func.func @transform_1(%arg0: i32) -> (i32, i32, i32) {
    %c0_i32 = arith.constant 0 : i32
    %c0_i32_0 = arith.constant 0 : i32
    %c0_i32_1 = arith.constant 0 : i32
    return %arg0, %c0_i32, %c0_i32_0 : i32, i32, i32
  }
  func.func @transform_2(%arg0: i32) -> (i32, i32, i32) {
    %c0_i32 = arith.constant 0 : i32
    %c0_i32_0 = arith.constant 0 : i32
    %c0_i32_1 = arith.constant 0 : i32
    return %arg0, %c0_i32, %c0_i32_0 : i32, i32, i32
  }
  func.func @transform_3(%arg0: i32) -> (i32, i32) {
    %c0_i32 = arith.constant 0 : i32
    %c0_i32_0 = arith.constant 0 : i32
    %c0_i32_1 = arith.constant 0 : i32
    return %c0_i32, %c0_i32_0 : i32, i32
  }
  func.func @transform_4(%arg0: i32) -> (i32, i32) {
    %c0_i32 = arith.constant 0 : i32
    %c0_i32_0 = arith.constant 0 : i32
    %c0_i32_1 = arith.constant 0 : i32
    return %c0_i32, %c0_i32_0 : i32, i32
  }
  func.func @transform_5(%arg0: i32) -> (i32, i32) {
    %c0_i32 = arith.constant 0 : i32
    %c0_i32_0 = arith.constant 0 : i32
    %c0_i32_1 = arith.constant 0 : i32
    return %c0_i32, %c0_i32_0 : i32, i32
  }
  func.func @transform_6(%arg0: i32) -> (i32, i32) {
    %c0_i32 = arith.constant 0 : i32
    %c0_i32_0 = arith.constant 0 : i32
    %c0_i32_1 = arith.constant 0 : i32
    return %c0_i32, %c0_i32_0 : i32, i32
  }
  func.func @transform_7(%arg0: i32) -> (i32, i32) {
    %c0_i32 = arith.constant 0 : i32
    %c0_i32_0 = arith.constant 0 : i32
    %c0_i32_1 = arith.constant 0 : i32
    return %c0_i32, %c0_i32_0 : i32, i32
  }
  func.func @transform_8(%arg0: i32) -> (i32, i32) {
    %c0_i32 = arith.constant 0 : i32
    %c0_i32_0 = arith.constant 0 : i32
    %c0_i32_1 = arith.constant 0 : i32
    return %c0_i32, %c0_i32_0 : i32, i32
  }
  func.func @transform_9(%arg0: i32) -> (i32, i32) {
    %c0_i32 = arith.constant 0 : i32
    %c0_i32_0 = arith.constant 0 : i32
    %c0_i32_1 = arith.constant 0 : i32
    return %c0_i32, %c0_i32_0 : i32, i32
  }
  func.func @transform_10(%arg0: i32) -> (i32, i32) {
    %c0_i32 = arith.constant 0 : i32
    %c0_i32_0 = arith.constant 0 : i32
    %c0_i32_1 = arith.constant 0 : i32
    return %c0_i32, %c0_i32_0 : i32, i32
  }
  func.func @transform_11(%arg0: i32) -> (i32, i32) {
    %c0_i32 = arith.constant 0 : i32
    %c0_i32_0 = arith.constant 0 : i32
    %c0_i32_1 = arith.constant 0 : i32
    return %c0_i32, %c0_i32_0 : i32, i32
  }
  func.func @transform_12(%arg0: i32) -> (i32, i32) {
    %c0_i32 = arith.constant 0 : i32
    %c0_i32_0 = arith.constant 0 : i32
    %c0_i32_1 = arith.constant 0 : i32
    return %c0_i32, %c0_i32_0 : i32, i32
  }
  func.func @transform_13(%arg0: i32) -> (i32, i32) {
    %c0_i32 = arith.constant 0 : i32
    %c0_i32_0 = arith.constant 0 : i32
    %c0_i32_1 = arith.constant 0 : i32
    return %c0_i32, %c0_i32_0 : i32, i32
  }
  func.func @transform_14(%arg0: i32) -> (i32, i32) {
    %c0_i32 = arith.constant 0 : i32
    %c0_i32_0 = arith.constant 0 : i32
    %c0_i32_1 = arith.constant 0 : i32
    return %c0_i32, %c0_i32_0 : i32, i32
  }
  func.func @transform_15(%arg0: i32) -> (i32, i32) {
    %c0_i32 = arith.constant 0 : i32
    %c0_i32_0 = arith.constant 0 : i32
    %c0_i32_1 = arith.constant 0 : i32
    return %c0_i32, %c0_i32_0 : i32, i32
  }
  func.func @transform_16(%arg0: i32) -> (i32, i32) {
    %c0_i32 = arith.constant 0 : i32
    %c0_i32_0 = arith.constant 0 : i32
    %c0_i32_1 = arith.constant 0 : i32
    return %c0_i32, %c0_i32_0 : i32, i32
  }
  func.func @transform_17(%arg0: i32) -> (i32, i32) {
    %c0_i32 = arith.constant 0 : i32
    %c0_i32_0 = arith.constant 0 : i32
    %c0_i32_1 = arith.constant 0 : i32
    return %c0_i32, %c0_i32_0 : i32, i32
  }
  func.func @transform_18(%arg0: i32) -> (i32, i32, i32) {
    %c0_i32 = arith.constant 0 : i32
    %c0_i32_0 = arith.constant 0 : i32
    %c0_i32_1 = arith.constant 0 : i32
    return %arg0, %c0_i32, %c0_i32_0 : i32, i32, i32
  }
}

</mosaic_0001>

<bundles_post_ra>
// kernel: block_forward.3
= control target key start
LH: loop header
LB: loop body
LE: loop exit
PB: predicated region body
PF: predicated region fallthrough
CT: control target
= control target key end

     0   :  { %s3545_s15 = smov 0   ;;  %s4269_s0 = inlined_call_operand.vmem [shape: f32[2,10,10,16], index: 0, kind: input, shape index: {}]   ;;  %s4270_s1 = inlined_call_operand.vmem [shape: bf16[3,3,16,16], index: 1, kind: input, shape index: {}]   ;;  %s4271_s2 = inlined_call_operand.vmem [shape: f32[1,16], index: 2, kind: input, shape index: {}]   ;;  %s4272_s3 = inlined_call_operand.vmem [shape: bf16[3,3,16,16], index: 3, kind: input, shape index: {}]   ;;  %s4273_s4 = inlined_call_operand.vmem [shape: f32[1,16], index: 4, kind: input, shape index: {}]   ;;  %s4274_s5 = inlined_call_operand.vmem [shape: bf16[16,2], index: 5, kind: input, shape index: {}]   ;;  %s4275_s6 = inlined_call_operand.vmem [shape: f32[1,2], index: 6, kind: input, shape index: {}]   ;;  %s4276_s7 = inlined_call_operand.vmem [shape: bf16[2,16], index: 7, kind: input, shape index: {}]   ;;  %s4277_s8 = inlined_call_operand.vmem [shape: f32[1,16], index: 8, kind: input, shape index: {}]   ;;  %s4278_s9 = inlined_call_operand.vmem [shape: bf16[16,2], index: 9, kind: input, shape index: {}]   ;;  %s4279_s10 = inlined_call_operand.vmem [shape: f32[1,2], index: 10, kind: input, shape index: {}]   ;;  %s4280_s11 = inlined_call_operand.vmem [shape: f32[1,2], index: 11, kind: input, shape index: {}]   ;;  %s4281_s12 = inlined_call_operand.<no memory space> [shape: f32[1,1], index: 12, kind: input, shape index: {}]   ;;  %s4282_s13 = inlined_call_operand.vmem [shape: f32[2,64,16], index: 13, kind: output, shape index: {0}]   ;;  %s4283_s14 = inlined_call_operand.vmem [shape: f32[2,64,16], index: 14, kind: output, shape index: {1}]  }
   0x1   :  { %v20_v0 = vstv %s4281_s12 }
   0x2   :  { %21 = vst [vmem:[#allocation3] sm:$0x1] %v20_v0 }
   0x3 LB: > { %s2957_s16 = sadd.s32 4294967295, %s3462_s15   ;;  %p2961_p0 = scmp.ge.s32.totalorder %s3462_s15, 1  ;;  %s3462_s15 = sphi %s3545_s15, %s27_s15  }
   0x4   : > { %p417_p1 = scmp.lt.s32.totalorder %s3462_s15, 3 }
   0x6   : > { %p418_p2 = pnand %p2961_p0, %p417_p1 }
   0x8   : > { %421 = sbr.rel (%p418_p2) target bundleno = 1569 (0x621), region = 72 }
   0xd   : > { %v3400_v1 = vld [vmem:[%s4270_s1 + $0x8] sm:$0xff]   ;;  %p468_p3 = scmp.lt.s32.totalorder %s2957_s16, 1  ;;  %v3561_v2 = vld [vmem:[%s4270_s1] sm:$0xff]   ;;  %v3566_v3 = vld [vmem:[%s4270_s1 + $0x10] sm:$0xff]   ;;  %vm520_vm0 = vcmask 1046528   ;;  %vm591_vm1 = vcmask 130048  }
   0xe   : > { %3384 = vmatprep.subr.bf16.mxu1 %v3400_v1  ;;  %3182 = vmatprep.subr.bf16.mxu0 %v3400_v1  ;;  %vm752_vm2 = vcmask 1045504   ;;  %v3404_v53 = vld [vmem:[%s4270_s1 + $0x20] sm:$0xff]   ;;  %v3403_v60 = vld [vmem:[%s4270_s1 + $0x18] sm:$0xff]   ;;  %vm1468_vm3 = vcmask 123904   ;;  %vm3465_vm4 = vmmov 0   ;;  %vm2537_vm5 = vcmask 1040384  }
   0xf   : > { %s4340_s16 = smov (!%p468_p3, %s2957_s16), 1  ;;  %3385 = vmatpush3.bf16.msra.mxu1 %v3400_v1  ;;  %3183 = vmatpush3.bf16.msra.mxu0 %v3400_v1  ;;  %vm2533_vm6 = vcmask 15360  }
  0x10   : > { %s3386_s22 = smul.u32 160, %s4340_s16  ;;  %3192 = vmatprep.subr.bf16.mxu1 %v3561_v2  ;;  %3202 = vmatprep.subr.bf16.mxu0 %v3566_v3  ;;  %s3081_s12 = sshll.u32 %s4340_s16, 6 }
  0x11   : > { %s3881_s21 = scalar_lea.vmem %s4282_s13, %s3081_s12 }
  0x12   : > { %s3574_s25 = scalar_lea.vmem %s4269_s0, %s3386_s22  ;;  %s482_s22 = scalar_lea.vmem %s4283_s14, %s3081_s12 }
  0x13   : > { %v3577_v4 = vld [vmem:[%s3574_s25] sm:$0xff]  ;;  %v485_v5 = vld [vmem:[%s3574_s25 + $0x8] sm:$0x3]  ;;  %v3581_v6 = vld [vmem:[%s3574_s25 + $0x10] sm:$0xff] }
  0x14   : > { %v487_v7 = vld [vmem:[%s3574_s25 + $0x18] sm:$0x3]  ;;  %v521_v8 = vrot.slane %v3581_v6, 1  ;;  %v577_v9 = vrot.slane %v3577_v4, 1  ;;  %v578_v10 = vrot.slane %v485_v5, 1  ;;  %v753_v12 = vrot.slane %v3577_v4, 2 }
  0x15   : > { %v522_v11 = vrot.slane %v487_v7, 1  ;;  %v754_v13 = vrot.slane %v485_v5, 2  ;;  %v3588_v14 = vld [vmem:[%s3574_s25 + $0x30] sm:$0xff]  ;;  %v491_v15 = vld [vmem:[%s3574_s25 + $0x38] sm:$0x3]  ;;  %v3593_v17 = vld [vmem:[%s3574_s25 + $0x40] sm:$0xff]  ;;  %v571_v34 = vpack.c.bf16 %v3581_v6, %v3577_v4 }
  0x16   : > { %v579_v16 = vsel %vm520_vm0, %v577_v9, %v578_v10  ;;  %v493_v18 = vld [vmem:[%s3574_s25 + $0x48] sm:$0x3]  ;;  %v3597_v19 = vld [vmem:[%s3574_s25 + $0x50] sm:$0xff]  ;;  %v527_v20 = vrot.slane %v3588_v14, 1  ;;  %v528_v21 = vrot.slane %v491_v15, 1  ;;  %v530_v24 = vrot.slane %v3593_v17, 1 }
  0x17   : > { %v3601_v22 = vsel %vm520_vm0, %v521_v8, %v522_v11  ;;  %v495_v23 = vld [vmem:[%s3574_s25 + $0x58] sm:$0x3]  ;;  %v531_v25 = vrot.slane %v493_v18, 1  ;;  %v533_v26 = vrot.slane %v3597_v19, 1  ;;  %v3607_v27 = vld [vmem:[%s3574_s25 + $0x20] sm:$0xff]  ;;  %v757_v29 = vrot.slane %v487_v7, 2 }
  0x18   : > { %4302 = vst [vmem:[#allocation4_spill] sm:$0xff] %v3601_v22  ;;  %v581_v28 = vpack.c.bf16 %v3601_v22, %v579_v16  ;;  %v534_v30 = vrot.slane %v495_v23, 1  ;;  %v489_v31 = vld [vmem:[%s3574_s25 + $0x28] sm:$0x3]  ;;  %v3612_v32 = vld [vmem:[%s3574_s25 + $0x60] sm:$0xff]  ;;  %v3615_v33 = vld [vmem:[%s3574_s25 + $0x70] sm:$0xff]  ;;  %v3620_v35 = vsel %vm520_vm0, %v527_v20, %v528_v21  ;;  %v755_v51 = vsel %vm752_vm2, %v753_v12, %v754_v13 }
  0x19   : > { %4303 = vst [vmem:[#allocation5_spill] sm:$0xff] %v3620_v35  ;;  %v3623_v36 = vsel %vm520_vm0, %v530_v24, %v531_v25  ;;  %v524_v37 = vrot.slane %v3607_v27, 1  ;;  %v525_v38 = vrot.slane %v489_v31, 1  ;;  %v497_v39 = vld [vmem:[%s3574_s25 + $0x68] sm:$0x3]  ;;  %v766_v41 = vrot.slane %v493_v18, 2 }
  0x1a   : > { %4304 = vst [vmem:[#allocation6_spill] sm:$0xff] %v3623_v36  ;;  %3184 = vmatprep.mubr.msk.bf16.mxu0 %vm591_vm1, %v581_v28  ;;  %v3629_v40 = vsel %vm520_vm0, %v533_v26, %v534_v30  ;;  %v499_v42 = vld [vmem:[%s3574_s25 + $0x78] sm:$0x3]  ;;  %v536_v43 = vrot.slane %v3612_v32, 1  ;;  %v537_v44 = vrot.slane %v497_v39, 1  ;;  %v539_v47 = vrot.slane %v3615_v33, 1 }
  0x1b   : > { %4305 = vst [vmem:[#allocation7_spill] sm:$0xff] %v3629_v40  ;;  %v3635_v45 = vpack.c.bf16 %v3629_v40, %v3623_v36  ;;  %v3638_v46 = vsel %vm520_vm0, %v524_v37, %v525_v38  ;;  %v540_v48 = vrot.slane %v499_v42, 1  ;;  %v756_v52 = vrot.slane %v3581_v6, 2  ;;  %v3405_v18 = vld [vmem:[%s4270_s1 + $0x28] sm:$0xff]   ;;  %v500_v28 = vld [vmem:[%s3574_s25 + $0x80] sm:$0xff] }
  0x1c   : > { %4306 = vst [vmem:[#allocation8_spill] sm:$0xff] %v3638_v46  ;;  %v3643_v49 = vpack.c.bf16 %v3620_v35, %v3638_v46  ;;  %v3646_v50 = vsel %vm520_vm0, %v536_v43, %v537_v44  ;;  %v769_v54 = vrot.slane %v495_v23, 2  ;;  %v759_v56 = vrot.slane %v3607_v27, 2 }
  0x1d   : > { %4307 = vst [vmem:[#allocation9_spill] sm:$0xff] %v3646_v50  ;;  %3188 = vmatprep.mubr.msk.bf16.mxu1 %vm591_vm1, %v3635_v45  ;;  %v3656_v55 = vsel %vm520_vm0, %v539_v47, %v540_v48  ;;  %v760_v57 = vrot.slane %v489_v31, 2  ;;  %v3666_v59 = vsel %vm752_vm2, %v756_v52, %v757_v29  ;;  %v762_v61 = vrot.slane %v3588_v14, 2  ;;  %v501_v29 = vld [vmem:[%s3574_s25 + $0x88] sm:$0x3] }
  0x1e   : > { %4308 = vst [vmem:[#allocation10_spill] sm:$0xff] %v3656_v55  ;;  %3185 = vmatmul.mubr.msk.bf16.vlgmr.msra.gmra.mxu0 %vm591_vm1, %v3643_v49  ;;  %v3663_v58 = vpack.c.bf16 %v3656_v55, %v3646_v50  ;;  %v763_v62 = vrot.slane %v491_v15, 2  ;;  %v785_v63 = vpack.c.bf16 %v3666_v59, %v755_v51  ;;  %v765_v1 = vrot.slane %v3593_v17, 2  ;;  %v3406_v15 = vld [vmem:[%s4270_s1 + $0x30] sm:$0xff]   ;;  %v503_v52 = vld [vmem:[%s3574_s25 + $0x98] sm:$0x3] }
  0x1f   : > { %3203 = vmatpush3.bf16.msra.mxu0 %v3566_v3  ;;  %v3675_v0 = vsel %vm752_vm2, %v759_v56, %v760_v57  ;;  %v768_v5 = vrot.slane %v3597_v19, 2  ;;  %v771_v7 = vrot.slane %v3612_v32, 2  ;;  %v772_v8 = vrot.slane %v497_v39, 2  ;;  %v3407_v39 = vld [vmem:[%s4270_s1 + $0x38] sm:$0xff]  }
  0x20   : > { %3189 = vmatmul.mubr.msk.bf16.vlgmr.msra.gmra.mxu1 %vm591_vm1, %v3663_v58  ;;  %v3681_v4 = vsel %vm752_vm2, %v762_v61, %v763_v62  ;;  %3222 = vmatprep.subr.bf16.mxu0 %v3404_v53  ;;  %v3687_v3 = vsel %vm752_vm2, %v765_v1, %v766_v41  ;;  %v775_v11 = vrot.slane %v499_v42, 2  ;;  %v572_v13 = vpack.c.bf16 %v3588_v14, %v3607_v27 }
  0x21   : > { %3193 = vmatpush3.bf16.msra.mxu1 %v3561_v2  ;;  %3194 = vmatprep.mubr.msk.bf16.mxu1 %vm591_vm1, %v571_v34  ;;  %v3693_v9 = vpack.c.bf16 %v3681_v4, %v3675_v0  ;;  %v3696_v10 = vsel %vm752_vm2, %v768_v5, %v769_v54  ;;  %v774_v2 = vrot.slane %v3615_v33, 2  ;;  %v573_v16 = vpack.c.bf16 %v3597_v19, %v3593_v17 }
  0x22   : > { %3204 = vmatprep.mubr.msk.bf16.mxu0 %vm591_vm1, %v785_v63  ;;  %3212 = vmatprep.subr.bf16.mxu1 %v3403_v60  ;;  %v3701_v12 = vpack.c.bf16 %v3696_v10, %v3687_v3  ;;  %v773_v20 = vsel %vm752_vm2, %v771_v7, %v772_v8  ;;  %v975_v24 = vpack.c.bf16 %v3638_v46, %v3601_v22  ;;  %v542_v34 = vrot.slane %v500_v28, 1  ;;  %v3840_v63 = vld [vmem:[%s4272_s3 + $0x10] sm:$0xff]  }
  0x23   : > { %v776_v21 = vsel %vm752_vm2, %v774_v2, %v775_v11  ;;  %v574_v25 = vpack.c.bf16 %v3615_v33, %v3612_v32  ;;  %v880_v26 = vpack.c.bf16 %v3607_v27, %v3581_v6  ;;  %v976_v30 = vpack.c.bf16 %v3623_v36, %v3620_v35  ;;  %v3408_v27 = vld [vmem:[%s4270_s1 + $0x40] sm:$0xff]   ;;  %4310 = vst [vmem:[#allocation12_spill] sm:$0xff] %v3840_v63 }
  0x24   : > { %v788_v23 = vpack.c.bf16 %v776_v21, %v773_v20  ;;  %v977_v31 = vpack.c.bf16 %v3646_v50, %v3629_v40  ;;  %v543_v37 = vrot.slane %v501_v29, 1  ;;  %v881_v6 = vpack.c.bf16 %v3593_v17, %v3588_v14 }
  0x25   : > { %v882_v38 = vpack.c.bf16 %v3612_v32, %v3597_v19  ;;  %v883_v17 = vpack.c.bf16 %v500_v28, %v3615_v33  ;;  %v1074_v19 = vpack.c.bf16 %v3675_v0, %v3666_v59  ;;  %v1075_v32 = vpack.c.bf16 %v3687_v3, %v3681_v4  ;;  %v502_v33 = vld [vmem:[%s3574_s25 + $0x90] sm:$0xff]  ;;  %v3846_v0 = vld [vmem:[%s4272_s3 + $0x18] sm:$0xff]  }
  0x26   : > { %3205 = vmatmul.mubr.msk.bf16.vlgmr.msra.gmra.mxu0 %vm591_vm1, %v3693_v9  ;;  %v3750_v41 = vsel %vm520_vm0, %v542_v34, %v543_v37  ;;  %v1076_v42 = vpack.c.bf16 %v773_v20, %v3696_v10  ;;  %v1070_v43 = vrot.slane %v500_v28, 2  ;;  %v1071_v44 = vrot.slane %v501_v29, 2  ;;  %4311 = vst [vmem:[#allocation13_spill] sm:$0xff] %v3846_v0 }
  0x27   : > { %3223 = vmatpush3.bf16.msra.mxu0 %v3404_v53  ;;  %3208 = vmatprep.mubr.msk.bf16.mxu0 %vm591_vm1, %v3701_v12  ;;  %4309 = vst [vmem:[#allocation11_spill] sm:$0xff] %v3750_v41  ;;  %v978_v14 = vpack.c.bf16 %v3750_v41, %v3656_v55  ;;  %v1169_v48 = vpack.c.bf16 %v502_v33, %v500_v28  ;;  %v1341_v53 = vrot.slane %v502_v33, 2  ;;  %v1342_v54 = vrot.slane %v503_v52, 2 }
  0x28   : > { %3195 = vmatmul.mubr.msk.bf16.vlgmr.msra.gmra.mxu1 %vm591_vm1, %v572_v13  ;;  %3242 = vmatprep.subr.bf16.mxu0 %v3406_v15  ;;  %v1072_v47 = vsel %vm752_vm2, %v1070_v43, %v1071_v44  ;;  %v1254_v56 = vrot.slane %v502_v33, 1  ;;  %v1255_v57 = vrot.slane %v503_v52, 1  ;;  %v4284_v62 = vmov 0.0  }
  0x29   : > { %3213 = vmatpush3.bf16.msra.mxu1 %v3403_v60  ;;  %3198 = vmatprep.mubr.msk.bf16.mxu1 %vm591_vm1, %v573_v16  ;;  %v1077_v51 = vpack.c.bf16 %v1072_v47, %v776_v21  ;;  %v1343_v59 = vsel %vm752_vm2, %v1341_v53, %v1342_v54  ;;  %1474 = vst.msk [vmem:[#allocation2 + $0x30] sm:$0xff] %vm591_vm1, %v4284_v62  ;;  %1467 = vst.msk [vmem:[#allocation2] sm:$0xff] %vm591_vm1, %v4284_v62 }
  0x2a   : > { %3232 = vmatprep.subr.bf16.mxu1 %v3405_v18  ;;  %v1256_v60 = vsel %vm520_vm0, %v1254_v56, %v1255_v57  ;;  %1475 = vst.msk [vmem:[#allocation2 + $0x38] sm:$0x3] %vm1468_vm3, %v4284_v62  ;;  %1469 = vst.msk [vmem:[#allocation2 + $0x8] sm:$0x3] %vm1468_vm3, %v4284_v62 }
  0x2b   : > { %v1258_v61 = vpack.c.bf16 %v1256_v60, %v3750_v41  ;;  %1470 = vst.msk [vmem:[#allocation2 + $0x10] sm:$0xff] %vm591_vm1, %v4284_v62  ;;  %1472 = vst.msk [vmem:[#allocation2 + $0x20] sm:$0xff] %vm591_vm1, %v4284_v62 }
  0x2c   : > { %1471 = vst.msk [vmem:[#allocation2 + $0x18] sm:$0x3] %vm1468_vm3, %v4284_v62  ;;  %1473 = vst.msk [vmem:[#allocation2 + $0x28] sm:$0x3] %vm1468_vm3, %v4284_v62 }
  0x2d   : > { %1476 = vst.msk [vmem:[#allocation2 + $0x40] sm:$0xff] %vm591_vm1, %v4284_v62  ;;  %1478 = vst.msk [vmem:[#allocation2 + $0x50] sm:$0xff] %vm591_vm1, %v4284_v62 }
  0x2e   : > { %3209 = vmatmul.mubr.msk.bf16.gmra.mxu0 %vm591_vm1, %v788_v23  ;;  %1477 = vst.msk [vmem:[#allocation2 + $0x48] sm:$0x3] %vm1468_vm3, %v4284_v62  ;;  %1479 = vst.msk [vmem:[#allocation2 + $0x58] sm:$0x3] %vm1468_vm3, %v4284_v62 }
  0x2f   : > { %3224 = vmatprep.mubr.msk.bf16.mxu0 %vm591_vm1, %v975_v24  ;;  %1480 = vst.msk [vmem:[#allocation2 + $0x60] sm:$0xff] %vm591_vm1, %v4284_v62  ;;  %1482 = vst.msk [vmem:[#allocation2 + $0x70] sm:$0xff] %vm591_vm1, %v4284_v62 }
  0x30   : > { %3199 = vmatmul.mubr.msk.bf16.gmra.mxu1 %vm591_vm1, %v574_v25  ;;  %1481 = vst.msk [vmem:[#allocation2 + $0x68] sm:$0x3] %vm1468_vm3, %v4284_v62  ;;  %1483 = vst.msk [vmem:[#allocation2 + $0x78] sm:$0x3] %vm1468_vm3, %v4284_v62 }
  0x31   : > { %3214 = vmatprep.mubr.msk.bf16.mxu1 %vm591_vm1, %v880_v26  ;;  %1484 = vst.msk [vmem:[#allocation2 + $0x80] sm:$0xff] %vm591_vm1, %v4284_v62  ;;  %1486 = vst.msk [vmem:[#allocation2 + $0x90] sm:$0xff] %vm591_vm1, %v4284_v62 }
  0x32   : > { %1485 = vst.msk [vmem:[#allocation2 + $0x88] sm:$0x3] %vm1468_vm3, %v4284_v62  ;;  %1487 = vst.msk [vmem:[#allocation2 + $0x98] sm:$0x3] %vm1468_vm3, %v4284_v62 }
  0x36   : > { %3225 = vmatmul.mubr.msk.bf16.vlgmr.msra.gmra.mxu0 %vm591_vm1, %v976_v30 }
  0x37   : > { %3243 = vmatpush3.bf16.msra.mxu0 %v3406_v15  ;;  %3228 = vmatprep.mubr.msk.bf16.mxu0 %vm591_vm1, %v977_v31 }
  0x38   : > { %3215 = vmatmul.mubr.msk.bf16.vlgmr.msra.gmra.mxu1 %vm591_vm1, %v881_v6  ;;  %3262 = vmatprep.subr.bf16.mxu0 %v3408_v27 }
  0x39   : > { %3233 = vmatpush3.bf16.msra.mxu1 %v3405_v18  ;;  %3218 = vmatprep.mubr.msk.bf16.mxu1 %vm591_vm1, %v882_v38 }
  0x3a   : > { %3252 = vmatprep.subr.bf16.mxu1 %v3407_v39 }
  0x3e   : > { %3229 = vmatmul.mubr.msk.bf16.gmra.mxu0 %vm591_vm1, %v978_v14 }
  0x3f   : > { %3244 = vmatprep.mubr.msk.bf16.mxu0 %vm591_vm1, %v572_v13 }
  0x40   : > { %3219 = vmatmul.mubr.msk.bf16.gmra.mxu1 %vm591_vm1, %v883_v17 }
  0x41   : > { %3234 = vmatprep.mubr.msk.bf16.mxu1 %vm591_vm1, %v1074_v19 }
  0x46   : > { %3245 = vmatmul.mubr.msk.bf16.vlgmr.msra.gmra.mxu0 %vm591_vm1, %v573_v16 }
  0x47   : > { %3263 = vmatpush3.bf16.msra.mxu0 %v3408_v27  ;;  %3248 = vmatprep.mubr.msk.bf16.mxu0 %vm591_vm1, %v574_v25 }
  0x48   : > { %3235 = vmatmul.mubr.msk.bf16.vlgmr.msra.gmra.mxu1 %vm591_vm1, %v1075_v32 }
  0x49   : > { %3253 = vmatpush3.bf16.msra.mxu1 %v3407_v39  ;;  %3238 = vmatprep.mubr.msk.bf16.mxu1 %vm591_vm1, %v1076_v42 }
  0x4e   : > { %3249 = vmatmul.mubr.msk.bf16.gmra.mxu0 %vm591_vm1, %v1169_v48 }
  0x4f   : > { %3264 = vmatprep.mubr.msk.bf16.mxu0 %vm591_vm1, %v3693_v9 }
  0x50   : > { %3239 = vmatmul.mubr.msk.bf16.gmra.mxu1 %vm591_vm1, %v1077_v51 }
  0x51   : > { %3254 = vmatprep.mubr.msk.bf16.mxu1 %vm591_vm1, %v3643_v49  ;;  %v1345_v49 = vpack.c.bf16 %v1343_v59, %v1072_v47 }
  0x56   : > { %3265 = vmatmul.mubr.msk.bf16.vlgmr.msra.gmra.mxu0 %vm591_vm1, %v3701_v12 }
  0x57   : > { %3268 = vmatprep.mubr.msk.bf16.mxu0 %vm591_vm1, %v788_v23 }
  0x58   : > { %3255 = vmatmul.mubr.msk.bf16.vlgmr.msra.gmra.mxu1 %vm591_vm1, %v3635_v45  ;;  %v3410_v45 = vld [vmem:[%s4272_s3] sm:$0xff]  }
  0x59   : > { %3258 = vmatprep.mubr.msk.bf16.mxu1 %vm591_vm1, %v3663_v58  ;;  %v3409_v58 = vld [vmem:[%s4272_s3 + $0x8] sm:$0xff]   ;;  %3282 = vmatprep.subr.bf16.mxu0 %v3410_v45 }
  0x5a   : > { %3272 = vmatprep.subr.bf16.mxu1 %v3409_v58  ;;  %3283 = vmatpush3.bf16.msra.mxu0 %v3410_v45 }
  0x5b   : > { %3273 = vmatpush3.bf16.msra.mxu1 %v3409_v58  ;;  %3302 = vmatprep.subr.bf16.mxu0 %v3846_v0 }
  0x5c   : > { %3292 = vmatprep.subr.bf16.mxu1 %v3840_v63 }
  0x5e   : > { %3269 = vmatmul.mubr.msk.bf16.gmra.mxu0 %vm591_vm1, %v1345_v49 }
  0x60   : > { %3259 = vmatmul.mubr.msk.bf16.gmra.mxu1 %vm591_vm1, %v1258_v61 }
  0xde   : > { %v3186_v1 = vpop.f32.mrf.mxu0 }
  0xe0   : > { %v3190_v4 = vpop.f32.mrf.mxu1  ;;  %v638_v5 = vpop.f32.mrf.mxu0 }
  0xe2   : > { %v654_v3 = vpop.f32.mrf.mxu1  ;;  %v3187_v7 = vpop.f32.mrf.mxu0 }
  0xe4   : > { %v3191_v8 = vpop.f32.mrf.mxu1  ;;  %v641_v9 = vpop.f32.mrf.mxu0 }
  0xe6   : > { %v3849_v10 = vpop.f32.mrf.mxu1  ;;  %v3206_v2 = vpop.f32.mrf.mxu0 }
  0xe8   : > { %v3196_v11 = vpop.f32.mrf.mxu1  ;;  %v841_v12 = vpop.f32.mrf.mxu0 }
  0xe9   : > { %v730_v51 = vadd.f32 %v3196_v11, %v3186_v1 }
  0xea   : > { %v721_v13 = vpop.f32.mrf.mxu1  ;;  %v3207_v15 = vpop.f32.mrf.mxu0 }
  0xeb   : > { %v722_v54 = vadd.f32 %v721_v13, %v638_v5  ;;  %v874_v59 = vadd.f32 %v3206_v2, %v730_v51 }
  0xec   : > { %v3197_v16 = vpop.f32.mrf.mxu1  ;;  %v844_v18 = vpop.f32.mrf.mxu0 }
  0xed   : > { %v733_v60 = vadd.f32 %v3197_v16, %v3187_v7  ;;  %v872_v45 = vadd.f32 %v841_v12, %v722_v54 }
  0xee   : > { %v724_v20 = vpop.f32.mrf.mxu1  ;;  %v3210_v21 = vpop.f32.mrf.mxu0 }
  0xef   : > { %v725_v58 = vadd.f32 %v724_v20, %v641_v9  ;;  %v875_v50 = vadd.f32 %v3207_v15, %v733_v60 }
  0xf0   : > { %v3200_v23 = vpop.f32.mrf.mxu1  ;;  %v857_v24 = vpop.f32.mrf.mxu0 }
  0xf1   : > { %v746_v40 = vadd.f32 %v3200_v23, %v3190_v4  ;;  %v873_v46 = vadd.f32 %v844_v18, %v725_v58 }
  0xf2   : > { %v737_v25 = vpop.f32.mrf.mxu1  ;;  %v3211_v26 = vpop.f32.mrf.mxu0 }
  0xf3   : > { %v738_v55 = vadd.f32 %v737_v25, %v654_v3  ;;  %v878_v20 = vadd.f32 %v3210_v21, %v746_v40 }
  0xf4   : > { %v3201_v28 = vpop.f32.mrf.mxu1  ;;  %v3851_v29 = vpop.f32.mrf.mxu0 }
  0xf5   : > { %v749_v36 = vadd.f32 %v3201_v28, %v3191_v8 }
  0xf6   : > { %v740_v30 = vpop.f32.mrf.mxu1  ;;  %v3226_v31 = vpop.f32.mrf.mxu0 }
  0xf7   : > { %v741_v51 = vadd.f32 %v740_v30, %v3849_v10  ;;  %v879_v23 = vadd.f32 %v3211_v26, %v749_v36  ;;  %v3868_v36 = vld [vmem:[%s4271_s2] ss:$0 sm:$0xff] }
  0xf8   : > { %v3216_v34 = vpop.f32.mrf.mxu1  ;;  %v1031_v37 = vpop.f32.mrf.mxu0 }
  0xf9   : > { %v969_v62 = vadd.f32 %v3216_v34, %v874_v59  ;;  %v876_v34 = vadd.f32 %v857_v24, %v738_v55 }
  0xfa   : > { %v936_v6 = vpop.f32.mrf.mxu1  ;;  %v3227_v27 = vpop.f32.mrf.mxu0 }
  0xfb   : > { %v967_v41 = vadd.f32 %v936_v6, %v872_v45  ;;  %v1064_v5 = vadd.f32 %v3226_v31, %v969_v62 }
  0xfc   : > { %v3217_v38 = vpop.f32.mrf.mxu1  ;;  %v1034_v39 = vpop.f32.mrf.mxu0 }
  0xfd   : > { %v970_v13 = vadd.f32 %v3217_v38, %v875_v50  ;;  %v1062_v16 = vadd.f32 %v1031_v37, %v967_v41 }
  0xfe   : > { %v939_v14 = vpop.f32.mrf.mxu1  ;;  %v3230_v17 = vpop.f32.mrf.mxu0 }
  0xff   : > { %v968_v12 = vadd.f32 %v939_v14, %v873_v46  ;;  %v1065_v4 = vadd.f32 %v3227_v27, %v970_v13  ;;  %v877_v46 = vadd.f32 %v3851_v29, %v741_v51 }
 0x100   : > { %v3220_v19 = vpop.f32.mrf.mxu1  ;;  %v1047_v32 = vpop.f32.mrf.mxu0 }
 0x101   : > { %v973_v18 = vadd.f32 %v3220_v19, %v878_v20  ;;  %v1063_v25 = vadd.f32 %v1034_v39, %v968_v12 }
 0x102   : > { %v952_v42 = vpop.f32.mrf.mxu1  ;;  %v3853_v43 = vpop.f32.mrf.mxu0 }
 0x103   : > { %v971_v62 = vadd.f32 %v952_v42, %v876_v34  ;;  %v1068_v30 = vadd.f32 %v3230_v17, %v973_v18 }
 0x104   : > { %v3221_v44 = vpop.f32.mrf.mxu1  ;;  %v3855_v33 = vpop.f32.mrf.mxu0 }
 0x105   : > { %v974_v41 = vadd.f32 %v3221_v44, %v879_v23  ;;  %v1066_v37 = vadd.f32 %v1047_v32, %v971_v62 }
 0x106   : > { %v955_v47 = vpop.f32.mrf.mxu1  ;;  %v3246_v48 = vpop.f32.mrf.mxu0 }
 0x107   : > { %v972_v27 = vadd.f32 %v955_v47, %v877_v46  ;;  %v1069_v19 = vadd.f32 %v3853_v43, %v974_v41 }
 0x108   : > { %v3236_v52 = vpop.f32.mrf.mxu1  ;;  %v1213_v53 = vpop.f32.mrf.mxu0 }
 0x109   : > { %v1163_v9 = vadd.f32 %v3236_v52, %v1064_v5 }
 0x10a   : > { %v1130_v56 = vpop.f32.mrf.mxu1  ;;  %v3247_v57 = vpop.f32.mrf.mxu0 }
 0x10b   : > { %v1161_v3 = vadd.f32 %v1130_v56, %v1062_v16  ;;  %v1246_v28 = vadd.f32 %v3246_v48, %v1163_v9 }
 0x10c   : > { %v3237_v49 = vpop.f32.mrf.mxu1  ;;  %v1216_v61 = vpop.f32.mrf.mxu0 }
 0x10d   : > { %v1164_v31 = vadd.f32 %v3237_v49, %v1065_v4  ;;  %v1244_v21 = vadd.f32 %v1213_v53, %v1161_v3  ;;  %v1067_v53 = vadd.f32 %v3855_v33, %v972_v27 }
 0x10e   : > { %v1133_v63 = vpop.f32.mrf.mxu1  ;;  %v3857_v0 = vpop.f32.mrf.mxu0 }
 0x10f   : > { %v1162_v10 = vadd.f32 %v1133_v63, %v1063_v25  ;;  %v1247_v39 = vadd.f32 %v3247_v57, %v1164_v31 }
 0x110   : > { %v3240_v1 = vpop.f32.mrf.mxu1  ;;  %v1229_v11 = vpop.f32.mrf.mxu0 }
 0x111   : > { %v1167_v42 = vadd.f32 %v3240_v1, %v1068_v30  ;;  %v1245_v52 = vadd.f32 %v1216_v61, %v1162_v10 }
 0x112   : > { %v1146_v2 = vpop.f32.mrf.mxu1  ;;  %v3859_v7 = vpop.f32.mrf.mxu0 }
 0x113   : > { %v1165_v44 = vadd.f32 %v1146_v2, %v1066_v37  ;;  %v1250_v45 = vadd.f32 %v3857_v0, %v1167_v42 }
 0x114   : > { %v3241_v15 = vpop.f32.mrf.mxu1  ;;  %v3862_v6 = vpop.f32.mrf.mxu0 }
 0x115   : > { %v1168_v54 = vadd.f32 %v3241_v15, %v1069_v19  ;;  %v1248_v58 = vadd.f32 %v1229_v11, %v1165_v44 }
 0x116   : > { %v1149_v50 = vpop.f32.mrf.mxu1  ;;  %v3266_v8 = vpop.f32.mrf.mxu0 }
 0x117   : > { %v1166_v61 = vadd.f32 %v1149_v50, %v1067_v53  ;;  %v1251_v0 = vadd.f32 %v3859_v7, %v1168_v54  ;;  %v4312_v7 = vld [vmem:[#allocation6_spill] sm:$0xff] }
 0x118   : > { %v3256_v40 = vpop.f32.mrf.mxu1  ;;  %v1389_v55 = vpop.f32.mrf.mxu0 }
 0x119   : > { %v1335_v24 = vadd.f32 %v3256_v40, %v1246_v28  ;;  %v1249_v15 = vadd.f32 %v3862_v6, %v1166_v61  ;;  %v4313_v6 = vld [vmem:[#allocation8_spill] sm:$0xff] }
 0x11a   : > { %v1302_v26 = vpop.f32.mrf.mxu1  ;;  %v3267_v38 = vpop.f32.mrf.mxu0 }
 0x11b   : > { %v1422_v14 = vadd.f32 %v3266_v8, %v1335_v24  ;;  %v1333_v29 = vadd.f32 %v1302_v26, %v1244_v21  ;;  %v3904_v21 = vld [vmem:[#allocation2 + $0x8] sm:$0x3]  ;;  %v4314_v26 = vld [vmem:[#allocation10_spill] sm:$0xff] }
 0x11c   : > { %v3257_v63 = vpop.f32.mrf.mxu1  ;;  %v1392_v48 = vpop.f32.mrf.mxu0 }
 0x11d   : > { %v1437_v17 = vadd.f32 %v3868_v36, %v1422_v14  ;;  %v1420_v32 = vadd.f32 %v1389_v55, %v1333_v29  ;;  %v1336_v47 = vadd.f32 %v3257_v63, %v1247_v39  ;;  %v3902_v55 = vld [vmem:[#allocation2] sm:$0xff]  ;;  %v1556_v14 = vrot.slane %v3904_v21, 1 }
 0x11e   : > { %v1305_v56 = vpop.f32.mrf.mxu1  ;;  %v3270_v57 = vpop.f32.mrf.mxu0  ;;  %v1555_v39 = vrot.slane %v3902_v55, 1  ;;  %v4315_v29 = vld [vmem:[#allocation7_spill] sm:$0xff] }
 0x11f   : > { %v1445_v59 = vmax.f32 %v1437_v17, 0.0  ;;  %v1435_v60 = vadd.f32 %v3868_v36, %v1420_v32  ;;  %v1423_v43 = vadd.f32 %v3267_v38, %v1336_v47  ;;  %v1334_v49 = vadd.f32 %v1305_v56, %v1245_v52  ;;  %v4316_v32 = vld [vmem:[#allocation11_spill] sm:$0xff] }
 0x120   : > { %v3260_v33 = vpop.f32.mrf.mxu1  ;;  %v1405_v1 = vpop.f32.mrf.mxu0  ;;  %v1557_v56 = vsel %vm520_vm0, %v1555_v39, %v1556_v14 }
 0x121   : > { %v1453_v5 = vadd.f32 %v1445_v59, %v3620_v35  ;;  %v1443_v13 = vmax.f32 %v1435_v60, 0.0  ;;  %v1438_v2 = vadd.f32 %v3868_v36, %v1423_v43  ;;  %v1421_v16 = vadd.f32 %v1392_v48, %v1334_v49  ;;  %v4317_v59 = vld [vmem:[#allocation9_spill] sm:$0xff] }
 0x122   : > { %v1339_v11 = vadd.f32 %v3260_v33, %v1250_v45  ;;  %v1318_v12 = vpop.f32.mrf.mxu1  ;;  %v3271_v23 = vpop.f32.mrf.mxu0 }
 0x123   : > { %1461 = vst.msk [vmem:[%s3881_s21 + $0x10] sm:$0xff] %vm591_vm1, %v1453_v5  ;;  %1491 = vst.msk [vmem:[#allocation2 + $0x31] sm:$0xff] %vm591_vm1, %v1453_v5  ;;  %v1451_v9 = vadd.f32 %v1443_v13, %v3601_v22  ;;  %v1446_v20 = vmax.f32 %v1438_v2, 0.0  ;;  %v1436_v34 = vadd.f32 %v3868_v36, %v1421_v16  ;;  %v1337_v51 = vadd.f32 %v1318_v12, %v1248_v58 }
 0x124   : > { %v1426_v4 = vadd.f32 %v3270_v57, %v1339_v11  ;;  %v3261_v3 = vpop.f32.mrf.mxu1  ;;  %v1408_v24 = vpop.f32.mrf.mxu0 }
 0x125   : > { %1459 = vst.msk [vmem:[%s3881_s21] sm:$0xff] %vm591_vm1, %v1451_v9  ;;  %1489 = vst.msk [vmem:[#allocation2 + $0x11] sm:$0xff] %vm591_vm1, %v1451_v9  ;;  %v1454_v18 = vadd.f32 %v1446_v20, %v4312_v7  ;;  %v1444_v62 = vmax.f32 %v1436_v34, 0.0  ;;  %v1424_v50 = vadd.f32 %v1405_v1, %v1337_v51  ;;  %v1340_v8 = vadd.f32 %v3261_v3, %v1251_v0  ;;  %v3966_v0 = vld [vmem:[%s4272_s3 + $0x28] sm:$0xff]   ;;  %v3984_v51 = vld [vmem:[%s4272_s3 + $0x20] sm:$0xff]  }
 0x126   : > { %v1441_v25 = vadd.f32 %v3868_v36, %v1426_v4  ;;  %v1321_v28 = vpop.f32.mrf.mxu1 }
 0x127   : > { %1462 = vst.msk [vmem:[%s3881_s21 + $0x18] sm:$0xff] %vm591_vm1, %v1454_v18  ;;  %1492 = vst.msk [vmem:[#allocation2 + $0x41] sm:$0xff] %vm591_vm1, %v1454_v18  ;;  %v1452_v31 = vadd.f32 %v1444_v62, %v4313_v6  ;;  %v1439_v46 = vadd.f32 %v3868_v36, %v1424_v50  ;;  %v1427_v41 = vadd.f32 %v3271_v23, %v1340_v8  ;;  %v4318_v18 = vld [vmem:[#allocation13_spill] sm:$0xff] }
 0x128   : > { %v1338_v40 = vadd.f32 %v1321_v28, %v1249_v15  ;;  %v1449_v10 = vmax.f32 %v1441_v25, 0.0  ;;  %v1757_v25 = vrot.slane %v3902_v55, 2  ;;  %v1758_v28 = vrot.slane %v3904_v21, 2 }
 0x129   : > { %1460 = vst.msk [vmem:[%s3881_s21 + $0x8] sm:$0xff] %vm591_vm1, %v1452_v31  ;;  %1490 = vst.msk [vmem:[#allocation2 + $0x21] sm:$0xff] %vm591_vm1, %v1452_v31  ;;  %v1447_v30 = vmax.f32 %v1439_v46, 0.0  ;;  %v1442_v37 = vadd.f32 %v3868_v36, %v1427_v41  ;;  %v4319_v41 = vld [vmem:[#allocation12_spill] sm:$0xff] }
 0x12a   : > { %v1425_v27 = vadd.f32 %v1408_v24, %v1338_v40  ;;  %v1457_v38 = vadd.f32 %v1449_v10, %v4314_v26  ;;  %v3915_v63 = vld [vmem:[#allocation2 + $0x30] sm:$0xff]  ;;  %v3924_v17 = vld [vmem:[#allocation2 + $0x38] sm:$0x3] }
 0x12b   : > { %v1455_v19 = vadd.f32 %v1447_v30, %v4315_v29  ;;  %v1450_v42 = vmax.f32 %v1442_v37, 0.0  ;;  %v1564_v43 = vrot.slane %v3915_v63, 1  ;;  %v1565_v49 = vrot.slane %v3924_v17, 1 }
 0x12c   : > { %v1440_v44 = vadd.f32 %v3868_v36, %v1425_v27  ;;  %1465 = vst.msk [vmem:[%s3881_s21 + $0x30] sm:$0xff] %vm591_vm1, %v1457_v38  ;;  %1495 = vst.msk [vmem:[#allocation2 + $0x71] sm:$0xff] %vm591_vm1, %v1457_v38  ;;  %v3920_v48 = vld [vmem:[#allocation2 + $0x10] sm:$0xff]  ;;  %v3922_v52 = vld [vmem:[#allocation2 + $0x18] sm:$0x3] }
 0x12d   : > { %1463 = vst.msk [vmem:[%s3881_s21 + $0x20] sm:$0xff] %vm591_vm1, %v1455_v19  ;;  %1493 = vst.msk [vmem:[#allocation2 + $0x51] sm:$0xff] %vm591_vm1, %v1455_v19  ;;  %v1458_v47 = vadd.f32 %v1450_v42, %v4316_v32  ;;  %v1535_v36 = vpack.c.bf16 %v3920_v48, %v3902_v55  ;;  %v1558_v54 = vrot.slane %v3920_v48, 1  ;;  %v1559_v57 = vrot.slane %v3922_v52, 1 }
 0x12e   : > { %v1448_v53 = vmax.f32 %v1440_v44, 0.0  ;;  %v3942_v45 = vld [vmem:[#allocation2 + $0x40] sm:$0xff]  ;;  %v3951_v1 = vld [vmem:[#allocation2 + $0x48] sm:$0x3]  ;;  %v3975_v12 = vsel %vm520_vm0, %v1564_v43, %v1565_v49  ;;  %v1760_v31 = vrot.slane %v3920_v48, 2  ;;  %v1761_v46 = vrot.slane %v3922_v52, 2 }
 0x12f   : > { %1466 = vst.msk [vmem:[%s3881_s21 + $0x38] sm:$0xff] %vm591_vm1, %v1458_v47  ;;  %1496 = vst.msk [vmem:[#allocation2 + $0x81] sm:$0xff] %vm591_vm1, %v1458_v47  ;;  %3284 = vmatprep.mubr.msk.bf16.mxu0 %vm591_vm1, %v1535_v36  ;;  %v3945_v58 = vsel %vm520_vm0, %v1558_v54, %v1559_v57  ;;  %v1567_v9 = vrot.slane %v3942_v45, 1  ;;  %v1568_v20 = vrot.slane %v3951_v1, 1  ;;  %v1759_v19 = vsel %vm752_vm2, %v1757_v25, %v1758_v28 }
 0x130   : > { %v1456_v60 = vadd.f32 %v1448_v53, %v4317_v59  ;;  %v3947_v61 = vld [vmem:[#allocation2 + $0x20] sm:$0xff]  ;;  %v3949_v33 = vld [vmem:[#allocation2 + $0x28] sm:$0x3]  ;;  %v1587_v5 = vpack.c.bf16 %v3945_v58, %v1557_v56  ;;  %v1762_v42 = vsel %vm752_vm2, %v1760_v31, %v1761_v46  ;;  %v1766_v57 = vrot.slane %v3915_v63, 2 }
 0x131   : > { %v3959_v13 = vpack.c.bf16 %v3915_v63, %v3947_v61  ;;  %v1561_v2 = vrot.slane %v3947_v61, 1  ;;  %v1562_v16 = vrot.slane %v3949_v33, 1  ;;  %v4007_v40 = vsel %vm520_vm0, %v1567_v9, %v1568_v20 }
 0x132   : > { %1464 = vst.msk [vmem:[%s3881_s21 + $0x28] sm:$0xff] %vm591_vm1, %v1456_v60  ;;  %1494 = vst.msk [vmem:[#allocation2 + $0x61] sm:$0xff] %vm591_vm1, %v1456_v60  ;;  %3274 = vmatprep.mubr.msk.bf16.mxu1 %vm591_vm1, %v1587_v5  ;;  %v1884_v14 = vpack.c.bf16 %v3947_v61, %v3920_v48  ;;  %v1789_v48 = vpack.c.bf16 %v1762_v42, %v1759_v19  ;;  %v1763_v53 = vrot.slane %v3947_v61, 2  ;;  %v1764_v36 = vrot.slane %v3949_v33, 2  ;;  %v3416_v5 = vld [vmem:[%s4272_s3 + $0x38] sm:$0xff]  }
 0x133   : > { %3285 = vmatmul.mubr.msk.bf16.vlgmr.msra.gmra.mxu0 %vm591_vm1, %v3959_v13  ;;  %v3972_v11 = vsel %vm520_vm0, %v1561_v2, %v1562_v16  ;;  %v3979_v34 = vld [vmem:[#allocation2 + $0x70] sm:$0xff]  ;;  %v3990_v23 = vld [vmem:[#allocation2 + $0x78] sm:$0x3]  ;;  %v1767_v60 = vrot.slane %v3924_v17, 2  ;;  %v1769_v43 = vrot.slane %v3942_v45, 2  ;;  %v1770_v49 = vrot.slane %v3951_v1, 2 }
 0x134   : > { %v3988_v15 = vpack.c.bf16 %v3975_v12, %v3972_v11  ;;  %v1507_v4 = vld [vmem:[#allocation2 + $0x50] sm:$0xff]  ;;  %v1508_v3 = vld [vmem:[#allocation2 + $0x58] sm:$0x3]  ;;  %3303 = vmatpush3.bf16.msra.mxu0 %v4318_v18  ;;  %v1576_v55 = vrot.slane %v3979_v34, 1  ;;  %v1577_v24 = vrot.slane %v3990_v23, 1  ;;  %v1885_v61 = vpack.c.bf16 %v3942_v45, %v3915_v63 }
 0x135   : > { %v3994_v62 = vpack.c.bf16 %v1507_v4, %v3942_v45  ;;  %v1570_v50 = vrot.slane %v1507_v4, 1  ;;  %v1571_v8 = vrot.slane %v1508_v3, 1  ;;  %3322 = vmatprep.subr.bf16.mxu0 %v3966_v0  ;;  %v1772_v54 = vrot.slane %v1507_v4, 2  ;;  %v3415_v63 = vld [vmem:[%s4272_s3 + $0x30] sm:$0xff]   ;;  %v1516_v19 = vld [vmem:[#allocation2 + $0x98] sm:$0x3] }
 0x136   : > { %3275 = vmatmul.mubr.msk.bf16.vlgmr.msra.gmra.mxu1 %vm591_vm1, %v3988_v15  ;;  %v4034_v52 = vsel %vm520_vm0, %v1576_v55, %v1577_v24  ;;  %v1773_v56 = vrot.slane %v1508_v3, 2  ;;  %v1765_v33 = vsel %vm752_vm2, %v1763_v53, %v1764_v36  ;;  %v1768_v17 = vsel %vm752_vm2, %v1766_v57, %v1767_v60  ;;  %v1513_v3 = vld [vmem:[#allocation2 + $0x80] sm:$0xff] }
 0x137   : > { %3293 = vmatpush3.bf16.msra.mxu1 %v4319_v41  ;;  %3288 = vmatprep.mubr.msk.bf16.mxu0 %vm591_vm1, %v3994_v62  ;;  %v4010_v10 = vsel %vm520_vm0, %v1570_v50, %v1571_v8  ;;  %v4060_v9 = vpack.c.bf16 %v1768_v17, %v1765_v33  ;;  %v1771_v1 = vsel %vm752_vm2, %v1769_v43, %v1770_v49  ;;  %v1779_v18 = vrot.slane %v3990_v23, 2  ;;  %v1514_v23 = vld [vmem:[#allocation2 + $0x88] sm:$0x3]  ;;  %v2530_v53 = vld [vmem:[%s4276_s7] sm:$0x1] }
 0x138   : > { %v4016_v21 = vpack.c.bf16 %v4010_v10, %v4007_v40  ;;  %3312 = vmatprep.subr.bf16.mxu1 %v3984_v51  ;;  %v1774_v16 = vsel %vm752_vm2, %v1772_v54, %v1773_v56  ;;  %v1887_v50 = vpack.c.bf16 %v1513_v3, %v3979_v34  ;;  %v2084_v25 = vpack.c.bf16 %v1765_v33, %v1762_v42 }
 0x139   : > { %v1509_v30 = vld [vmem:[#allocation2 + $0x60] sm:$0xff]  ;;  %v1510_v37 = vld [vmem:[#allocation2 + $0x68] sm:$0x3]  ;;  %v4067_v45 = vpack.c.bf16 %v1774_v16, %v1771_v1  ;;  %v1985_v31 = vpack.c.bf16 %v3972_v11, %v3945_v58  ;;  %v2085_v46 = vpack.c.bf16 %v1771_v1, %v1768_v17  ;;  %v2080_v41 = vrot.slane %v1513_v3, 2 }
 0x13a   : > { %v4020_v27 = vpack.c.bf16 %v3979_v34, %v1509_v30  ;;  %v1573_v38 = vrot.slane %v1509_v30, 1  ;;  %v1574_v39 = vrot.slane %v1510_v37, 1  ;;  %3278 = vmatprep.mubr.msk.bf16.mxu1 %vm591_vm1, %v4016_v21  ;;  %v1886_v2 = vpack.c.bf16 %v1509_v30, %v1507_v4  ;;  %v3417_v58 = vld [vmem:[%s4272_s3 + $0x40] sm:$0xff]  }
 0x13b   : > { %v1775_v20 = vrot.slane %v1509_v30, 2  ;;  %v1776_v4 = vrot.slane %v1510_v37, 2  ;;  %v2081_v55 = vrot.slane %v1514_v23, 2  ;;  %v1986_v24 = vpack.c.bf16 %v4007_v40, %v3975_v12 }
 0x13c   : > { %3289 = vmatmul.mubr.msk.bf16.gmra.mxu0 %vm591_vm1, %v4020_v27  ;;  %v4031_v44 = vsel %vm520_vm0, %v1573_v38, %v1574_v39  ;;  %v1981_v30 = vrot.slane %v1513_v3, 1  ;;  %v1982_v37 = vrot.slane %v1514_v23, 1  ;;  %v4320_v38 = vmov 0.0  }
 0x13d   : > { %3304 = vmatprep.mubr.msk.bf16.mxu0 %vm591_vm1, %v1884_v14  ;;  %v4039_v47 = vpack.c.bf16 %v4034_v52, %v4031_v44  ;;  %v1777_v8 = vsel %vm752_vm2, %v1775_v20, %v1776_v4  ;;  %v1987_v11 = vpack.c.bf16 %v4031_v44, %v4010_v10  ;;  %v2082_v39 = vsel %vm752_vm2, %v2080_v41, %v2081_v55  ;;  %v1515_v14 = vld [vmem:[#allocation2 + $0x90] sm:$0xff] }
 0x13e   : > { %v1983_v40 = vsel %vm520_vm0, %v1981_v30, %v1982_v37  ;;  %v2264_v42 = vrot.slane %v1515_v14, 1  ;;  %v2265_v44 = vrot.slane %v1516_v19, 1  ;;  %v2539_v36 = vsel %vm2537_vm5, %v2530_v53, 0 }
 0x13f   : > { %3279 = vmatmul.mubr.msk.bf16.gmra.mxu1 %vm591_vm1, %v4039_v47  ;;  %v1988_v10 = vpack.c.bf16 %v1983_v40, %v4034_v52  ;;  %v2179_v52 = vpack.c.bf16 %v1515_v14, %v1513_v3 }
 0x140   : > { %3294 = vmatprep.mubr.msk.bf16.mxu1 %vm591_vm1, %v1789_v48  ;;  %v3418_v48 = vld [vmem:[%s4274_s5] sm:$0xff]  }
 0x144   : > { %3305 = vmatmul.mubr.msk.bf16.vlgmr.msra.gmra.mxu0 %vm591_vm1, %v1885_v61 }
 0x145   : > { %3308 = vmatprep.mubr.msk.bf16.mxu0 %vm591_vm1, %v1886_v2  ;;  %3323 = vmatpush3.bf16.msra.mxu0 %v3966_v0  ;;  %v1778_v0 = vrot.slane %v3979_v34, 2  ;;  %v2086_v34 = vpack.c.bf16 %v1777_v8, %v1774_v16 }
 0x146   : > { %3342 = vmatprep.subr.bf16.mxu0 %v3416_v5 }
 0x147   : > { %3295 = vmatmul.mubr.msk.bf16.vlgmr.msra.gmra.mxu1 %vm591_vm1, %v4060_v9  ;;  %v1780_v28 = vsel %vm752_vm2, %v1778_v0, %v1779_v18 }
 0x148   : > { %3313 = vmatpush3.bf16.msra.mxu1 %v3984_v51  ;;  %3298 = vmatprep.mubr.msk.bf16.mxu1 %vm591_vm1, %v4067_v45  ;;  %v1792_v51 = vpack.c.bf16 %v1780_v28, %v1777_v8  ;;  %v2087_v12 = vpack.c.bf16 %v2082_v39, %v1780_v28 }
 0x149   : > { %3332 = vmatprep.subr.bf16.mxu1 %v3415_v63 }
 0x14c   : > { %3309 = vmatmul.mubr.msk.bf16.gmra.mxu0 %vm591_vm1, %v1887_v50 }
 0x14d   : > { %3324 = vmatprep.mubr.msk.bf16.mxu0 %vm591_vm1, %v2084_v25 }
 0x14f   : > { %3299 = vmatmul.mubr.msk.bf16.gmra.mxu1 %vm591_vm1, %v1792_v51 }
 0x150   : > { %3314 = vmatprep.mubr.msk.bf16.mxu1 %vm591_vm1, %v1985_v31 }
 0x154   : > { %3325 = vmatmul.mubr.msk.bf16.vlgmr.msra.gmra.mxu0 %vm591_vm1, %v2085_v46 }
 0x155   : > { %3328 = vmatprep.mubr.msk.bf16.mxu0 %vm591_vm1, %v2086_v34  ;;  %3343 = vmatpush3.bf16.msra.mxu0 %v3416_v5 }
 0x156   : > { %3362 = vmatprep.subr.bf16.mxu0 %v4320_v38 }
 0x157   : > { %3315 = vmatmul.mubr.msk.bf16.vlgmr.msra.gmra.mxu1 %vm591_vm1, %v1986_v24 }
 0x158   : > { %3333 = vmatpush3.bf16.msra.mxu1 %v3415_v63  ;;  %3318 = vmatprep.mubr.msk.bf16.mxu1 %vm591_vm1, %v1987_v11 }
 0x159   : > { %3352 = vmatprep.subr.bf16.mxu1 %v3417_v58 }
 0x15c   : > { %3329 = vmatmul.mubr.msk.bf16.gmra.mxu0 %vm591_vm1, %v2087_v12 }
 0x15d   : > { %3344 = vmatprep.mubr.msk.bf16.mxu0 %vm591_vm1, %v3988_v15  ;;  %v2266_v15 = vsel %vm520_vm0, %v2264_v42, %v2265_v44 }
 0x15f   : > { %3319 = vmatmul.mubr.msk.bf16.gmra.mxu1 %vm591_vm1, %v1988_v10 }
 0x160   : > { %3334 = vmatprep.mubr.msk.bf16.mxu1 %vm591_vm1, %v3959_v13  ;;  %v2268_v13 = vpack.c.bf16 %v2266_v15, %v1983_v40 }
 0x164   : > { %3345 = vmatmul.mubr.msk.bf16.vlgmr.msra.gmra.mxu0 %vm591_vm1, %v4016_v21  ;;  %v2351_v21 = vrot.slane %v1515_v14, 2 }
 0x165   : > { %3348 = vmatprep.mubr.msk.bf16.mxu0 %vm591_vm1, %v4039_v47  ;;  %v2352_v47 = vrot.slane %v1516_v19, 2  ;;  %3363 = vmatpush3.bf16.msra.mxu0 %v3418_v48 }
 0x167   : > { %3335 = vmatmul.mubr.msk.bf16.vlgmr.msra.gmra.mxu1 %vm591_vm1, %v3994_v62  ;;  %v2353_v62 = vsel %vm752_vm2, %v2351_v21, %v2352_v47 }
 0x168   : > { %3353 = vmatpush3.bf16.msra.mxu1 %v3417_v58  ;;  %3338 = vmatprep.mubr.msk.bf16.mxu1 %vm591_vm1, %v4020_v27  ;;  %v2355_v27 = vpack.c.bf16 %v2353_v62, %v2082_v39 }
 0x169   : > { %3368 = vmatprep.subr.bf16.mxu1 %v4320_v38 }
 0x16c   : > { %3349 = vmatmul.mubr.msk.bf16.gmra.mxu0 %vm591_vm1, %v2268_v13 }
 0x16d   : > { %3364 = vmatprep.mubr.msk.bf16.mxu0 %vm3465_vm4, %v4320_v38 }
 0x16f   : > { %3339 = vmatmul.mubr.msk.bf16.gmra.mxu1 %vm591_vm1, %v2179_v52 }
 0x170   : > { %3354 = vmatprep.mubr.msk.bf16.mxu1 %vm591_vm1, %v4060_v9 }
 0x177   : > { %3355 = vmatmul.mubr.msk.bf16.vlgmr.msra.gmra.mxu1 %vm591_vm1, %v4067_v45 }
 0x178   : > { %3358 = vmatprep.mubr.msk.bf16.mxu1 %vm591_vm1, %v1792_v51  ;;  %3369 = vmatpush3.bf16.msra.mxu1 %v2539_v36 }
 0x17f   : > { %3359 = vmatmul.mubr.msk.bf16.gmra.mxu1 %vm591_vm1, %v2355_v27 }
 0x180   : > { %3370 = vmatprep.mubr.msk.bf16.mxu1 %vm3465_vm4, %v4320_v38 }
 0x1f3   : > { %v3286_v54 = vpop.f32.mrf.mxu0 }
 0x1f5   : > { %v1726_v56 = vpop.f32.mrf.mxu0 }
 0x1f6   : > { %v3276_v57 = vpop.f32.mrf.mxu1 }
 0x1f7   : > { %v3287_v60 = vpop.f32.mrf.mxu0  ;;  %v1735_v62 = vadd.f32 %v3286_v54, %v3276_v57 }
 0x1f8   : > { %v1643_v43 = vpop.f32.mrf.mxu1 }
 0x1f9   : > { %v1729_v49 = vpop.f32.mrf.mxu0  ;;  %v1727_v52 = vadd.f32 %v1726_v56, %v1643_v43 }
 0x1fa   : > { %v3277_v61 = vpop.f32.mrf.mxu1 }
 0x1fb   : > { %v1738_v53 = vadd.f32 %v3287_v60, %v3277_v61 }
 0x1fc   : > { %v3290_v33 = vpop.f32.mrf.mxu0  ;;  %v1646_v5 = vpop.f32.mrf.mxu1 }
 0x1fd   : > { %v1730_v36 = vadd.f32 %v1729_v49, %v1646_v5 }
 0x1fe   : > { %v1742_v2 = vpop.f32.mrf.mxu0 }
 0x1ff   : > { %v3280_v16 = vpop.f32.mrf.mxu1 }
 0x200   : > { %v3291_v17 = vpop.f32.mrf.mxu0 }
 0x201   : > { %v1659_v9 = vpop.f32.mrf.mxu1 }
 0x202   : > { %v4133_v1 = vpop.f32.mrf.mxu0  ;;  %v1743_v35 = vadd.f32 %v1742_v2, %v1659_v9 }
 0x203   : > { %v3281_v63 = vpop.f32.mrf.mxu1 }
 0x204   : > { %v3306_v45 = vpop.f32.mrf.mxu0 }
 0x205   : > { %v1662_v20 = vpop.f32.mrf.mxu1 }
 0x206   : > { %v1940_v4 = vpop.f32.mrf.mxu0  ;;  %v1746_v61 = vadd.f32 %v4133_v1, %v1662_v20 }
 0x207   : > { %v3296_v3 = vpop.f32.mrf.mxu1 }
 0x208   : > { %v3307_v0 = vpop.f32.mrf.mxu0  ;;  %v1878_v32 = vadd.f32 %v3296_v3, %v1735_v62 }
 0x209   : > { %v1845_v18 = vpop.f32.mrf.mxu1 }
 0x20a   : > { %v1943_v50 = vpop.f32.mrf.mxu0  ;;  %v1876_v27 = vadd.f32 %v1845_v18, %v1727_v52  ;;  %v1754_v18 = vadd.f32 %v3291_v17, %v3281_v63 }
 0x20b   : > { %v3297_v8 = vpop.f32.mrf.mxu1 }
 0x20c   : > { %v4135_v25 = vpop.f32.mrf.mxu0  ;;  %v1879_v26 = vadd.f32 %v3297_v8, %v1738_v53  ;;  %v1971_v7 = vadd.f32 %v1940_v4, %v1876_v27 }
 0x20d   : > { %v1848_v28 = vpop.f32.mrf.mxu1 }
 0x20e   : > { %v1956_v51 = vpop.f32.mrf.mxu0  ;;  %v1877_v6 = vadd.f32 %v1848_v28, %v1730_v36  ;;  %v1974_v54 = vadd.f32 %v3307_v0, %v1879_v26 }
 0x20f   : > { %v3300_v31 = vpop.f32.mrf.mxu1 }
 0x210   : > { %v4137_v23 = vpop.f32.mrf.mxu0  ;;  %v1972_v57 = vadd.f32 %v1943_v50, %v1877_v6 }
 0x211   : > { %v1861_v46 = vpop.f32.mrf.mxu1 }
 0x212   : > { %v4139_v34 = vpop.f32.mrf.mxu0  ;;  %v1880_v43 = vadd.f32 %v1861_v46, %v1743_v35 }
 0x213   : > { %4321 = vst [vmem:[#allocation13_spill] sm:$0xff] %v4139_v34  ;;  %v3301_v41 = vpop.f32.mrf.mxu1 }
 0x214   : > { %v3326_v55 = vpop.f32.mrf.mxu0  ;;  %v1883_v4 = vadd.f32 %v3301_v41, %v1754_v18 }
 0x215   : > { %v1864_v24 = vpop.f32.mrf.mxu1 }
 0x216   : > { %v2140_v58 = vpop.f32.mrf.mxu0  ;;  %v1978_v1 = vadd.f32 %v4137_v23, %v1883_v4 }
 0x217   : > { %v3316_v11 = vpop.f32.mrf.mxu1 }
 0x218   : > { %v3327_v30 = vpop.f32.mrf.mxu0 }
 0x219   : > { %v2041_v37 = vpop.f32.mrf.mxu1 }
 0x21a   : > { %v2143_v38 = vpop.f32.mrf.mxu0  ;;  %v4326_v50 = vld [vmem:[#allocation13_spill] sm:$0xff] }
 0x21b   : > { %v3317_v39 = vpop.f32.mrf.mxu1 }
 0x21c   : > { %v4141_v12 = vpop.f32.mrf.mxu0  ;;  %v2075_v5 = vadd.f32 %v3317_v39, %v1974_v54 }
 0x21d   : > { %4322 = vst [vmem:[#allocation12_spill] sm:$0xff] %v4141_v12  ;;  %v2044_v40 = vpop.f32.mrf.mxu1  ;;  %v1751_v12 = vadd.f32 %v3290_v33, %v3280_v16 }
 0x21e   : > { %v4143_v10 = vpop.f32.mrf.mxu0  ;;  %v2073_v3 = vadd.f32 %v2044_v40, %v1972_v57  ;;  %v2174_v17 = vadd.f32 %v3327_v30, %v2075_v5 }
 0x21f   : > { %4323 = vst [vmem:[#allocation14_spill] sm:$0xff] %v4143_v10  ;;  %v3320_v14 = vpop.f32.mrf.mxu1  ;;  %v1882_v60 = vadd.f32 %v3300_v31, %v1751_v12 }
 0x220   : > { %v4145_v19 = vpop.f32.mrf.mxu0  ;;  %v2172_v63 = vadd.f32 %v2143_v38, %v2073_v3 }
 0x221   : > { %4324 = vst [vmem:[#allocation15_spill] sm:$0xff] %v4145_v19  ;;  %v2057_v42 = vpop.f32.mrf.mxu1  ;;  %v1973_v19 = vadd.f32 %v3306_v45, %v1878_v32  ;;  %v1881_v32 = vadd.f32 %v1864_v24, %v1746_v61  ;;  %v1977_v35 = vadd.f32 %v4135_v25, %v1882_v60 }
 0x222   : > { %v4147_v44 = vpop.f32.mrf.mxu0 }
 0x223   : > { %4325 = vst [vmem:[#allocation16_spill] sm:$0xff] %v4147_v44  ;;  %v3321_v15 = vpop.f32.mrf.mxu1  ;;  %v2072_v44 = vadd.f32 %v2041_v37, %v1971_v7  ;;  %v2074_v34 = vadd.f32 %v3316_v11, %v1973_v19  ;;  %v1975_v7 = vadd.f32 %v1956_v51, %v1880_v43  ;;  %v2078_v45 = vadd.f32 %v3320_v14, %v1977_v35 }
 0x224   : > { %v3346_v21 = vpop.f32.mrf.mxu0  ;;  %v1976_v31 = vadd.f32 %v4326_v50, %v1881_v32  ;;  %v2079_v51 = vadd.f32 %v3321_v15, %v1978_v1  ;;  %v4328_v30 = vld [vmem:[#allocation12_spill] sm:$0xff] }
 0x225   : > { %v2060_v13 = vpop.f32.mrf.mxu1  ;;  %v2171_v8 = vadd.f32 %v2140_v58, %v2072_v44  ;;  %v2173_v33 = vadd.f32 %v3326_v55, %v2074_v34  ;;  %v2076_v26 = vadd.f32 %v2057_v42, %v1975_v7  ;;  %v2177_v38 = vadd.f32 %v4328_v30, %v2078_v45 }
 0x226   : > { %v2312_v59 = vpop.f32.mrf.mxu0  ;;  %v2077_v55 = vadd.f32 %v2060_v13, %v1976_v31  ;;  %v4327_v58 = vld [vmem:[#allocation14_spill] sm:$0xff] }
 0x227   : > { %v3336_v47 = vpop.f32.mrf.mxu1  ;;  %v2175_v25 = vadd.f32 %v4327_v58, %v2076_v26 }
 0x228   : > { %v3347_v10 = vpop.f32.mrf.mxu0  ;;  %v2256_v6 = vadd.f32 %v3336_v47, %v2173_v33  ;;  %v4329_v44 = vld [vmem:[#allocation15_spill] sm:$0xff] }
 0x229   : > { %v2223_v48 = vpop.f32.mrf.mxu1 }
 0x22a   : > { %v2315_v28 = vpop.f32.mrf.mxu0  ;;  %v2254_v16 = vadd.f32 %v2223_v48, %v2171_v8  ;;  %v2345_v11 = vadd.f32 %v3346_v21, %v2256_v6  ;;  %v4330_v15 = vld [vmem:[#allocation16_spill] sm:$0xff] }
 0x22b   : > { %v3337_v29 = vpop.f32.mrf.mxu1  ;;  %v2176_v13 = vadd.f32 %v4330_v15, %v2077_v55 }
 0x22c   : > { %v3350_v20 = vpop.f32.mrf.mxu0  ;;  %v2257_v46 = vadd.f32 %v3337_v29, %v2174_v17  ;;  %v2343_v24 = vadd.f32 %v2312_v59, %v2254_v16  ;;  %v2178_v29 = vadd.f32 %v4329_v44, %v2079_v51  ;;  %v2532_v44 = vld [vmem:[%s4277_s8] sm:$0x1] }
 0x22d   : > { %v2226_v22 = vpop.f32.mrf.mxu1 }
 0x22e   : > { %v2255_v41 = vadd.f32 %v2226_v22, %v2172_v63  ;;  %v2328_v39 = vpop.f32.mrf.mxu0  ;;  %v2346_v14 = vadd.f32 %v3347_v10, %v2257_v46  ;;  %v3058_v22 = vld [vmem:[%s4273_s4] ss:$0 sm:$0xff] }
 0x22f   : > { %v3340_v56 = vpop.f32.mrf.mxu1 }
 0x230   : > { %v2344_v19 = vadd.f32 %v2315_v28, %v2255_v41  ;;  %v2260_v42 = vadd.f32 %v3340_v56, %v2177_v38  ;;  %v3351_v62 = vpop.f32.mrf.mxu0 }
 0x231   : > { %v2239_v49 = vpop.f32.mrf.mxu1 }
 0x232   : > { %v2258_v40 = vadd.f32 %v2239_v49, %v2175_v25  ;;  %v2349_v43 = vadd.f32 %v3350_v20, %v2260_v42  ;;  %v2331_v61 = vpop.f32.mrf.mxu0  ;;  %v3419_v42 = vld [vmem:[%s4278_s9] sm:$0xff]  }
 0x233   : > { %v3341_v2 = vpop.f32.mrf.mxu1  ;;  %3374 = vmatprep.subr.bf16.mxu0 %v3419_v42 }
 0x234   : > { %v2261_v27 = vadd.f32 %v3341_v2, %v2178_v29  ;;  %v2347_v56 = vadd.f32 %v2328_v39, %v2258_v40  ;;  %v2479_v39 = vld [vmem:[%s4275_s6] sm:$0x1] }
 0x235   : > { %v2242_v9 = vpop.f32.mrf.mxu1 }
 0x236   : > { %v2259_v53 = vadd.f32 %v2242_v9, %v2176_v13  ;;  %v2350_v3 = vadd.f32 %v3351_v62, %v2261_v27  ;;  %v2587_v27 = vlaneseq }
 0x237   : > { %v3356_v0 = vpop.f32.mrf.mxu1 }
 0x238   : > { %v2432_v23 = vadd.f32 %v3356_v0, %v2345_v11  ;;  %v2348_v32 = vadd.f32 %v2331_v61, %v2259_v53 }
 0x239   : > { %v2399_v34 = vpop.f32.mrf.mxu1 }
 0x23a   : > { %v2430_v37 = vadd.f32 %v2399_v34, %v2343_v24  ;;  %v4162_v10 = vadd.f32 %v3058_v22, %v2432_v23 }
 0x23b   : > { %v3357_v12 = vpop.f32.mrf.mxu1 }
 0x23c   : > { %v4160_v52 = vadd.f32 %v3058_v22, %v2430_v37  ;;  %v2433_v21 = vadd.f32 %v3357_v12, %v2346_v14  ;;  %v2456_v4 = vsel %vm591_vm1, %v4162_v10, 0.0 }
 0x23d   : > { %v2402_v59 = vpop.f32.mrf.mxu1 }
 0x23e   : > { %v2431_v47 = vadd.f32 %v2402_v59, %v2344_v19  ;;  %v2453_v57 = vsel %vm591_vm1, %v4160_v52, 0.0  ;;  %v4168_v18 = vadd.f32 %v3058_v22, %v2433_v21 }
 0x23f   : > { %v3360_v48 = vpop.f32.mrf.mxu1 }
 0x240   : > { %v4164_v36 = vadd.f32 %v3058_v22, %v2431_v47  ;;  %v2436_v28 = vadd.f32 %v3360_v48, %v2349_v43  ;;  %v2458_v16 = vsel %vm591_vm1, %v4168_v18, 0.0  ;;  %v2588_v48 = vshrl.u32 %v2587_v27, 7 }
 0x241   : > { %v2415_v54 = vpop.f32.mrf.mxu1 }
 0x242   : > { %v2454_v60 = vsel %vm591_vm1, %v4164_v36, 0.0  ;;  %v2434_v49 = vadd.f32 %v2415_v54, %v2347_v56  ;;  %v2451_v6 = vadd.f32 %v3058_v22, %v2436_v28  ;;  %v2589_v53 = vsub.s32 0, %v2588_v48 }
 0x243   : > { %v2455_v5 = vadd.f32 %v2454_v60, %v2453_v57  ;;  %v3361_v8 = vpop.f32.mrf.mxu1 }
 0x244   : > { %v2449_v2 = vadd.f32 %v3058_v22, %v2434_v49  ;;  %v2437_v35 = vadd.f32 %v3361_v8, %v2350_v3  ;;  %v2464_v50 = vsel %vm591_vm1, %v2451_v6, 0.0 }
 0x245   : > { %v2457_v7 = vadd.f32 %v2456_v4, %v2455_v5  ;;  %v2418_v33 = vpop.f32.mrf.mxu1  ;;  %v3063_v4 = vld [vmem:[%s4279_s10] ss:$0 sm:$0xff] }
 0x246   : > { %v2435_v9 = vadd.f32 %v2418_v33, %v2348_v32  ;;  %v2460_v17 = vsel %vm591_vm1, %v2449_v2, 0.0  ;;  %v2452_v1 = vadd.f32 %v3058_v22, %v2437_v35 }
 0x247   : > { %v2459_v26 = vadd.f32 %v2458_v16, %v2457_v7  ;;  %v3069_v7 = vld [vmem:[%s4280_s11] ss:$0 sm:$0xff] }
 0x248   : > { %v2450_v63 = vadd.f32 %v3058_v22, %v2435_v9  ;;  %v2466_v46 = vsel %vm591_vm1, %v2452_v1, 0.0 }
 0x249   : > { %v2461_v45 = vadd.f32 %v2460_v17, %v2459_v26 }
 0x24a   : > { %v2462_v20 = vsel %vm591_vm1, %v2450_v63, 0.0 }
 0x24b   : > { %v2463_v0 = vadd.f32 %v2462_v20, %v2461_v45 }
 0x24d   : > { %v2465_v31 = vadd.f32 %v2464_v50, %v2463_v0 }
 0x24f   : > { %v2467_v41 = vadd.f32 %v2466_v46, %v2465_v31 }
 0x251   : > { %v2468_v24 = vrot.slane %v2467_v41, 4 }
 0x253   : > { %v2469_v51 = vadd.f32 %v2468_v24, %v2467_v41 }
 0x255   : > { %v2470_v34 = vrot.slane %v2469_v51, 2 }
 0x257   : > { %v2471_v55 = vadd.f32 %v2470_v34, %v2469_v51 }
 0x259   : > { %v2472_v58 = vrot.slane %v2471_v55, 1 }
 0x25b   : > { %v2473_v25 = vadd.f32 %v2472_v58, %v2471_v55 }
 0x25d   : > { %v2475_v11 = vmul.f32 0.015625, %v2473_v25 }
 0x25f   : > { %v2478_v37 = vpack.c.bf16 %v2475_v11, %v2475_v11 }
 0x261   : > { %3365 = vmatmul.mubr.msk.bf16.vlgmr.msra.gmra.mxu0 %vm591_vm1, %v2478_v37 }
 0x262   : > { %3375 = vmatpush3.bf16.msra.mxu0 %v3419_v42 }
 0x321   : > { %v2523_v30 = vpop.f32.mrf.mxu0 }
 0x322   : > { %v2524_v38 = vadd.f32 %v2523_v30, %v2479_v39 }
 0x323   : > { %v3366_v12 = vpop.f32.mrf.mxu0 }
 0x324   : > { %v2529_v40 = vmax.f32 %v2524_v38, 0.0 }
 0x325   : > { %v2526_v23 = vpop.f32.mrf.mxu0 }
 0x326   : > { %v2531_v14 = vpack.c.bf16 %v2529_v40, %v2529_v40 }
 0x327   : > { %v3367_v19 = vpop.f32.mrf.mxu0 }
 0x328   : > { %3371 = vmatmul.mubr.msk.bf16.vlgmr.msra.gmra.mxu1 %vm2533_vm6, %v2531_v14 }
 0x3e8   : > { %v2575_v29 = vpop.f32.mrf.mxu1 }
 0x3e9   : > { %v2576_v22 = vadd.f32 %v2575_v29, %v2532_v44 }
 0x3ea   : > { %v3372_v59 = vpop.f32.mrf.mxu1 }
 0x3eb   : > { %v3062_v15 = vmul.f32 -1.442695, %v2576_v22 }
 0x3ec   : > { %v2578_v13 = vpop.f32.mrf.mxu1 }
 0x3ed   : > { %3420 = vpow2.f32 %v3062_v15  ;;  %v3466_v15 = vmov 0   ;;  %v3070_v13 = vld [vmem:[#allocation3] ss:$0 sm:$0xff] }
 0x3ee   : > { %v3373_v21 = vpop.f32.mrf.mxu1  ;;  %3399 = vset.pattern.permute.xlu1 %v3466_v15  ;;  %3398 = vset.pattern.permute.xlu0 %v3466_v15 }
 0x3fa   : > { %v3421_v47 = vpop.eup %3420 }
 0x3fb   : > { %v2584_v62 = vadd.f32 1.0, %v3421_v47 }
 0x3fd   : > { %3422 = vrcp.f32 %v2584_v62 }
 0x40a   : > { %v3423_v56 = vpop.eup %3422 }
 0x40b   : > { %v2590_v43 = vrot.slane %v3423_v56, %v2589_v53 }
 0x40d   : > { %v4192_v54 = vmul.f32 %v2590_v43, %v4160_v52  ;;  %v4195_v57 = vmul.f32 %v2590_v43, %v4164_v36  ;;  %v4198_v60 = vmul.f32 %v2590_v43, %v4162_v10  ;;  %v4201_v49 = vmul.f32 %v2590_v43, %v4168_v18 }
 0x40e   : > { %v4203_v61 = vmul.f32 %v2590_v43, %v2449_v2  ;;  %v4205_v5 = vmul.f32 %v2590_v43, %v2450_v63  ;;  %v4216_v10 = vmul.f32 %v2590_v43, %v2451_v6  ;;  %v4218_v18 = vmul.f32 %v2590_v43, %v2452_v1 }
 0x40f   : > { %v2601_v3 = vpack.c.bf16 %v4195_v57, %v4192_v54  ;;  %v2602_v52 = vpack.c.bf16 %v4201_v49, %v4198_v60 }
 0x410   : > { %v2603_v36 = vpack.c.bf16 %v4205_v5, %v4203_v61  ;;  %v2604_v8 = vpack.c.bf16 %v4218_v18, %v4216_v10 }
 0x411   : > { %3376 = vmatprep.mubr.msk.bf16.mxu0 %vm591_vm1, %v2601_v3 }
 0x412   : > { %3377 = vmatmul.mubr.msk.bf16.vlgmr.msra.gmra.mxu0 %vm591_vm1, %v2602_v52 }
 0x413   : > { %3380 = vmatprep.mubr.msk.bf16.mxu0 %vm591_vm1, %v2603_v36 }
 0x41a   : > { %3381 = vmatmul.mubr.msk.bf16.gmra.mxu0 %vm591_vm1, %v2604_v8 }
 0x4d2   : > { %v3378_v28 = vpop.f32.mrf.mxu0 }
 0x4d3   : > { %v2673_v2 = vadd.f32 %v3378_v28, %v3063_v4 }
 0x4d4   : > { %v2664_v32 = vpop.f32.mrf.mxu0 }
 0x4d5   : > { %v2697_v33 = vmax.f32 %v2673_v2, 0.0  ;;  %v2665_v16 = vadd.f32 %v3063_v4, %v2664_v32 }
 0x4d6   : > { %v3379_v35 = vpop.f32.mrf.mxu0 }
 0x4d7   : > { %v2695_v9 = vmax.f32 %v2665_v16, 0.0  ;;  %v2676_v26 = vadd.f32 %v3379_v35, %v3063_v4  ;;  %v2712_v6 = vmul.f32 %v3069_v7, %v2697_v33 }
 0x4d8   : > { %v2667_v17 = vpop.f32.mrf.mxu0 }
 0x4d9   : > { %v2698_v63 = vmax.f32 %v2676_v26, 0.0  ;;  %v2668_v45 = vadd.f32 %v3063_v4, %v2667_v17  ;;  %v2724_v1 = vsel %vm2533_vm6, %v2712_v6, 0.0  ;;  %v2710_v20 = vmul.f32 %v3069_v7, %v2695_v9 }
 0x4da   : > { %2725 = vadd.xlane.f32.xlu1 %v2724_v1  ;;  %v3382_v0 = vpop.f32.mrf.mxu0 }
 0x4db   : > { %v2696_v50 = vmax.f32 %v2668_v45, 0.0  ;;  %v2689_v31 = vadd.f32 %v3382_v0, %v3063_v4  ;;  %v2718_v46 = vsel %vm2533_vm6, %v2710_v20, 0.0  ;;  %v2713_v41 = vmul.f32 %v3069_v7, %v2698_v63 }
 0x4dc   : > { %v2680_v24 = vpop.f32.mrf.mxu0  ;;  %2719 = vadd.xlane.f32.xlu0 %v2718_v46 }
 0x4dd   : > { %v2681_v51 = vadd.f32 %v3063_v4, %v2680_v24  ;;  %v2727_v34 = vsel %vm2533_vm6, %v2713_v41, 0.0  ;;  %v2711_v55 = vmul.f32 %v3069_v7, %v2696_v50  ;;  %v2701_v25 = vmax.f32 %v2689_v31, 0.0 }
 0x4de   : > { %2728 = vadd.xlane.f32.xlu1 %v2727_v34  ;;  %v3383_v58 = vpop.f32.mrf.mxu0 }
 0x4df   : > { %v2699_v11 = vmax.f32 %v2681_v51, 0.0  ;;  %v2692_v37 = vadd.f32 %v3383_v58, %v3063_v4  ;;  %v2721_v39 = vsel %vm2533_vm6, %v2711_v55, 0.0  ;;  %v2716_v19 = vmul.f32 %v3069_v7, %v2701_v25 }
 0x4e0   : > { %v2683_v30 = vpop.f32.mrf.mxu0  ;;  %2722 = vadd.xlane.f32.xlu0 %v2721_v39 }
 0x4e1   : > { %v2684_v38 = vadd.f32 %v3063_v4, %v2683_v30  ;;  %v2714_v12 = vmul.f32 %v3069_v7, %v2699_v11  ;;  %v2702_v40 = vmax.f32 %v2692_v37, 0.0  ;;  %v2736_v29 = vsel %vm2533_vm6, %v2716_v19, 0.0 }
 0x4e3   : > { %v2700_v23 = vmax.f32 %v2684_v38, 0.0  ;;  %v2730_v14 = vsel %vm2533_vm6, %v2714_v12, 0.0  ;;  %v2717_v22 = vmul.f32 %v3069_v7, %v2702_v40 }
 0x4e4   : > { %2731 = vadd.xlane.f32.xlu0 %v2730_v14 }
 0x4e5   : > { %v2715_v42 = vmul.f32 %v3069_v7, %v2700_v23  ;;  %v2739_v59 = vsel %vm2533_vm6, %v2717_v22, 0.0 }
 0x4e7   : > { %v2733_v44 = vsel %vm2533_vm6, %v2715_v42, 0.0 }
 0x4e8   : > { %2734 = vadd.xlane.f32.xlu1 %v2733_v44  ;;  %2737 = vadd.xlane.f32.xlu0 %v2736_v29  ;;  %v4331_v29 = vld [vmem:[#allocation5_spill] sm:$0xff] }
 0x4ec   : > { %2740 = vadd.xlane.f32.xlu1 %v2739_v59 }
 0x563   : > { %v2726_v21 = vpop.xlane.xlu1 %2725 }
 0x564   : > { %v2751_v47 = vadd.f32 %v3070_v13, %v2726_v21 }
 0x565   : > { %v2720_v62 = vpop.xlane.xlu0 %2719 }
 0x566   : > { %v3073_v27 = vmul.f32 -1.442695, %v2751_v47  ;;  %v2749_v48 = vadd.f32 %v3070_v13, %v2720_v62 }
 0x567   : > { %v2729_v53 = vpop.xlane.xlu1 %2728 }
 0x568   : > { %3424 = vpow2.f32 %v3073_v27  ;;  %v3071_v56 = vmul.f32 -1.442695, %v2749_v48  ;;  %v2752_v43 = vadd.f32 %v3070_v13, %v2729_v53  ;;  %v4334_v53 = vld [vmem:[#allocation8_spill] sm:$0xff] }
 0x569   : > { %v2723_v3 = vpop.xlane.xlu0 %2722 }
 0x56a   : > { %3426 = vpow2.f32 %v3071_v56  ;;  %v3074_v52 = vmul.f32 -1.442695, %v2752_v43  ;;  %v2750_v36 = vadd.f32 %v3070_v13, %v2723_v3  ;;  %v4335_v3 = vld [vmem:[#allocation10_spill] sm:$0xff] }
 0x56c   : > { %3428 = vpow2.f32 %v3074_v52  ;;  %v3072_v8 = vmul.f32 -1.442695, %v2750_v36 }
 0x56d   : > { %v2732_v4 = vpop.xlane.xlu0 %2731 }
 0x56e   : > { %3430 = vpow2.f32 %v3072_v8  ;;  %v2753_v28 = vadd.f32 %v3070_v13, %v2732_v4  ;;  %v4336_v8 = vld [vmem:[#allocation7_spill] sm:$0xff] }
 0x570   : > { %v3075_v7 = vmul.f32 -1.442695, %v2753_v28 }
 0x571   : > { %v2735_v2 = vpop.xlane.xlu1 %2734  ;;  %v2738_v32 = vpop.xlane.xlu0 %2737 }
 0x572   : > { %v2755_v33 = vadd.f32 %v3070_v13, %v2738_v32  ;;  %v2754_v16 = vadd.f32 %v3070_v13, %v2735_v2  ;;  %3432 = vpow2.f32 %v3075_v7  ;;  %v4337_v2 = vld [vmem:[#allocation9_spill] sm:$0xff] }
 0x574   : > { %v3077_v35 = vmul.f32 -1.442695, %v2755_v33  ;;  %v3076_v63 = vmul.f32 -1.442695, %v2754_v16  ;;  %v4338_v33 = vld [vmem:[#allocation11_spill] sm:$0xff] }
 0x575   : > { %v3425_v9 = vpop.eup %3424  ;;  %v2741_v26 = vpop.xlane.xlu1 %2740 }
 0x576   : > { %v2783_v6 = vadd.f32 1.0, %v3425_v9  ;;  %3434 = vpow2.f32 %v3077_v35  ;;  %v2756_v45 = vadd.f32 %v3070_v13, %v2741_v26  ;;  %v4332_v13 = vld [vmem:[#allocation4_spill] sm:$0xff] }
 0x577   : > { %v3427_v17 = vpop.eup %3426 }
 0x578   : > { %3436 = vrcp.f32 %v2783_v6  ;;  %v2781_v1 = vadd.f32 1.0, %v3427_v17  ;;  %v3078_v31 = vmul.f32 -1.442695, %v2756_v45 }
 0x579   : > { %v3429_v20 = vpop.eup %3428 }
 0x57a   : > { %3438 = vrcp.f32 %v2781_v1  ;;  %v2784_v0 = vadd.f32 1.0, %v3429_v20 }
 0x57b   : > { %v3431_v50 = vpop.eup %3430  ;;  %3440 = vpow2.f32 %v3076_v63 }
 0x57c   : > { %3442 = vrcp.f32 %v2784_v0  ;;  %v2782_v46 = vadd.f32 1.0, %v3431_v50 }
 0x57d   : > { %3444 = vpow2.f32 %v3078_v31 }
 0x57e   : > { %3446 = vrcp.f32 %v2782_v46 }
 0x57f   : > { %v3433_v41 = vpop.eup %3432 }
 0x580   : > { %v2785_v58 = vadd.f32 1.0, %v3433_v41 }
 0x583   : > { %v3435_v24 = vpop.eup %3434 }
 0x584   : > { %v2787_v34 = vadd.f32 1.0, %v3435_v24 }
 0x585   : > { %v3437_v51 = vpop.eup %3436 }
 0x586   : > { %2817 = vperm.xlu1 %3399, %v3437_v51   ;;  %3448 = vrcp.f32 %v2787_v34 }
 0x587   : > { %v3439_v55 = vpop.eup %3438  ;;  %3450 = vrcp.f32 %v2785_v58 }
 0x588   : > { %v3441_v25 = vpop.eup %3440  ;;  %2807 = vperm.xlu0 %3398, %v3439_v55  }
 0x589   : > { %v3443_v11 = vpop.eup %3442  ;;  %v2786_v37 = vadd.f32 1.0, %v3441_v25 }
 0x58a   : > { %2822 = vperm.xlu1 %3399, %v3443_v11   ;;  %v3445_v39 = vpop.eup %3444 }
 0x58b   : > { %v3447_v30 = vpop.eup %3446  ;;  %3452 = vrcp.f32 %v2786_v37  ;;  %v2788_v38 = vadd.f32 1.0, %v3445_v39 }
 0x58d   : > { %3454 = vrcp.f32 %v2788_v38 }
 0x58e   : > { %2812 = vperm.xlu1 %3399, %v3447_v30  }
 0x593   : > { %v3449_v12 = vpop.eup %3448 }
 0x594   : > { %2837 = vperm.xlu1 %3399, %v3449_v12   ;;  %v3451_v40 = vpop.eup %3450 }
 0x598   : > { %2827 = vperm.xlu1 %3399, %v3451_v40   ;;  %v3453_v23 = vpop.eup %3452 }
 0x59a   : > { %v3455_v14 = vpop.eup %3454 }
 0x59c   : > { %2832 = vperm.xlu1 %3399, %v3453_v23  }
 0x5a0   : > { %2842 = vperm.xlu1 %3399, %v3455_v14  }
 0x601   : > { %v2818_v19 = vpop.permute.xlu1 %2817 }
 0x602   : > { %v2847_v42 = vmul.f32 %v2818_v19, %v4198_v60  ;;  %v4333_v60 = vld [vmem:[#allocation6_spill] sm:$0xff] }
 0x603   : > { %v2808_v44 = vpop.permute.xlu0 %2807 }
 0x604   : > { %v2855_v22 = vadd.f32 %v2847_v42, %v4331_v29  ;;  %v2845_v59 = vmul.f32 %v2808_v44, %v4192_v54 }
 0x605   : > { %v2823_v15 = vpop.permute.xlu1 %2822 }
 0x606   : > { %2863 = vst.msk [vmem:[%s482_s22 + $0x10] sm:$0xff] %vm591_vm1, %v2855_v22  ;;  %v2853_v21 = vadd.f32 %v2845_v59, %v4332_v13  ;;  %v2848_v47 = vmul.f32 %v2823_v15, %v4201_v49 }
 0x608   : > { %2861 = vst.msk [vmem:[%s482_s22] sm:$0xff] %vm591_vm1, %v2853_v21  ;;  %v2856_v62 = vadd.f32 %v2848_v47, %v4333_v60 }
 0x609   : > { %v2813_v27 = vpop.permute.xlu1 %2812 }
 0x60a   : > { %2864 = vst.msk [vmem:[%s482_s22 + $0x18] sm:$0xff] %vm591_vm1, %v2856_v62  ;;  %v2846_v48 = vmul.f32 %v2813_v27, %v4195_v57 }
 0x60c   : > { %v2854_v56 = vadd.f32 %v2846_v48, %v4334_v53 }
 0x60e   : > { %2862 = vst.msk [vmem:[%s482_s22 + $0x8] sm:$0xff] %vm591_vm1, %v2854_v56 }
 0x60f   : > { %v2838_v54 = vpop.permute.xlu1 %2837 }
 0x610   : > { %v2851_v43 = vmul.f32 %v2838_v54, %v4216_v10 }
 0x612   : > { %v2859_v52 = vadd.f32 %v2851_v43, %v4335_v3 }
 0x613   : > { %v2828_v36 = vpop.permute.xlu1 %2827 }
 0x614   : > { %2867 = vst.msk [vmem:[%s482_s22 + $0x30] sm:$0xff] %vm591_vm1, %v2859_v52  ;;  %v2849_v49 = vmul.f32 %v2828_v36, %v4203_v61 }
 0x616   : > { %v2857_v4 = vadd.f32 %v2849_v49, %v4336_v8 }
 0x617   : > { %v2833_v28 = vpop.permute.xlu1 %2832 }
 0x618   : > { %2865 = vst.msk [vmem:[%s482_s22 + $0x20] sm:$0xff] %vm591_vm1, %v2857_v4  ;;  %v2850_v57 = vmul.f32 %v2833_v28, %v4205_v5 }
 0x61a   : > { %v2858_v32 = vadd.f32 %v2850_v57, %v4337_v2 }
 0x61b   : > { %v2843_v7 = vpop.permute.xlu1 %2842 }
 0x61c   : > { %2866 = vst.msk [vmem:[%s482_s22 + $0x28] sm:$0xff] %vm591_vm1, %v2858_v32  ;;  %v2852_v10 = vmul.f32 %v2843_v7, %v4218_v18 }
 0x61e   : > { %v2860_v16 = vadd.f32 %v2852_v10, %v4338_v33 }
 0x620   : > { %2868 = vst.msk [vmem:[%s482_s22 + $0x38] sm:$0xff] %vm591_vm1, %v2860_v16 }
 0x621 PF: > { %s27_s15 = sadd.s32 1, %s3462_s15  }
 0x622   : > { %p24_p4 = scmp.ge.s32.totalorder %s27_s15, 4  }
 0x624   :  { %26 = sbr.rel (!%p24_p4) target bundleno = 3 (0x3), region = 115 }

// kernel: block_forward.4
= control target key start
LH: loop header
LB: loop body
LE: loop exit
PB: predicated region body
PF: predicated region fallthrough
CT: control target
= control target key end

     0   :  { %s4228_s27 = smov 0   ;;  %s6142_s0 = inlined_call_operand.vmem [shape: f32[2,64,16], index: 0, kind: input, shape index: {}]   ;;  %s6143_s1 = inlined_call_operand.vmem [shape: f32[2,64,16], index: 1, kind: input, shape index: {}]   ;;  %s6144_s2 = inlined_call_operand.vmem [shape: f32[2,64,16], index: 2, kind: input, shape index: {}]   ;;  %s6145_s3 = inlined_call_operand.vmem [shape: bf16[48,144], index: 3, kind: input, shape index: {}]   ;;  %s6146_s4 = inlined_call_operand.vmem [shape: f32[1,144], index: 4, kind: input, shape index: {}]   ;;  %s6147_s5 = inlined_call_operand.vmem [shape: f32[3,3,144], index: 5, kind: input, shape index: {}]   ;;  %s6148_s6 = inlined_call_operand.vmem [shape: f32[1,1,144], index: 6, kind: input, shape index: {}]   ;;  %s6149_s7 = inlined_call_operand.<no memory space> [shape: f32[1,1], index: 7, kind: input, shape index: {}]   ;;  %s6150_s8 = inlined_call_operand.vmem [shape: bf16[48,48], index: 8, kind: input, shape index: {}]   ;;  %s6151_s9 = inlined_call_operand.vmem [shape: f32[1,48], index: 9, kind: input, shape index: {}]   ;;  %s6152_s10 = inlined_call_operand.vmem [shape: bf16[48,16], index: 10, kind: input, shape index: {}]   ;;  %s6153_s11 = inlined_call_operand.vmem [shape: bf16[16,16], index: 11, kind: input, shape index: {}]   ;;  %s6154_s12 = inlined_call_operand.vmem [shape: f32[1,16], index: 12, kind: input, shape index: {}]   ;;  %s6155_s13 = inlined_call_operand.vmem [shape: f32[2,64,16], index: 13, kind: output, shape index: {}]  }
   0x1   :  { %v18_v0 = vstv %s6149_s7 }
   0x2   :  { %19 = vst [vmem:[#allocation3] sm:$0x1] %v18_v0 }
   0x3 LB: > { %s3857_s28 = sadd.s32 4294967295, %s4142_s27   ;;  %p3861_p0 = scmp.ge.s32.totalorder %s4142_s27, 1  ;;  %s4142_s27 = sphi %s4228_s27, %s25_s27  }
   0x4   : > { %p409_p1 = scmp.lt.s32.totalorder %s4142_s27, 3 }
   0x6   : > { %p410_p2 = pnand %p3861_p0, %p409_p1 }
   0x8   : > { %413 = sbr.rel (%p410_p2) target bundleno = 3202 (0xc82), region = 72 }
   0xd   : > { %p463_p3 = scmp.lt.s32.totalorder %s3857_s28, 1  ;;  %v4095_v1 = vld [vmem:[%s6145_s3 + $0x24] ss:$8 sps:$4 sm:$0xff]   ;;  %v4097_v2 = vld [vmem:[%s6145_s3 + $0x20] ss:$8 sps:$4 sm:$0xff]   ;;  %v4144_v6 = vmov 0  }
   0xe   : > { %665 = vmatprep.subr.bf16.mxu0 %v4095_v1  ;;  %v4098_v3 = vld [vmem:[%s6145_s3 + $0x14] ss:$8 sps:$4 sm:$0xff]   ;;  %v4100_v4 = vld [vmem:[%s6145_s3 + $0x10] ss:$8 sps:$4 sm:$0xff]   ;;  %v4101_v5 = vld [vmem:[%s6145_s3 + $0x4] ss:$8 sps:$4 sm:$0xff]   ;;  %687 = vmatprep.mubr.bf16.mxu0 %v4144_v6 }
   0xf   : > { %s6228_s28 = smov (!%p463_p3, %s3857_s28), 1  ;;  %666 = vmatpush1.bf16.msra.mxu0 %v4097_v2  ;;  %s4145_s29 = smov 16   ;;  %v4103_v11 = vld [vmem:[%s6145_s3] ss:$8 sps:$4 sm:$0xff]   ;;  %vm572_vm0 = vcmask 130048   ;;  %vm581_vm1 = vcmask 261120  }
  0x10   : > { %s4248_s19 = sshll.u32 %s6228_s28, 6  ;;  %667 = vmatprep.subr.bf16.mxu0 %v4098_v3  ;;  %s4146_s30 = smov 32   ;;  %vm642_vm2 = vcmask 392192   ;;  %vm731_vm3 = vcmask 123904   ;;  %vm1028_vm4 = vcmask 1046528   ;;  %vm1191_vm5 = vcmask 1045504  }
  0x11   : > { %s4258_s24 = scalar_lea.vmem %s6143_s1, %s4248_s19  ;;  %s4264_s28 = scalar_lea.vmem %s6144_s2, %s4248_s19  ;;  %vm819_vm6 = vcmask 130049   ;;  %vm822_vm7 = vcmask 122880   ;;  %vm2535_vm8 = vcmask 7168   ;;  %vm2537_vm9 = vcmask 15360  }
  0x12   : > { %v492_v7 = vld [vmem:[%s4258_s24] sm:$0xff]  ;;  %v493_v9 = vld [vmem:[%s4258_s24 + $0x8] sm:$0xff]  ;;  %v495_v12 = vld [vmem:[%s4258_s24 + $0x18] sm:$0xff]  ;;  %s4305_s17 = scalar_lea.vmem %s6142_s0, %s4248_s19  ;;  %s4148_s7 = smov 80   ;;  %vm2541_vm10 = vcmask 16384  }
  0x13   : > { %v500_v8 = vld [vmem:[%s4264_s28] sm:$0xff]  ;;  %516 = vrot.lane.b32.xlu0 %v492_v7, %s4145_s29  ;;  %v501_v10 = vld [vmem:[%s4264_s28 + $0x8] sm:$0xff]  ;;  %668 = vmatpush1.bf16.msra.mxu0 %v4100_v4  ;;  %v494_v13 = vld [vmem:[%s4258_s24 + $0x10] sm:$0xff]  ;;  %v602_v4 = vlaneseq  ;;  %s4149_s14 = smov 64   ;;  %s4150_s15 = smov 48  }
  0x14   : > { %548 = vrot.lane.b32.xlu1 %v500_v8, %s4146_s30  ;;  %669 = vmatprep.subr.bf16.mxu0 %v4101_v5  ;;  %v503_v14 = vld [vmem:[%s4264_s28 + $0x18] sm:$0xff]  ;;  %v502_v15 = vld [vmem:[%s4264_s28 + $0x10] sm:$0xff]  ;;  %v497_v16 = vld [vmem:[%s4258_s24 + $0x28] sm:$0xff]  ;;  %v4147_v5 = vmov 0.0   ;;  %s4151_s16 = smov 112  }
  0x15   : > { %v496_v17 = vld [vmem:[%s4258_s24 + $0x20] sm:$0xff]  ;;  %v505_v18 = vld [vmem:[%s4264_s28 + $0x28] sm:$0xff]  ;;  %v499_v20 = vld [vmem:[%s4258_s24 + $0x38] sm:$0xff]  ;;  %730 = vst [vmem:[#allocation2 + $0x10] sm:$0x3] %v4147_v5 }
  0x16   : > { %v504_v19 = vld [vmem:[%s4264_s28 + $0x20] sm:$0xff]  ;;  %v498_v21 = vld [vmem:[%s4258_s24 + $0x30] sm:$0xff]  ;;  %v507_v22 = vld [vmem:[%s4264_s28 + $0x38] sm:$0xff]  ;;  %733 = vst [vmem:[#allocation2 + $0x20] sm:$0xff] %v4147_v5 }
  0x17   : > { %518 = vrot.lane.b32.xlu0 %v493_v9, %s4145_s29  ;;  %670 = vmatpush1.bf16.msra.mxu0 %v4103_v11  ;;  %v506_v23 = vld [vmem:[%s4264_s28 + $0x30] sm:$0xff]  ;;  %v484_v25 = vld [vmem:[%s4305_s17] sm:$0xff]  ;;  %v485_v27 = vld [vmem:[%s4305_s17 + $0x8] sm:$0xff]  ;;  %735 = vst [vmem:[#allocation2 + $0x30] sm:$0x3] %v4147_v5 }
  0x18   : > { %550 = vrot.lane.b32.xlu1 %v501_v10, %s4146_s30  ;;  %v487_v35 = vld [vmem:[%s4305_s17 + $0x18] sm:$0xff]  ;;  %v486_v36 = vld [vmem:[%s4305_s17 + $0x10] sm:$0xff]  ;;  %v489_v46 = vld [vmem:[%s4305_s17 + $0x28] sm:$0xff]  ;;  %729 = vst.msk [vmem:[#allocation2 + $0x8] sm:$0xff] %vm572_vm0, %v4147_v5 }
  0x19   : > { %v488_v47 = vld [vmem:[%s4305_s17 + $0x20] sm:$0xff]  ;;  %v491_v57 = vld [vmem:[%s4305_s17 + $0x38] sm:$0xff]  ;;  %v490_v58 = vld [vmem:[%s4305_s17 + $0x30] sm:$0xff]  ;;  %734 = vst.msk [vmem:[#allocation2 + $0x28] sm:$0xff] %vm572_vm0, %v4147_v5  ;;  %s4152_s17 = smov 96  }
  0x1a   : > { %737 = vst [vmem:[#allocation2 + $0x40] sm:$0xff] %v4147_v5  ;;  %738 = vst.msk [vmem:[#allocation2 + $0x48] sm:$0xff] %vm572_vm0, %v4147_v5  ;;  %v892_v8 = vld [vmem:[%s6147_s5] sm:$0x77] }
  0x1b   : > { %520 = vrot.lane.b32.xlu0 %v494_v13, %s4145_s29  ;;  %739 = vst [vmem:[#allocation2 + $0x50] sm:$0x3] %v4147_v5  ;;  %741 = vst [vmem:[#allocation2 + $0x60] sm:$0xff] %v4147_v5 }
  0x1c   : > { %522 = vrot.lane.b32.xlu1 %v495_v12, %s4145_s29  ;;  %742 = vst.msk [vmem:[#allocation2 + $0x68] sm:$0xff] %vm572_vm0, %v4147_v5  ;;  %743 = vst [vmem:[#allocation2 + $0x70] sm:$0x3] %v4147_v5 }
  0x1d   : > { %745 = vst [vmem:[#allocation2 + $0x80] sm:$0xff] %v4147_v5  ;;  %746 = vst.msk [vmem:[#allocation2 + $0x88] sm:$0xff] %vm572_vm0, %v4147_v5 }
  0x1e   : > { %747 = vst [vmem:[#allocation2 + $0x90] sm:$0x3] %v4147_v5  ;;  %749 = vst [vmem:[#allocation2 + $0xa0] sm:$0xff] %v4147_v5 }
  0x1f   : > { %552 = vrot.lane.b32.xlu0 %v502_v15, %s4146_s30  ;;  %750 = vst.msk [vmem:[#allocation2 + $0xa8] sm:$0xff] %vm572_vm0, %v4147_v5  ;;  %751 = vst [vmem:[#allocation2 + $0xb0] sm:$0x3] %v4147_v5 }
  0x20   : > { %554 = vrot.lane.b32.xlu1 %v503_v14, %s4146_s30  ;;  %753 = vst [vmem:[#allocation2 + $0xc0] sm:$0xff] %v4147_v5  ;;  %754 = vst.msk [vmem:[#allocation2 + $0xc8] sm:$0xff] %vm572_vm0, %v4147_v5 }
  0x21   : > { %755 = vst [vmem:[#allocation2 + $0xd0] sm:$0x3] %v4147_v5  ;;  %757 = vst [vmem:[#allocation2 + $0xe0] sm:$0xff] %v4147_v5 }
  0x22   : > { %758 = vst.msk [vmem:[#allocation2 + $0xe8] sm:$0xff] %vm572_vm0, %v4147_v5  ;;  %759 = vst [vmem:[#allocation2 + $0xf0] sm:$0x3] %v4147_v5 }
  0x23   : > { %524 = vrot.lane.b32.xlu0 %v496_v17, %s4145_s29  ;;  %761 = vst [vmem:[#allocation2 + $0x100] sm:$0xff] %v4147_v5  ;;  %762 = vst.msk [vmem:[#allocation2 + $0x108] sm:$0xff] %vm572_vm0, %v4147_v5 }
  0x24   : > { %526 = vrot.lane.b32.xlu1 %v497_v16, %s4145_s29  ;;  %763 = vst [vmem:[#allocation2 + $0x110] sm:$0x3] %v4147_v5  ;;  %766 = vst.msk [vmem:[#allocation2 + $0x128] sm:$0xff] %vm572_vm0, %v4147_v5 }
  0x25   : > { %767 = vst [vmem:[#allocation2 + $0x130] sm:$0x3] %v4147_v5  ;;  %732 = vst.msk [vmem:[#allocation2 + $0x18] sm:$0x3] %vm731_vm3, %v4147_v5 }
  0x26   : > { %736 = vst.msk [vmem:[#allocation2 + $0x38] sm:$0x3] %vm731_vm3, %v4147_v5  ;;  %740 = vst.msk [vmem:[#allocation2 + $0x58] sm:$0x3] %vm731_vm3, %v4147_v5 }
  0x27   : > { %556 = vrot.lane.b32.xlu0 %v504_v19, %s4146_s30  ;;  %744 = vst.msk [vmem:[#allocation2 + $0x78] sm:$0x3] %vm731_vm3, %v4147_v5  ;;  %748 = vst.msk [vmem:[#allocation2 + $0x98] sm:$0x3] %vm731_vm3, %v4147_v5 }
  0x28   : > { %558 = vrot.lane.b32.xlu1 %v505_v18, %s4146_s30  ;;  %752 = vst.msk [vmem:[#allocation2 + $0xb8] sm:$0x3] %vm731_vm3, %v4147_v5  ;;  %756 = vst.msk [vmem:[#allocation2 + $0xd8] sm:$0x3] %vm731_vm3, %v4147_v5 }
  0x29   : > { %760 = vst.msk [vmem:[#allocation2 + $0xf8] sm:$0x3] %vm731_vm3, %v4147_v5  ;;  %764 = vst.msk [vmem:[#allocation2 + $0x118] sm:$0x3] %vm731_vm3, %v4147_v5 }
  0x2a   : > { %768 = vst.msk [vmem:[#allocation2 + $0x138] sm:$0x3] %vm731_vm3, %v4147_v5 }
  0x2b   : > { %528 = vrot.lane.b32.xlu0 %v498_v21, %s4145_s29 }
  0x2c   : > { %530 = vrot.lane.b32.xlu1 %v499_v20, %s4145_s29  ;;  %v853_v20 = vld [vmem:[#allocation2 + $0x8] sm:$0xff]  ;;  %v855_v21 = vld [vmem:[#allocation2 + $0x18] sm:$0x3] }
  0x2f   : > { %560 = vrot.lane.b32.xlu0 %v506_v23, %s4146_s30 }
  0x30   : > { %562 = vrot.lane.b32.xlu1 %v507_v22, %s4146_s30 }
  0x85   : > { %v517_v24 = vpop.permute.xlu0 %516 }
  0x86   : > { %v549_v26 = vpop.permute.xlu1 %548  ;;  %v573_v28 = vsel %vm572_vm0, %v484_v25, %v517_v24 }
  0x87   : > { %v4312_v32 = vsel %vm581_vm1, %v573_v28, %v549_v26 }
  0x88   : > { %6175 = vst [vmem:[#allocation4_spill] sm:$0xff] %v4312_v32 }
  0x89   : > { %v519_v29 = vpop.permute.xlu0 %518 }
  0x8a   : > { %v551_v30 = vpop.permute.xlu1 %550  ;;  %v574_v31 = vsel %vm572_vm0, %v485_v27, %v519_v29 }
  0x8b   : > { %v4315_v33 = vsel %vm581_vm1, %v574_v31, %v551_v30 }
  0x8c   : > { %6176 = vst [vmem:[#allocation5_spill] sm:$0xff] %v4315_v33  ;;  %v596_v34 = vpack.c.bf16 %v4315_v33, %v4312_v32 }
  0x8d   : > { %v521_v38 = vpop.permute.xlu0 %520 }
  0x8e   : > { %v523_v37 = vpop.permute.xlu1 %522  ;;  %3876 = vmatmul.mubr.msk.bf16.vlgmr.msra.gmra.mxu0 %vm642_vm2, %v596_v34  ;;  %v575_v40 = vsel %vm572_vm0, %v486_v36, %v521_v38 }
  0x8f   : > { %v576_v39 = vsel %vm572_vm0, %v487_v35, %v523_v37  ;;  %697 = vmatprep.mubr.bf16.mxu0 %v4144_v6 }
  0x91   : > { %v553_v42 = vpop.permute.xlu0 %552 }
  0x92   : > { %v555_v41 = vpop.permute.xlu1 %554  ;;  %v4329_v44 = vsel %vm581_vm1, %v575_v40, %v553_v42  ;;  %v854_v40 = vld [vmem:[#allocation2 + $0x10] sm:$0x3]  ;;  %v600_v42 = vld [vmem:[%s6146_s4] sm:$0x3] }
  0x93   : > { %v4326_v43 = vsel %vm581_vm1, %v576_v39, %v555_v41  ;;  %6178 = vst [vmem:[#allocation7_spill] sm:$0xff] %v4329_v44 }
  0x94   : > { %6177 = vst [vmem:[#allocation6_spill] sm:$0xff] %v4326_v43  ;;  %v597_v45 = vpack.c.bf16 %v4326_v43, %v4329_v44 }
  0x95   : > { %v525_v49 = vpop.permute.xlu0 %524 }
  0x96   : > { %v527_v48 = vpop.permute.xlu1 %526  ;;  %3877 = vmatmul.mubr.msk.bf16.gmra.mxu0 %vm642_vm2, %v597_v45  ;;  %v577_v51 = vsel %vm572_vm0, %v488_v47, %v525_v49 }
  0x97   : > { %v578_v50 = vsel %vm572_vm0, %v489_v46, %v527_v48  ;;  %707 = vmatprep.mubr.bf16.mxu0 %v4144_v6 }
  0x99   : > { %v557_v53 = vpop.permute.xlu0 %556 }
  0x9a   : > { %v559_v52 = vpop.permute.xlu1 %558  ;;  %v4343_v55 = vsel %vm581_vm1, %v577_v51, %v557_v53 }
  0x9b   : > { %v4340_v54 = vsel %vm581_vm1, %v578_v50, %v559_v52  ;;  %6180 = vst [vmem:[#allocation9_spill] sm:$0xff] %v4343_v55 }
  0x9c   : > { %6179 = vst [vmem:[#allocation8_spill] sm:$0xff] %v4340_v54  ;;  %v598_v56 = vpack.c.bf16 %v4340_v54, %v4343_v55 }
  0x9d   : > { %v529_v60 = vpop.permute.xlu0 %528 }
  0x9e   : > { %v531_v59 = vpop.permute.xlu1 %530  ;;  %3878 = vmatmul.mubr.msk.bf16.gmra.mxu0 %vm642_vm2, %v598_v56  ;;  %v579_v62 = vsel %vm572_vm0, %v490_v58, %v529_v60  ;;  %v893_v56 = vld [vmem:[%s6147_s5 + $0x8] sm:$0x77]  ;;  %v4439_v58 = vld [vmem:[%s6147_s5 + $0x10] sm:$0x77] }
  0x9f   : > { %v580_v61 = vsel %vm572_vm0, %v491_v57, %v531_v59  ;;  %717 = vmatprep.mubr.bf16.mxu0 %v4144_v6  ;;  %v603_v6 = vshrl.u32 %v602_v4, 7 }
  0xa1   : > { %v561_v0 = vpop.permute.xlu0 %560  ;;  %v4372_v7 = vsub.s32 6, %v603_v6  ;;  %v4377_v9 = vsub.s32 2, %v603_v6  ;;  %v4383_v12 = vsub.s32 5, %v603_v6  ;;  %v4385_v13 = vsub.s32 4, %v603_v6 }
  0xa2   : > { %v563_v63 = vpop.permute.xlu1 %562  ;;  %v4357_v2 = vsel %vm581_vm1, %v579_v62, %v561_v0  ;;  %v4388_v15 = vsub.s32 1, %v603_v6  ;;  %v4394_v18 = vsub.s32 0, %v603_v6 }
  0xa3   : > { %v4354_v1 = vsel %vm581_vm1, %v580_v61, %v563_v63  ;;  %6182 = vst [vmem:[#allocation11_spill] sm:$0xff] %v4357_v2  ;;  %v1116_v10 = vrot.slane %v892_v8, %v4372_v7  ;;  %v953_v14 = vrot.slane %v892_v8, %v4383_v12  ;;  %v903_v16 = vrot.slane %v892_v8, %v4385_v13 }
  0xa4   : > { %6181 = vst [vmem:[#allocation10_spill] sm:$0xff] %v4354_v1  ;;  %v599_v3 = vpack.c.bf16 %v4354_v1, %v4357_v2  ;;  %6183 = vst [vmem:[#allocation12_spill] sm:$0xff] %v4388_v15  ;;  %v949_v37 = vrot.slane %v892_v8, %v4388_v15  ;;  %v1112_v39 = vrot.slane %v892_v8, %v4377_v9 }
  0xa5   : > { %v4381_v11 = vrot.slane %v1116_v10, %v4377_v9  ;;  %v4392_v17 = vrot.slane %v953_v14, %v4388_v15  ;;  %v4397_v19 = vrot.slane %v903_v16, %v4394_v18  ;;  %v899_v41 = vrot.slane %v892_v8, %v4394_v18 }
  0xa6   : > { %3879 = vmatmul.mubr.msk.bf16.gmra.mxu0 %vm642_vm2, %v599_v3  ;;  %v4410_v38 = vrot.slane %v949_v37, %v4388_v15  ;;  %v4420_v47 = vrot.slane %v1112_v39, %v4377_v9  ;;  %v4423_v48 = vrot.slane %v600_v42, %v4394_v18  ;;  %v4434_v57 = vrot.slane %v600_v42, %v4388_v15 }
  0xa7   : > { %v965_v22 = vmul.f32 %v4392_v17, %v853_v20  ;;  %v967_v23 = vmul.f32 %v4392_v17, %v855_v21  ;;  %v1128_v26 = vmul.f32 %v4381_v11, %v853_v20  ;;  %v915_v27 = vmul.f32 %v4397_v19, %v853_v20 }
  0xa8   : > { %v1130_v29 = vmul.f32 %v4381_v11, %v855_v21  ;;  %v964_v45 = vmul.f32 0.0, %v4410_v38  ;;  %v966_v46 = vmul.f32 %v4410_v38, %v854_v40  ;;  %v4426_v49 = vrot.slane %v899_v41, %v4394_v18  ;;  %v2022_v41 = vld [vmem:[%s6148_s6] sm:$0x3] }
  0xa9   : > { %v1032_v24 = vrot.slane %v965_v22, 1  ;;  %v1033_v25 = vrot.slane %v967_v23, 1  ;;  %v1195_v30 = vrot.slane %v1128_v26, 2  ;;  %v1127_v52 = vmul.f32 0.0, %v4420_v47 }
  0xaa   : > { %v1196_v34 = vrot.slane %v1130_v29, 2  ;;  %v1029_v50 = vrot.slane %v964_v45, 1  ;;  %v1030_v51 = vrot.slane %v966_v46, 1  ;;  %v1129_v53 = vmul.f32 %v4420_v47, %v854_v40 }
  0xab   : > { %v1034_v28 = vsel %vm1028_vm4, %v1032_v24, %v1033_v25  ;;  %v914_v60 = vmul.f32 0.0, %v4426_v49  ;;  %v1192_v63 = vrot.slane %v1127_v52, 2  ;;  %v1276_v3 = vrot.slane %v893_v56, %v4394_v18  ;;  %v890_v52 = vld [vmem:[#allocation2 + $0x130] sm:$0x3] }
  0xac   : > { %v1094_v31 = vadd.f32 %v1034_v28, %v915_v27  ;;  %v1197_v35 = vsel %vm1191_vm5, %v1195_v30, %v1196_v34  ;;  %v1031_v62 = vsel %vm1028_vm4, %v1029_v50, %v1030_v51  ;;  %v1193_v0 = vrot.slane %v1129_v53, 2 }
  0xad   : > { %v1701_v5 = vrot.slane %v4439_v58, %v4388_v15  ;;  %v1326_v8 = vrot.slane %v893_v56, %v4388_v15  ;;  %v1488_v10 = vrot.slane %v893_v56, %v4377_v9  ;;  %v1093_v16 = vadd.f32 %v1031_v62, %v914_v60 }
  0xae   : > { %v4406_v36 = vadd.f32 %v1197_v35, %v1094_v31  ;;  %v1330_v20 = vrot.slane %v893_v56, %v4383_v12  ;;  %v1194_v22 = vsel %vm1191_vm5, %v1192_v63, %v1193_v0  ;;  %v1492_v23 = vrot.slane %v893_v56, %v4372_v7 }
  0xaf   : > { %v1651_v26 = vrot.slane %v4439_v58, %v4394_v18  ;;  %v1705_v27 = vrot.slane %v4439_v58, %v4383_v12  ;;  %v4459_v28 = vrot.slane %v1701_v5, %v4388_v15  ;;  %v1863_v29 = vrot.slane %v4439_v58, %v4377_v9 }
  0xb0   : > { %6184 = vst [vmem:[#allocation13_spill] sm:$0xff] %v4406_v36  ;;  %v1867_v34 = vrot.slane %v4439_v58, %v4372_v7  ;;  %v1280_v37 = vrot.slane %v893_v56, %v4385_v13  ;;  %v4470_v12 = vrot.slane %v1276_v3, %v4394_v18  ;;  %v4473_v39 = vrot.slane %v1326_v8, %v4388_v15 }
  0xb1   : > { %v4476_v40 = vrot.slane %v1488_v10, %v4377_v9  ;;  %v4482_v7 = vmul.f32 0.0, %v4459_v28  ;;  %v1256_v45 = vadd.f32 %v1194_v22, %v1093_v16  ;;  %v4485_v46 = vrot.slane %v1330_v20, %v4388_v15 }
  0xb2   : > { %v4489_v53 = vrot.slane %v1492_v23, %v4377_v9  ;;  %v4492_v56 = vrot.slane %v1651_v26, %v4394_v18  ;;  %v4498_v60 = vrot.slane %v1863_v29, %v4377_v9  ;;  %v4503_v62 = vrot.slane %v1867_v34, %v4377_v9 }
  0xb3   : > { %v4506_v63 = vrot.slane %v2022_v41, %v4394_v18  ;;  %v4511_v3 = vrot.slane %v1280_v37, %v4394_v18  ;;  %v4519_v9 = vmul.f32 %v4459_v28, %v890_v52 }
  0xb4   : > { %v4516_v8 = vmul.f32 0.0, %v4492_v56 }
 0x14e   : > { %v689_v59 = vpop.f32.mrf.mxu0 }
 0x14f   : > { %v690_v61 = vadd.f32 %v689_v59, %v4423_v48  ;;  %v4495_v59 = vrot.slane %v1705_v27, %v4388_v15 }
 0x150   : > { %v691_v4 = vpop.f32.mrf.mxu0 }
 0x151   : > { %v785_v6 = vrot.slane %v690_v61, 7  ;;  %v692_v14 = vadd.f32 %v691_v4, %v4434_v57 }
 0x152   : > { %v693_v21 = vpop.f32.mrf.mxu0 }
 0x153   : > { %818 = vst [vmem:[#allocation2 + $0x20] sm:$0xfe] %v785_v6  ;;  %821 = vst [vmem:[#allocation2 + $0x30] sm:$0x1] %v785_v6  ;;  %v786_v24 = vrot.slane %v692_v14, 7  ;;  %v694_v25 = vadd.f32 %v693_v21, %v4423_v48 }
 0x154   : > { %v695_v30 = vpop.f32.mrf.mxu0 }
 0x155   : > { %820 = vst.msk [vmem:[#allocation2 + $0x28] sm:$0xfe] %vm819_vm6, %v786_v24  ;;  %v787_v31 = vrot.slane %v694_v25, 7  ;;  %v696_v35 = vadd.f32 %v695_v30, %v4434_v57 }
 0x156   : > { %823 = vst.msk [vmem:[#allocation2 + $0x38] sm:$0x1] %vm822_vm7, %v786_v24  ;;  %v699_v42 = vpop.f32.mrf.mxu0 }
 0x157   : > { %824 = vst [vmem:[#allocation2 + $0x40] sm:$0xfe] %v787_v31  ;;  %826 = vst [vmem:[#allocation2 + $0x50] sm:$0x1] %v787_v31  ;;  %v788_v50 = vrot.slane %v696_v35, 7  ;;  %v700_v51 = vadd.f32 %v699_v42, %v4423_v48 }
 0x158   : > { %v4500_v61 = vpop.f32.mrf.mxu0 }
 0x159   : > { %825 = vst.msk [vmem:[#allocation2 + $0x48] sm:$0xfe] %vm819_vm6, %v788_v50  ;;  %v789_v0 = vrot.slane %v700_v51, 7 }
 0x15a   : > { %827 = vst.msk [vmem:[#allocation2 + $0x58] sm:$0x1] %vm822_vm7, %v788_v50  ;;  %v856_v4 = vld [vmem:[#allocation2 + $0x20] sm:$0xff]  ;;  %v858_v5 = vld [vmem:[#allocation2 + $0x30] sm:$0x3]  ;;  %v4513_v6 = vpop.f32.mrf.mxu0 }
 0x15b   : > { %v916_v16 = vmul.f32 %v4426_v49, %v856_v4  ;;  %v968_v20 = vmul.f32 %v4410_v38, %v856_v4  ;;  %v970_v21 = vmul.f32 %v4410_v38, %v858_v5  ;;  %v1131_v22 = vmul.f32 %v4420_v47, %v856_v4  ;;  %828 = vst [vmem:[#allocation2 + $0x60] sm:$0xfe] %v789_v0 }
 0x15c   : > { %830 = vst [vmem:[#allocation2 + $0x70] sm:$0x1] %v789_v0  ;;  %v1133_v23 = vmul.f32 %v4420_v47, %v858_v5  ;;  %v1291_v24 = vmul.f32 %v4470_v12, %v856_v4  ;;  %v1341_v25 = vmul.f32 %v4473_v39, %v856_v4  ;;  %v1343_v26 = vmul.f32 %v4473_v39, %v858_v5  ;;  %v4532_v27 = vpop.f32.mrf.mxu0 }
 0x15d   : > { %v1035_v29 = vrot.slane %v968_v20, 1  ;;  %v1036_v30 = vrot.slane %v970_v21, 1  ;;  %v1198_v31 = vrot.slane %v1131_v22, 2  ;;  %v1503_v34 = vmul.f32 %v4476_v40, %v856_v4 }
 0x15e   : > { %v1199_v35 = vrot.slane %v1133_v23, 2  ;;  %v1307_v37 = vadd.f32 %v1291_v24, %v1256_v45  ;;  %v1405_v41 = vrot.slane %v1341_v25, 1  ;;  %v1406_v42 = vrot.slane %v1343_v26, 1  ;;  %v860_v50 = vld [vmem:[#allocation2 + $0x40] sm:$0xff]  ;;  %v862_v51 = vld [vmem:[#allocation2 + $0x50] sm:$0x3]  ;;  %v4537_v2 = vpop.f32.mrf.mxu0 }
 0x15f   : > { %v1037_v0 = vsel %vm1028_vm4, %v1035_v29, %v1036_v30  ;;  %v1505_v10 = vmul.f32 %v4476_v40, %v858_v5  ;;  %v1567_v14 = vrot.slane %v1503_v34, 2  ;;  %v972_v4 = vmul.f32 %v4410_v38, %v860_v50 }
 0x160   : > { %v1095_v20 = vadd.f32 %v1037_v0, %v916_v16  ;;  %v1407_v21 = vsel %vm1028_vm4, %v1405_v41, %v1406_v42  ;;  %v4543_v45 = vmul.f32 0.0, %v4498_v60  ;;  %v974_v24 = vmul.f32 %v4410_v38, %v862_v51 }
 0x161   : > { %v1469_v22 = vadd.f32 %v1407_v21, %v1307_v37  ;;  %v1568_v23 = vrot.slane %v1505_v10, 2  ;;  %v1135_v25 = vmul.f32 %v4420_v47, %v860_v50  ;;  %v1200_v5 = vsel %vm1191_vm5, %v1198_v31, %v1199_v35  ;;  %v4554_v37 = vpop.f32.mrf.mxu0 }
 0x162   : > { %v1041_v26 = vrot.slane %v972_v4, 1  ;;  %v1137_v29 = vmul.f32 %v4420_v47, %v862_v51  ;;  %v4550_v16 = vmul.f32 %v4498_v60, %v890_v52  ;;  %v1258_v30 = vadd.f32 %v1200_v5, %v1095_v20 }
 0x163   : > { %v1569_v34 = vsel %vm1191_vm5, %v1567_v14, %v1568_v23  ;;  %v1042_v41 = vrot.slane %v974_v24, 1  ;;  %v1345_v42 = vmul.f32 %v4473_v39, %v860_v50  ;;  %v1204_v0 = vrot.slane %v1135_v25, 2 }
 0x164   : > { %v1631_v10 = vadd.f32 %v1569_v34, %v1469_v22  ;;  %v1205_v21 = vrot.slane %v1137_v29, 2  ;;  %v1347_v54 = vmul.f32 %v4473_v39, %v862_v51  ;;  %v1293_v35 = vmul.f32 %v4470_v12, %v860_v50  ;;  %v864_v29 = vld [vmem:[#allocation2 + $0x60] sm:$0xff]  ;;  %v4569_v34 = vpop.f32.mrf.mxu0 }
 0x165   : > { %v1043_v31 = vsel %vm1028_vm4, %v1041_v26, %v1042_v41  ;;  %v1507_v52 = vmul.f32 %v4476_v40, %v860_v50  ;;  %v1509_v20 = vmul.f32 %v4476_v40, %v862_v51  ;;  %v918_v14 = vmul.f32 %v4426_v49, %v860_v50 }
 0x166   : > { %v1411_v4 = vrot.slane %v1345_v42, 1  ;;  %v1412_v23 = vrot.slane %v1347_v54, 1  ;;  %v1666_v24 = vmul.f32 %v4492_v56, %v860_v50  ;;  %v1309_v5 = vadd.f32 %v1293_v35, %v1258_v30  ;;  %v866_v42 = vld [vmem:[#allocation2 + $0x70] sm:$0x3] }
 0x167   : > { %v1716_v22 = vmul.f32 %v4459_v28, %v860_v50  ;;  %v1718_v25 = vmul.f32 %v4459_v28, %v862_v51  ;;  %v4567_v26 = vadd.f32 %v4500_v61, %v4434_v57  ;;  %v1097_v41 = vadd.f32 %v1043_v31, %v918_v14 }
 0x168   : > { %v1206_v55 = vsel %vm1191_vm5, %v1204_v0, %v1205_v21  ;;  %v1682_v1 = vadd.f32 %v1666_v24, %v1631_v10  ;;  %v1878_v54 = vmul.f32 %v4498_v60, %v860_v50  ;;  %v1573_v44 = vrot.slane %v1507_v52, 2  ;;  %v715_v50 = vpop.f32.mrf.mxu0 }
 0x169   : > { %v1574_v30 = vrot.slane %v1509_v20, 2  ;;  %v1780_v35 = vrot.slane %v1716_v22, 1  ;;  %v1781_v33 = vrot.slane %v1718_v25, 1  ;;  %v1413_v32 = vsel %vm1028_vm4, %v1411_v4, %v1412_v23 }
 0x16a   : > { %v1880_v43 = vmul.f32 %v4498_v60, %v862_v51  ;;  %v1942_v15 = vrot.slane %v1878_v54, 2  ;;  %v976_v61 = vmul.f32 %v4410_v38, %v864_v29  ;;  %v1471_v36 = vadd.f32 %v1413_v32, %v1309_v5 }
 0x16b   : > { %v1782_v31 = vsel %vm1028_vm4, %v1780_v35, %v1781_v33  ;;  %v978_v0 = vmul.f32 %v4410_v38, %v866_v42  ;;  %v1139_v10 = vmul.f32 %v4420_v47, %v864_v29  ;;  %v1141_v14 = vmul.f32 %v4420_v47, %v866_v42  ;;  %v719_v35 = vpop.f32.mrf.mxu0 }
 0x16c   : > { %v1844_v21 = vadd.f32 %v1782_v31, %v1682_v1  ;;  %v1943_v52 = vrot.slane %v1880_v43, 2  ;;  %v1047_v20 = vrot.slane %v976_v61, 1  ;;  %v1260_v24 = vadd.f32 %v1206_v55, %v1097_v41 }
 0x16d   : > { %v1575_v4 = vsel %vm1191_vm5, %v1573_v44, %v1574_v30  ;;  %v1048_v51 = vrot.slane %v978_v0, 1  ;;  %v1349_v23 = vmul.f32 %v4473_v39, %v864_v29  ;;  %v1210_v5 = vrot.slane %v1139_v10, 2  ;;  %v721_v0 = vpop.f32.mrf.mxu0 }
 0x16e   : > { %v1944_v32 = vsel %vm1191_vm5, %v1942_v15, %v1943_v52  ;;  %v1211_v33 = vrot.slane %v1141_v14, 2  ;;  %v1351_v22 = vmul.f32 %v4473_v39, %v866_v42  ;;  %v1633_v25 = vadd.f32 %v1575_v4, %v1471_v36 }
 0x16f   : > { %v2006_v54 = vadd.f32 %v1944_v32, %v1844_v21  ;;  %v1049_v1 = vsel %vm1028_vm4, %v1047_v20, %v1048_v51  ;;  %v4586_v43 = vmul.f32 %v4476_v40, %v864_v29  ;;  %v920_v55 = vmul.f32 %v4426_v49, %v864_v29 }
 0x170   : > { %v1295_v44 = vmul.f32 %v4470_v12, %v864_v29  ;;  %v1417_v41 = vrot.slane %v1349_v23, 1  ;;  %v1418_v30 = vrot.slane %v1351_v22, 1  ;;  %v4594_v61 = vmul.f32 %v4476_v40, %v866_v42 }
 0x171   : > { %v4591_v15 = vadd.f32 %v4506_v63, %v2006_v54  ;;  %v1668_v36 = vmul.f32 %v4492_v56, %v864_v29  ;;  %v1720_v31 = vmul.f32 %v4459_v28, %v864_v29  ;;  %v4598_v10 = vadd.f32 %v1049_v1, %v920_v55  ;;  %v723_v1 = vpop.f32.mrf.mxu0 }
 0x172   : > { %v4601_v21 = vsel %vm1191_vm5, %v1210_v5, %v1211_v33  ;;  %v1311_v52 = vadd.f32 %v1295_v44, %v1260_v24  ;;  %v1722_v20 = vmul.f32 %v4459_v28, %v866_v42  ;;  %v1579_v14 = vrot.slane %v4586_v43, 2 }
 0x173   : > { %6185 = vst [vmem:[#allocation14_spill] sm:$0xff] %v4591_v15  ;;  %v1684_v4 = vadd.f32 %v1668_v36, %v1633_v25  ;;  %v1786_v51 = vrot.slane %v1720_v31, 1  ;;  %v1882_v23 = vmul.f32 %v4498_v60, %v864_v29  ;;  %2358 = vrot.lane.b32.xlu0 %v4591_v15, %s4148_s7  ;;  %v1419_v32 = vsel %vm1028_vm4, %v1417_v41, %v1418_v30 }
 0x174   : > { %v1787_v22 = vrot.slane %v1722_v20, 1  ;;  %v1884_v54 = vmul.f32 %v4498_v60, %v866_v42  ;;  %v790_v5 = vrot.slane %v4567_v26, 7  ;;  %v1580_v24 = vrot.slane %v4594_v61, 2  ;;  %v725_v61 = vpop.f32.mrf.mxu0 }
 0x175   : > { %v1948_v33 = vrot.slane %v1882_v23, 2  ;;  %v704_v25 = vadd.f32 %v4513_v6, %v4423_v48  ;;  %v706_v29 = vadd.f32 %v4532_v27, %v4434_v57  ;;  %v710_v26 = vadd.f32 %v4537_v2, %v4423_v48 }
 0x176   : > { %v1788_v55 = vsel %vm1028_vm4, %v1786_v51, %v1787_v22  ;;  %v1949_v44 = vrot.slane %v1884_v54, 2  ;;  %829 = vst.msk [vmem:[#allocation2 + $0x68] sm:$0xfe] %vm819_vm6, %v790_v5  ;;  %v712_v42 = vadd.f32 %v4554_v37, %v4434_v57  ;;  %v714_v27 = vadd.f32 %v4569_v34, %v4423_v48  ;;  %v4629_v51 = vld [vmem:[#allocation2 + $0x28] sm:$0xff] }
 0x177   : > { %831 = vst.msk [vmem:[#allocation2 + $0x78] sm:$0x1] %vm822_vm7, %v790_v5  ;;  %v1846_v41 = vadd.f32 %v1788_v55, %v1684_v4  ;;  %v791_v30 = vrot.slane %v704_v25, 7  ;;  %v792_v6 = vrot.slane %v706_v29, 7  ;;  %2417 = vrot.lane.b32.xlu0 %v4591_v15, %s4149_s14  ;;  %v793_v31 = vrot.slane %v710_v26, 7  ;;  %v4662_v55 = vld [vmem:[#allocation2 + $0x48] sm:$0xff] }
 0x178   : > { %v1950_v36 = vsel %vm1191_vm5, %v1948_v33, %v1949_v44  ;;  %v794_v20 = vrot.slane %v712_v42, 7  ;;  %v716_v2 = vadd.f32 %v715_v50, %v4434_v57  ;;  %v795_v34 = vrot.slane %v714_v27, 7 }
 0x179   : > { %v2008_v37 = vadd.f32 %v1950_v36, %v1846_v41  ;;  %832 = vst [vmem:[#allocation2 + $0x80] sm:$0xfe] %v791_v30  ;;  %834 = vst [vmem:[#allocation2 + $0x90] sm:$0x1] %v791_v30  ;;  %v720_v4 = vadd.f32 %v719_v35, %v4423_v48  ;;  %v722_v23 = vadd.f32 %v721_v0, %v4434_v57  ;;  %v6189_v26 = vrot.slane %v4519_v9, 1 }
 0x17a   : > { %833 = vst.msk [vmem:[#allocation2 + $0x88] sm:$0xfe] %vm819_vm6, %v792_v6  ;;  %v1473_v22 = vadd.f32 %v1419_v32, %v1311_v52  ;;  %836 = vst [vmem:[#allocation2 + $0xa0] sm:$0xfe] %v793_v31  ;;  %v796_v50 = vrot.slane %v716_v2, 7  ;;  %v724_v54 = vadd.f32 %v723_v1, %v4423_v48  ;;  %v726_v5 = vadd.f32 %v725_v61, %v4434_v57 }
 0x17b   : > { %835 = vst.msk [vmem:[#allocation2 + $0x98] sm:$0x1] %vm822_vm7, %v792_v6  ;;  %838 = vst [vmem:[#allocation2 + $0xb0] sm:$0x1] %v793_v31  ;;  %v4640_v33 = vadd.f32 %v4506_v63, %v2008_v37  ;;  %v797_v35 = vrot.slane %v720_v4, 7  ;;  %v798_v25 = vrot.slane %v722_v23, 7  ;;  %2476 = vrot.lane.b32.xlu0 %v4591_v15, %s4150_s15  ;;  %v4646_v0 = vmul.f32 %v4591_v15, %v4591_v15 }
 0x17c   : > { %837 = vst.msk [vmem:[#allocation2 + $0xa8] sm:$0xfe] %vm819_vm6, %v794_v20  ;;  %840 = vst [vmem:[#allocation2 + $0xc0] sm:$0xfe] %v795_v34  ;;  %v799_v48 = vrot.slane %v724_v54, 7  ;;  %v800_v57 = vrot.slane %v726_v5, 7  ;;  %v4654_v32 = vmul.f32 %v4392_v17, %v4629_v51  ;;  %v6188_v29 = vrot.slane %v4439_v58, %v4385_v13 }
 0x17d   : > { %839 = vst.msk [vmem:[#allocation2 + $0xb8] sm:$0x1] %vm822_vm7, %v794_v20  ;;  %6186 = vst [vmem:[#allocation15_spill] sm:$0xff] %v4640_v33  ;;  %v4650_v52 = vld [vmem:[#allocation2 + $0x38] sm:$0x3]  ;;  %v1581_v44 = vsel %vm1191_vm5, %v1579_v14, %v1580_v24  ;;  %v6190_v42 = vrot.slane %v4482_v7, 1  ;;  %2360 = vrot.lane.b32.xlu1 %v4640_v33, %s4148_s7  ;;  %v4681_v58 = vmul.f32 %v4640_v33, %v4640_v33 }
 0x17e   : > { %842 = vst [vmem:[#allocation2 + $0xd0] sm:$0x1] %v795_v34  ;;  %841 = vst.msk [vmem:[#allocation2 + $0xc8] sm:$0xfe] %vm819_vm6, %v796_v50  ;;  %v4660_v1 = vrot.slane %v6188_v29, %v4394_v18  ;;  %v1262_v43 = vadd.f32 %v4601_v21, %v4598_v10  ;;  %v1635_v14 = vadd.f32 %v1581_v44, %v1473_v22  ;;  %v2058_v10 = vsel %vm572_vm0, %v4646_v0, 0.0 }
 0x17f   : > { %843 = vst.msk [vmem:[#allocation2 + $0xd8] sm:$0x1] %vm822_vm7, %v796_v50  ;;  %6187 = vst [vmem:[#allocation16_spill] sm:$0xff] %v4650_v52  ;;  %v4674_v13 = vsel %vm1028_vm4, %v6190_v42, %v6189_v26  ;;  %v4690_v9 = vmul.f32 %v4397_v19, %v4629_v51  ;;  %2093 = vrot.lane.b32.xlu0 %v4646_v0, %s4151_s16  ;;  %v2059_v21 = vsel %vm572_vm0, %v4681_v58, 0.0 }
 0x180   : > { %844 = vst [vmem:[#allocation2 + $0xe0] sm:$0xfe] %v797_v35  ;;  %846 = vst [vmem:[#allocation2 + $0xf0] sm:$0x1] %v797_v35  ;;  %v4700_v24 = vmul.f32 %v4392_v17, %v4650_v52  ;;  %v4704_v41 = vmul.f32 %v4381_v11, %v4629_v51  ;;  %v868_v30 = vld [vmem:[#allocation2 + $0x80] sm:$0xff]  ;;  %v4706_v27 = vadd.f32 %v2059_v21, %v2058_v10 }
 0x181   : > { %845 = vst.msk [vmem:[#allocation2 + $0xe8] sm:$0xfe] %vm819_vm6, %v798_v25  ;;  %848 = vst [vmem:[#allocation2 + $0x100] sm:$0xfe] %v799_v48  ;;  %v870_v6 = vld [vmem:[#allocation2 + $0x90] sm:$0x3]  ;;  %v4711_v36 = vmul.f32 %v4381_v11, %v4650_v52  ;;  %v4715_v31 = vmul.f32 %v4511_v3, %v4662_v55  ;;  %v922_v20 = vmul.f32 %v4426_v49, %v868_v30  ;;  %2419 = vrot.lane.b32.xlu1 %v4640_v33, %s4149_s14 }
 0x182   : > { %847 = vst.msk [vmem:[#allocation2 + $0xf8] sm:$0x1] %vm822_vm7, %v798_v25  ;;  %850 = vst [vmem:[#allocation2 + $0x110] sm:$0x1] %v799_v48  ;;  %v980_v2 = vmul.f32 %v4410_v38, %v868_v30  ;;  %v982_v37 = vmul.f32 %v4410_v38, %v870_v6  ;;  %v1143_v34 = vmul.f32 %v4420_v47, %v868_v30 }
 0x183   : > { %849 = vst.msk [vmem:[#allocation2 + $0x108] sm:$0xfe] %vm819_vm6, %v800_v57  ;;  %v1145_v4 = vmul.f32 %v4420_v47, %v870_v6  ;;  %v1297_v23 = vmul.f32 %v4470_v12, %v868_v30  ;;  %v1353_v22 = vmul.f32 %v4473_v39, %v868_v30  ;;  %v1355_v50 = vmul.f32 %v4473_v39, %v870_v6 }
 0x184   : > { %851 = vst.msk [vmem:[#allocation2 + $0x118] sm:$0x1] %vm822_vm7, %v800_v57  ;;  %v1053_v54 = vrot.slane %v980_v2, 1  ;;  %v1054_v5 = vrot.slane %v982_v37, 1  ;;  %v1216_v35 = vrot.slane %v1143_v34, 2  ;;  %v1515_v25 = vmul.f32 %v4476_v40, %v868_v30  ;;  %2144 = vrot.lane.b32.xlu0 %v4646_v0, %s4152_s17 }
 0x185   : > { %v1217_v48 = vrot.slane %v1145_v4, 2  ;;  %v1313_v57 = vadd.f32 %v1297_v23, %v1262_v43  ;;  %v1423_v29 = vrot.slane %v1353_v22, 1  ;;  %v1424_v44 = vrot.slane %v1355_v50, 1  ;;  %2478 = vrot.lane.b32.xlu1 %v4640_v33, %s4150_s15  ;;  %v872_v43 = vld [vmem:[#allocation2 + $0xa0] sm:$0xff] }
 0x186   : > { %v1055_v26 = vsel %vm1028_vm4, %v1053_v54, %v1054_v5  ;;  %v1517_v42 = vmul.f32 %v4476_v40, %v870_v6  ;;  %v1585_v10 = vrot.slane %v1515_v25, 2  ;;  %v1670_v21 = vmul.f32 %v4492_v56, %v868_v30  ;;  %v874_v5 = vld [vmem:[#allocation2 + $0xb0] sm:$0x3] }
 0x187   : > { %v1101_v2 = vadd.f32 %v1055_v26, %v922_v20  ;;  %v1218_v37 = vsel %vm1191_vm5, %v1216_v35, %v1217_v48  ;;  %v1425_v34 = vsel %vm1028_vm4, %v1423_v29, %v1424_v44  ;;  %v1724_v4 = vmul.f32 %v4459_v28, %v868_v30 }
 0x188   : > { %v1475_v23 = vadd.f32 %v1425_v34, %v1313_v57  ;;  %v1586_v22 = vrot.slane %v1517_v42, 2  ;;  %v1686_v50 = vadd.f32 %v1670_v21, %v1635_v14  ;;  %v1726_v54 = vmul.f32 %v4459_v28, %v870_v6  ;;  %2195 = vrot.lane.b32.xlu0 %v4646_v0, %s4148_s7 }
 0x189   : > { %v1264_v25 = vadd.f32 %v1218_v37, %v1101_v2  ;;  %v1792_v18 = vrot.slane %v1724_v4, 1  ;;  %v1886_v20 = vmul.f32 %v4498_v60, %v868_v30  ;;  %v1888_v35 = vmul.f32 %v4498_v60, %v870_v6  ;;  %2095 = vrot.lane.b32.xlu1 %v4681_v58, %s4151_s16 }
 0x18a   : > { %v1587_v48 = vsel %vm1191_vm5, %v1585_v10, %v1586_v22  ;;  %v1793_v29 = vrot.slane %v1726_v54, 1  ;;  %v924_v44 = vmul.f32 %v4426_v49, %v872_v43  ;;  %v984_v57 = vmul.f32 %v4410_v38, %v872_v43 }
 0x18b   : > { %v1637_v14 = vadd.f32 %v1587_v48, %v1475_v23  ;;  %v1954_v26 = vrot.slane %v1886_v20, 2  ;;  %v1955_v42 = vrot.slane %v1888_v35, 2  ;;  %v986_v21 = vmul.f32 %v4410_v38, %v874_v5 }
 0x18c   : > { %v1794_v2 = vsel %vm1028_vm4, %v1792_v18, %v1793_v29  ;;  %v1059_v30 = vrot.slane %v984_v57, 1  ;;  %v1147_v6 = vmul.f32 %v4420_v47, %v872_v43  ;;  %v1149_v10 = vmul.f32 %v4420_v47, %v874_v5  ;;  %2246 = vrot.lane.b32.xlu0 %v4646_v0, %s4149_s14 }
 0x18d   : > { %v1848_v37 = vadd.f32 %v1794_v2, %v1686_v50  ;;  %v1956_v34 = vsel %vm1191_vm5, %v1954_v26, %v1955_v42  ;;  %v1060_v4 = vrot.slane %v986_v21, 1  ;;  %v1299_v23 = vmul.f32 %v4470_v12, %v872_v43  ;;  %2146 = vrot.lane.b32.xlu1 %v4681_v58, %s4152_s17 }
 0x18e   : > { %v1222_v22 = vrot.slane %v1147_v6, 2  ;;  %v1223_v54 = vrot.slane %v1149_v10, 2  ;;  %v1357_v20 = vmul.f32 %v4473_v39, %v872_v43  ;;  %v1359_v18 = vmul.f32 %v4473_v39, %v874_v5 }
 0x18f   : > { %v2010_v35 = vadd.f32 %v1956_v34, %v1848_v37  ;;  %v1061_v48 = vsel %vm1028_vm4, %v1059_v30, %v1060_v4  ;;  %v1315_v29 = vadd.f32 %v1299_v23, %v1264_v25  ;;  %v1519_v50 = vmul.f32 %v4476_v40, %v872_v43  ;;  %v876_v4 = vld [vmem:[#allocation2 + $0xc0] sm:$0xff] }
 0x190   : > { %v1103_v57 = vadd.f32 %v1061_v48, %v924_v44  ;;  %v1224_v26 = vsel %vm1191_vm5, %v1222_v22, %v1223_v54  ;;  %v1429_v42 = vrot.slane %v1357_v20, 1  ;;  %v1430_v21 = vrot.slane %v1359_v18, 1  ;;  %2297 = vrot.lane.b32.xlu0 %v4646_v0, %s4150_s15  ;;  %v878_v0 = vld [vmem:[#allocation2 + $0xd0] sm:$0x3] }
 0x191   : > { %v4766_v2 = vadd.f32 %v4506_v63, %v2010_v35  ;;  %v1521_v6 = vmul.f32 %v4476_v40, %v874_v5  ;;  %v1672_v10 = vmul.f32 %v4492_v56, %v872_v43  ;;  %v4772_v25 = vmul.f32 %v4485_v46, %v4662_v55  ;;  %2197 = vrot.lane.b32.xlu1 %v4681_v58, %s4148_s7 }
 0x192   : > { %v1431_v44 = vsel %vm1028_vm4, %v1429_v42, %v1430_v21  ;;  %v1591_v30 = vrot.slane %v1519_v50, 2  ;;  %v1728_v37 = vmul.f32 %v4459_v28, %v872_v43  ;;  %v1730_v34 = vmul.f32 %v4459_v28, %v874_v5 }
 0x193   : > { %v1266_v23 = vadd.f32 %v1224_v26, %v1103_v57  ;;  %v1592_v22 = vrot.slane %v1521_v6, 2  ;;  %v1688_v54 = vadd.f32 %v1672_v10, %v1637_v14  ;;  %v1890_v20 = vmul.f32 %v4498_v60, %v872_v43 }
 0x194   : > { %v1477_v18 = vadd.f32 %v1431_v44, %v1315_v29  ;;  %v1798_v35 = vrot.slane %v1728_v37, 1  ;;  %v1799_v48 = vrot.slane %v1730_v34, 1  ;;  %v1892_v42 = vmul.f32 %v4498_v60, %v874_v5  ;;  %2362 = vrot.lane.b32.xlu0 %v4766_v2, %s4148_s7  ;;  %v4791_v5 = vld [vmem:[#allocation2 + $0x58] sm:$0x3] }
 0x195   : > { %v1960_v50 = vrot.slane %v1890_v20, 2  ;;  %v926_v21 = vmul.f32 %v4426_v49, %v876_v4  ;;  %v988_v7 = vmul.f32 %v4410_v38, %v876_v4  ;;  %v990_v61 = vmul.f32 %v4410_v38, %v878_v0  ;;  %2248 = vrot.lane.b32.xlu1 %v4681_v58, %s4149_s14 }
 0x196   : > { %v1593_v57 = vsel %vm1191_vm5, %v1591_v30, %v1592_v22  ;;  %v1800_v14 = vsel %vm1028_vm4, %v1798_v35, %v1799_v48  ;;  %v1961_v43 = vrot.slane %v1892_v42, 2  ;;  %v1151_v29 = vmul.f32 %v4420_v47, %v876_v4 }
 0x197   : > { %v1850_v26 = vadd.f32 %v1800_v14, %v1688_v54  ;;  %v1065_v6 = vrot.slane %v988_v7, 1  ;;  %v1066_v10 = vrot.slane %v990_v61, 1  ;;  %v1153_v44 = vmul.f32 %v4420_v47, %v878_v0 }
 0x198   : > { %v1962_v37 = vsel %vm1191_vm5, %v1960_v50, %v1961_v43  ;;  %v1228_v34 = vrot.slane %v1151_v29, 2  ;;  %v1301_v30 = vmul.f32 %v4470_v12, %v876_v4  ;;  %v1361_v22 = vmul.f32 %v4473_v39, %v876_v4  ;;  %2480 = vrot.lane.b32.xlu0 %v4766_v2, %s4150_s15 }
 0x199   : > { %v1067_v20 = vsel %vm1028_vm4, %v1065_v6, %v1066_v10  ;;  %v1229_v35 = vrot.slane %v1153_v44, 2  ;;  %v1363_v48 = vmul.f32 %v4473_v39, %v878_v0  ;;  %v4803_v7 = vmul.f32 %v4485_v46, %v4791_v5  ;;  %2299 = vrot.lane.b32.xlu1 %v4681_v58, %s4150_s15 }
 0x19a   : > { %v1639_v61 = vadd.f32 %v1593_v57, %v1477_v18  ;;  %v1317_v54 = vadd.f32 %v1301_v30, %v1266_v23  ;;  %v1435_v42 = vrot.slane %v1361_v22, 1  ;;  %v1523_v50 = vmul.f32 %v4476_v40, %v876_v4  ;;  %v880_v23 = vld [vmem:[#allocation2 + $0xe0] sm:$0xff] }
 0x19b   : > { %v4808_v14 = vadd.f32 %v1962_v37, %v1850_v26  ;;  %v1105_v43 = vadd.f32 %v1067_v20, %v926_v21  ;;  %v1436_v29 = vrot.slane %v1363_v48, 1  ;;  %v1525_v6 = vmul.f32 %v4476_v40, %v878_v0  ;;  %v882_v26 = vld [vmem:[#allocation2 + $0xf0] sm:$0x3] }
 0x19c   : > { %v1230_v10 = vsel %vm1191_vm5, %v1228_v34, %v1229_v35  ;;  %v1597_v44 = vrot.slane %v1523_v50, 2  ;;  %v1674_v33 = vmul.f32 %v4492_v56, %v876_v4  ;;  %v1732_v18 = vmul.f32 %v4459_v28, %v876_v4 }
 0x19d   : > { %v1437_v57 = vsel %vm1028_vm4, %v1435_v42, %v1436_v29  ;;  %v1598_v30 = vrot.slane %v1525_v6, 2  ;;  %v1734_v22 = vmul.f32 %v4459_v28, %v878_v0  ;;  %v1894_v58 = vmul.f32 %v4498_v60, %v876_v4  ;;  %2421 = vrot.lane.b32.xlu1 %v4766_v2, %s4149_s14 }
 0x19e   : > { %v1479_v21 = vadd.f32 %v1437_v57, %v1317_v54  ;;  %v1690_v37 = vadd.f32 %v1674_v33, %v1639_v61  ;;  %v1804_v20 = vrot.slane %v1732_v18, 1  ;;  %v1896_v48 = vmul.f32 %v4498_v60, %v878_v0 }
 0x19f   : > { %v1599_v34 = vsel %vm1191_vm5, %v1597_v44, %v1598_v30  ;;  %v1805_v35 = vrot.slane %v1734_v22, 1  ;;  %v1966_v50 = vrot.slane %v1894_v58, 2  ;;  %v992_v42 = vmul.f32 %v4410_v38, %v880_v23 }
 0x1a0   : > { %v1641_v29 = vadd.f32 %v1599_v34, %v1479_v21  ;;  %v1967_v6 = vrot.slane %v1896_v48, 2  ;;  %v994_v15 = vmul.f32 %v4410_v38, %v882_v26  ;;  %v1157_v4 = vmul.f32 %v4420_v47, %v882_v26 }
 0x1a1   : > { %v1806_v33 = vsel %vm1028_vm4, %v1804_v20, %v1805_v35  ;;  %v1071_v61 = vrot.slane %v992_v42, 1  ;;  %v1365_v0 = vmul.f32 %v4473_v39, %v880_v23  ;;  %v1367_v54 = vmul.f32 %v4473_v39, %v882_v26 }
 0x1a2   : > { %v1268_v18 = vadd.f32 %v1230_v10, %v1105_v43  ;;  %v1852_v57 = vadd.f32 %v1806_v33, %v1690_v37  ;;  %v1968_v44 = vsel %vm1191_vm5, %v1966_v50, %v1967_v6  ;;  %v1072_v30 = vrot.slane %v994_v15, 1  ;;  %v884_v15 = vld [vmem:[#allocation2 + $0x100] sm:$0xff] }
 0x1a3   : > { %v1441_v22 = vrot.slane %v1365_v0, 1  ;;  %v1442_v58 = vrot.slane %v1367_v54, 1  ;;  %v1529_v21 = vmul.f32 %v4476_v40, %v882_v26  ;;  %v1676_v38 = vmul.f32 %v4492_v56, %v880_v23 }
 0x1a4   : > { %v2014_v48 = vadd.f32 %v1968_v44, %v1852_v57  ;;  %v1235_v34 = vrot.slane %v1157_v4, 2  ;;  %v1736_v20 = vmul.f32 %v4459_v28, %v880_v23  ;;  %v1738_v35 = vmul.f32 %v4459_v28, %v882_v26  ;;  %v886_v57 = vld [vmem:[#allocation2 + $0x110] sm:$0x3] }
 0x1a5   : > { %v1073_v42 = vsel %vm1028_vm4, %v1071_v61, %v1072_v30  ;;  %v1443_v43 = vsel %vm1028_vm4, %v1441_v22, %v1442_v58  ;;  %v1692_v10 = vadd.f32 %v1676_v38, %v1641_v29  ;;  %v1898_v37 = vmul.f32 %v4498_v60, %v880_v23 }
 0x1a6   : > { %v1604_v50 = vrot.slane %v1529_v21, 2  ;;  %v1810_v6 = vrot.slane %v1736_v20, 1  ;;  %v1811_v33 = vrot.slane %v1738_v35, 1  ;;  %v1900_v0 = vmul.f32 %v4498_v60, %v882_v26 }
 0x1a7   : > { %v1972_v54 = vrot.slane %v1898_v37, 2  ;;  %v928_v4 = vmul.f32 %v4426_v49, %v880_v23  ;;  %v1155_v44 = vmul.f32 %v4420_v47, %v880_v23  ;;  %v1303_v52 = vmul.f32 %v4470_v12, %v880_v23 }
 0x1a8   : > { %v1812_v61 = vsel %vm1028_vm4, %v1810_v6, %v1811_v33  ;;  %v1973_v30 = vrot.slane %v1900_v0, 2  ;;  %v1305_v29 = vmul.f32 %v4470_v12, %v884_v15  ;;  %v1369_v22 = vmul.f32 %v4473_v39, %v884_v15 }
 0x1a9   : > { %v1854_v58 = vadd.f32 %v1812_v61, %v1692_v10  ;;  %v1107_v21 = vadd.f32 %v1073_v42, %v928_v4  ;;  %v1234_v38 = vrot.slane %v1155_v44, 2  ;;  %v1319_v20 = vadd.f32 %v1303_v52, %v1268_v18 }
 0x1aa   : > { %v1974_v26 = vsel %vm1191_vm5, %v1972_v54, %v1973_v30  ;;  %v1371_v35 = vmul.f32 %v4473_v39, %v886_v57  ;;  %v1447_v49 = vrot.slane %v1369_v22, 1  ;;  %v1527_v47 = vmul.f32 %v4476_v40, %v880_v23 }
 0x1ab   : > { %v4847_v37 = vadd.f32 %v4506_v63, %v4808_v14  ;;  %v2016_v6 = vadd.f32 %v1974_v26, %v1854_v58  ;;  %v1236_v12 = vsel %vm1191_vm5, %v1234_v38, %v1235_v34  ;;  %v1531_v33 = vmul.f32 %v4476_v40, %v884_v15 }
 0x1ac   : > { %v1270_v10 = vadd.f32 %v1236_v12, %v1107_v21  ;;  %v1448_v42 = vrot.slane %v1371_v35, 1  ;;  %v1533_v52 = vmul.f32 %v4476_v40, %v886_v57  ;;  %v1603_v18 = vrot.slane %v1527_v47, 2  ;;  %v4895_v12 = vld [vmem:[#allocation2 + $0x68] sm:$0xff] }
 0x1ad   : > { %v4853_v0 = vadd.f32 %v4506_v63, %v2014_v48  ;;  %v1481_v39 = vadd.f32 %v1443_v43, %v1319_v20  ;;  %v1609_v54 = vrot.slane %v1531_v33, 2  ;;  %v1740_v23 = vmul.f32 %v4459_v28, %v884_v15 }
 0x1ae   : > { %v1321_v4 = vadd.f32 %v1305_v29, %v1270_v10  ;;  %v1449_v14 = vsel %vm1028_vm4, %v1447_v49, %v1448_v42  ;;  %v1605_v44 = vsel %vm1191_vm5, %v1603_v18, %v1604_v50  ;;  %v1610_v34 = vrot.slane %v1533_v52, 2 }
 0x1af   : > { %v4859_v61 = vadd.f32 %v4506_v63, %v2016_v6  ;;  %v1742_v30 = vmul.f32 %v4459_v28, %v886_v57  ;;  %v1039_v40 = vrot.slane %v4700_v24, 1  ;;  %v1201_v48 = vrot.slane %v4704_v41, 2 }
 0x1b0   : > { %v1483_v22 = vadd.f32 %v1449_v14, %v1321_v4  ;;  %v1678_v43 = vmul.f32 %v4492_v56, %v884_v15  ;;  %v2052_v29 = vmul.f32 %v4766_v2, %v4766_v2  ;;  %v1202_v58 = vrot.slane %v4711_v36, 2 }
 0x1b1   : > { %v1611_v50 = vsel %vm1191_vm5, %v1609_v54, %v1610_v34  ;;  %v1643_v21 = vadd.f32 %v1605_v44, %v1481_v39  ;;  %v1816_v38 = vrot.slane %v1740_v23, 1  ;;  %v4871_v20 = vmul.f32 %v4847_v37, %v4847_v37 }
 0x1b2   : > { %v1817_v28 = vrot.slane %v1742_v30, 1  ;;  %v1902_v24 = vmul.f32 %v4498_v60, %v884_v15  ;;  %v1904_v41 = vmul.f32 %v4498_v60, %v886_v57  ;;  %2097 = vrot.lane.b32.xlu0 %v2052_v29, %s4151_s16  ;;  %2148 = vrot.lane.b32.xlu1 %v2052_v29, %s4152_s17  ;;  %v4879_v56 = vmul.f32 %v4853_v0, %v4853_v0 }
 0x1b3   : > { %v4883_v36 = vmul.f32 %v4859_v61, %v4859_v61  ;;  %v2061_v26 = vsel %vm572_vm0, %v2052_v29, 0.0  ;;  %v2063_v35 = vsel %vm572_vm0, %v4871_v20, 0.0  ;;  %v6191_v15 = vrot.slane %v4654_v32, 1 }
 0x1b4   : > { %v1645_v57 = vadd.f32 %v1611_v50, %v1483_v22  ;;  %v2062_v49 = vadd.f32 %v2061_v26, %v4706_v27  ;;  %v1414_v47 = vrot.slane %v4772_v25, 1  ;;  %v1508_v6 = vmul.f32 %v4489_v53, %v4662_v55  ;;  %v4903_v25 = vld [vmem:[#allocation2 + $0x78] sm:$0x3] }
 0x1b5   : > { %v1040_v60 = vsel %vm1028_vm4, %v6191_v15, %v1039_v40  ;;  %v1694_v33 = vadd.f32 %v1678_v43, %v1643_v21  ;;  %v2065_v10 = vsel %vm572_vm0, %v4879_v56, 0.0  ;;  %v1415_v32 = vrot.slane %v4803_v7, 1 }
 0x1b6   : > { %v1096_v42 = vadd.f32 %v1040_v60, %v4690_v9  ;;  %v1978_v52 = vrot.slane %v1902_v24, 2  ;;  %v1979_v18 = vrot.slane %v1904_v41, 2  ;;  %2199 = vrot.lane.b32.xlu0 %v2052_v29, %s4148_s7  ;;  %2250 = vrot.lane.b32.xlu1 %v2052_v29, %s4149_s14  ;;  %v2064_v27 = vadd.f32 %v2063_v35, %v2062_v49  ;;  %v4947_v49 = vld [vmem:[#allocation2 + $0x98] sm:$0x3] }
 0x1b7   : > { %v1203_v39 = vsel %vm1191_vm5, %v1201_v48, %v1202_v58  ;;  %v1818_v54 = vsel %vm1028_vm4, %v1816_v38, %v1817_v28  ;;  %v2067_v23 = vsel %vm572_vm0, %v4883_v36, 0.0  ;;  %v1510_v9 = vmul.f32 %v4489_v53, %v4791_v5 }
 0x1b8   : > { %v1259_v4 = vadd.f32 %v1203_v39, %v1096_v42  ;;  %v1696_v7 = vadd.f32 %v4516_v8, %v1645_v57  ;;  %v2066_v14 = vadd.f32 %v2065_v10, %v2064_v27  ;;  %v1576_v44 = vrot.slane %v1508_v6, 2  ;;  %v4941_v57 = vld [vmem:[#allocation2 + $0x88] sm:$0xff] }
 0x1b9   : > { %v1721_v34 = vmul.f32 %v4495_v59, %v4895_v12  ;;  %v1577_v40 = vrot.slane %v1510_v9, 2  ;;  %v1723_v48 = vmul.f32 %v4495_v59, %v4903_v25  ;;  %v1883_v22 = vmul.f32 %v4503_v62, %v4895_v12 }
 0x1ba   : > { %v1310_v30 = vadd.f32 %v4715_v31, %v1259_v4  ;;  %v6192_v43 = vrot.slane %v4550_v16, 2  ;;  %v6193_v58 = vrot.slane %v4543_v45, 2  ;;  %2301 = vrot.lane.b32.xlu0 %v2052_v29, %s4150_s15  ;;  %2364 = vrot.lane.b32.xlu1 %v4847_v37, %s4148_s7  ;;  %v4929_v31 = vadd.f32 %v2067_v23, %v2066_v14 }
 0x1bb   : > { %v1416_v50 = vsel %vm1028_vm4, %v1414_v47, %v1415_v32  ;;  %v1789_v38 = vrot.slane %v1721_v34, 1  ;;  %v1790_v28 = vrot.slane %v1723_v48, 1  ;;  %v1885_v16 = vmul.f32 %v4503_v62, %v4903_v25 }
 0x1bc   : > { %v4924_v8 = vsel %vm1191_vm5, %v6193_v58, %v6192_v43  ;;  %v1472_v21 = vadd.f32 %v1416_v50, %v1310_v30  ;;  %v1856_v24 = vadd.f32 %v1818_v54, %v1694_v33  ;;  %v1980_v45 = vsel %vm1191_vm5, %v1978_v52, %v1979_v18  ;;  %v4980_v43 = vld [vmem:[#allocation2 + $0xb8] sm:$0x3] }
 0x1bd   : > { %v1578_v41 = vsel %vm1191_vm5, %v1576_v44, %v1577_v40  ;;  %v1951_v26 = vrot.slane %v1883_v22, 2  ;;  %v4937_v29 = vadd.f32 %v4674_v13, %v1696_v7  ;;  %v1669_v15 = vmul.f32 %v4660_v1, %v4895_v12  ;;  %v4978_v22 = vld [vmem:[#allocation2 + $0xa8] sm:$0xff] }
 0x1be   : > { %v1634_v35 = vadd.f32 %v1578_v41, %v1472_v21  ;;  %v1952_v60 = vrot.slane %v1885_v16, 2  ;;  %2423 = vrot.lane.b32.xlu0 %v4847_v37, %s4149_s14  ;;  %2482 = vrot.lane.b32.xlu1 %v4847_v37, %s4150_s15  ;;  %v977_v47 = vmul.f32 %v4392_v17, %v4895_v12  ;;  %v979_v13 = vmul.f32 %v4392_v17, %v4903_v25 }
 0x1bf   : > { %v1140_v6 = vmul.f32 %v4381_v11, %v4895_v12  ;;  %v1791_v10 = vsel %vm1028_vm4, %v1789_v38, %v1790_v28  ;;  %v921_v42 = vmul.f32 %v4397_v19, %v4895_v12  ;;  %v1142_v32 = vmul.f32 %v4381_v11, %v4903_v25 }
 0x1c0   : > { %v1685_v33 = vadd.f32 %v1669_v15, %v1634_v35  ;;  %v1953_v52 = vsel %vm1191_vm5, %v1951_v26, %v1952_v60  ;;  %v1050_v18 = vrot.slane %v977_v47, 1  ;;  %v1051_v27 = vrot.slane %v979_v13, 1 }
 0x1c1   : > { %v1213_v39 = vrot.slane %v1140_v6, 2  ;;  %v1214_v23 = vrot.slane %v1142_v32, 2  ;;  %v1354_v4 = vmul.f32 %v4485_v46, %v4941_v57  ;;  %v1356_v9 = vmul.f32 %v4485_v46, %v4947_v49 }
 0x1c2   : > { %v1847_v54 = vadd.f32 %v1791_v10, %v1685_v33  ;;  %2150 = vrot.lane.b32.xlu0 %v4871_v20, %s4152_s17  ;;  %2099 = vrot.lane.b32.xlu1 %v4871_v20, %s4151_s16  ;;  %v1052_v7 = vsel %vm1028_vm4, %v1050_v18, %v1051_v27  ;;  %v1516_v14 = vmul.f32 %v4489_v53, %v4941_v57 }
 0x1c3   : > { %v1518_v44 = vmul.f32 %v4489_v53, %v4947_v49  ;;  %v4974_v34 = vadd.f32 %v1980_v45, %v1856_v24  ;;  %v1100_v40 = vadd.f32 %v1052_v7, %v921_v42  ;;  %v1426_v48 = vrot.slane %v1354_v4, 1  ;;  %v6195_v42 = vld [vmem:[#allocation16_spill] sm:$0xff] }
 0x1c4   : > { %v4976_v30 = vadd.f32 %v1953_v52, %v1847_v54  ;;  %v1215_v58 = vsel %vm1191_vm5, %v1213_v39, %v1214_v23  ;;  %v1298_v50 = vmul.f32 %v4511_v3, %v4941_v57  ;;  %v1427_v21 = vrot.slane %v1356_v9, 1  ;;  %v6196_v54 = vld [vmem:[#allocation13_spill] sm:$0xff] }
 0x1c5   : > { %v1588_v38 = vrot.slane %v1516_v14, 2  ;;  %v1263_v28 = vadd.f32 %v1215_v58, %v1100_v40  ;;  %v1589_v16 = vrot.slane %v1518_v44, 2  ;;  %v1729_v24 = vmul.f32 %v4495_v59, %v4978_v22 }
 0x1c6   : > { %6194 = vst [vmem:[#allocation17_spill] sm:$0xff] %v4976_v30  ;;  %v1731_v45 = vmul.f32 %v4495_v59, %v4980_v43  ;;  %2252 = vrot.lane.b32.xlu0 %v4871_v20, %s4149_s14  ;;  %2201 = vrot.lane.b32.xlu1 %v4871_v20, %s4148_s7  ;;  %v1428_v41 = vsel %vm1028_vm4, %v1426_v48, %v1427_v21 }
 0x1c7   : > { %v1673_v26 = vmul.f32 %v4660_v1, %v4978_v22  ;;  %v1891_v35 = vmul.f32 %v4503_v62, %v4978_v22  ;;  %v1314_v15 = vadd.f32 %v1298_v50, %v1263_v28  ;;  %v1801_v60 = vrot.slane %v1729_v24, 1 }
 0x1c8   : > { %v1802_v47 = vrot.slane %v1731_v45, 1  ;;  %v1893_v13 = vmul.f32 %v4503_v62, %v4980_v43  ;;  %v1292_v33 = vmul.f32 %v4511_v3, %v4629_v51  ;;  %v1342_v10 = vmul.f32 %v4485_v46, %v4629_v51 }
 0x1c9   : > { %v1963_v6 = vrot.slane %v1891_v35, 2  ;;  %v1344_v32 = vmul.f32 %v4485_v46, %v6195_v42  ;;  %v1476_v52 = vadd.f32 %v1428_v41, %v1314_v15  ;;  %v1590_v18 = vsel %vm1191_vm5, %v1588_v38, %v1589_v16 }
 0x1ca   : > { %v1964_v27 = vrot.slane %v1893_v13, 2  ;;  %v1504_v39 = vmul.f32 %v4489_v53, %v4629_v51  ;;  %2366 = vrot.lane.b32.xlu0 %v4853_v0, %s4148_s7  ;;  %2303 = vrot.lane.b32.xlu1 %v4871_v20, %s4150_s15  ;;  %v1308_v23 = vadd.f32 %v1292_v33, %v6196_v54  ;;  %v1408_v4 = vrot.slane %v1342_v10, 1 }
 0x1cb   : > { %v1409_v9 = vrot.slane %v1344_v32, 1  ;;  %v1506_v7 = vmul.f32 %v4489_v53, %v6195_v42  ;;  %v1638_v14 = vadd.f32 %v1590_v18, %v1476_v52  ;;  %v1803_v44 = vsel %vm1028_vm4, %v1801_v60, %v1802_v47 }
 0x1cc   : > { %v1965_v40 = vsel %vm1191_vm5, %v1963_v6, %v1964_v27  ;;  %v1570_v48 = vrot.slane %v1504_v39, 2  ;;  %v1717_v50 = vmul.f32 %v4495_v59, %v4662_v55  ;;  %v1719_v20 = vmul.f32 %v4495_v59, %v4791_v5 }
 0x1cd   : > { %v1410_v51 = vsel %vm1028_vm4, %v1408_v4, %v1409_v9  ;;  %v1571_v58 = vrot.slane %v1506_v7, 2  ;;  %v1689_v21 = vadd.f32 %v1673_v26, %v1638_v14  ;;  %v1879_v28 = vmul.f32 %v4503_v62, %v4662_v55 }
 0x1ce   : > { %v1470_v38 = vadd.f32 %v1410_v51, %v1308_v23  ;;  %v1881_v16 = vmul.f32 %v4503_v62, %v4791_v5  ;;  %2484 = vrot.lane.b32.xlu0 %v4853_v0, %s4150_s15  ;;  %2425 = vrot.lane.b32.xlu1 %v4853_v0, %s4149_s14  ;;  %v1667_v45 = vmul.f32 %v4660_v1, %v4662_v55  ;;  %v1783_v41 = vrot.slane %v1717_v50, 1 }
 0x1cf   : > { %v1572_v24 = vsel %vm1191_vm5, %v1570_v48, %v1571_v58  ;;  %v1784_v26 = vrot.slane %v1719_v20, 1  ;;  %v1851_v35 = vadd.f32 %v1803_v44, %v1689_v21  ;;  %v1945_v60 = vrot.slane %v1879_v28, 2 }
 0x1d0   : > { %v1632_v15 = vadd.f32 %v1572_v24, %v1470_v38  ;;  %v1946_v47 = vrot.slane %v1881_v16, 2  ;;  %v5036_v13 = vadd.f32 %v4924_v8, %v4937_v29  ;;  %v973_v6 = vmul.f32 %v4392_v17, %v4662_v55 }
 0x1d1   : > { %v975_v33 = vmul.f32 %v4392_v17, %v4791_v5  ;;  %v1136_v10 = vmul.f32 %v4381_v11, %v4662_v55  ;;  %v5044_v42 = vadd.f32 %v1965_v40, %v1851_v35  ;;  %v919_v52 = vmul.f32 %v4397_v19, %v4662_v55 }
 0x1d2   : > { %v1683_v32 = vadd.f32 %v1667_v45, %v1632_v15  ;;  %v1138_v18 = vmul.f32 %v4381_v11, %v4791_v5  ;;  %2101 = vrot.lane.b32.xlu0 %v4879_v56, %s4151_s16  ;;  %2152 = vrot.lane.b32.xlu1 %v4879_v56, %s4152_s17  ;;  %v1785_v8 = vsel %vm1028_vm4, %v1783_v41, %v1784_v26  ;;  %v1044_v29 = vrot.slane %v973_v6, 1 }
 0x1d3   : > { %6197 = vst [vmem:[#allocation16_spill] sm:$0xff] %v5044_v42  ;;  %v1045_v27 = vrot.slane %v975_v33, 1  ;;  %v1207_v39 = vrot.slane %v1136_v10, 2  ;;  %v1947_v23 = vsel %vm1191_vm5, %v1945_v60, %v1946_v47  ;;  %v1350_v55 = vmul.f32 %v4485_v46, %v4895_v12  ;;  %v5100_v10 = vld [vmem:[#allocation2 + $0xc8] sm:$0xff] }
 0x1d4   : > { %v1845_v54 = vadd.f32 %v1785_v8, %v1683_v32  ;;  %v1208_v4 = vrot.slane %v1138_v18, 2  ;;  %v1352_v9 = vmul.f32 %v4485_v46, %v4903_v25  ;;  %v1512_v7 = vmul.f32 %v4489_v53, %v4895_v12 }
 0x1d5   : > { %v1046_v5 = vsel %vm1028_vm4, %v1044_v29, %v1045_v27  ;;  %v1514_v14 = vmul.f32 %v4489_v53, %v4903_v25  ;;  %v5067_v44 = vadd.f32 %v4506_v63, %v4974_v34  ;;  %v1420_v51 = vrot.slane %v1350_v55, 1 }
 0x1d6   : > { %v5069_v40 = vadd.f32 %v1947_v23, %v1845_v54  ;;  %v1098_v48 = vadd.f32 %v1046_v5, %v919_v52  ;;  %2203 = vrot.lane.b32.xlu0 %v4879_v56, %s4148_s7  ;;  %2254 = vrot.lane.b32.xlu1 %v4879_v56, %s4149_s14  ;;  %v1209_v58 = vsel %vm1191_vm5, %v1207_v39, %v1208_v4  ;;  %v1421_v50 = vrot.slane %v1352_v9, 1  ;;  %v5109_v23 = vld [vmem:[#allocation2 + $0xd8] sm:$0x3]  ;;  %v5113_v9 = vld [vmem:[#allocation2 + $0xe8] sm:$0xff] }
 0x1d7   : > { %6198 = vst [vmem:[#allocation13_spill] sm:$0xff] %v5067_v44  ;;  %v1582_v20 = vrot.slane %v1512_v7, 2  ;;  %v1583_v21 = vrot.slane %v1514_v14, 2  ;;  %v1296_v34 = vmul.f32 %v4511_v3, %v4895_v12  ;;  %v1725_v38 = vmul.f32 %v4495_v59, %v4941_v57  ;;  %v5119_v7 = vld [vmem:[#allocation2 + $0xf8] sm:$0x3] }
 0x1d8   : > { %6199 = vst [vmem:[#allocation18_spill] sm:$0xff] %v5069_v40  ;;  %v1261_v25 = vadd.f32 %v1209_v58, %v1098_v48  ;;  %v1727_v28 = vmul.f32 %v4495_v59, %v4947_v49  ;;  %v1422_v16 = vsel %vm1028_vm4, %v1420_v51, %v1421_v50  ;;  %v1671_v24 = vmul.f32 %v4660_v1, %v4941_v57 }
 0x1d9   : > { %v1887_v45 = vmul.f32 %v4503_v62, %v4941_v57  ;;  %v1889_v41 = vmul.f32 %v4503_v62, %v4947_v49  ;;  %v1584_v12 = vsel %vm1191_vm5, %v1582_v20, %v1583_v21  ;;  %v1795_v35 = vrot.slane %v1725_v38, 1 }
 0x1da   : > { %v1312_v26 = vadd.f32 %v1296_v34, %v1261_v25  ;;  %v1796_v15 = vrot.slane %v1727_v28, 1  ;;  %2305 = vrot.lane.b32.xlu0 %v4879_v56, %s4150_s15  ;;  %2368 = vrot.lane.b32.xlu1 %v4859_v61, %s4148_s7  ;;  %v925_v47 = vmul.f32 %v4397_v19, %v4978_v22  ;;  %v985_v6 = vmul.f32 %v4392_v17, %v4978_v22 }
 0x1db   : > { %v1957_v60 = vrot.slane %v1887_v45, 2  ;;  %v987_v33 = vmul.f32 %v4392_v17, %v4980_v43  ;;  %v1958_v52 = vrot.slane %v1889_v41, 2  ;;  %v1148_v56 = vmul.f32 %v4381_v11, %v4978_v22 }
 0x1dc   : > { %v1474_v32 = vadd.f32 %v1422_v16, %v1312_v26  ;;  %v1150_v18 = vmul.f32 %v4381_v11, %v4980_v43  ;;  %v1797_v8 = vsel %vm1028_vm4, %v1795_v35, %v1796_v15  ;;  %v1062_v29 = vrot.slane %v985_v6, 1 }
 0x1dd   : > { %v1063_v27 = vrot.slane %v987_v33, 1  ;;  %v1302_v39 = vmul.f32 %v4511_v3, %v5100_v10  ;;  %v1225_v4 = vrot.slane %v1148_v56, 2  ;;  %v1362_v5 = vmul.f32 %v4485_v46, %v5100_v10 }
 0x1de   : > { %v1636_v54 = vadd.f32 %v1584_v12, %v1474_v32  ;;  %v1226_v55 = vrot.slane %v1150_v18, 2  ;;  %2154 = vrot.lane.b32.xlu0 %v4883_v36, %s4152_s17  ;;  %2103 = vrot.lane.b32.xlu1 %v4883_v36, %s4151_s16  ;;  %v1364_v48 = vmul.f32 %v4485_v46, %v5109_v23  ;;  %v1524_v51 = vmul.f32 %v4489_v53, %v5100_v10 }
 0x1df   : > { %v1064_v14 = vsel %vm1028_vm4, %v1062_v29, %v1063_v27  ;;  %v1438_v21 = vrot.slane %v1362_v5, 1  ;;  %v1959_v25 = vsel %vm1191_vm5, %v1957_v60, %v1958_v52  ;;  %v1526_v38 = vmul.f32 %v4489_v53, %v5109_v23  ;;  %v5166_v5 = vld [vmem:[#allocation2 + $0x108] sm:$0xff] }
 0x1e0   : > { %v1687_v58 = vadd.f32 %v1671_v24, %v1636_v54  ;;  %v1104_v50 = vadd.f32 %v1064_v14, %v925_v47  ;;  %v1227_v20 = vsel %vm1191_vm5, %v1225_v4, %v1226_v55  ;;  %v1439_v34 = vrot.slane %v1364_v48, 1 }
 0x1e1   : > { %v1600_v28 = vrot.slane %v1524_v51, 2  ;;  %v1737_v41 = vmul.f32 %v4495_v59, %v5113_v9  ;;  %v1739_v26 = vmul.f32 %v4495_v59, %v5119_v7  ;;  %v1601_v12 = vrot.slane %v1526_v38, 2  ;;  %v5175_v51 = vld [vmem:[#allocation2 + $0x118] sm:$0x3] }
 0x1e2   : > { %v1849_v16 = vadd.f32 %v1797_v8, %v1687_v58  ;;  %v1267_v45 = vadd.f32 %v1227_v20, %v1104_v50  ;;  %2256 = vrot.lane.b32.xlu0 %v4883_v36, %s4149_s14  ;;  %2205 = vrot.lane.b32.xlu1 %v4883_v36, %s4148_s7  ;;  %v1440_v24 = vsel %vm1028_vm4, %v1438_v21, %v1439_v34 }
 0x1e3   : > { %v1899_v35 = vmul.f32 %v4503_v62, %v5113_v9  ;;  %v1901_v15 = vmul.f32 %v4503_v62, %v5119_v7  ;;  %v5145_v60 = vmul.f32 %v5067_v44, %v5067_v44  ;;  %v1602_v33 = vsel %vm1191_vm5, %v1600_v28, %v1601_v12  ;;  %v889_v28 = vld [vmem:[#allocation2 + $0x128] sm:$0xff]  ;;  %v891_v12 = vld [vmem:[#allocation2 + $0x138] sm:$0x3] }
 0x1e4   : > { %v5147_v47 = vadd.f32 %v1959_v25, %v1849_v16  ;;  %v1318_v6 = vadd.f32 %v1302_v39, %v1267_v45  ;;  %v1677_v32 = vmul.f32 %v4660_v1, %v5113_v9  ;;  %v1813_v52 = vrot.slane %v1737_v41, 1 }
 0x1e5   : > { %v1814_v56 = vrot.slane %v1739_v26, 1  ;;  %v1975_v8 = vrot.slane %v1899_v35, 2  ;;  %v1976_v29 = vrot.slane %v1901_v15, 2  ;;  %v993_v27 = vmul.f32 %v4392_v17, %v5113_v9  ;;  %v5172_v48 = vpop.permute.xlu0 %2358 }
 0x1e6   : > { %6200 = vst [vmem:[#allocation19_spill] sm:$0xff] %v5147_v47  ;;  %v1480_v18 = vadd.f32 %v1440_v24, %v1318_v6  ;;  %v5156_v54 = vadd.f32 %v4506_v63, %v5036_v13  ;;  %2105 = vrot.lane.b32.xlu0 %v5145_v60, %s4151_s16  ;;  %2307 = vrot.lane.b32.xlu1 %v4883_v36, %s4150_s15 }
 0x1e7   : > { %v995_v39 = vmul.f32 %v4392_v17, %v5119_v7  ;;  %v1156_v4 = vmul.f32 %v4381_v11, %v5113_v9  ;;  %v929_v14 = vmul.f32 %v4397_v19, %v5113_v9  ;;  %v1074_v63 = vrot.slane %v993_v27, 1 }
 0x1e8   : > { %6201 = vst [vmem:[#allocation20_spill] sm:$0xff] %v5156_v54  ;;  %v1642_v55 = vadd.f32 %v1602_v33, %v1480_v18  ;;  %v1158_v13 = vmul.f32 %v4381_v11, %v5119_v7  ;;  %v1815_v36 = vsel %vm1028_vm4, %v1813_v52, %v1814_v56  ;;  %v1370_v20 = vmul.f32 %v4485_v46, %v5166_v5 }
 0x1e9   : > { %v1075_v58 = vrot.slane %v995_v39, 1  ;;  %v1237_v50 = vrot.slane %v1156_v4, 2  ;;  %v1977_v25 = vsel %vm1191_vm5, %v1975_v8, %v1976_v29  ;;  %v1372_v38 = vmul.f32 %v4485_v46, %v5175_v51  ;;  %v5201_v29 = vpop.permute.xlu0 %2417 }
 0x1ea   : > { %v1693_v21 = vadd.f32 %v1677_v32, %v1642_v55  ;;  %v1238_v34 = vrot.slane %v1158_v13, 2  ;;  %2207 = vrot.lane.b32.xlu0 %v5145_v60, %s4148_s7  ;;  %2156 = vrot.lane.b32.xlu1 %v5145_v60, %s4152_s17  ;;  %v1450_v45 = vrot.slane %v1370_v20, 1  ;;  %v1532_v41 = vmul.f32 %v4489_v53, %v5166_v5 }
 0x1eb   : > { %v1076_v16 = vsel %vm1028_vm4, %v1074_v63, %v1075_v58  ;;  %v1534_v26 = vmul.f32 %v4489_v53, %v5175_v51  ;;  %v1306_v6 = vmul.f32 %v4511_v3, %v5166_v5  ;;  %v1451_v33 = vrot.slane %v1372_v38, 1 }
 0x1ec   : > { %v1855_v24 = vadd.f32 %v1815_v36, %v1693_v21  ;;  %v1108_v35 = vadd.f32 %v1076_v16, %v929_v14  ;;  %v1239_v15 = vsel %vm1191_vm5, %v1237_v50, %v1238_v34  ;;  %v1612_v32 = vrot.slane %v1532_v41, 2 }
 0x1ed   : > { %v1613_v52 = vrot.slane %v1534_v26, 2  ;;  %v1745_v8 = vmul.f32 %v4495_v59, %v889_v28  ;;  %v1452_v27 = vsel %vm1028_vm4, %v1450_v45, %v1451_v33  ;;  %v1747_v39 = vmul.f32 %v4495_v59, %v891_v12  ;;  %v5223_v26 = vpop.permute.xlu0 %2476 }
 0x1ee   : > { %v5194_v56 = vadd.f32 %v1977_v25, %v1855_v24  ;;  %v1271_v18 = vadd.f32 %v1239_v15, %v1108_v35  ;;  %2309 = vrot.lane.b32.xlu0 %v5145_v60, %s4150_s15  ;;  %2258 = vrot.lane.b32.xlu1 %v5145_v60, %s4149_s14  ;;  %v5207_v4 = vmul.f32 %v5156_v54, %v5156_v54 }
 0x1ef   : > { %v1614_v14 = vsel %vm1191_vm5, %v1612_v32, %v1613_v52  ;;  %v5210_v63 = vpop.permute.xlu1 %2360  ;;  %v1825_v13 = vrot.slane %v1745_v8, 1  ;;  %v1826_v36 = vrot.slane %v1747_v39, 1  ;;  %v1907_v58 = vmul.f32 %v4503_v62, %v889_v28 }
 0x1f0   : > { %6202 = vst [vmem:[#allocation21_spill] sm:$0xff] %v5194_v56  ;;  %v1322_v55 = vadd.f32 %v1306_v6, %v1271_v18  ;;  %v1909_v50 = vmul.f32 %v4503_v62, %v891_v12  ;;  %v1681_v21 = vmul.f32 %v4660_v1, %v889_v28  ;;  %v981_v25 = vmul.f32 %v4392_v17, %v4941_v57 }
 0x1f1   : > { %v1987_v34 = vrot.slane %v1907_v58, 2  ;;  %v983_v16 = vmul.f32 %v4392_v17, %v4947_v49  ;;  %v1827_v28 = vsel %vm1028_vm4, %v1825_v13, %v1826_v36  ;;  %v1144_v35 = vmul.f32 %v4381_v11, %v4941_v57 }
 0x1f2   : > { %v1484_v20 = vadd.f32 %v1452_v27, %v1322_v55  ;;  %2158 = vrot.lane.b32.xlu0 %v5207_v4, %s4152_s17  ;;  %2107 = vrot.lane.b32.xlu1 %v5207_v4, %s4151_s16  ;;  %v1988_v38 = vrot.slane %v1909_v50, 2  ;;  %v1056_v41 = vrot.slane %v981_v25, 1  ;;  %v923_v33 = vmul.f32 %v4397_v19, %v4941_v57 }
 0x1f3   : > { %v5225_v24 = vpop.permute.xlu1 %2419  ;;  %v1057_v12 = vrot.slane %v983_v16, 1  ;;  %v1146_v32 = vmul.f32 %v4381_v11, %v4947_v49  ;;  %v1219_v18 = vrot.slane %v1144_v35, 2  ;;  %v1358_v8 = vmul.f32 %v4485_v46, %v4978_v22 }
 0x1f4   : > { %v1646_v45 = vadd.f32 %v1614_v14, %v1484_v20  ;;  %v1989_v6 = vsel %vm1191_vm5, %v1987_v34, %v1988_v38  ;;  %v1360_v27 = vmul.f32 %v4485_v46, %v4980_v43  ;;  %v1300_v36 = vmul.f32 %v4511_v3, %v4978_v22  ;;  %v5256_v20 = vpop.permute.xlu0 %2093 }
 0x1f5   : > { %v1058_v52 = vsel %vm1028_vm4, %v1056_v41, %v1057_v12  ;;  %v1220_v55 = vrot.slane %v1146_v32, 2  ;;  %v1432_v14 = vrot.slane %v1358_v8, 1  ;;  %v1520_v58 = vmul.f32 %v4489_v53, %v4978_v22 }
 0x1f6   : > { %v1697_v15 = vadd.f32 %v1681_v21, %v1646_v45  ;;  %2260 = vrot.lane.b32.xlu0 %v5207_v4, %s4149_s14  ;;  %2209 = vrot.lane.b32.xlu1 %v5207_v4, %s4148_s7  ;;  %v1102_v57 = vadd.f32 %v1058_v52, %v923_v33  ;;  %v1433_v49 = vrot.slane %v1360_v27, 1  ;;  %v1522_v50 = vmul.f32 %v4489_v53, %v4980_v43 }
 0x1f7   : > { %v5258_v21 = vpop.permute.xlu1 %2478  ;;  %v1221_v25 = vsel %vm1191_vm5, %v1219_v18, %v1220_v55  ;;  %v1594_v16 = vrot.slane %v1520_v58, 2  ;;  %v1733_v43 = vmul.f32 %v4495_v59, %v5100_v10  ;;  %v1735_v41 = vmul.f32 %v4495_v59, %v5109_v23 }
 0x1f8   : > { %v1859_v39 = vadd.f32 %v1827_v28, %v1697_v15  ;;  %v1265_v34 = vadd.f32 %v1221_v25, %v1102_v57  ;;  %v1434_v38 = vsel %vm1028_vm4, %v1432_v14, %v1433_v49  ;;  %v1595_v22 = vrot.slane %v1522_v50, 2  ;;  %v5277_v52 = vpop.permute.xlu0 %2144 }
 0x1f9   : > { %v1895_v28 = vmul.f32 %v4503_v62, %v5100_v10  ;;  %v1807_v35 = vrot.slane %v1733_v43, 1  ;;  %v1897_v15 = vmul.f32 %v4503_v62, %v5109_v23  ;;  %v1675_v33 = vmul.f32 %v4660_v1, %v5100_v10 }
 0x1fa   : > { %v5244_v13 = vadd.f32 %v1989_v6, %v1859_v39  ;;  %2427 = vrot.lane.b32.xlu0 %v4859_v61, %s4149_s14  ;;  %2311 = vrot.lane.b32.xlu1 %v5207_v4, %s4150_s15  ;;  %v1316_v45 = vadd.f32 %v1300_v36, %v1265_v34  ;;  %v1596_v12 = vsel %vm1191_vm5, %v1594_v16, %v1595_v22  ;;  %v1808_v32 = vrot.slane %v1735_v41, 1 }
 0x1fb   : > { %v5279_v18 = vpop.permute.xlu1 %2095  ;;  %v1969_v8 = vrot.slane %v1895_v28, 2  ;;  %v1970_v27 = vrot.slane %v1897_v15, 2  ;;  %v989_v39 = vmul.f32 %v4392_v17, %v5100_v10  ;;  %v991_v57 = vmul.f32 %v4392_v17, %v5109_v23 }
 0x1fc   : > { %6203 = vst [vmem:[#allocation22_spill] sm:$0xff] %v5244_v13  ;;  %v1478_v6 = vadd.f32 %v1434_v38, %v1316_v45  ;;  %v927_v14 = vmul.f32 %v4397_v19, %v5100_v10  ;;  %v1152_v49 = vmul.f32 %v4381_v11, %v5100_v10  ;;  %v1809_v36 = vsel %vm1028_vm4, %v1807_v35, %v1808_v32 }
 0x1fd   : > { %v1068_v58 = vrot.slane %v989_v39, 1  ;;  %v1069_v50 = vrot.slane %v991_v57, 1  ;;  %v1154_v17 = vmul.f32 %v4381_v11, %v5109_v23  ;;  %v1971_v19 = vsel %vm1191_vm5, %v1969_v8, %v1970_v27  ;;  %v5306_v11 = vpop.permute.xlu0 %2195 }
 0x1fe   : > { %2370 = vrot.lane.b32.xlu0 %v5067_v44, %s4148_s7  ;;  %2486 = vrot.lane.b32.xlu1 %v4859_v61, %s4150_s15  ;;  %v1640_v55 = vadd.f32 %v1596_v12, %v1478_v6  ;;  %v1231_v34 = vrot.slane %v1152_v49, 2  ;;  %v1366_v10 = vmul.f32 %v4485_v46, %v5113_v9  ;;  %v1368_v16 = vmul.f32 %v4485_v46, %v5119_v7 }
 0x1ff   : > { %v1070_v38 = vsel %vm1028_vm4, %v1068_v58, %v1069_v50  ;;  %v1232_v45 = vrot.slane %v1154_v17, 2  ;;  %v5308_v23 = vpop.permute.xlu1 %2146  ;;  %v1304_v41 = vmul.f32 %v4511_v3, %v5113_v9  ;;  %v1528_v46 = vmul.f32 %v4489_v53, %v5113_v9 }
 0x200   : > { %v1691_v25 = vadd.f32 %v1675_v33, %v1640_v55  ;;  %v1106_v43 = vadd.f32 %v1070_v38, %v927_v14  ;;  %v1444_v28 = vrot.slane %v1366_v10, 1  ;;  %v1445_v12 = vrot.slane %v1368_v16, 1 }
 0x201   : > { %v1233_v15 = vsel %vm1191_vm5, %v1231_v34, %v1232_v45  ;;  %v1530_v6 = vmul.f32 %v4489_v53, %v5119_v7  ;;  %v1606_v32 = vrot.slane %v1528_v46, 2  ;;  %v1741_v39 = vmul.f32 %v4495_v59, %v5166_v5  ;;  %v2247_v7 = vpop.permute.xlu0 %2246 }
 0x202   : > { %2488 = vrot.lane.b32.xlu0 %v5067_v44, %s4150_s15  ;;  %2429 = vrot.lane.b32.xlu1 %v5067_v44, %s4149_s14  ;;  %v1853_v22 = vadd.f32 %v1809_v36, %v1691_v25  ;;  %v1269_v33 = vadd.f32 %v1233_v15, %v1106_v43  ;;  %v1446_v8 = vsel %vm1028_vm4, %v1444_v28, %v1445_v12 }
 0x203   : > { %v1607_v27 = vrot.slane %v1530_v6, 2  ;;  %v1743_v57 = vmul.f32 %v4495_v59, %v5175_v51  ;;  %v1903_v53 = vmul.f32 %v4503_v62, %v5166_v5  ;;  %v2198_v55 = vpop.permute.xlu1 %2197  ;;  %v1679_v49 = vmul.f32 %v4660_v1, %v5166_v5 }
 0x204   : > { %v5314_v35 = vadd.f32 %v1971_v19, %v1853_v22  ;;  %v1320_v3 = vadd.f32 %v1304_v41, %v1269_v33  ;;  %v1819_v36 = vrot.slane %v1741_v39, 1  ;;  %v1905_v58 = vmul.f32 %v4503_v62, %v5175_v51 }
 0x205   : > { %v1608_v9 = vsel %vm1191_vm5, %v1606_v32, %v1607_v27  ;;  %v1820_v50 = vrot.slane %v1743_v57, 1  ;;  %v1981_v25 = vrot.slane %v1903_v53, 2  ;;  %v2298_v10 = vpop.permute.xlu0 %2297  ;;  %v2069_v51 = vsel %vm572_vm0, %v5145_v60, 0.0 }
 0x206   : > { %2431 = vrot.lane.b32.xlu0 %v5156_v54, %s4149_s14  ;;  %2372 = vrot.lane.b32.xlu1 %v5156_v54, %s4148_s7  ;;  %6204 = vst [vmem:[#allocation23_spill] sm:$0xff] %v5314_v35  ;;  %v1482_v14 = vadd.f32 %v1446_v8, %v1320_v3  ;;  %v1982_v34 = vrot.slane %v1905_v58, 2  ;;  %v2071_v41 = vsel %vm572_vm0, %v5207_v4, 0.0  ;;  %v2070_v28 = vadd.f32 %v2069_v51, %v4929_v31  ;;  %s4153_s7 = smov 126  }
 0x207   : > { %v1821_v19 = vsel %vm1028_vm4, %v1819_v36, %v1820_v50  ;;  %v2249_v16 = vpop.permute.xlu1 %2248  ;;  %v2117_v51 = vsel %vm572_vm0, %v5256_v20, 0.0  ;;  %v2220_v35 = vsel %vm572_vm0, %v2198_v55, 0.0 }
 0x208   : > { %v1644_v17 = vadd.f32 %v1608_v9, %v1482_v14  ;;  %v1983_v38 = vsel %vm1191_vm5, %v1981_v25, %v1982_v34  ;;  %v2072_v12 = vadd.f32 %v2071_v41, %v2070_v28  ;;  %v2169_v41 = vsel %vm572_vm0, %v5308_v23, 0.0 }
 0x209   : > { %v5337_v45 = vpop.permute.xlu0 %2362  ;;  %v2168_v28 = vsel %vm572_vm0, %v5277_v52, 0.0  ;;  %v2271_v47 = vsel %vm572_vm0, %v2249_v16, 0.0  ;;  %v2321_v52 = vsel %vm572_vm0, %v2298_v10, 0.0 }
 0x20a   : > { %2490 = vrot.lane.b32.xlu1 %v5156_v54, %s4150_s15  ;;  %v1695_v59 = vadd.f32 %v1679_v49, %v1644_v17  ;;  %v2170_v40 = vadd.f32 %v2169_v41, %v2168_v28 }
 0x20b   : > { %v2300_v1 = vpop.permute.xlu1 %2299 }
 0x20c   : > { %v1857_v22 = vadd.f32 %v1821_v19, %v1695_v59 }
 0x20d   : > { %v5339_v5 = vpop.permute.xlu0 %2480 }
 0x20e   : > { %v5335_v43 = vadd.f32 %v1983_v38, %v1857_v22  ;;  %v2118_v22 = vsel %vm572_vm0, %v5279_v18, 0.0  ;;  %v2270_v18 = vsel %vm572_vm0, %v2247_v7, 0.0 }
 0x20f   : > { %v5341_v62 = vpop.permute.xlu1 %2421  ;;  %v2272_v30 = vadd.f32 %v2271_v47, %v2270_v18 }
 0x210   : > { %6205 = vst [vmem:[#allocation24_spill] sm:$0xff] %v5335_v43  ;;  %v2219_v43 = vsel %vm572_vm0, %v5306_v11, 0.0 }
 0x224   : > { %v2098_v46 = vpop.permute.xlu0 %2097  ;;  %v2149_v15 = vpop.permute.xlu1 %2148 }
 0x225   : > { %2073 = vadd.xlane.f32.xlu0 %v2072_v12  ;;  %v2119_v12 = vadd.f32 %v2118_v22, %v2117_v51  ;;  %v2120_v20 = vsel %vm572_vm0, %v2098_v46, 0.0  ;;  %v2171_v23 = vsel %vm572_vm0, %v2149_v15, 0.0  ;;  %v2322_v22 = vsel %vm572_vm0, %v2300_v1, 0.0 }
 0x226   : > { %v2221_v51 = vadd.f32 %v2220_v35, %v2219_v43  ;;  %v2172_v54 = vadd.f32 %v2171_v23, %v2170_v40  ;;  %v2323_v28 = vadd.f32 %v2322_v22, %v2321_v52 }
 0x227   : > { %v2121_v16 = vadd.f32 %v2120_v20, %v2119_v12 }
 0x228   : > { %v2200_v6 = vpop.permute.xlu0 %2199  ;;  %v2251_v33 = vpop.permute.xlu1 %2250 }
 0x229   : > { %v2222_v11 = vsel %vm572_vm0, %v2200_v6, 0.0  ;;  %v2273_v55 = vsel %vm572_vm0, %v2251_v33, 0.0 }
 0x22a   : > { %v2223_v10 = vadd.f32 %v2222_v11, %v2221_v51  ;;  %v2274_v35 = vadd.f32 %v2273_v55, %v2272_v30 }
 0x22c   : > { %v2302_v32 = vpop.permute.xlu0 %2301  ;;  %v5348_v8 = vpop.permute.xlu1 %2364 }
 0x22d   : > { %v2324_v46 = vsel %vm572_vm0, %v2302_v32, 0.0 }
 0x22e   : > { %v2325_v44 = vadd.f32 %v2324_v46, %v2323_v28 }
 0x230   : > { %v5350_v27 = vpop.permute.xlu0 %2423  ;;  %v5352_v3 = vpop.permute.xlu1 %2482 }
 0x234   : > { %v2151_v39 = vpop.permute.xlu0 %2150  ;;  %v2100_v60 = vpop.permute.xlu1 %2099 }
 0x235   : > { %v2173_v42 = vsel %vm572_vm0, %v2151_v39, 0.0  ;;  %v2122_v7 = vsel %vm572_vm0, %v2100_v60, 0.0 }
 0x236   : > { %v2174_v43 = vadd.f32 %v2173_v42, %v2172_v54  ;;  %v2123_v33 = vadd.f32 %v2122_v7, %v2121_v16 }
 0x238   : > { %v2253_v9 = vpop.permute.xlu0 %2252  ;;  %v2202_v57 = vpop.permute.xlu1 %2201 }
 0x239   : > { %v2224_v39 = vsel %vm572_vm0, %v2202_v57, 0.0  ;;  %v2275_v47 = vsel %vm572_vm0, %v2253_v9, 0.0  ;;  %v6206_v9 = vld [vmem:[#allocation14_spill] sm:$0xff] }
 0x23a   : > { %v2225_v30 = vadd.f32 %v2224_v39, %v2223_v10 }
 0x23c   : > { %v5354_v4 = vpop.permute.xlu0 %2366  ;;  %v2304_v31 = vpop.permute.xlu1 %2303 }
 0x23d   : > { %v2326_v60 = vsel %vm572_vm0, %v2304_v31, 0.0 }
 0x23e   : > { %v2327_v52 = vadd.f32 %v2326_v60, %v2325_v44 }
 0x240   : > { %v5356_v53 = vpop.permute.xlu0 %2484  ;;  %v5358_v14 = vpop.permute.xlu1 %2425 }
 0x244   : > { %v2102_v49 = vpop.permute.xlu0 %2101  ;;  %v2153_v36 = vpop.permute.xlu1 %2152 }
 0x245   : > { %v2124_v1 = vsel %vm572_vm0, %v2102_v49, 0.0  ;;  %v2175_v6 = vsel %vm572_vm0, %v2153_v36, 0.0 }
 0x246   : > { %v2125_v12 = vadd.f32 %v2124_v1, %v2123_v33  ;;  %v2176_v18 = vadd.f32 %v2175_v6, %v2174_v43  ;;  %v5413_v1 = vmul.f32 %v5201_v29, %v6206_v9 }
 0x248   : > { %v2204_v58 = vpop.permute.xlu0 %2203  ;;  %v2255_v50 = vpop.permute.xlu1 %2254 }
 0x249   : > { %v2226_v49 = vsel %vm572_vm0, %v2204_v58, 0.0  ;;  %v2277_v42 = vsel %vm572_vm0, %v2255_v50, 0.0 }
 0x24a   : > { %v2227_v22 = vadd.f32 %v2226_v49, %v2225_v30 }
 0x24c   : > { %v5360_v25 = vpop.permute.xlu0 %2305  ;;  %v5362_v17 = vpop.permute.xlu1 %2368 }
 0x24d   : > { %v2328_v50 = vsel %vm572_vm0, %v5360_v25, 0.0  ;;  %v6207_v25 = vld [vmem:[#allocation15_spill] sm:$0xff] }
 0x24e   : > { %v5417_v6 = vmul.f32 %v5210_v63, %v6207_v25  ;;  %v2329_v33 = vadd.f32 %v2328_v50, %v2327_v52  ;;  %v5429_v63 = vmul.f32 %v5341_v62, %v4766_v2  ;;  %v2501_v60 = vmul.f32 %v5258_v21, %v6207_v25 }
 0x24f   : > { %v5442_v62 = vmul.f32 %v5337_v45, %v4766_v2 }
 0x250   : > { %v2155_v34 = vpop.permute.xlu0 %2154  ;;  %v2104_v19 = vpop.permute.xlu1 %2103  ;;  %v2391_v21 = vsel %vm572_vm0, %v5417_v6, 0.0  ;;  %v2452_v45 = vsel %vm572_vm0, %v5429_v63, 0.0 }
 0x251   : > { %v2177_v40 = vsel %vm572_vm0, %v2155_v34, 0.0  ;;  %v2126_v32 = vsel %vm572_vm0, %v2104_v19, 0.0  ;;  %v5401_v34 = vmul.f32 %v5172_v48, %v6206_v9  ;;  %v2276_v19 = vadd.f32 %v2275_v47, %v2274_v35 }
 0x252   : > { %v2178_v23 = vadd.f32 %v2177_v40, %v2176_v18  ;;  %v2127_v31 = vadd.f32 %v2126_v32, %v2125_v12 }
 0x253   : > { %v2278_v51 = vadd.f32 %v2277_v42, %v2276_v19  ;;  %v2390_v43 = vsel %vm572_vm0, %v5401_v34, 0.0  ;;  %v2500_v42 = vmul.f32 %v5223_v26, %v6206_v9 }
 0x254   : > { %v2257_v59 = vpop.permute.xlu0 %2256  ;;  %v2206_v38 = vpop.permute.xlu1 %2205  ;;  %v2392_v50 = vadd.f32 %v2391_v21, %v2390_v43  ;;  %v6208_v43 = vld [vmem:[#allocation13_spill] sm:$0xff] }
 0x255   : > { %v2279_v58 = vsel %vm572_vm0, %v2257_v59, 0.0  ;;  %v2228_v11 = vsel %vm572_vm0, %v2206_v38, 0.0 }
 0x256   : > { %v2280_v28 = vadd.f32 %v2279_v58, %v2278_v51  ;;  %v2229_v59 = vadd.f32 %v2228_v11, %v2227_v22  ;;  %v2503_v22 = vmul.f32 %v5352_v3, %v4847_v37  ;;  %v2393_v11 = vsel %vm572_vm0, %v5442_v62, 0.0 }
 0x257   : > { %v5474_v51 = vmul.f32 %v5354_v4, %v4853_v0 }
 0x258   : > { %v2106_v13 = vpop.permute.xlu0 %2105  ;;  %v5375_v56 = vpop.permute.xlu1 %2307 }
 0x259   : > { %v2128_v54 = vsel %vm572_vm0, %v2106_v13, 0.0  ;;  %v2330_v35 = vsel %vm572_vm0, %v5375_v56, 0.0 }
 0x25a   : > { %v2129_v13 = vadd.f32 %v2128_v54, %v2127_v31  ;;  %v2331_v12 = vadd.f32 %v2330_v35, %v2329_v33  ;;  %v2502_v54 = vmul.f32 %v5339_v5, %v4766_v2  ;;  %v5462_v31 = vmul.f32 %v5358_v14, %v4853_v0 }
 0x25b   : > { %v2509_v5 = vsel %vm572_vm0, %v2501_v60, 0.0 }
 0x25c   : > { %v2208_v15 = vpop.permute.xlu0 %2207  ;;  %v2157_v41 = vpop.permute.xlu1 %2156  ;;  %v2456_v4 = vsel %vm572_vm0, %v5462_v31, 0.0 }
 0x25d   : > { %v2179_v57 = vsel %vm572_vm0, %v2157_v41, 0.0  ;;  %v2230_v48 = vsel %vm572_vm0, %v2208_v15, 0.0  ;;  %v5421_v15 = vmul.f32 %v5225_v24, %v6207_v25 }
 0x25e   : > { %v2180_v55 = vadd.f32 %v2179_v57, %v2178_v23  ;;  %v2231_v39 = vadd.f32 %v2230_v48, %v2229_v59 }
 0x25f   : > { %v2450_v30 = vsel %vm572_vm0, %v5421_v15, 0.0 }
 0x260   : > { %v2310_v20 = vpop.permute.xlu0 %2309  ;;  %v2259_v36 = vpop.permute.xlu1 %2258 }
 0x261   : > { %v2281_v46 = vsel %vm572_vm0, %v2259_v36, 0.0  ;;  %v2332_v24 = vsel %vm572_vm0, %v2310_v20, 0.0  ;;  %v2449_v36 = vsel %vm572_vm0, %v5413_v1, 0.0  ;;  %v5446_v20 = vmul.f32 %v5350_v27, %v4847_v37 }
 0x262   : > { %v2282_v47 = vadd.f32 %v2281_v46, %v2280_v28  ;;  %v2333_v57 = vadd.f32 %v2332_v24, %v2331_v12  ;;  %v5458_v27 = vmul.f32 %v5348_v8, %v4847_v37  ;;  %v2451_v52 = vadd.f32 %v2450_v30, %v2449_v36 }
 0x263   : > { %v2454_v8 = vsel %vm572_vm0, %v5446_v20, 0.0  ;;  %v2504_v46 = vmul.f32 %v5356_v53, %v4853_v0  ;;  %v2394_v28 = vadd.f32 %v2393_v11, %v2392_v50 }
 0x264   : > { %v2159_v7 = vpop.permute.xlu0 %2158  ;;  %v2108_v16 = vpop.permute.xlu1 %2107  ;;  %v2453_v3 = vadd.f32 %v2452_v45, %v2451_v52  ;;  %v2395_v48 = vsel %vm572_vm0, %v5458_v27, 0.0  ;;  %v6209_v45 = vld [vmem:[#allocation20_spill] sm:$0xff] }
 0x265   : > { %v2181_v41 = vsel %vm572_vm0, %v2159_v7, 0.0  ;;  %v2130_v44 = vsel %vm572_vm0, %v2108_v16, 0.0  ;;  %v2515_v24 = vsel %vm572_vm0, %v2504_v46, 0.0 }
 0x266   : > { %v2182_v10 = vadd.f32 %v2181_v41, %v2180_v55  ;;  %v2131_v38 = vadd.f32 %v2130_v44, %v2129_v13  ;;  %v2508_v13 = vsel %vm572_vm0, %v2500_v42, 0.0  ;;  %v2511_v55 = vsel %vm572_vm0, %v2502_v54, 0.0 }
 0x267   : > { %v5489_v41 = vmul.f32 %v5362_v17, %v4859_v61  ;;  %v2510_v44 = vadd.f32 %v2509_v5, %v2508_v13  ;;  %v2455_v59 = vadd.f32 %v2454_v8, %v2453_v3 }
 0x268   : > { %v2261_v40 = vpop.permute.xlu0 %2260  ;;  %2183 = vadd.xlane.f32.xlu0 %v2182_v10  ;;  %2132 = vadd.xlane.f32.xlu1 %v2131_v38  ;;  %v2210_v29 = vpop.permute.xlu1 %2209  ;;  %v2513_v10 = vsel %vm572_vm0, %v2503_v22, 0.0  ;;  %v2397_v38 = vsel %vm572_vm0, %v5474_v51, 0.0 }
 0x269   : > { %v2283_v32 = vsel %vm572_vm0, %v2261_v40, 0.0  ;;  %v2232_v56 = vsel %vm572_vm0, %v2210_v29, 0.0  ;;  %v2457_v17 = vadd.f32 %v2456_v4, %v2455_v59 }
 0x26a   : > { %v2284_v18 = vadd.f32 %v2283_v32, %v2282_v47  ;;  %v2233_v49 = vadd.f32 %v2232_v56, %v2231_v39  ;;  %v2512_v39 = vadd.f32 %v2511_v55, %v2510_v44  ;;  %v2396_v47 = vadd.f32 %v2395_v48, %v2394_v28 }
 0x26b   : > { %v2399_v32 = vsel %vm572_vm0, %v5489_v41, 0.0 }
 0x26c   : > { %v2428_v19 = vpop.permute.xlu0 %2427  ;;  %2285 = vadd.xlane.f32.xlu1 %v2284_v18  ;;  %v2312_v23 = vpop.permute.xlu1 %2311  ;;  %2234 = vadd.xlane.f32.xlu0 %v2233_v49  ;;  %v2514_v60 = vadd.f32 %v2513_v10, %v2512_v39  ;;  %v2398_v12 = vadd.f32 %v2397_v38, %v2396_v47 }
 0x26d   : > { %v2334_v26 = vsel %vm572_vm0, %v2312_v23, 0.0  ;;  %v5477_v14 = vmul.f32 %v2428_v19, %v4859_v61 }
 0x26e   : > { %v2335_v58 = vadd.f32 %v2334_v26, %v2333_v57  ;;  %v2516_v42 = vadd.f32 %v2515_v24, %v2514_v60  ;;  %v2400_v23 = vadd.f32 %v2399_v32, %v2398_v12 }
 0x26f   : > { %v2458_v35 = vsel %vm572_vm0, %v5477_v14, 0.0 }
 0x270   : > { %v2371_v7 = vpop.permute.xlu0 %2370  ;;  %v2487_v16 = vpop.permute.xlu1 %2486  ;;  %2336 = vadd.xlane.f32.xlu0 %v2335_v58  ;;  %v2459_v18 = vadd.f32 %v2458_v35, %v2457_v17 }
 0x271   : > { %v5497_v53 = vmul.f32 %v2371_v7, %v6208_v43  ;;  %v2505_v33 = vmul.f32 %v2487_v16, %v4859_v61 }
 0x273   : > { %v2517_v49 = vsel %vm572_vm0, %v2505_v33, 0.0  ;;  %v2401_v21 = vsel %vm572_vm0, %v5497_v53, 0.0 }
 0x274   : > { %v2489_v40 = vpop.permute.xlu0 %2488  ;;  %v2430_v29 = vpop.permute.xlu1 %2429  ;;  %v2518_v5 = vadd.f32 %v2517_v49, %v2516_v42  ;;  %v2402_v22 = vadd.f32 %v2401_v21, %v2400_v23 }
 0x275   : > { %v5504_v56 = vmul.f32 %v2430_v29, %v6208_v43  ;;  %v2506_v36 = vmul.f32 %v2489_v40, %v6208_v43 }
 0x277   : > { %v2460_v30 = vsel %vm572_vm0, %v5504_v56, 0.0  ;;  %v2519_v58 = vsel %vm572_vm0, %v2506_v36, 0.0 }
 0x278   : > { %v2432_v54 = vpop.permute.xlu0 %2431  ;;  %v2373_v57 = vpop.permute.xlu1 %2372  ;;  %v2461_v19 = vadd.f32 %v2460_v30, %v2459_v18  ;;  %v2520_v7 = vadd.f32 %v2519_v58, %v2518_v5 }
 0x279   : > { %v5513_v26 = vmul.f32 %v2432_v54, %v6209_v45  ;;  %v5516_v52 = vmul.f32 %v2373_v57, %v6209_v45 }
 0x27b   : > { %v2462_v11 = vsel %vm572_vm0, %v5513_v26, 0.0  ;;  %v2403_v8 = vsel %vm572_vm0, %v5516_v52, 0.0 }
 0x27c   : > { %v2491_v50 = vpop.permute.xlu1 %2490  ;;  %v2463_v13 = vadd.f32 %v2462_v11, %v2461_v19  ;;  %v2404_v55 = vadd.f32 %v2403_v8, %v2402_v22 }
 0x27d   : > { %v2507_v3 = vmul.f32 %v2491_v50, %v6209_v45 }
 0x27e   : > { %2464 = vadd.xlane.f32.xlu0 %v2463_v13  ;;  %2405 = vadd.xlane.f32.xlu1 %v2404_v55 }
 0x27f   : > { %v2521_v16 = vsel %vm572_vm0, %v2507_v3, 0.0 }
 0x280   : > { %v2522_v48 = vadd.f32 %v2521_v16, %v2520_v7 }
 0x282   : > { %2523 = vadd.xlane.f32.xlu1 %v2522_v48 }
 0x293   : > { %2671 = vrot.lane.b32.xlu1 %v6206_v9, %s4152_s17 }
 0x294   : > { %2673 = vrot.lane.b32.xlu0 %v6207_v25, %s4152_s17 }
 0x297   : > { %2675 = vrot.lane.b32.xlu1 %v4766_v2, %s4152_s17 }
 0x298   : > { %2679 = vrot.lane.b32.xlu0 %v4853_v0, %s4152_s17 }
 0x29b   : > { %2677 = vrot.lane.b32.xlu1 %v4847_v37, %s4152_s17 }
 0x29c   : > { %2683 = vrot.lane.b32.xlu0 %v6208_v43, %s4152_s17 }
 0x29f   : > { %2681 = vrot.lane.b32.xlu1 %v4859_v61, %s4152_s17 }
 0x2a3   : > { %2685 = vrot.lane.b32.xlu1 %v6209_v45, %s4152_s17 }
 0x2ae   : > { %v2074_v46 = vpop.xlane.xlu0 %2073 }
 0x2af   : > { %v2075_v4 = vrot.slane %v2074_v46, 4 }
 0x2b1   : > { %v2076_v44 = vadd.f32 %v2075_v4, %v2074_v46 }
 0x2b3   : > { %v2077_v28 = vrot.slane %v2076_v44, 2 }
 0x2b5   : > { %v2078_v59 = vadd.f32 %v2077_v28, %v2076_v44  ;;  %v2348_v44 = vld [vmem:[#allocation3] sm:$0x1] }
 0x2b7   : > { %v2079_v10 = vrot.slane %v2078_v59, 1 }
 0x2b9   : > { %v2080_v38 = vadd.f32 %v2079_v10, %v2078_v59 }
 0x2bb   : > { %3966 = vpush %v2080_v38 }
 0x2ec   : > { %s3967_s18 = spop %3966 }
 0x2f1   : > { %v2184_v35 = vpop.xlane.xlu0 %2183  ;;  %v2133_v33 = vpop.xlane.xlu1 %2132 }
 0x2f2   : > { %v2185_v39 = vrot.slane %v2184_v35, 4  ;;  %v2134_v47 = vrot.slane %v2133_v33, 4 }
 0x2f4   : > { %v2186_v17 = vadd.f32 %v2185_v39, %v2184_v35  ;;  %v2135_v40 = vadd.f32 %v2134_v47, %v2133_v33 }
 0x2f5   : > { %v2286_v29 = vpop.xlane.xlu1 %2285  ;;  %v2235_v24 = vpop.xlane.xlu0 %2234 }
 0x2f6   : > { %v2287_v32 = vrot.slane %v2286_v29, 4  ;;  %v2236_v60 = vrot.slane %v2235_v24, 4  ;;  %v2136_v12 = vrot.slane %v2135_v40, 2  ;;  %v2187_v18 = vrot.slane %v2186_v17, 2 }
 0x2f8   : > { %v2288_v49 = vadd.f32 %v2287_v32, %v2286_v29  ;;  %v2237_v36 = vadd.f32 %v2236_v60, %v2235_v24  ;;  %v2137_v30 = vadd.f32 %v2136_v12, %v2135_v40  ;;  %v2188_v21 = vadd.f32 %v2187_v18, %v2186_v17 }
 0x2f9   : > { %v2337_v42 = vpop.xlane.xlu0 %2336 }
 0x2fa   : > { %v2338_v54 = vrot.slane %v2337_v42, 4  ;;  %v2138_v57 = vrot.slane %v2137_v30, 1  ;;  %v2189_v19 = vrot.slane %v2188_v21, 1  ;;  %v2238_v23 = vrot.slane %v2237_v36, 2 }
 0x2fb   : > { %v2289_v5 = vrot.slane %v2288_v49, 2 }
 0x2fc   : > { %v2339_v22 = vadd.f32 %v2338_v54, %v2337_v42  ;;  %v2139_v58 = vadd.f32 %v2138_v57, %v2137_v30  ;;  %v2239_v11 = vadd.f32 %v2238_v23, %v2237_v36  ;;  %v2190_v8 = vadd.f32 %v2189_v19, %v2188_v21 }
 0x2fd   : > { %v2290_v50 = vadd.f32 %v2289_v5, %v2288_v49 }
 0x2fe   : > { %3968 = vpush %v2139_v58  ;;  %v2240_v13 = vrot.slane %v2239_v11, 1  ;;  %v2340_v55 = vrot.slane %v2339_v22, 2 }
 0x2ff   : > { %3970 = vpush %v2190_v8  ;;  %v2291_v3 = vrot.slane %v2290_v50, 1 }
 0x300   : > { %v2241_v7 = vadd.f32 %v2240_v13, %v2239_v11  ;;  %v2341_v16 = vadd.f32 %v2340_v55, %v2339_v22  ;;  %v2082_v11 = vstv %s3967_s18  ;;  %s4154_s18 = smov 127  }
 0x301   : > { %v2292_v48 = vadd.f32 %v2291_v3, %v2290_v50  ;;  %v2083_v8 = vmax.f32 %v2082_v11, 1e-24 }
 0x302   : > { %3972 = vpush %v2241_v7  ;;  %v2342_v46 = vrot.slane %v2341_v16, 1 }
 0x303   : > { %3974 = vpush %v2292_v48  ;;  %4111 = vrsqrt.f32 %v2083_v8 }
 0x304   : > { %v2343_v4 = vadd.f32 %v2342_v46, %v2341_v16 }
 0x306   : > { %3976 = vpush %v2343_v4 }
 0x307   : > { %v2465_v28 = vpop.xlane.xlu0 %2464  ;;  %v2406_v59 = vpop.xlane.xlu1 %2405  ;;  %3978 = vpush %v2348_v44 }
 0x308   : > { %v2466_v10 = vrot.slane %v2465_v28, 4  ;;  %v2407_v38 = vrot.slane %v2406_v59, 4 }
 0x30a   : > { %v2467_v35 = vadd.f32 %v2466_v10, %v2465_v28  ;;  %v2408_v33 = vadd.f32 %v2407_v38, %v2406_v59 }
 0x30b   : > { %v2674_v39 = vpop.permute.xlu0 %2673  ;;  %v2524_v47 = vpop.xlane.xlu1 %2523 }
 0x30c   : > { %v5542_v17 = vmul.f32 %v2674_v39, %v6207_v25  ;;  %v2525_v40 = vrot.slane %v2524_v47, 4  ;;  %v2409_v29 = vrot.slane %v2408_v33, 2  ;;  %v2468_v24 = vrot.slane %v2467_v35, 2 }
 0x30e   : > { %v2526_v32 = vadd.f32 %v2525_v40, %v2524_v47  ;;  %2713 = vrot.lane.b32.xlu1 %v5542_v17, %s4151_s16  ;;  %v2410_v60 = vadd.f32 %v2409_v29, %v2408_v33  ;;  %v2469_v12 = vadd.f32 %v2468_v24, %v2467_v35 }
 0x30f   : > { %v5546_v18 = vpop.permute.xlu1 %2671 }
 0x310   : > { %v2411_v49 = vrot.slane %v2410_v60, 1  ;;  %v2470_v36 = vrot.slane %v2469_v12, 1  ;;  %v2527_v30 = vrot.slane %v2526_v32, 2  ;;  %v4112_v28 = vpop.eup %4111  ;;  %v5605_v11 = vmul.f32 %v5546_v18, %v6206_v9  ;;  %v2680_v18 = vpop.permute.xlu0 %2679 }
 0x312   : > { %2772 = vrot.lane.b32.xlu1 %v5417_v6, %s4151_s16  ;;  %v2412_v21 = vadd.f32 %v2411_v49, %v2410_v60  ;;  %v2471_v54 = vadd.f32 %v2470_v36, %v2469_v12  ;;  %v2528_v57 = vadd.f32 %v2527_v30, %v2526_v32 }
 0x313   : > { %v5550_v42 = vpop.permute.xlu1 %2675 }
 0x314   : > { %3980 = vpush %v2412_v21  ;;  %v2529_v19 = vrot.slane %v2528_v57, 1  ;;  %v5615_v8 = vmul.f32 %v5550_v42, %v4766_v2 }
 0x315   : > { %3982 = vpush %v2471_v54 }
 0x316   : > { %2831 = vrot.lane.b32.xlu1 %v5421_v15, %s4151_s16  ;;  %v2530_v23 = vadd.f32 %v2529_v19, %v2528_v57 }
 0x317   : > { %v2678_v5 = vpop.permute.xlu1 %2677 }
 0x318   : > { %3984 = vpush %v2530_v23  ;;  %v5557_v22 = vmul.f32 %v2678_v5, %v4847_v37 }
 0x31a   : > { %2774 = vrot.lane.b32.xlu1 %v5442_v62, %s4151_s16 }
 0x31b   : > { %v2682_v58 = vpop.permute.xlu1 %2681 }
 0x31c   : > { %v5566_v15 = vmul.f32 %v2682_v58, %v4859_v61 }
 0x31e   : > { %2717 = vrot.lane.b32.xlu1 %v5557_v22, %s4151_s16 }
 0x31f   : > { %v2686_v7 = vpop.permute.xlu1 %2685 }
 0x320   : > { %v5577_v46 = vmul.f32 %v2686_v7, %v6209_v45 }
 0x322   : > { %2835 = vrot.lane.b32.xlu1 %v5446_v20, %s4151_s16 }
 0x326   : > { %2778 = vrot.lane.b32.xlu1 %v5474_v51, %s4151_s16 }
 0x32a   : > { %2721 = vrot.lane.b32.xlu1 %v5566_v15, %s4151_s16 }
 0x32e   : > { %2839 = vrot.lane.b32.xlu1 %v5477_v14, %s4151_s16 }
 0x32f   : > { %s3969_s20 = spop %3968 }
 0x330   : > { %v2141_v50 = vstv %s3969_s20  ;;  %s3971_s21 = spop %3970 }
 0x331   : > { %v2142_v20 = vmax.f32 %v2141_v50, 1e-24  ;;  %v2192_v13 = vstv %s3971_s21  ;;  %v5624_v50 = vmul.f32 %v2680_v18, %v4853_v0 }
 0x332   : > { %v2193_v55 = vmax.f32 %v2192_v13, 1e-24  ;;  %2782 = vrot.lane.b32.xlu1 %v5497_v53, %s4151_s16 }
 0x333   : > { %s3973_s22 = spop %3972  ;;  %4113 = vrsqrt.f32 %v2142_v20 }
 0x334   : > { %v2243_v3 = vstv %s3973_s22  ;;  %s3975_s23 = spop %3974  ;;  %4115 = vrsqrt.f32 %v2193_v55 }
 0x335   : > { %v2244_v16 = vmax.f32 %v2243_v3, 1e-24  ;;  %v2294_v48 = vstv %s3975_s23 }
 0x336   : > { %v2295_v14 = vmax.f32 %v2294_v48, 1e-24  ;;  %2841 = vrot.lane.b32.xlu1 %v5504_v56, %s4151_s16 }
 0x337   : > { %4117 = vrsqrt.f32 %v2244_v16  ;;  %s3977_s24 = spop %3976 }
 0x338   : > { %4119 = vrsqrt.f32 %v2295_v14  ;;  %v2345_v4 = vstv %s3977_s24  ;;  %s3979_s25 = spop %3978 }
 0x339   : > { %v2346_v44 = vmax.f32 %v2345_v4, 1e-24  ;;  %v5598_v19 = vstv %s3979_s25 }
 0x33a   : > { %2725 = vrot.lane.b32.xlu1 %v5577_v46, %s4151_s16 }
 0x33b   : > { %4121 = vrsqrt.f32 %v2346_v44 }
 0x33e   : > { %2784 = vrot.lane.b32.xlu1 %v5516_v52, %s4151_s16 }
 0x340   : > { %v4114_v59 = vpop.eup %4113 }
 0x341   : > { %v4116_v56 = vpop.eup %4115 }
 0x342   : > { %2843 = vrot.lane.b32.xlu1 %v5513_v26, %s4151_s16 }
 0x344   : > { %v4118_v10 = vpop.eup %4117 }
 0x345   : > { %v4120_v38 = vpop.eup %4119  ;;  %s3981_s26 = spop %3980  ;;  %v2415_v35 = vmul.f32 %v4118_v10, %v4112_v28  ;;  %v5585_v33 = vmul.f32 %v4118_v10, %v4114_v59  ;;  %v5587_v39 = vmul.f32 %v4118_v10, %v4116_v56 }
 0x346   : > { %v2414_v47 = vstv %s3981_s26  ;;  %s3983_s28 = spop %3982  ;;  %v2474_v40 = vmul.f32 %v4120_v38, %v4112_v28  ;;  %v5589_v29 = vmul.f32 %v4120_v38, %v4114_v59  ;;  %v5591_v24 = vmul.f32 %v4120_v38, %v4116_v56 }
 0x347   : > { %v2473_v32 = vstv %s3983_s28  ;;  %v2416_v26 = vmul.f32 %v2415_v35, %v2414_v47 }
 0x348   : > { %v4122_v60 = vpop.eup %4121  ;;  %v2475_v12 = vmul.f32 %v2474_v40, %v2473_v32 }
 0x349   : > { %v2533_v49 = vmul.f32 %v4122_v60, %v4112_v28  ;;  %v5593_v36 = vmul.f32 %v4122_v60, %v4114_v59  ;;  %v5595_v30 = vmul.f32 %v4122_v60, %v4116_v56  ;;  %s3985_s29 = spop %3984 }
 0x34a   : > { %v2532_v21 = vstv %s3985_s29  ;;  %v2536_v57 = vsel %vm2535_vm8, %v2416_v26, %v2475_v12 }
 0x34b   : > { %v2534_v54 = vmul.f32 %v2533_v49, %v2532_v21 }
 0x34d   : > { %v2538_v23 = vsel %vm2537_vm9, %v2536_v57, %v2534_v54 }
 0x34e   : > { %v2540_v5 = vmul.f32 %v5598_v19, %v2538_v23 }
 0x350   : > { %v2542_v58 = vsel %vm2541_vm10, %v2540_v5, -inf }
 0x351   : > { %2543 = vmax.xlane.f32.xlu0 %v2542_v58 }
 0x367   : > { %2711 = vrot.lane.b32.xlu0 %v5605_v11, %s4151_s16 }
 0x36b   : > { %2770 = vrot.lane.b32.xlu0 %v5401_v34, %s4151_s16 }
 0x36f   : > { %2829 = vrot.lane.b32.xlu0 %v5413_v1, %s4151_s16  ;;  %v2684_v1 = vpop.permute.xlu0 %2683 }
 0x370   : > { %v5633_v42 = vmul.f32 %v2684_v1, %v6208_v43 }
 0x373   : > { %2715 = vrot.lane.b32.xlu0 %v5615_v8, %s4151_s16 }
 0x377   : > { %2833 = vrot.lane.b32.xlu0 %v5429_v63, %s4151_s16 }
 0x37b   : > { %2776 = vrot.lane.b32.xlu0 %v5458_v27, %s4151_s16 }
 0x37f   : > { %2719 = vrot.lane.b32.xlu0 %v5624_v50, %s4151_s16 }
 0x380   : > { %v2714_v63 = vpop.permute.xlu1 %2713 }
 0x381   : > { %v2736_v58 = vsel %vm572_vm0, %v2714_v63, 0.0 }
 0x383   : > { %2837 = vrot.lane.b32.xlu0 %v5462_v31, %s4151_s16 }
 0x384   : > { %v2773_v20 = vpop.permute.xlu1 %2772 }
 0x385   : > { %v2795_v49 = vsel %vm572_vm0, %v2773_v20, 0.0 }
 0x387   : > { %2780 = vrot.lane.b32.xlu0 %v5489_v41, %s4151_s16 }
 0x388   : > { %v2832_v13 = vpop.permute.xlu1 %2831 }
 0x389   : > { %v2854_v21 = vsel %vm572_vm0, %v2832_v13, 0.0 }
 0x38b   : > { %2723 = vrot.lane.b32.xlu0 %v5633_v42, %s4151_s16 }
 0x38c   : > { %v2775_v55 = vpop.permute.xlu1 %2774 }
 0x390   : > { %v2718_v3 = vpop.permute.xlu1 %2717 }
 0x394   : > { %v2836_v7 = vpop.permute.xlu1 %2835 }
 0x398   : > { %v2779_v16 = vpop.permute.xlu1 %2778 }
 0x39c   : > { %v2722_v44 = vpop.permute.xlu1 %2721 }
 0x3a0   : > { %v2840_v59 = vpop.permute.xlu1 %2839 }
 0x3a4   : > { %v2783_v35 = vpop.permute.xlu1 %2782 }
 0x3a8   : > { %v2842_v26 = vpop.permute.xlu1 %2841 }
 0x3ac   : > { %v2726_v20 = vpop.permute.xlu1 %2725 }
 0x3da   : > { %v2544_v48 = vpop.xlane.xlu0 %2543 }
 0x3db   : > { %v2545_v14 = vsub.f32 %v2540_v5, %v2544_v48 }
 0x3dd   : > { %v2546_v31 = vmul.f32 1.442695, %v2545_v14 }
 0x3de   : > { %v2712_v4 = vpop.permute.xlu0 %2711 }
 0x3df   : > { %4123 = vpow2.f32 %v2546_v31  ;;  %v2735_v54 = vsel %vm572_vm0, %v2712_v4, 0.0  ;;  %v2797_v31 = vsel %vm572_vm0, %v2775_v55, 0.0  ;;  %v2858_v4 = vsel %vm572_vm0, %v2836_v7, 0.0 }
 0x3e0   : > { %v2737_v1 = vadd.f32 %v2736_v58, %v2735_v54  ;;  %v2801_v55 = vsel %vm572_vm0, %v2779_v16, 0.0  ;;  %v2785_v54 = vpop.permute.xlu1 %2784 }
 0x3e1   : > { %v2807_v16 = vsel %vm572_vm0, %v2785_v54, 0.0 }
 0x3e2   : > { %v2771_v28 = vpop.permute.xlu0 %2770 }
 0x3e3   : > { %v2794_v32 = vsel %vm572_vm0, %v2771_v28, 0.0 }
 0x3e4   : > { %v2796_v23 = vadd.f32 %v2795_v49, %v2794_v32 }
 0x3e6   : > { %v2830_v56 = vpop.permute.xlu0 %2829  ;;  %v2798_v13 = vadd.f32 %v2797_v31, %v2796_v23  ;;  %v2862_v23 = vsel %vm572_vm0, %v2840_v59, 0.0 }
 0x3e7   : > { %v2853_v60 = vsel %vm572_vm0, %v2830_v56, 0.0 }
 0x3e8   : > { %v2855_v5 = vadd.f32 %v2854_v21, %v2853_v60  ;;  %v2740_v60 = vsel %vm572_vm0, %v2718_v3, 0.0  ;;  %v2744_v3 = vsel %vm572_vm0, %v2722_v44, 0.0 }
 0x3ea   : > { %v2716_v10 = vpop.permute.xlu0 %2715 }
 0x3eb   : > { %v2738_v18 = vsel %vm572_vm0, %v2716_v10, 0.0 }
 0x3ec   : > { %v5637_v38 = vpop.eup %4123  ;;  %v2739_v56 = vadd.f32 %v2738_v18, %v2737_v1  ;;  %v2805_v1 = vsel %vm572_vm0, %v2783_v35, 0.0 }
 0x3ed   : > { %v2548_v47 = vsel %vm2541_vm10, %v5637_v38, 0.0 }
 0x3ee   : > { %2549 = vadd.xlane.f32.xlu0 %v2548_v47  ;;  %v2834_v40 = vpop.permute.xlu0 %2833  ;;  %v2741_v49 = vadd.f32 %v2740_v60, %v2739_v56 }
 0x3ef   : > { %v2856_v57 = vsel %vm572_vm0, %v2834_v40, 0.0 }
 0x3f0   : > { %v2857_v48 = vadd.f32 %v2856_v57, %v2855_v5 }
 0x3f2   : > { %v2777_v12 = vpop.permute.xlu0 %2776  ;;  %v2859_v40 = vadd.f32 %v2858_v4, %v2857_v48 }
 0x3f3   : > { %v2799_v28 = vsel %vm572_vm0, %v2777_v12, 0.0 }
 0x3f4   : > { %v2800_v47 = vadd.f32 %v2799_v28, %v2798_v13  ;;  %v2864_v28 = vsel %vm572_vm0, %v2842_v26, 0.0  ;;  %v2844_v13 = vpop.permute.xlu1 %2843 }
 0x3f5   : > { %v2866_v44 = vsel %vm572_vm0, %v2844_v13, 0.0 }
 0x3f6   : > { %v2720_v14 = vpop.permute.xlu0 %2719  ;;  %v2802_v57 = vadd.f32 %v2801_v55, %v2800_v47 }
 0x3f7   : > { %v2742_v63 = vsel %vm572_vm0, %v2720_v14, 0.0 }
 0x3f8   : > { %v2743_v12 = vadd.f32 %v2742_v63, %v2741_v49 }
 0x3fa   : > { %v2838_v32 = vpop.permute.xlu0 %2837  ;;  %v2745_v14 = vadd.f32 %v2744_v3, %v2743_v12 }
 0x3fb   : > { %v2860_v10 = vsel %vm572_vm0, %v2838_v32, 0.0 }
 0x3fc   : > { %v2861_v21 = vadd.f32 %v2860_v10, %v2859_v40  ;;  %v2748_v40 = vsel %vm572_vm0, %v2726_v20, 0.0 }
 0x3fe   : > { %v2781_v5 = vpop.permute.xlu0 %2780  ;;  %v2863_v58 = vadd.f32 %v2862_v23, %v2861_v21 }
 0x3ff   : > { %v2803_v7 = vsel %vm572_vm0, %v2781_v5, 0.0 }
 0x400   : > { %v2804_v18 = vadd.f32 %v2803_v7, %v2802_v57  ;;  %v2865_v47 = vadd.f32 %v2864_v28, %v2863_v58 }
 0x402   : > { %v2806_v48 = vadd.f32 %v2805_v1, %v2804_v18  ;;  %v2724_v31 = vpop.permute.xlu0 %2723  ;;  %v2867_v35 = vadd.f32 %v2866_v44, %v2865_v47 }
 0x403   : > { %v2746_v56 = vsel %vm572_vm0, %v2724_v31, 0.0 }
 0x404   : > { %v2747_v4 = vadd.f32 %v2746_v56, %v2745_v14  ;;  %v2808_v59 = vadd.f32 %v2807_v16, %v2806_v48 }
 0x406   : > { %2809 = vadd.xlane.f32.xlu0 %v2808_v59  ;;  %v2749_v32 = vadd.f32 %v2748_v40, %v2747_v4 }
 0x408   : > { %2750 = vadd.xlane.f32.xlu1 %v2749_v32 }
 0x40a   : > { %2868 = vadd.xlane.f32.xlu0 %v2867_v35 }
 0x477   : > { %v2550_v60 = vpop.xlane.xlu0 %2549 }
 0x478   : > { %4125 = vrcp.f32 %v2550_v60 }
 0x485   : > { %v4126_v26 = vpop.eup %4125 }
 0x486   : > { %v2552_v63 = vmul.f32 %v4126_v26, %v5637_v38 }
 0x488   : > { %2618 = vrot.lane.b32.xlu1 %v2552_v63, %s4153_s7  ;;  %2565 = vrot.lane.b32.xlu0 %v2552_v63, %s4154_s18  ;;  %3986 = vpush %v2552_v63 }
 0x48c   : > { %3012 = vrot.lane.b32.xlu1 %v6206_v9, %s4151_s16 }
 0x48f   : > { %v2810_v38 = vpop.xlane.xlu0 %2809 }
 0x490   : > { %3014 = vrot.lane.b32.xlu1 %v6207_v25, %s4151_s16  ;;  %v2811_v21 = vrot.slane %v2810_v38, 4 }
 0x491   : > { %v2751_v20 = vpop.xlane.xlu1 %2750 }
 0x492   : > { %v2752_v49 = vrot.slane %v2751_v20, 4  ;;  %v2812_v12 = vadd.f32 %v2811_v21, %v2810_v38 }
 0x493   : > { %v2869_v10 = vpop.xlane.xlu0 %2868 }
 0x494   : > { %3016 = vrot.lane.b32.xlu1 %v4766_v2, %s4151_s16  ;;  %v2870_v55 = vrot.slane %v2869_v10, 4  ;;  %v2753_v54 = vadd.f32 %v2752_v49, %v2751_v20  ;;  %v2813_v23 = vrot.slane %v2812_v12, 2 }
 0x496   : > { %v2871_v57 = vadd.f32 %v2870_v55, %v2869_v10  ;;  %v2754_v5 = vrot.slane %v2753_v54, 2  ;;  %v2814_v18 = vadd.f32 %v2813_v23, %v2812_v12 }
 0x498   : > { %3018 = vrot.lane.b32.xlu1 %v4847_v37, %s4151_s16  ;;  %v2872_v7 = vrot.slane %v2871_v57, 2  ;;  %v2755_v58 = vadd.f32 %v2754_v5, %v2753_v54  ;;  %v2815_v48 = vrot.slane %v2814_v18, 1 }
 0x49a   : > { %v2873_v3 = vadd.f32 %v2872_v7, %v2871_v57  ;;  %v2756_v1 = vrot.slane %v2755_v58, 1  ;;  %v2816_v56 = vadd.f32 %v2815_v48, %v2814_v18 }
 0x49c   : > { %3020 = vrot.lane.b32.xlu1 %v4853_v0, %s4151_s16  ;;  %v2874_v14 = vrot.slane %v2873_v3, 1  ;;  %v2757_v16 = vadd.f32 %v2756_v1, %v2755_v58 }
 0x49e   : > { %v2875_v13 = vadd.f32 %v2874_v14, %v2873_v3 }
 0x4a0   : > { %3022 = vrot.lane.b32.xlu1 %v4859_v61, %s4151_s16 }
 0x4a4   : > { %3026 = vrot.lane.b32.xlu1 %v6209_v45, %s4151_s16 }
 0x4b9   : > { %s5704_s20 = spop %3986 }
 0x4fa   : > { %v2619_v31 = vpop.permute.xlu1 %2618  ;;  %v2566_v28 = vpop.permute.xlu0 %2565 }
 0x4fb   : > { %3988 = vpush %v2566_v28 }
 0x4fc   : > { %3990 = vpush %v2619_v31 }
 0x4fd   : > { %3992 = vpush %v2757_v16 }
 0x4fe   : > { %3994 = vpush %v2816_v56  ;;  %v3013_v4 = vpop.permute.xlu1 %3012 }
 0x4ff   : > { %3996 = vpush %v2875_v13  ;;  %v3036_v59 = vmul.f32 %v3013_v4, %v6206_v9 }
 0x501   : > { %3052 = vrot.lane.b32.xlu1 %v3036_v59, %s4152_s17 }
 0x502   : > { %v3015_v47 = vpop.permute.xlu1 %3014 }
 0x503   : > { %v3037_v40 = vmul.f32 %v3015_v47, %v6207_v25 }
 0x505   : > { %3054 = vrot.lane.b32.xlu1 %v3037_v40, %s4152_s17 }
 0x506   : > { %v3017_v32 = vpop.permute.xlu1 %3016 }
 0x507   : > { %v3038_v44 = vmul.f32 %v3017_v32, %v4766_v2 }
 0x509   : > { %3103 = vrot.lane.b32.xlu1 %v5605_v11, %s4152_s17 }
 0x50a   : > { %v3019_v35 = vpop.permute.xlu1 %3018 }
 0x50d   : > { %3105 = vrot.lane.b32.xlu1 %v5542_v17, %s4152_s17 }
 0x50e   : > { %v3021_v60 = vpop.permute.xlu1 %3020 }
 0x50f   : > { %v3040_v11 = vmul.f32 %v3021_v60, %v4853_v0 }
 0x511   : > { %3154 = vrot.lane.b32.xlu1 %v5401_v34, %s4152_s17 }
 0x515   : > { %3056 = vrot.lane.b32.xlu1 %v3038_v44, %s4152_s17 }
 0x519   : > { %3158 = vrot.lane.b32.xlu1 %v5442_v62, %s4152_s17 }
 0x51d   : > { %3109 = vrot.lane.b32.xlu1 %v5557_v22, %s4152_s17 }
 0x521   : > { %3060 = vrot.lane.b32.xlu1 %v3040_v11, %s4152_s17 }
 0x525   : > { %3162 = vrot.lane.b32.xlu1 %v5474_v51, %s4152_s17 }
 0x529   : > { %3113 = vrot.lane.b32.xlu1 %v5566_v15, %s4152_s17 }
 0x52c   : > { %s5706_s21 = spop %3988 }
 0x52d   : > { %s5708_s22 = spop %3990 }
 0x52e   : > { %s3993_s23 = spop %3992 }
 0x52f   : > { %v2759_v34 = vstv %s3993_s23  ;;  %s3995_s24 = spop %3994 }
 0x530   : > { %v2761_v62 = vmul.f32 %v5585_v33, %v2759_v34  ;;  %v2818_v17 = vstv %s3995_s24  ;;  %s3997_s25 = spop %3996  ;;  %v3039_v33 = vmul.f32 %v3019_v35, %v4847_v37 }
 0x531   : > { %v2820_v22 = vmul.f32 %v5589_v29, %v2818_v17  ;;  %v2877_v26 = vstv %s3997_s25  ;;  %v3023_v29 = vpop.permute.xlu1 %3022 }
 0x532   : > { %v2879_v51 = vmul.f32 %v5593_v36, %v2877_v26  ;;  %v3041_v36 = vmul.f32 %v3023_v29, %v4859_v61 }
 0x533   : > { %v2880_v15 = vsel %vm2535_vm8, %v2761_v62, %v2820_v22 }
 0x534   : > { %v2881_v63 = vsel %vm2537_vm9, %v2880_v15, %v2879_v51 }
 0x535   : > { %v2882_v38 = vmul.f32 %v2881_v63, %v5598_v19 }
 0x537   : > { %v2883_v20 = vsel %vm2541_vm10, %v2882_v38, -inf }
 0x538   : > { %2884 = vmax.xlane.f32.xlu0 %v2883_v20 }
 0x54e   : > { %3024 = vrot.lane.b32.xlu0 %v6208_v43, %s4151_s16 }
 0x552   : > { %3156 = vrot.lane.b32.xlu0 %v5417_v6, %s4152_s17  ;;  %v3027_v6 = vpop.permute.xlu1 %3026 }
 0x556   : > { %3107 = vrot.lane.b32.xlu0 %v5615_v8, %s4152_s17 }
 0x55a   : > { %3058 = vrot.lane.b32.xlu0 %v3039_v33, %s4152_s17 }
 0x55e   : > { %3160 = vrot.lane.b32.xlu0 %v5458_v27, %s4152_s17  ;;  %v3043_v27 = vmul.f32 %v3027_v6, %v6209_v45 }
 0x562   : > { %3111 = vrot.lane.b32.xlu0 %v5624_v50, %s4152_s17 }
 0x566   : > { %3062 = vrot.lane.b32.xlu0 %v3041_v36, %s4152_s17 }
 0x56a   : > { %3164 = vrot.lane.b32.xlu0 %v5489_v41, %s4152_s17 }
 0x56e   : > { %3115 = vrot.lane.b32.xlu0 %v5633_v42, %s4152_s17 }
 0x572   : > { %3166 = vrot.lane.b32.xlu0 %v5497_v53, %s4152_s17 }
 0x573   : > { %v3053_v8 = vpop.permute.xlu1 %3052 }
 0x574   : > { %v3076_v10 = vsel %vm572_vm0, %v3053_v8, 0.0 }
 0x576   : > { %3066 = vrot.lane.b32.xlu0 %v3043_v27, %s4152_s17 }
 0x577   : > { %v3055_v50 = vpop.permute.xlu1 %3054 }
 0x578   : > { %v3077_v49 = vsel %vm572_vm0, %v3055_v50, 0.0 }
 0x579   : > { %v3078_v21 = vadd.f32 %v3077_v49, %v3076_v10 }
 0x57a   : > { %3117 = vrot.lane.b32.xlu0 %v5577_v46, %s4152_s17 }
 0x57b   : > { %v3104_v41 = vpop.permute.xlu1 %3103 }
 0x57c   : > { %v3127_v44 = vsel %vm572_vm0, %v3104_v41, 0.0 }
 0x57e   : > { %3168 = vrot.lane.b32.xlu0 %v5516_v52, %s4152_s17 }
 0x57f   : > { %v3106_v42 = vpop.permute.xlu1 %3105 }
 0x580   : > { %v3128_v40 = vsel %vm572_vm0, %v3106_v42, 0.0 }
 0x581   : > { %v3129_v60 = vadd.f32 %v3128_v40, %v3127_v44 }
 0x583   : > { %v3155_v53 = vpop.permute.xlu1 %3154 }
 0x584   : > { %v3178_v22 = vsel %vm572_vm0, %v3155_v53, 0.0 }
 0x587   : > { %v3057_v55 = vpop.permute.xlu1 %3056 }
 0x588   : > { %v3079_v54 = vsel %vm572_vm0, %v3057_v55, 0.0 }
 0x589   : > { %v3080_v12 = vadd.f32 %v3079_v54, %v3078_v21 }
 0x58b   : > { %v3159_v5 = vpop.permute.xlu1 %3158 }
 0x58c   : > { %v3181_v33 = vsel %vm572_vm0, %v3159_v5, 0.0 }
 0x58f   : > { %v3110_v18 = vpop.permute.xlu1 %3109 }
 0x590   : > { %v3132_v15 = vsel %vm572_vm0, %v3110_v18, 0.0 }
 0x593   : > { %v3061_v3 = vpop.permute.xlu1 %3060 }
 0x594   : > { %v3083_v31 = vsel %vm572_vm0, %v3061_v3, 0.0 }
 0x597   : > { %v3163_v34 = vpop.permute.xlu1 %3162 }
 0x598   : > { %v3185_v42 = vsel %vm572_vm0, %v3163_v34, 0.0 }
 0x59b   : > { %v3114_v36 = vpop.permute.xlu1 %3113 }
 0x59c   : > { %v3136_v49 = vsel %vm572_vm0, %v3114_v36, 0.0 }
 0x5c1   : > { %v2885_v57 = vpop.xlane.xlu0 %2884 }
 0x5c2   : > { %v2886_v48 = vsub.f32 %v2882_v38, %v2885_v57 }
 0x5c4   : > { %v2887_v56 = vmul.f32 1.442695, %v2886_v48 }
 0x5c5   : > { %v3025_v23 = vpop.permute.xlu0 %3024 }
 0x5c6   : > { %v3042_v7 = vmul.f32 %v3025_v23, %v6208_v43  ;;  %4127 = vpow2.f32 %v2887_v56 }
 0x5c8   : > { %3064 = vrot.lane.b32.xlu1 %v3042_v7, %s4152_s17 }
 0x5c9   : > { %v3157_v58 = vpop.permute.xlu0 %3156 }
 0x5ca   : > { %v3179_v11 = vsel %vm572_vm0, %v3157_v58, 0.0 }
 0x5cb   : > { %v3180_v26 = vadd.f32 %v3179_v11, %v3178_v22 }
 0x5cd   : > { %v3108_v46 = vpop.permute.xlu0 %3107  ;;  %v3182_v6 = vadd.f32 %v3181_v33, %v3180_v26 }
 0x5ce   : > { %v3130_v35 = vsel %vm572_vm0, %v3108_v46, 0.0 }
 0x5cf   : > { %v3131_v62 = vadd.f32 %v3130_v35, %v3129_v60 }
 0x5d1   : > { %v3059_v1 = vpop.permute.xlu0 %3058  ;;  %v3133_v38 = vadd.f32 %v3132_v15, %v3131_v62 }
 0x5d2   : > { %v3081_v52 = vsel %vm572_vm0, %v3059_v1, 0.0 }
 0x5d3   : > { %v3082_v14 = vadd.f32 %v3081_v52, %v3080_v12  ;;  %v4128_v51 = vpop.eup %4127 }
 0x5d4   : > { %v2889_v27 = vsel %vm2541_vm10, %v4128_v51, 0.0 }
 0x5d5   : > { %v3161_v28 = vpop.permute.xlu0 %3160  ;;  %v3084_v16 = vadd.f32 %v3083_v31, %v3082_v14 }
 0x5d6   : > { %v3183_v29 = vsel %vm572_vm0, %v3161_v28, 0.0 }
 0x5d7   : > { %v3184_v50 = vadd.f32 %v3183_v29, %v3182_v6 }
 0x5d9   : > { %v3112_v13 = vpop.permute.xlu0 %3111  ;;  %v3186_v55 = vadd.f32 %v3185_v42, %v3184_v50 }
 0x5da   : > { %v3134_v63 = vsel %vm572_vm0, %v3112_v13, 0.0 }
 0x5db   : > { %v3135_v8 = vadd.f32 %v3134_v63, %v3133_v38 }
 0x5dd   : > { %v3063_v4 = vpop.permute.xlu0 %3062  ;;  %v3137_v41 = vadd.f32 %v3136_v49, %v3135_v8 }
 0x5de   : > { %v3085_v59 = vsel %vm572_vm0, %v3063_v4, 0.0 }
 0x5df   : > { %v3086_v47 = vadd.f32 %v3085_v59, %v3084_v16 }
 0x5e1   : > { %v3165_v32 = vpop.permute.xlu0 %3164 }
 0x5e2   : > { %v3187_v53 = vsel %vm572_vm0, %v3165_v32, 0.0 }
 0x5e3   : > { %v3188_v23 = vadd.f32 %v3187_v53, %v3186_v55 }
 0x5e5   : > { %v3116_v17 = vpop.permute.xlu0 %3115 }
 0x5e6   : > { %v3138_v21 = vsel %vm572_vm0, %v3116_v17, 0.0 }
 0x5e7   : > { %v3139_v54 = vadd.f32 %v3138_v21, %v3137_v41 }
 0x5e9   : > { %v3167_v20 = vpop.permute.xlu0 %3166 }
 0x5ea   : > { %v3189_v57 = vsel %vm572_vm0, %v3167_v20, 0.0 }
 0x5eb   : > { %v3190_v58 = vadd.f32 %v3189_v57, %v3188_v23  ;;  %v2568_v23 = vstv %s5706_s21 }
 0x5ec   : > { %2890 = vadd.xlane.f32.xlu1 %v2889_v27 }
 0x5ed   : > { %v3067_v10 = vpop.permute.xlu0 %3066 }
 0x5ee   : > { %v3089_v14 = vsel %vm572_vm0, %v3067_v10, 0.0 }
 0x5f1   : > { %v3118_v12 = vpop.permute.xlu0 %3117 }
 0x5f2   : > { %v3140_v5 = vsel %vm572_vm0, %v3118_v12, 0.0 }
 0x5f3   : > { %v3141_v7 = vadd.f32 %v3140_v5, %v3139_v54 }
 0x5f5   : > { %3142 = vadd.xlane.f32.xlu1 %v3141_v7  ;;  %v3169_v18 = vpop.permute.xlu0 %3168 }
 0x5f6   : > { %v3191_v46 = vsel %vm572_vm0, %v3169_v18, 0.0  ;;  %v2573_v18 = vmul.f32 %v2568_v23, %v4847_v37 }
 0x5f7   : > { %v3192_v3 = vadd.f32 %v3191_v46, %v3190_v58  ;;  %v2570_v58 = vmul.f32 %v2568_v23, %v6206_v9  ;;  %v2571_v46 = vmul.f32 %v2568_v23, %v6207_v25 }
 0x5f9   : > { %3193 = vadd.xlane.f32.xlu1 %v3192_v3 }
 0x63a   : > { %v3065_v1 = vpop.permute.xlu1 %3064 }
 0x63b   : > { %v3087_v52 = vsel %vm572_vm0, %v3065_v1, 0.0 }
 0x63c   : > { %v3088_v48 = vadd.f32 %v3087_v52, %v3086_v47  ;;  %v4135_v52 = vld [vmem:[%s6148_s6] sm:$0x3] }
 0x63e   : > { %v3090_v31 = vadd.f32 %v3089_v14, %v3088_v48  ;;  %v6210_v48 = vld [vmem:[#allocation12_spill] sm:$0xff] }
 0x63f   : > { %v2031_v14 = vrot.slane %v4135_v52, %v6210_v48 }
 0x640   : > { %3091 = vadd.xlane.f32.xlu0 %v3090_v31  ;;  %v2621_v31 = vstv %s5708_s22 }
 0x675   : > { %v2891_v28 = vpop.xlane.xlu1 %2890 }
 0x676   : > { %4129 = vrcp.f32 %v2891_v28  ;;  %v6211_v28 = vld [vmem:[#allocation17_spill] sm:$0xff] }
 0x67e   : > { %v3143_v13 = vpop.xlane.xlu1 %3142 }
 0x67f   : > { %v3144_v32 = vrot.slane %v3143_v13, 4 }
 0x681   : > { %v3145_v35 = vadd.f32 %v3144_v32, %v3143_v13  ;;  %v2572_v13 = vmul.f32 %v2568_v23, %v4766_v2  ;;  %v6212_v32 = vld [vmem:[#allocation16_spill] sm:$0xff] }
 0x682   : > { %v3194_v59 = vpop.xlane.xlu1 %3193 }
 0x683   : > { %v4130_v16 = vpop.eup %4129  ;;  %v3195_v44 = vrot.slane %v3194_v59, 4  ;;  %v3146_v34 = vrot.slane %v3145_v35, 2 }
 0x684   : > { %v2893_v56 = vmul.f32 %v4130_v16, %v4128_v51  ;;  %v5805_v16 = vadd.f32 %v2031_v14, %v6211_v28 }
 0x685   : > { %v3196_v60 = vadd.f32 %v3195_v44, %v3194_v59  ;;  %v3147_v22 = vadd.f32 %v3146_v34, %v3145_v35  ;;  %v5817_v44 = vadd.f32 %v2031_v14, %v6212_v32 }
 0x686   : > { %3998 = vpush %v2893_v56  ;;  %2959 = vrot.lane.b32.xlu0 %v2893_v56, %s4153_s7  ;;  %2906 = vrot.lane.b32.xlu1 %v2893_v56, %s4154_s18  ;;  %v2624_v56 = vmul.f32 %v2621_v31, %v5805_v16 }
 0x687   : > { %v3197_v62 = vrot.slane %v3196_v60, 2  ;;  %v3148_v15 = vrot.slane %v3147_v22, 1 }
 0x689   : > { %v3198_v26 = vadd.f32 %v3197_v62, %v3196_v60  ;;  %v3149_v29 = vadd.f32 %v3148_v15, %v3147_v22  ;;  %v2626_v60 = vmul.f32 %v2621_v31, %v5817_v44 }
 0x68b   : > { %v3199_v63 = vrot.slane %v3198_v26, 1 }
 0x68d   : > { %v3200_v36 = vadd.f32 %v3199_v63, %v3198_v26  ;;  %v2575_v26 = vmul.f32 %v2568_v23, %v4859_v61 }
 0x6b7   : > { %s5772_s26 = spop %3998 }
 0x6c9   : > { %v3092_v4 = vpop.xlane.xlu0 %3091 }
 0x6ca   : > { %v3093_v40 = vrot.slane %v3092_v4, 4 }
 0x6cc   : > { %v3094_v47 = vadd.f32 %v3093_v40, %v3092_v4 }
 0x6ce   : > { %v3095_v11 = vrot.slane %v3094_v47, 2 }
 0x6d0   : > { %v3096_v17 = vadd.f32 %v3095_v11, %v3094_v47  ;;  %v6213_v47 = vld [vmem:[#allocation18_spill] sm:$0xff] }
 0x6d1   : > { %v5820_v35 = vadd.f32 %v2031_v14, %v6213_v47 }
 0x6d2   : > { %v3097_v51 = vrot.slane %v3096_v17, 1 }
 0x6d3   : > { %v2623_v11 = vmul.f32 %v2621_v31, %v5820_v35 }
 0x6d4   : > { %v3098_v33 = vadd.f32 %v3097_v51, %v3096_v17  ;;  %v6214_v17 = vld [vmem:[#allocation19_spill] sm:$0xff] }
 0x6d5   : > { %v5831_v22 = vadd.f32 %v2031_v14, %v6214_v17 }
 0x6d7   : > { %v2625_v51 = vmul.f32 %v2621_v31, %v5831_v22 }
 0x6f8   : > { %v2907_v38 = vpop.permute.xlu1 %2906  ;;  %v2960_v20 = vpop.permute.xlu0 %2959 }
 0x6f9   : > { %4000 = vpush %v2907_v38  ;;  %v2577_v38 = vmul.f32 %v2568_v23, %v6209_v45 }
 0x6fa   : > { %4002 = vpush %v2960_v20  ;;  %v2574_v20 = vmul.f32 %v2568_v23, %v4853_v0 }
 0x6fb   : > { %4004 = vpush %v3098_v33 }
 0x6fc   : > { %4006 = vpush %v3149_v29 }
 0x6fd   : > { %4008 = vpush %v3200_v36  ;;  %v6215_v36 = vld [vmem:[#allocation21_spill] sm:$0xff] }
 0x72a   : > { %s4001_s28 = spop %4000 }
 0x72b   : > { %s5774_s29 = spop %4002  ;;  %v2909_v7 = vstv %s4001_s28 }
 0x72c   : > { %s4005_s23 = spop %4004  ;;  %v2914_v3 = vmul.f32 %v2909_v7, %v4847_v37  ;;  %v2911_v1 = vmul.f32 %v2909_v7, %v6206_v9  ;;  %v2962_v4 = vstv %s5774_s29  ;;  %v2913_v40 = vmul.f32 %v2909_v7, %v4766_v2  ;;  %s482_s29 = scalar_lea.vmem %s6155_s13, %s4248_s19 }
 0x72d   : > { %v3100_v6 = vstv %s4005_s23  ;;  %s4007_s24 = spop %4006  ;;  %v2965_v59 = vmul.f32 %v2962_v4, %v5805_v16  ;;  %v2967_v34 = vmul.f32 %v2962_v4, %v5817_v44  ;;  %v2964_v62 = vmul.f32 %v2962_v4, %v5820_v35 }
 0x72e   : > { %v3102_v8 = vmul.f32 %v5587_v39, %v3100_v6  ;;  %v3151_v27 = vstv %s4007_s24  ;;  %s4009_s25 = spop %4008  ;;  %v2916_v15 = vmul.f32 %v2909_v7, %v4859_v61  ;;  %v2966_v63 = vmul.f32 %v2962_v4, %v5831_v22 }
 0x72f   : > { %v3153_v50 = vmul.f32 %v5591_v24, %v3151_v27  ;;  %v3202_v10 = vstv %s4009_s25  ;;  %v2918_v33 = vmul.f32 %v2909_v7, %v6209_v45  ;;  %v2915_v29 = vmul.f32 %v2909_v7, %v4853_v0 }
 0x730   : > { %v3204_v49 = vmul.f32 %v5595_v30, %v3202_v10  ;;  %v5850_v6 = vadd.f32 %v2031_v14, %v6215_v36  ;;  %v2576_v27 = vmul.f32 %v2568_v23, %v6208_v43  ;;  %v2917_v10 = vmul.f32 %v2909_v7, %v6208_v43 }
 0x731   : > { %v3205_v21 = vsel %vm2535_vm8, %v3102_v8, %v3153_v50 }
 0x732   : > { %v3206_v41 = vsel %vm2537_vm9, %v3205_v21, %v3204_v49  ;;  %v2628_v8 = vmul.f32 %v2621_v31, %v5850_v6  ;;  %v2969_v50 = vmul.f32 %v2962_v4, %v5850_v6  ;;  %v6216_v49 = vld [vmem:[#allocation22_spill] sm:$0xff] }
 0x733   : > { %v3207_v42 = vmul.f32 %v3206_v41, %v5598_v19  ;;  %v2912_v19 = vmul.f32 %v2909_v7, %v6207_v25  ;;  %v5861_v21 = vadd.f32 %v2031_v14, %v6216_v49  ;;  %v6217_v41 = vld [vmem:[#allocation23_spill] sm:$0xff] }
 0x735   : > { %v3208_v53 = vsel %vm2541_vm10, %v3207_v42, -inf }
 0x736   : > { %3209 = vmax.xlane.f32.xlu1 %v3208_v53  ;;  %v2630_v53 = vmul.f32 %v2621_v31, %v5861_v21 }
 0x7bf   : > { %v3210_v55 = vpop.xlane.xlu1 %3209 }
 0x7c0   : > { %v3211_v54 = vsub.f32 %v3207_v42, %v3210_v55  ;;  %v5864_v42 = vadd.f32 %v2031_v14, %v6217_v41 }
 0x7c2   : > { %v3212_v39 = vmul.f32 1.442695, %v3211_v54  ;;  %v2627_v55 = vmul.f32 %v2621_v31, %v5864_v42  ;;  %v2971_v54 = vmul.f32 %v2962_v4, %v5861_v21 }
 0x7c4   : > { %4131 = vpow2.f32 %v3212_v39  ;;  %v2968_v39 = vmul.f32 %v2962_v4, %v5864_v42 }
 0x7d1   : > { %v4132_v12 = vpop.eup %4131 }
 0x7d2   : > { %v3214_v24 = vsel %vm2541_vm10, %v4132_v12, 0.0 }
 0x7d3   : > { %3215 = vadd.xlane.f32.xlu0 %v3214_v24 }
 0x85c   : > { %v3216_v57 = vpop.xlane.xlu0 %3215 }
 0x85d   : > { %4133 = vrcp.f32 %v3216_v57 }
 0x86a   : > { %v4134_v30 = vpop.eup %4133 }
 0x86b   : > { %v3218_v5 = vmul.f32 %v4134_v30, %v4132_v12  ;;  %v6218_v12 = vld [vmem:[#allocation24_spill] sm:$0xff] }
 0x86c   : > { %v5875_v24 = vadd.f32 %v2031_v14, %v6218_v12 }
 0x86d   : > { %3284 = vrot.lane.b32.xlu0 %v3218_v5, %s4153_s7  ;;  %3231 = vrot.lane.b32.xlu1 %v3218_v5, %s4154_s18  ;;  %4010 = vpush %v3218_v5 }
 0x86e   : > { %v2629_v57 = vmul.f32 %v2621_v31, %v5875_v24  ;;  %v2970_v30 = vmul.f32 %v2962_v4, %v5875_v24 }
 0x871   : > { %2929 = vrot.lane.b32.xlu0 %v2912_v19, %s4151_s16  ;;  %2586 = vrot.lane.b32.xlu1 %v2570_v58, %s4151_s16 }
 0x875   : > { %2592 = vrot.lane.b32.xlu0 %v2573_v18, %s4151_s16  ;;  %2588 = vrot.lane.b32.xlu1 %v2571_v46, %s4151_s16 }
 0x879   : > { %2933 = vrot.lane.b32.xlu0 %v2914_v3, %s4151_s16  ;;  %2927 = vrot.lane.b32.xlu1 %v2911_v1, %s4151_s16 }
 0x87d   : > { %2641 = vrot.lane.b32.xlu0 %v2624_v56, %s4152_s17  ;;  %2590 = vrot.lane.b32.xlu1 %v2572_v13, %s4151_s16 }
 0x881   : > { %2982 = vrot.lane.b32.xlu0 %v2965_v59, %s4152_s17  ;;  %2931 = vrot.lane.b32.xlu1 %v2913_v40, %s4151_s16  ;;  %v5914_v40 = vstv %s5704_s20 }
 0x885   : > { %2645 = vrot.lane.b32.xlu0 %v2626_v60, %s4152_s17  ;;  %2639 = vrot.lane.b32.xlu1 %v2623_v11, %s4152_s17  ;;  %v2564_v60 = vmul.f32 %v5914_v40, %v6209_v45  ;;  %v5923_v11 = vstv %s5772_s26 }
 0x889   : > { %2986 = vrot.lane.b32.xlu0 %v2967_v34, %s4152_s17  ;;  %2980 = vrot.lane.b32.xlu1 %v2964_v62, %s4152_s17 }
 0x88d   : > { %2596 = vrot.lane.b32.xlu0 %v2575_v26, %s4151_s16  ;;  %2643 = vrot.lane.b32.xlu1 %v2625_v51, %s4152_s17  ;;  %v2905_v26 = vmul.f32 %v5923_v11, %v6209_v45 }
 0x891   : > { %2937 = vrot.lane.b32.xlu0 %v2916_v15, %s4151_s16  ;;  %2984 = vrot.lane.b32.xlu1 %v2966_v63, %s4152_s17 }
 0x895   : > { %2600 = vrot.lane.b32.xlu0 %v2577_v38, %s4151_s16  ;;  %2594 = vrot.lane.b32.xlu1 %v2574_v20, %s4151_s16  ;;  %v2563_v38 = vmul.f32 %v5914_v40, %v6208_v43 }
 0x899   : > { %2941 = vrot.lane.b32.xlu0 %v2918_v33, %s4151_s16  ;;  %2935 = vrot.lane.b32.xlu1 %v2915_v29, %s4151_s16 }
 0x89d   : > { %2649 = vrot.lane.b32.xlu0 %v2628_v8, %s4152_s17  ;;  %2598 = vrot.lane.b32.xlu1 %v2576_v27, %s4151_s16  ;;  %v2904_v8 = vmul.f32 %v5923_v11, %v6208_v43 }
 0x89e   : > { %s5935_s20 = spop %4010 }
 0x8a1   : > { %2990 = vrot.lane.b32.xlu0 %v2969_v50, %s4152_s17  ;;  %2939 = vrot.lane.b32.xlu1 %v2917_v10, %s4151_s16 }
 0x8a5   : > { %2653 = vrot.lane.b32.xlu0 %v2630_v53, %s4152_s17  ;;  %2647 = vrot.lane.b32.xlu1 %v2627_v55, %s4152_s17 }
 0x8a9   : > { %2994 = vrot.lane.b32.xlu0 %v2971_v54, %s4152_s17  ;;  %2988 = vrot.lane.b32.xlu1 %v2968_v39, %s4152_s17 }
 0x8ad   : > { %2651 = vrot.lane.b32.xlu1 %v2629_v57, %s4152_s17 }
 0x8b1   : > { %2992 = vrot.lane.b32.xlu1 %v2970_v30, %s4152_s17 }
 0x8df   : > { %v3285_v5 = vpop.permute.xlu0 %3284  ;;  %v3232_v23 = vpop.permute.xlu1 %3231 }
 0x8e0   : > { %4012 = vpush %v3232_v23 }
 0x8e1   : > { %4014 = vpush %v3285_v5 }
 0x8e3   : > { %v5881_v7 = vpop.permute.xlu0 %2929  ;;  %v5883_v19 = vpop.permute.xlu1 %2586 }
 0x8e7   : > { %v5885_v58 = vpop.permute.xlu0 %2592  ;;  %v5887_v18 = vpop.permute.xlu1 %2588 }
 0x8eb   : > { %v5889_v46 = vpop.permute.xlu0 %2933  ;;  %v5891_v3 = vpop.permute.xlu1 %2927 }
 0x8ef   : > { %v5893_v1 = vpop.permute.xlu0 %2641  ;;  %v5895_v52 = vpop.permute.xlu1 %2590 }
 0x8f3   : > { %v5897_v48 = vpop.permute.xlu0 %2982  ;;  %v5899_v14 = vpop.permute.xlu1 %2931 }
 0x8f7   : > { %v5901_v31 = vpop.permute.xlu0 %2645  ;;  %v5903_v28 = vpop.permute.xlu1 %2639 }
 0x8fb   : > { %v5905_v56 = vpop.permute.xlu0 %2986  ;;  %v5907_v13 = vpop.permute.xlu1 %2980 }
 0x8ff   : > { %v5909_v4 = vpop.permute.xlu0 %2596  ;;  %v5911_v59 = vpop.permute.xlu1 %2643 }
 0x903   : > { %v5916_v32 = vpop.permute.xlu0 %2937  ;;  %v5918_v47 = vpop.permute.xlu1 %2984 }
 0x907   : > { %v2601_v34 = vpop.permute.xlu0 %2600  ;;  %v5925_v62 = vpop.permute.xlu1 %2594 }
 0x908   : > { %v2617_v17 = vadd.f32 %v2601_v34, %v2564_v60 }
 0x90b   : > { %v2942_v51 = vpop.permute.xlu0 %2941  ;;  %v5929_v15 = vpop.permute.xlu1 %2935 }
 0x90c   : > { %v2958_v63 = vadd.f32 %v2942_v51, %v2905_v26 }
 0x90f   : > { %v5933_v20 = vpop.permute.xlu0 %2649  ;;  %v2599_v33 = vpop.permute.xlu1 %2598 }
 0x910   : > { %v2616_v29 = vadd.f32 %v2599_v33, %v2563_v38 }
 0x911   : > { %s4013_s21 = spop %4012 }
 0x912   : > { %v3234_v36 = vstv %s4013_s21  ;;  %s4015_s22 = spop %4014 }
 0x913   : > { %v2940_v27 = vpop.permute.xlu1 %2939  ;;  %v3237_v50 = vmul.f32 %v3234_v36, %v6207_v25  ;;  %v3236_v10 = vmul.f32 %v3234_v36, %v6206_v9  ;;  %v5941_v41 = vpop.permute.xlu0 %2990  ;;  %v3239_v55 = vmul.f32 %v3234_v36, %v4847_v37  ;;  %v3238_v54 = vmul.f32 %v3234_v36, %v4766_v2 }
 0x914   : > { %v2957_v49 = vadd.f32 %v2940_v27, %v2904_v8  ;;  %v3287_v39 = vstv %s4015_s22  ;;  %v3241_v33 = vmul.f32 %v3234_v36, %v4859_v61  ;;  %v3240_v8 = vmul.f32 %v3234_v36, %v4853_v0 }
 0x915   : > { %3254 = vrot.lane.b32.xlu0 %v3237_v50, %s4151_s16  ;;  %3252 = vrot.lane.b32.xlu1 %v3236_v10, %s4151_s16  ;;  %v3290_v30 = vmul.f32 %v3287_v39, %v5805_v16  ;;  %v3289_v5 = vmul.f32 %v3287_v39, %v5820_v35  ;;  %v3292_v60 = vmul.f32 %v3287_v39, %v5817_v44 }
 0x916   : > { %v3291_v34 = vmul.f32 %v3287_v39, %v5831_v22  ;;  %v3242_v27 = vmul.f32 %v3234_v36, %v6208_v43  ;;  %v2898_v50 = vmul.f32 %v5923_v11, %v6206_v9  ;;  %v3294_v10 = vmul.f32 %v3287_v39, %v5850_v6 }
 0x917   : > { %v5945_v53 = vpop.permute.xlu1 %2647  ;;  %v2654_v12 = vpop.permute.xlu0 %2653 }
 0x918   : > { %v5959_v26 = vadd.f32 %v2654_v12, %v2617_v17  ;;  %v2951_v12 = vadd.f32 %v5891_v3, %v2898_v50  ;;  %v3296_v3 = vmul.f32 %v3287_v39, %v5861_v21 }
 0x919   : > { %3258 = vrot.lane.b32.xlu0 %v3239_v55, %s4151_s16  ;;  %3256 = vrot.lane.b32.xlu1 %v3238_v54, %s4151_s16  ;;  %v2899_v55 = vmul.f32 %v5923_v11, %v6207_v25 }
 0x91b   : > { %v5951_v57 = vpop.permute.xlu1 %2988  ;;  %v2995_v38 = vpop.permute.xlu0 %2994 }
 0x91c   : > { %v5969_v44 = vadd.f32 %v2995_v38, %v2958_v63  ;;  %v2557_v63 = vmul.f32 %v5914_v40, %v6206_v9 }
 0x91d   : > { %3307 = vrot.lane.b32.xlu0 %v3290_v30, %s4152_s17  ;;  %3305 = vrot.lane.b32.xlu1 %v3289_v5, %s4152_s17  ;;  %v2952_v30 = vadd.f32 %v5881_v7, %v2899_v55  ;;  %v2900_v5 = vmul.f32 %v5923_v11, %v4766_v2  ;;  %v2901_v7 = vmul.f32 %v5923_v11, %v4847_v37 }
 0x91e   : > { %v2610_v54 = vadd.f32 %v5883_v19, %v2557_v63  ;;  %v3004_v19 = vadd.f32 %v5907_v13, %v2951_v12  ;;  %v2561_v13 = vmul.f32 %v5914_v40, %v4853_v0  ;;  %v4106_v12 = vld [vmem:[%s6150_s8] sm:$0xff]  }
 0x91f   : > { %v2652_v23 = vpop.permute.xlu1 %2651 }
 0x920   : > { %v5961_v51 = vadd.f32 %v2652_v23, %v2616_v29  ;;  %v3243_v29 = vmul.f32 %v3234_v36, %v6209_v45  ;;  %v2558_v36 = vmul.f32 %v5914_v40, %v6207_v25  ;;  %v2663_v23 = vadd.f32 %v5903_v28, %v2610_v54 }
 0x921   : > { %3311 = vrot.lane.b32.xlu0 %v3292_v60, %s4152_s17  ;;  %3309 = vrot.lane.b32.xlu1 %v3291_v34, %s4152_s17  ;;  %v3295_v60 = vmul.f32 %v3287_v39, %v5875_v24  ;;  %v2560_v34 = vmul.f32 %v5914_v40, %v4847_v37  ;;  %v2953_v28 = vadd.f32 %v5899_v14, %v2900_v5 }
 0x922   : > { %v4070_v16 = vpack.i.bf16 %v5959_v26, %v5961_v51  ;;  %v2611_v6 = vadd.f32 %v5887_v18, %v2558_v36 }
 0x923   : > { %v2993_v35 = vpop.permute.xlu1 %2992  ;;  %v2613_v21 = vadd.f32 %v5885_v58, %v2560_v34 }
 0x924   : > { %v5971_v22 = vadd.f32 %v2993_v35, %v2957_v49  ;;  %v3293_v49 = vmul.f32 %v3287_v39, %v5864_v42  ;;  %v2559_v42 = vmul.f32 %v5914_v40, %v4766_v2  ;;  %v2664_v38 = vadd.f32 %v5893_v1, %v2611_v6  ;;  %v4104_v1 = vld [vmem:[%s6150_s8 + $0x10] sm:$0xff]  }
 0x925   : > { %3262 = vrot.lane.b32.xlu0 %v3241_v33, %s4151_s16  ;;  %3260 = vrot.lane.b32.xlu1 %v3240_v8, %s4151_s16  ;;  %v3005_v35 = vadd.f32 %v5897_v48, %v2952_v30  ;;  %v2954_v48 = vadd.f32 %v5889_v46, %v2901_v7  ;;  %v3006_v33 = vadd.f32 %v5918_v47, %v2953_v28 }
 0x926   : > { %v4080_v17 = vpack.i.bf16 %v5969_v44, %v5971_v22  ;;  %v2612_v18 = vadd.f32 %v5895_v52, %v2559_v42  ;;  %v2902_v52 = vmul.f32 %v5923_v11, %v4853_v0  ;;  %v4035_v14 = vpack.i.bf16 %v2664_v38, %v2663_v23  ;;  %3926 = vmatprep.subr.bf16.mxu1 %v4104_v1 }
 0x927   : > { %v4040_v39 = vpack.i.bf16 %v3005_v35, %v3004_v19  ;;  %v2666_v58 = vadd.f32 %v5901_v31, %v2613_v21  ;;  %v2903_v8 = vmul.f32 %v5923_v11, %v4859_v61  ;;  %3927 = vmatpush3.bf16.msra.mxu1 %v4104_v1 }
 0x928   : > { %v2665_v24 = vadd.f32 %v5911_v59, %v2612_v18  ;;  %v2562_v59 = vmul.f32 %v5914_v40, %v4859_v61  ;;  %v2955_v63 = vadd.f32 %v5929_v15, %v2902_v52 }
 0x929   : > { %3266 = vrot.lane.b32.xlu0 %v3243_v29, %s4151_s16  ;;  %3264 = vrot.lane.b32.xlu1 %v3242_v27, %s4151_s16  ;;  %v3007_v29 = vadd.f32 %v5905_v56, %v2954_v48  ;;  %v2614_v27 = vadd.f32 %v5925_v62, %v2561_v13  ;;  %v2956_v40 = vadd.f32 %v5916_v32, %v2903_v8 }
 0x92a   : > { %v2615_v46 = vadd.f32 %v5909_v4, %v2562_v59  ;;  %v4045_v31 = vpack.i.bf16 %v2666_v58, %v2665_v24  ;;  %v3008_v56 = vadd.f32 %v5951_v57, %v2955_v63  ;;  %v3221_v57 = vstv %s5935_s20 }
 0x92b   : > { %v4050_v47 = vpack.i.bf16 %v3007_v29, %v3006_v33  ;;  %v2667_v11 = vadd.f32 %v5945_v53, %v2614_v27  ;;  %v3009_v15 = vadd.f32 %v5941_v41, %v2956_v40  ;;  %v4105_v53 = vld [vmem:[%s6150_s8 + $0x8] sm:$0xff]   ;;  %v3223_v55 = vmul.f32 %v3221_v57, %v6206_v9 }
 0x92c   : > { %v2668_v62 = vadd.f32 %v5933_v20, %v2615_v46  ;;  %3928 = vmatprep.subr.bf16.mxu1 %v4105_v53  ;;  %v3226_v42 = vmul.f32 %v3221_v57, %v4847_v37  ;;  %v3225_v5 = vmul.f32 %v3221_v57, %v4766_v2  ;;  %v3228_v21 = vmul.f32 %v3221_v57, %v4859_v61 }
 0x92d   : > { %3315 = vrot.lane.b32.xlu0 %v3294_v10, %s4152_s17  ;;  %3313 = vrot.lane.b32.xlu1 %v3293_v49, %s4152_s17  ;;  %v4060_v4 = vpack.i.bf16 %v3009_v15, %v3008_v56  ;;  %v3224_v49 = vmul.f32 %v3221_v57, %v6207_v25  ;;  %v3227_v24 = vmul.f32 %v3221_v57, %v4853_v0 }
 0x92e   : > { %v4055_v50 = vpack.i.bf16 %v2668_v62, %v2667_v11  ;;  %3929 = vmatpush3.bf16.msra.mxu1 %v4105_v53  ;;  %v3230_v26 = vmul.f32 %v3221_v57, %v6209_v45  ;;  %v3229_v51 = vmul.f32 %v3221_v57, %v6208_v43 }
 0x92f   : > { %3930 = vmatprep.subr.bf16.mxu1 %v4106_v12 }
 0x931   : > { %3319 = vrot.lane.b32.xlu0 %v3296_v3, %s4152_s17  ;;  %3317 = vrot.lane.b32.xlu1 %v3295_v60, %s4152_s17 }
 0x932   : > { %3931 = vmatpush3.bf16.msra.mxu1 %v4106_v12 }
 0x935   : > { %4036 = vrot.lane.b32.xlu1 %v4035_v14, %s4146_s30  ;;  %4041 = vrot.lane.b32.xlu0 %v4040_v39, %s4150_s15 }
 0x939   : > { %4046 = vrot.lane.b32.xlu1 %v4045_v31, %s4146_s30  ;;  %4051 = vrot.lane.b32.xlu0 %v4050_v47, %s4150_s15 }
 0x93d   : > { %4056 = vrot.lane.b32.xlu1 %v4055_v50, %s4146_s30  ;;  %4061 = vrot.lane.b32.xlu0 %v4060_v4, %s4150_s15 }
 0x987   : > { %v3255_v32 = vpop.permute.xlu0 %3254  ;;  %v3253_v10 = vpop.permute.xlu1 %3252 }
 0x988   : > { %v3277_v36 = vadd.f32 %v3255_v32, %v3224_v49  ;;  %v3276_v54 = vadd.f32 %v3253_v10, %v3223_v55 }
 0x98b   : > { %v3259_v20 = vpop.permute.xlu0 %3258  ;;  %v3257_v41 = vpop.permute.xlu1 %3256 }
 0x98c   : > { %v3279_v3 = vadd.f32 %v3259_v20, %v3226_v42  ;;  %v3278_v25 = vadd.f32 %v3257_v41, %v3225_v5 }
 0x98f   : > { %v3308_v30 = vpop.permute.xlu0 %3307  ;;  %v3306_v6 = vpop.permute.xlu1 %3305 }
 0x990   : > { %v3330_v23 = vadd.f32 %v3308_v30, %v3277_v36  ;;  %v3329_v19 = vadd.f32 %v3306_v6, %v3276_v54 }
 0x992   : > { %v4065_v60 = vpack.i.bf16 %v3330_v23, %v3329_v19 }
 0x993   : > { %v3312_v9 = vpop.permute.xlu0 %3311  ;;  %v3310_v34 = vpop.permute.xlu1 %3309 }
 0x994   : > { %v3332_v7 = vadd.f32 %v3312_v9, %v3279_v3  ;;  %v3331_v18 = vadd.f32 %v3310_v34, %v3278_v25  ;;  %4066 = vrot.lane.b32.xlu1 %v4065_v60, %s4149_s14 }
 0x996   : > { %v4075_v38 = vpack.i.bf16 %v3332_v7, %v3331_v18 }
 0x997   : > { %v3263_v35 = vpop.permute.xlu0 %3262  ;;  %v3261_v28 = vpop.permute.xlu1 %3260 }
 0x998   : > { %4071 = vrot.lane.b32.xlu1 %v4070_v16, %s4146_s30  ;;  %4076 = vrot.lane.b32.xlu0 %v4075_v38, %s4149_s14  ;;  %v3281_v13 = vadd.f32 %v3263_v35, %v3228_v21  ;;  %v3280_v52 = vadd.f32 %v3261_v28, %v3227_v24 }
 0x99b   : > { %v3267_v2 = vpop.permute.xlu0 %3266  ;;  %v3265_v37 = vpop.permute.xlu1 %3264 }
 0x99c   : > { %4081 = vrot.lane.b32.xlu0 %v4080_v17, %s4150_s15  ;;  %v3283_v39 = vadd.f32 %v3267_v2, %v3230_v26  ;;  %v3282_v33 = vadd.f32 %v3265_v37, %v3229_v51 }
 0x99f   : > { %v3316_v1 = vpop.permute.xlu0 %3315  ;;  %v3314_v48 = vpop.permute.xlu1 %3313 }
 0x9a0   : > { %v3334_v16 = vadd.f32 %v3316_v1, %v3281_v13  ;;  %v3333_v14 = vadd.f32 %v3314_v48, %v3280_v52 }
 0x9a2   : > { %v4085_v61 = vpack.i.bf16 %v3334_v16, %v3333_v14 }
 0x9a3   : > { %v3320_v58 = vpop.permute.xlu0 %3319  ;;  %v3318_v0 = vpop.permute.xlu1 %3317 }
 0x9a4   : > { %v3336_v59 = vadd.f32 %v3320_v58, %v3283_v39  ;;  %v3335_v8 = vadd.f32 %v3318_v0, %v3282_v33  ;;  %4086 = vrot.lane.b32.xlu1 %v4085_v61, %s4149_s14  ;;  %v4107_v39 = vld [vmem:[%s6152_s10 + $0x10] sm:$0xff]   ;;  %v4108_v33 = vld [vmem:[%s6152_s10 + $0x8] sm:$0xff]   ;;  %v4109_v61 = vld [vmem:[%s6152_s10] sm:$0xff]  }
 0x9a5   : > { %3940 = vmatprep.subr.bf16.mxu1 %v4107_v39  ;;  %v4110_v58 = vld [vmem:[%s6153_s11] sm:$0xff]  }
 0x9a6   : > { %v4090_v44 = vpack.i.bf16 %v3336_v59, %v3335_v8  ;;  %3954 = vmatprep.subr.bf16.mxu0 %v4110_v58  ;;  %v3880_v8 = vld [vmem:[%s6151_s9] ss:$0 sm:$0xff] }
 0x9a7   : > { %v4037_v22 = vpop.permute.xlu1 %4036  ;;  %v4042_v17 = vpop.permute.xlu0 %4041  ;;  %3955 = vmatpush3.bf16.msra.mxu0 %v4110_v58 }
 0x9a8   : > { %4091 = vrot.lane.b32.xlu0 %v4090_v44, %s4149_s14  ;;  %v4044_v43 = vunpack.i.h.bf16 %v4042_v17  ;;  %v4043_v63 = vunpack.i.l.bf16 %v4042_v17  ;;  %v4039_v46 = vunpack.i.h.bf16 %v4037_v22  ;;  %v4038_v31 = vunpack.i.l.bf16 %v4037_v22 }
 0x9aa   : > { %v3433_v62 = vsel %vm572_vm0, %v4038_v31, %v4043_v63  ;;  %v3434_v15 = vsel %vm572_vm0, %v4039_v46, %v4044_v43  ;;  %v6219_v43 = vld [vmem:[#allocation6_spill] sm:$0xff]  ;;  %v6220_v46 = vld [vmem:[#allocation4_spill] sm:$0xff] }
 0x9ab   : > { %v4047_v29 = vpop.permute.xlu1 %4046  ;;  %v4052_v45 = vpop.permute.xlu0 %4051 }
 0x9ac   : > { %v4054_v50 = vunpack.i.h.bf16 %v4052_v45  ;;  %v4053_v4 = vunpack.i.l.bf16 %v4052_v45  ;;  %v4049_v32 = vunpack.i.h.bf16 %v4047_v29  ;;  %v4048_v10 = vunpack.i.l.bf16 %v4047_v29 }
 0x9ae   : > { %v3436_v36 = vsel %vm572_vm0, %v4049_v32, %v4054_v50  ;;  %v3435_v54 = vsel %vm572_vm0, %v4048_v10, %v4053_v4 }
 0x9af   : > { %v4057_v27 = vpop.permute.xlu1 %4056  ;;  %v4062_v40 = vpop.permute.xlu0 %4061 }
 0x9b0   : > { %v4064_v5 = vunpack.i.h.bf16 %v4062_v40  ;;  %v4063_v23 = vunpack.i.l.bf16 %v4062_v40  ;;  %v4059_v19 = vunpack.i.h.bf16 %v4057_v27  ;;  %v4058_v3 = vunpack.i.l.bf16 %v4057_v27  ;;  %v6221_v40 = vld [vmem:[#allocation5_spill] sm:$0xff] }
 0x9b2   : > { %v3438_v7 = vsel %vm572_vm0, %v4059_v19, %v4064_v5  ;;  %v3437_v18 = vsel %vm572_vm0, %v4058_v3, %v4063_v23 }
 0xa06   : > { %v4067_v47 = vpop.permute.xlu1 %4066 }
 0xa07   : > { %v4069_v11 = vunpack.i.h.bf16 %v4067_v47  ;;  %v4068_v56 = vunpack.i.l.bf16 %v4067_v47 }
 0xa09   : > { %v3441_v53 = vsel %vm581_vm1, %v3433_v62, %v4068_v56  ;;  %v3442_v57 = vsel %vm581_vm1, %v3434_v15, %v4069_v11  ;;  %v6222_v11 = vld [vmem:[#allocation7_spill] sm:$0xff] }
 0xa0a   : > { %v4077_v20 = vpop.permute.xlu0 %4076  ;;  %v3455_v41 = vpack.c.bf16 %v3442_v57, %v3441_v53  ;;  %v4072_v42 = vpop.permute.xlu1 %4071 }
 0xa0b   : > { %v4079_v49 = vunpack.i.h.bf16 %v4077_v20  ;;  %v4078_v55 = vunpack.i.l.bf16 %v4077_v20  ;;  %v4074_v37 = vunpack.i.h.bf16 %v4072_v42  ;;  %v4073_v21 = vunpack.i.l.bf16 %v4072_v42 }
 0xa0c   : > { %3932 = vmatprep.mubr.msk.bf16.mxu1 %vm642_vm2, %v3455_v41 }
 0xa0d   : > { %v3443_v12 = vsel %vm581_vm1, %v3435_v54, %v4078_v55  ;;  %v3444_v30 = vsel %vm581_vm1, %v3436_v36, %v4079_v49  ;;  %v6223_v49 = vld [vmem:[#allocation10_spill] sm:$0xff]  ;;  %v6224_v36 = vld [vmem:[#allocation9_spill] sm:$0xff] }
 0xa0e   : > { %v3456_v6 = vpack.c.bf16 %v3444_v30, %v3443_v12  ;;  %v4082_v25 = vpop.permute.xlu0 %4081  ;;  %v6225_v12 = vld [vmem:[#allocation8_spill] sm:$0xff] }
 0xa0f   : > { %v4084_v38 = vunpack.i.h.bf16 %v4082_v25  ;;  %v4083_v35 = vunpack.i.l.bf16 %v4082_v25 }
 0xa10   : > { %3933 = vmatmul.mubr.msk.bf16.vlgmr.msra.gmra.mxu1 %vm642_vm2, %v3456_v6  ;;  %v6226_v6 = vld [vmem:[#allocation11_spill] sm:$0xff] }
 0xa11   : > { %v3439_v48 = vsel %vm572_vm0, %v4073_v21, %v4083_v35  ;;  %v3440_v26 = vsel %vm572_vm0, %v4074_v37, %v4084_v38  ;;  %3941 = vmatpush3.bf16.msra.mxu1 %v4107_v39  ;;  %v3895_v37 = vld [vmem:[%s6154_s12] ss:$0 sm:$0xff] }
 0xa12   : > { %3942 = vmatprep.subr.bf16.mxu1 %v4108_v33 }
 0xa15   : > { %3943 = vmatpush3.bf16.msra.mxu1 %v4108_v33 }
 0xa16   : > { %v4087_v60 = vpop.permute.xlu1 %4086  ;;  %3944 = vmatprep.subr.bf16.mxu1 %v4109_v61 }
 0xa17   : > { %v4089_v9 = vunpack.i.h.bf16 %v4087_v60  ;;  %v4088_v34 = vunpack.i.l.bf16 %v4087_v60 }
 0xa19   : > { %v3445_v28 = vsel %vm581_vm1, %v3437_v18, %v4088_v34  ;;  %v3446_v2 = vsel %vm581_vm1, %v3438_v7, %v4089_v9  ;;  %3945 = vmatpush3.bf16.msra.mxu1 %v4109_v61 }
 0xa1a   : > { %v3457_v24 = vpack.c.bf16 %v3446_v2, %v3445_v28  ;;  %v4092_v13 = vpop.permute.xlu0 %4091  ;;  %3964 = vmatprep.subr.bf16.mxu1 %v4110_v58 }
 0xa1b   : > { %v4094_v52 = vunpack.i.h.bf16 %v4092_v13  ;;  %v4093_v1 = vunpack.i.l.bf16 %v4092_v13 }
 0xa1c   : > { %3936 = vmatprep.mubr.msk.bf16.mxu1 %vm642_vm2, %v3457_v24 }
 0xa1d   : > { %v3447_v51 = vsel %vm581_vm1, %v3439_v48, %v4093_v1  ;;  %v3448_v16 = vsel %vm581_vm1, %v3440_v26, %v4094_v52 }
 0xa1e   : > { %v3458_v14 = vpack.c.bf16 %v3448_v16, %v3447_v51 }
 0xa20   : > { %3937 = vmatmul.mubr.msk.bf16.gmra.mxu1 %vm642_vm2, %v3458_v14 }
 0xad0   : > { %v3934_v0 = vpop.f32.mrf.mxu1 }
 0xad1   : > { %v3539_v29 = vadd.f32 %v3934_v0, %v3880_v8 }
 0xad2   : > { %v3530_v59 = vpop.f32.mrf.mxu1 }
 0xad3   : > { %v3531_v22 = vadd.f32 %v3880_v8, %v3530_v59  ;;  %v3563_v56 = vadd.f32 %v3539_v29, %v6222_v11 }
 0xad4   : > { %v3935_v44 = vpop.f32.mrf.mxu1 }
 0xad5   : > { %v3542_v17 = vadd.f32 %v3935_v44, %v3880_v8  ;;  %v3561_v31 = vadd.f32 %v3531_v22, %v6220_v46 }
 0xad6   : > { %v3533_v45 = vpop.f32.mrf.mxu1 }
 0xad7   : > { %v3534_v27 = vadd.f32 %v3880_v8, %v3533_v45  ;;  %v3564_v63 = vadd.f32 %v3542_v17, %v6219_v43 }
 0xad9   : > { %v3562_v47 = vadd.f32 %v3534_v27, %v6221_v40  ;;  %v3576_v15 = vpack.c.bf16 %v3564_v63, %v3563_v56 }
 0xadb   : > { %v3575_v62 = vpack.c.bf16 %v3562_v47, %v3561_v31 }
 0xadd   : > { %3946 = vmatprep.mubr.msk.bf16.mxu1 %vm642_vm2, %v3575_v62 }
 0xade   : > { %3947 = vmatmul.mubr.msk.bf16.vlgmr.msra.gmra.mxu1 %vm642_vm2, %v3576_v15 }
 0xadf   : > { %3965 = vmatpush3.bf16.msra.mxu1 %v4110_v58 }
 0xae0   : > { %v3938_v50 = vpop.f32.mrf.mxu1 }
 0xae1   : > { %v3555_v57 = vadd.f32 %v3938_v50, %v3880_v8 }
 0xae2   : > { %v3546_v4 = vpop.f32.mrf.mxu1 }
 0xae3   : > { %v3547_v10 = vadd.f32 %v3880_v8, %v3546_v4  ;;  %v3567_v42 = vadd.f32 %v3555_v57, %v6226_v6 }
 0xae4   : > { %v3939_v32 = vpop.f32.mrf.mxu1 }
 0xae5   : > { %v3558_v53 = vadd.f32 %v3939_v32, %v3880_v8  ;;  %v3565_v54 = vadd.f32 %v3547_v10, %v6224_v36 }
 0xae6   : > { %v3549_v20 = vpop.f32.mrf.mxu1 }
 0xae7   : > { %v3550_v41 = vadd.f32 %v3880_v8, %v3549_v20  ;;  %v3568_v55 = vadd.f32 %v3558_v53, %v6223_v49 }
 0xae9   : > { %v3566_v30 = vadd.f32 %v3550_v41, %v6225_v12  ;;  %v3578_v23 = vpack.c.bf16 %v3568_v55, %v3567_v42 }
 0xaeb   : > { %v3577_v5 = vpack.c.bf16 %v3566_v30, %v3565_v54 }
 0xaed   : > { %3950 = vmatprep.mubr.msk.bf16.mxu1 %vm642_vm2, %v3577_v5 }
 0xaee   : > { %3951 = vmatmul.mubr.msk.bf16.gmra.mxu1 %vm642_vm2, %v3578_v23 }
 0xb9e   : > { %v3948_v19 = vpop.f32.mrf.mxu1 }
 0xba0   : > { %v3643_v3 = vpop.f32.mrf.mxu1 }
 0xba2   : > { %v3949_v25 = vpop.f32.mrf.mxu1 }
 0xba3   : > { %v3677_v34 = vpack.c.bf16 %v3949_v25, %v3948_v19 }
 0xba4   : > { %v3646_v60 = vpop.f32.mrf.mxu1 }
 0xba5   : > { %v3676_v9 = vpack.c.bf16 %v3646_v60, %v3643_v3 }
 0xba7   : > { %3956 = vmatprep.mubr.msk.bf16.mxu0 %vm572_vm0, %v3676_v9 }
 0xba8   : > { %3957 = vmatmul.mubr.msk.bf16.vlgmr.msra.gmra.mxu0 %vm572_vm0, %v3677_v34 }
 0xbae   : > { %v3952_v7 = vpop.f32.mrf.mxu1 }
 0xbb0   : > { %v3659_v18 = vpop.f32.mrf.mxu1 }
 0xbb2   : > { %v3953_v38 = vpop.f32.mrf.mxu1 }
 0xbb3   : > { %v3679_v2 = vpack.c.bf16 %v3953_v38, %v3952_v7 }
 0xbb4   : > { %v3662_v35 = vpop.f32.mrf.mxu1 }
 0xbb5   : > { %v3678_v28 = vpack.c.bf16 %v3662_v35, %v3659_v18 }
 0xbb7   : > { %3960 = vmatprep.mubr.msk.bf16.mxu1 %vm572_vm0, %v3678_v28 }
 0xbb8   : > { %3961 = vmatmul.mubr.msk.bf16.vlgmr.msra.gmra.mxu1 %vm572_vm0, %v3679_v2 }
 0xc68   : > { %v3958_v21 = vpop.f32.mrf.mxu0 }
 0xc69   : > { %v3748_v24 = vadd.f32 %v3958_v21, %v3895_v37 }
 0xc6a   : > { %v3739_v13 = vpop.f32.mrf.mxu0 }
 0xc6b   : > { %3772 = vst.msk [vmem:[%s482_s29 + $0x10] sm:$0xff] %vm572_vm0, %v3748_v24  ;;  %v3740_v52 = vadd.f32 %v3895_v37, %v3739_v13 }
 0xc6c   : > { %v3959_v1 = vpop.f32.mrf.mxu0 }
 0xc6d   : > { %3770 = vst.msk [vmem:[%s482_s29] sm:$0xff] %vm572_vm0, %v3740_v52  ;;  %v3751_v48 = vadd.f32 %v3959_v1, %v3895_v37 }
 0xc6e   : > { %v3742_v26 = vpop.f32.mrf.mxu0 }
 0xc6f   : > { %3773 = vst.msk [vmem:[%s482_s29 + $0x18] sm:$0xff] %vm572_vm0, %v3751_v48  ;;  %v3743_v51 = vadd.f32 %v3895_v37, %v3742_v26 }
 0xc71   : > { %3771 = vst.msk [vmem:[%s482_s29 + $0x8] sm:$0xff] %vm572_vm0, %v3743_v51 }
 0xc78   : > { %v3962_v16 = vpop.f32.mrf.mxu1 }
 0xc79   : > { %v3764_v14 = vadd.f32 %v3962_v16, %v3895_v37 }
 0xc7a   : > { %v3755_v39 = vpop.f32.mrf.mxu1 }
 0xc7b   : > { %3776 = vst.msk [vmem:[%s482_s29 + $0x30] sm:$0xff] %vm572_vm0, %v3764_v14  ;;  %v3756_v33 = vadd.f32 %v3895_v37, %v3755_v39 }
 0xc7c   : > { %v3963_v61 = vpop.f32.mrf.mxu1 }
 0xc7d   : > { %3774 = vst.msk [vmem:[%s482_s29 + $0x20] sm:$0xff] %vm572_vm0, %v3756_v33  ;;  %v3767_v58 = vadd.f32 %v3963_v61, %v3895_v37 }
 0xc7e   : > { %v3758_v0 = vpop.f32.mrf.mxu1 }
 0xc7f   : > { %3777 = vst.msk [vmem:[%s482_s29 + $0x38] sm:$0xff] %vm572_vm0, %v3767_v58  ;;  %v3759_v59 = vadd.f32 %v3895_v37, %v3758_v0 }
 0xc81   : > { %3775 = vst.msk [vmem:[%s482_s29 + $0x28] sm:$0xff] %vm572_vm0, %v3759_v59 }
 0xc82 PF: > { %s25_s27 = sadd.s32 1, %s4142_s27  }
 0xc83   : > { %p22_p4 = scmp.ge.s32.totalorder %s25_s27, 4  }
 0xc85   :  { %24 = sbr.rel (!%p22_p4) target bundleno = 3 (0x3), region = 109 }

// kernel: block_forward.5
= control target key start
LH: loop header
LB: loop body
LE: loop exit
PB: predicated region body
PF: predicated region fallthrough
CT: control target
= control target key end

     0   :  { %s7132_s0 = inlined_call_operand.vmem [shape: f32[2,64,16], index: 0, kind: input, shape index: {}]   ;;  %s7133_s1 = inlined_call_operand.vmem [shape: f32[2,64,16], index: 1, kind: input, shape index: {}]   ;;  %s7134_s2 = inlined_call_operand.vmem [shape: f32[2,8,128], index: 2, kind: input, shape index: {}]   ;;  %s7135_s3 = inlined_call_operand.vmem [shape: f32[1,16], index: 3, kind: input, shape index: {}]   ;;  %s7136_s4 = inlined_call_operand.vmem [shape: f32[1,16], index: 4, kind: input, shape index: {}]   ;;  %s7137_s5 = inlined_call_operand.vmem [shape: bf16[16,64], index: 5, kind: input, shape index: {}]   ;;  %s7138_s6 = inlined_call_operand.vmem [shape: bf16[128,64], index: 6, kind: input, shape index: {}]   ;;  %s7139_s7 = inlined_call_operand.vmem [shape: bf16[128,64], index: 7, kind: input, shape index: {}]   ;;  %s7140_s8 = inlined_call_operand.vmem [shape: bf16[64,16], index: 8, kind: input, shape index: {}]   ;;  %s7141_s9 = inlined_call_operand.vmem [shape: f32[1,16], index: 9, kind: input, shape index: {}]   ;;  %s7142_s10 = inlined_call_operand.vmem [shape: bf16[16,64], index: 10, kind: input, shape index: {}]   ;;  %s7143_s11 = inlined_call_operand.vmem [shape: f32[1,64], index: 11, kind: input, shape index: {}]   ;;  %s7144_s12 = inlined_call_operand.vmem [shape: bf16[16,64], index: 12, kind: input, shape index: {}]   ;;  %s7145_s13 = inlined_call_operand.vmem [shape: f32[1,64], index: 13, kind: input, shape index: {}]   ;;  %s7146_s14 = inlined_call_operand.vmem [shape: bf16[64,16], index: 14, kind: input, shape index: {}]   ;;  %s7147_s15 = inlined_call_operand.vmem [shape: f32[1,16], index: 15, kind: input, shape index: {}]   ;;  %s7148_s16 = inlined_call_operand.vmem [shape: bf16[16,16], index: 16, kind: input, shape index: {}]   ;;  %s7149_s17 = inlined_call_operand.vmem [shape: f32[1,16], index: 17, kind: input, shape index: {}]   ;;  %s7150_s18 = inlined_call_operand.hbm [shape: f32[2,64,16], index: 18, kind: output, shape index: {}]  }
   0x1   :  { %7189 = sst [smem:[#allocation29_spill]] %s7132_s0 }
   0x2   :  { %7190 = sst [smem:[#allocation30_spill]] %s7133_s1 }
   0x3   :  { %7191 = sst [smem:[#allocation31_spill]] %s7134_s2 }
   0x4   :  { %7192 = sst [smem:[#allocation32_spill]] %s7135_s3 }
   0x5   :  { %23 = vsyncpa [#allocation3], 0 }
   0x6   :  { %25 = vsyncpa [#allocation3 + $0x1], 0  ;;  %s5650_s27 = smov 0   ;;  %s5652_s28 = smov 0  }
   0x7   :  { %s5654_s29 = smov 0   ;;  %s5656_s30 = smov 0  }
   0x8 LB: > { %7193 = sst [smem:[#allocation5_spill]] %s5531_s29  ;;  %s5671_s0 = sadd.s32 4294967295, %s5535_s30   ;;  %s5535_s30 = sphi %s5656_s30, %s7268_s30   ;;  %s5531_s29 = sphi %s5654_s29, %s7270_s29   ;;  %s5527_s28 = sphi %s5652_s28, %s7272_s28   ;;  %s5523_s27 = sphi %s5650_s27, %s7271_s27  }
   0x9   : > { %s4371_s19 = sadd.s32 4294967294, %s5535_s30   ;;  %s5675_s1 = sadd.s32 1, %s5535_s30  }
   0xa   : > { %7194 = sst [smem:[#allocation6_spill]] %s5675_s1  ;;  %s431_s20 = sadd.s32 1, %s5531_s29 }
   0xb   : > { %s428_s21 = ssub.s32 %s5535_s30, %s5675_s1  ;;  %p441_p0 = scmp.ne.s32.totalorder %s5531_s29, %s5527_s28 }
   0xc   : > { %p429_p1 = scmp.eq.s32.totalorder %s428_s21, 0  ;;  %p442_p2 = scmp.eq.s32.totalorder %s5671_s0, 1 }
   0xd   : > { %p447_p3 = scmp.ne.s32.totalorder %s5527_s28, %s5523_s27  ;;  %p448_p4 = scmp.eq.s32.totalorder %s4371_s19, 1 }
   0xe   : > { %s5686_s22 = scalar_select %p429_p1, %s5531_s29, %s431_s20  }
   0xf   : > { %p5688_p5 = por %p442_p2, %p441_p0  ;;  %p5692_p6 = por %p448_p4, %p447_p3 }
  0x10   : > { %7195 = sst [smem:[#allocation7_spill]] %s5686_s22  ;;  %p4374_p7 = scmp.ge.s32.totalorder %s5535_s30, 1 }
  0x11   : > { %s7197_s23 = scalar_select %p5692_p6, 1, 0 }
  0x12   : > { %p534_p8 = scmp.lt.s32.totalorder %s5535_s30, 3 }
  0x13   : > { %7198 = sst [smem:[#allocation8_spill]] %s7197_s23 }
  0x14   : > { %p535_p9 = pnand %p4374_p7, %p534_p8 }
  0x16   : > { %538 = sbr.rel (%p535_p9) target bundleno = 2832 (0xb10), region = 92 }
  0x1b   : > { %p597_p10 = scmp.lt.s32.totalorder %s5671_s0, 1  ;;  %vm629_vm0 = vcmask 130048   ;;  %s7199_s20 = sld [smem:[#allocation29_spill]]  ;;  %v5133_v16 = vld [vmem:[%s7138_s6 + $0x38] sm:$0xff]   ;;  %v5537_v17 = vmov 0.0   ;;  %v5134_v57 = vld [vmem:[%s7138_s6 + $0x30] sm:$0xff]  }
  0x1c   : > { %4656 = vmatprep.subr.bf16.mxu1 %v5537_v17  ;;  %v5135_v59 = vld [vmem:[%s7138_s6 + $0x28] sm:$0xff]   ;;  %v5136_v60 = vld [vmem:[%s7138_s6 + $0x20] sm:$0xff]   ;;  %v5137_v61 = vld [vmem:[%s7138_s6 + $0x18] sm:$0xff]   ;;  %vm5538_vm1 = vmmov 0   ;;  %s7200_s19 = sld [smem:[#allocation31_spill]]  ;;  %vm1068_vm2 = vcmask 64512  }
  0x1d   : > { %s5700_s24 = scalar_select %p597_p10, %s5671_s0, 1  ;;  %4657 = vmatpush3.bf16.msra.mxu1 %v5133_v16  ;;  %v5138_v62 = vld [vmem:[%s7138_s6 + $0x10] sm:$0xff]   ;;  %v5139_v63 = vld [vmem:[%s7138_s6 + $0x8] sm:$0xff]   ;;  %4672 = vmatprep.mubr.msk.bf16.mxu1 %vm5538_vm1, %v5537_v17  ;;  %vm1262_vm3 = vcmask 1043456   ;;  %vm3481_vm4 = vcmask 195584   ;;  %vm3490_vm5 = vcmask 261120  }
  0x1e   : > { %4658 = vmatprep.subr.bf16.mxu1 %v5537_v17  ;;  %s7201_s3 = sld [smem:[#allocation32_spill]]  ;;  %s5539_s23 = smov 120   ;;  %vm3499_vm6 = vcmask 326656   ;;  %vm3508_vm7 = vcmask 392192   ;;  %vm3517_vm8 = vcmask 457728   ;;  %vm3569_vm9 = vcmask 523264  }
  0x1f   : > { %s7151_s25 = sshll.u32 %s5700_s24, 6  ;;  %s4380_s1 = sshll.u32 %s5700_s24, 3 }
  0x20   : > { %s5543_s22 = smov 88   ;;  %s5545_s26 = smov 72  }
  0x21   : > { %s5708_s21 = scalar_lea.vmem %s7199_s20, %s7151_s25  ;;  %4659 = vmatpush3.bf16.msra.mxu1 %v5134_v57  ;;  %s5540_s25 = smov 112  }
  0x22   : > { %v612_v0 = vld [vmem:[%s5708_s21] sm:$0xff]  ;;  %v614_v1 = vld [vmem:[%s5708_s21 + $0x10] sm:$0xff]  ;;  %v613_v2 = vld [vmem:[%s5708_s21 + $0x8] sm:$0xff]  ;;  %4660 = vmatprep.subr.bf16.mxu1 %v5537_v17  ;;  %s610_s29 = scalar_lea.vmem %s7200_s19, %s4380_s1  ;;  %s5541_s19 = smov 104  }
  0x23   : > { %v630_v3 = vsel %vm629_vm0, %v612_v0, 0.0  ;;  %v636_v4 = vsel %vm629_vm0, %v614_v1, 0.0  ;;  %v615_v5 = vld [vmem:[%s5708_s21 + $0x18] sm:$0xff]  ;;  %v616_v6 = vld [vmem:[%s5708_s21 + $0x20] sm:$0xff]  ;;  %v617_v7 = vld [vmem:[%s5708_s21 + $0x28] sm:$0xff]  ;;  %v633_v8 = vsel %vm629_vm0, %v613_v2, 0.0 }
  0x24   : > { %631 = vadd.xlane.f32.xlu0 %v630_v3  ;;  %637 = vadd.xlane.f32.xlu1 %v636_v4  ;;  %v639_v9 = vsel %vm629_vm0, %v615_v5, 0.0  ;;  %v642_v10 = vsel %vm629_vm0, %v616_v6, 0.0  ;;  %v645_v11 = vsel %vm629_vm0, %v617_v7, 0.0  ;;  %v618_v12 = vld [vmem:[%s5708_s21 + $0x30] sm:$0xff]  ;;  %v619_v13 = vld [vmem:[%s5708_s21 + $0x38] sm:$0xff]  ;;  %s5544_s20 = smov 80  }
  0x25   : > { %v648_v14 = vsel %vm629_vm0, %v618_v12, 0.0  ;;  %v651_v15 = vsel %vm629_vm0, %v619_v13, 0.0  ;;  %4661 = vmatpush3.bf16.msra.mxu1 %v5135_v59  ;;  %s7188_s1 = smov 8  }
  0x26   : > { %4662 = vmatprep.subr.bf16.mxu1 %v5537_v17 }
  0x28   : > { %634 = vadd.xlane.f32.xlu0 %v633_v8  ;;  %640 = vadd.xlane.f32.xlu1 %v639_v9 }
  0x29   : > { %4663 = vmatpush3.bf16.msra.mxu1 %v5136_v60 }
  0x2a   : > { %4664 = vmatprep.subr.bf16.mxu1 %v5537_v17 }
  0x2c   : > { %643 = vadd.xlane.f32.xlu0 %v642_v10  ;;  %646 = vadd.xlane.f32.xlu1 %v645_v11 }
  0x2d   : > { %4665 = vmatpush3.bf16.msra.mxu1 %v5137_v61 }
  0x2e   : > { %4666 = vmatprep.subr.bf16.mxu1 %v5537_v17 }
  0x30   : > { %649 = vadd.xlane.f32.xlu0 %v648_v14  ;;  %652 = vadd.xlane.f32.xlu1 %v651_v15 }
  0x31   : > { %4667 = vmatpush3.bf16.msra.mxu1 %v5138_v62 }
  0x32   : > { %4668 = vmatprep.subr.bf16.mxu1 %v5537_v17 }
  0x35   : > { %4669 = vmatpush3.bf16.msra.mxu1 %v5139_v63 }
  0x36   : > { %4670 = vmatprep.subr.bf16.mxu1 %v5537_v17 }
  0xad   : > { %v632_v18 = vpop.xlane.xlu0 %631  ;;  %v638_v19 = vpop.xlane.xlu1 %637 }
  0xae   : > { %v655_v20 = vmul.f32 0.0625, %v632_v18  ;;  %v657_v21 = vmul.f32 0.0625, %v638_v19 }
  0xb0   : > { %v5731_v22 = vsub.f32 %v612_v0, %v655_v20  ;;  %v5733_v23 = vsub.f32 %v614_v1, %v657_v21  ;;  %v5141_v0 = vld [vmem:[%s7137_s5] sm:$0xff]  }
  0xb1   : > { %v635_v24 = vpop.xlane.xlu0 %634  ;;  %v641_v25 = vpop.xlane.xlu1 %640  ;;  %4646 = vmatprep.subr.bf16.mxu0 %v5141_v0  ;;  %v5140_v1 = vld [vmem:[%s7138_s6] sm:$0xff]  }
  0xb2   : > { %v656_v26 = vmul.f32 0.0625, %v635_v24  ;;  %v658_v27 = vmul.f32 0.0625, %v641_v25  ;;  %v671_v28 = vmul.f32 %v5731_v22, %v5731_v22  ;;  %v673_v29 = vmul.f32 %v5733_v23, %v5733_v23  ;;  %4647 = vmatpush3.bf16.msra.mxu0 %v5141_v0  ;;  %4671 = vmatpush3.bf16.msra.mxu1 %v5140_v1 }
  0xb3   : > { %4676 = vmatprep.subr.bf16.mxu0 %v5537_v17 }
  0xb4   : > { %v5739_v30 = vsub.f32 %v613_v2, %v656_v26  ;;  %v5741_v31 = vsub.f32 %v615_v5, %v658_v27  ;;  %v679_v32 = vsel %vm629_vm0, %v671_v28, 0.0  ;;  %v685_v35 = vsel %vm629_vm0, %v673_v29, 0.0  ;;  %v628_v2 = vld [vmem:[%s610_s29] sm:$0xff]  ;;  %s5542_s29 = smov 96  }
  0xb5   : > { %680 = vadd.xlane.f32.xlu0 %v679_v32  ;;  %v644_v33 = vpop.xlane.xlu0 %643  ;;  %v647_v34 = vpop.xlane.xlu1 %646  ;;  %v5808_v3 = vpack.c.bf16 %v628_v2, %v628_v2 }
  0xb6   : > { %v659_v36 = vmul.f32 0.0625, %v644_v33  ;;  %v660_v37 = vmul.f32 0.0625, %v647_v34  ;;  %v672_v38 = vmul.f32 %v5739_v30, %v5739_v30  ;;  %v674_v39 = vmul.f32 %v5741_v31, %v5741_v31 }
  0xb7   : > { %4673 = vmatmul.mubr.bf16.vlgmr.msra.gmra.mxu1 %v5808_v3 }
  0xb8   : > { %v5749_v40 = vsub.f32 %v616_v6, %v659_v36  ;;  %v5751_v41 = vsub.f32 %v617_v7, %v660_v37  ;;  %v682_v42 = vsel %vm629_vm0, %v672_v38, 0.0  ;;  %v688_v45 = vsel %vm629_vm0, %v674_v39, 0.0 }
  0xb9   : > { %686 = vadd.xlane.f32.xlu0 %v685_v35  ;;  %683 = vadd.xlane.f32.xlu1 %v682_v42  ;;  %v650_v43 = vpop.xlane.xlu0 %649  ;;  %v653_v44 = vpop.xlane.xlu1 %652  ;;  %v4381_v35 = vld [vmem:[%s7201_s3] ss:$0 sm:$0xff] }
  0xba   : > { %v661_v46 = vmul.f32 0.0625, %v650_v43  ;;  %v662_v47 = vmul.f32 0.0625, %v653_v44  ;;  %v675_v48 = vmul.f32 %v5749_v40, %v5749_v40  ;;  %v676_v49 = vmul.f32 %v5751_v41, %v5751_v41  ;;  %v4382_v42 = vld [vmem:[%s7136_s4] ss:$0 sm:$0xff] }
  0xbc   : > { %v5759_v50 = vsub.f32 %v618_v12, %v661_v46  ;;  %v5761_v51 = vsub.f32 %v619_v13, %v662_v47  ;;  %v691_v52 = vsel %vm629_vm0, %v675_v48, 0.0  ;;  %v694_v53 = vsel %vm629_vm0, %v676_v49, 0.0 }
  0xbd   : > { %689 = vadd.xlane.f32.xlu1 %v688_v45  ;;  %692 = vadd.xlane.f32.xlu0 %v691_v52 }
  0xbe   : > { %v677_v54 = vmul.f32 %v5759_v50, %v5759_v50  ;;  %v678_v55 = vmul.f32 %v5761_v51, %v5761_v51 }
  0xc0   : > { %v697_v56 = vsel %vm629_vm0, %v677_v54, 0.0  ;;  %v700_v58 = vsel %vm629_vm0, %v678_v55, 0.0 }
  0xc1   : > { %695 = vadd.xlane.f32.xlu1 %v694_v53  ;;  %698 = vadd.xlane.f32.xlu0 %v697_v56 }
  0xc5   : > { %701 = vadd.xlane.f32.xlu1 %v700_v58 }
 0x13e   : > { %v681_v4 = vpop.xlane.xlu0 %680 }
 0x13f   : > { %v703_v5 = vmul.f32 0.0625, %v681_v4 }
 0x141   : > { %v711_v6 = vadd.f32 1e-05, %v703_v5 }
 0x142   : > { %v684_v7 = vpop.xlane.xlu1 %683  ;;  %v687_v8 = vpop.xlane.xlu0 %686 }
 0x143   : > { %5161 = vrsqrt.f32 %v711_v6  ;;  %v704_v9 = vmul.f32 0.0625, %v684_v7  ;;  %v705_v10 = vmul.f32 0.0625, %v687_v8  ;;  %v5144_v6 = vld [vmem:[%s7139_s7 + $0x28] sm:$0xff]   ;;  %v5145_v7 = vld [vmem:[%s7139_s7 + $0x20] sm:$0xff]   ;;  %v5146_v8 = vld [vmem:[%s7139_s7 + $0x18] sm:$0xff]  }
 0x145   : > { %v712_v11 = vadd.f32 1e-05, %v704_v9  ;;  %v713_v12 = vadd.f32 1e-05, %v705_v10  ;;  %v5147_v9 = vld [vmem:[%s7139_s7 + $0x10] sm:$0xff]   ;;  %v5148_v10 = vld [vmem:[%s7139_s7 + $0x8] sm:$0xff]  }
 0x146   : > { %v690_v13 = vpop.xlane.xlu1 %689  ;;  %v693_v14 = vpop.xlane.xlu0 %692 }
 0x147   : > { %5163 = vrsqrt.f32 %v712_v11  ;;  %v706_v15 = vmul.f32 0.0625, %v690_v13  ;;  %v707_v16 = vmul.f32 0.0625, %v693_v14  ;;  %v5149_v11 = vld [vmem:[%s7139_s7] sm:$0xff]  }
 0x148   : > { %5165 = vrsqrt.f32 %v713_v12 }
 0x149   : > { %v714_v18 = vadd.f32 1e-05, %v706_v15  ;;  %v715_v19 = vadd.f32 1e-05, %v707_v16 }
 0x14a   : > { %v696_v20 = vpop.xlane.xlu1 %695  ;;  %v699_v21 = vpop.xlane.xlu0 %698 }
 0x14b   : > { %5167 = vrsqrt.f32 %v714_v18  ;;  %v708_v24 = vmul.f32 0.0625, %v696_v20  ;;  %v709_v25 = vmul.f32 0.0625, %v699_v21 }
 0x14c   : > { %5169 = vrsqrt.f32 %v715_v19 }
 0x14d   : > { %v716_v26 = vadd.f32 1e-05, %v708_v24  ;;  %v717_v27 = vadd.f32 1e-05, %v709_v25 }
 0x14e   : > { %v702_v28 = vpop.xlane.xlu1 %701 }
 0x14f   : > { %5171 = vrsqrt.f32 %v716_v26  ;;  %v710_v29 = vmul.f32 0.0625, %v702_v28 }
 0x150   : > { %v5162_v32 = vpop.eup %5161  ;;  %5173 = vrsqrt.f32 %v717_v27 }
 0x151   : > { %v718_v33 = vadd.f32 1e-05, %v710_v29  ;;  %v727_v34 = vmul.f32 %v5162_v32, %v5731_v22 }
 0x153   : > { %5175 = vrsqrt.f32 %v718_v33  ;;  %v742_v39 = vmul.f32 %v4381_v35, %v727_v34 }
 0x154   : > { %v5164_v36 = vpop.eup %5163 }
 0x155   : > { %v5166_v37 = vpop.eup %5165  ;;  %v728_v38 = vmul.f32 %v5164_v36, %v5739_v30  ;;  %v757_v22 = vadd.f32 %v4382_v42, %v742_v39 }
 0x156   : > { %v729_v43 = vmul.f32 %v5166_v37, %v5733_v23 }
 0x157   : > { %v743_v44 = vmul.f32 %v4381_v35, %v728_v38 }
 0x158   : > { %v5168_v45 = vpop.eup %5167  ;;  %v744_v49 = vmul.f32 %v4381_v35, %v729_v43 }
 0x159   : > { %v5170_v46 = vpop.eup %5169  ;;  %v758_v47 = vadd.f32 %v4382_v42, %v743_v44  ;;  %v730_v48 = vmul.f32 %v5168_v45, %v5741_v31  ;;  %v5142_v31 = vld [vmem:[%s7139_s7 + $0x38] sm:$0xff]  }
 0x15a   : > { %v731_v52 = vmul.f32 %v5170_v46, %v5749_v40  ;;  %v759_v56 = vadd.f32 %v4382_v42, %v744_v49 }
 0x15b   : > { %v767_v53 = vpack.c.bf16 %v758_v47, %v757_v22  ;;  %v745_v54 = vmul.f32 %v4381_v35, %v730_v48 }
 0x15c   : > { %v5172_v30 = vpop.eup %5171  ;;  %v746_v58 = vmul.f32 %v4381_v35, %v731_v52 }
 0x15d   : > { %v5174_v55 = vpop.eup %5173  ;;  %4648 = vmatprep.mubr.msk.bf16.mxu0 %vm629_vm0, %v767_v53  ;;  %v760_v57 = vadd.f32 %v4382_v42, %v745_v54  ;;  %v732_v23 = vmul.f32 %v5172_v30, %v5751_v41  ;;  %v5143_v41 = vld [vmem:[%s7139_s7 + $0x30] sm:$0xff]  }
 0x15e   : > { %v733_v59 = vmul.f32 %v5174_v55, %v5759_v50  ;;  %v761_v62 = vadd.f32 %v4382_v42, %v746_v58 }
 0x15f   : > { %v768_v60 = vpack.c.bf16 %v760_v57, %v759_v56  ;;  %v747_v61 = vmul.f32 %v4381_v35, %v732_v23 }
 0x160   : > { %v5176_v40 = vpop.eup %5175  ;;  %v748_v1 = vmul.f32 %v4381_v35, %v733_v59 }
 0x161   : > { %4649 = vmatmul.mubr.msk.bf16.vlgmr.msra.gmra.mxu0 %vm629_vm0, %v768_v60  ;;  %v762_v63 = vadd.f32 %v4382_v42, %v747_v61  ;;  %v734_v0 = vmul.f32 %v5176_v40, %v5761_v51 }
 0x162   : > { %4677 = vmatpush3.bf16.msra.mxu0 %v5142_v31  ;;  %v763_v4 = vadd.f32 %v4382_v42, %v748_v1 }
 0x163   : > { %v769_v50 = vpack.c.bf16 %v762_v63, %v761_v62  ;;  %v749_v2 = vmul.f32 %v4381_v35, %v734_v0  ;;  %4678 = vmatprep.subr.bf16.mxu0 %v5537_v17 }
 0x165   : > { %4652 = vmatprep.mubr.msk.bf16.mxu0 %vm629_vm0, %v769_v50  ;;  %v764_v5 = vadd.f32 %v4382_v42, %v749_v2 }
 0x166   : > { %4679 = vmatpush3.bf16.msra.mxu0 %v5143_v41 }
 0x167   : > { %v770_v51 = vpack.c.bf16 %v764_v5, %v763_v4  ;;  %4680 = vmatprep.subr.bf16.mxu0 %v5537_v17 }
 0x169   : > { %4653 = vmatmul.mubr.msk.bf16.gmra.mxu0 %vm629_vm0, %v770_v51 }
 0x16a   : > { %4681 = vmatpush3.bf16.msra.mxu0 %v5144_v6  ;;  %4692 = vmatprep.mubr.msk.bf16.mxu0 %vm5538_vm1, %v5537_v17 }
 0x16b   : > { %4682 = vmatprep.subr.bf16.mxu0 %v5537_v17 }
 0x16e   : > { %4683 = vmatpush3.bf16.msra.mxu0 %v5145_v7 }
 0x16f   : > { %4684 = vmatprep.subr.bf16.mxu0 %v5537_v17 }
 0x172   : > { %4685 = vmatpush3.bf16.msra.mxu0 %v5146_v8 }
 0x173   : > { %4686 = vmatprep.subr.bf16.mxu0 %v5537_v17 }
 0x176   : > { %4687 = vmatpush3.bf16.msra.mxu0 %v5147_v9 }
 0x177   : > { %4688 = vmatprep.subr.bf16.mxu0 %v5537_v17  ;;  %v953_v12 = vpop.f32.mrf.mxu1 }
 0x178   : > { %v5863_v13 = vpack.c.bf16 %v953_v12, %v953_v12 }
 0x179   : > { %v4674_v14 = vpop.f32.mrf.mxu1 }
 0x17a   : > { %4689 = vmatpush3.bf16.msra.mxu0 %v5148_v10  ;;  %v1082_v18 = vsel %vm1068_vm2, %v5863_v13, 0  ;;  %4921 = vmatprep.subr.msk.bf16.mxu1 %vm1068_vm2, %v5863_v13 }
 0x17b   : > { %4690 = vmatprep.subr.bf16.mxu0 %v5537_v17  ;;  %v956_v15 = vpop.f32.mrf.mxu1  ;;  %4919 = vmatpush3.bf16.xpose.msra.mxu1 %v1082_v18 }
 0x17c   : > { %1344 = vrot.lane.b32.xlu0 %v5863_v13, %s5539_s23 }
 0x17d   : > { %v4675_v16 = vpop.f32.mrf.mxu1 }
 0x17e   : > { %4691 = vmatpush3.bf16.msra.mxu0 %v5149_v11 }
 0x17f   : > { %4920 = vmatprep.subr.msk.bf16.mxu0 %vm1068_vm2, %v5863_v13 }
 0x181   : > { %4693 = vmatmul.mubr.bf16.vlgmr.msra.gmra.mxu0 %v5808_v3 }
 0x182   : > { %4697 = vmatpush3.bf16.xpose.msra.mxu0 %v1082_v18 }
 0x1ee   : > { %v1345_v17 = vpop.permute.xlu0 %1344 }
 0x1ef   : > { %4923 = vmatprep.subr.msk.bf16.mxu1 %vm1068_vm2, %v1345_v17  ;;  %v1359_v34 = vsel %vm1068_vm2, %v1345_v17, 0 }
 0x221   : > { %v4650_v3 = vpop.f32.mrf.mxu0 }
 0x223   : > { %v823_v19 = vpop.f32.mrf.mxu0 }
 0x225   : > { %v4651_v20 = vpop.f32.mrf.mxu0 }
 0x226   : > { %v1064_v25 = vpack.c.bf16 %v4651_v20, %v4650_v3 }
 0x227   : > { %v826_v21 = vpop.f32.mrf.mxu0 }
 0x228   : > { %v1063_v24 = vpack.c.bf16 %v826_v21, %v823_v19 }
 0x229   : > { %v4654_v26 = vpop.f32.mrf.mxu0 }
 0x22a   : > { %1335 = vrot.lane.b32.xlu1 %v1063_v24, %s5539_s23  ;;  %4698 = vmatprep.mubr.msk.bf16.mxu0 %vm1068_vm2, %v1063_v24 }
 0x22b   : > { %v839_v27 = vpop.f32.mrf.mxu0  ;;  %4699 = vmatmul.mubr.msk.bf16.vlgmr.msra.gmra.mxu0 %vm1068_vm2, %v1064_v25 }
 0x22d   : > { %v4655_v28 = vpop.f32.mrf.mxu0 }
 0x22e   : > { %v1066_v29 = vpack.c.bf16 %v4655_v28, %v4654_v26  ;;  %1337 = vrot.lane.b32.xlu1 %v1064_v25, %s5539_s23 }
 0x22f   : > { %v842_v32 = vpop.f32.mrf.mxu0 }
 0x230   : > { %v1065_v33 = vpack.c.bf16 %v842_v32, %v839_v27  ;;  %1341 = vrot.lane.b32.xlu0 %v1066_v29, %s5539_s23 }
 0x232   : > { %1339 = vrot.lane.b32.xlu1 %v1065_v33, %s5539_s23  ;;  %4702 = vmatprep.mubr.msk.bf16.mxu1 %vm1068_vm2, %v1065_v33 }
 0x233   : > { %4703 = vmatmul.mubr.msk.bf16.vlgmr.msra.gmra.mxu1 %vm1068_vm2, %v1066_v29 }
 0x234   : > { %1609 = vrot.lane.b32.xlu0 %v1063_v24, %s5540_s25  ;;  %4717 = vmatpush3.bf16.xpose.msra.mxu1 %v1359_v34 }
 0x236   : > { %1617 = vrot.lane.b32.xlu1 %v5863_v13, %s5540_s25 }
 0x238   : > { %1613 = vrot.lane.b32.xlu0 %v1065_v33, %s5540_s25 }
 0x23a   : > { %1611 = vrot.lane.b32.xlu1 %v1064_v25, %s5540_s25 }
 0x23c   : > { %1889 = vrot.lane.b32.xlu0 %v5863_v13, %s5541_s19 }
 0x23e   : > { %1615 = vrot.lane.b32.xlu1 %v1066_v29, %s5540_s25 }
 0x240   : > { %1883 = vrot.lane.b32.xlu0 %v1064_v25, %s5541_s19 }
 0x241   : > { %v1057_v35 = vpop.f32.mrf.mxu0 }
 0x242   : > { %1881 = vrot.lane.b32.xlu1 %v1063_v24, %s5541_s19  ;;  %v5900_v39 = vpack.c.bf16 %v1057_v35, %v1057_v35 }
 0x243   : > { %v4694_v36 = vpop.f32.mrf.mxu0 }
 0x244   : > { %1887 = vrot.lane.b32.xlu0 %v1066_v29, %s5541_s19  ;;  %7202 = vst [vmem:[#allocation9_spill] sm:$0xff] %v5900_v39  ;;  %4922 = vmatprep.subr.msk.bf16.mxu0 %vm1262_vm3, %v5900_v39  ;;  %v1264_v42 = vsel %vm1262_vm3, %v5900_v39, 0 }
 0x245   : > { %v1060_v37 = vpop.f32.mrf.mxu0  ;;  %4707 = vmatpush3.bf16.msra.mxu0 %v1264_v42 }
 0x246   : > { %1885 = vrot.lane.b32.xlu1 %v1065_v33, %s5541_s19 }
 0x247   : > { %v4695_v38 = vpop.f32.mrf.mxu0 }
 0x248   : > { %2153 = vrot.lane.b32.xlu0 %v1063_v24, %s5542_s29 }
 0x24a   : > { %2161 = vrot.lane.b32.xlu1 %v5863_v13, %s5542_s29 }
 0x24c   : > { %2157 = vrot.lane.b32.xlu0 %v1065_v33, %s5542_s29 }
 0x24e   : > { %2155 = vrot.lane.b32.xlu1 %v1064_v25, %s5542_s29 }
 0x250   : > { %2433 = vrot.lane.b32.xlu0 %v5863_v13, %s5543_s22 }
 0x252   : > { %2159 = vrot.lane.b32.xlu1 %v1066_v29, %s5542_s29 }
 0x254   : > { %2427 = vrot.lane.b32.xlu0 %v1064_v25, %s5543_s22 }
 0x256   : > { %2425 = vrot.lane.b32.xlu1 %v1063_v24, %s5543_s22 }
 0x258   : > { %2431 = vrot.lane.b32.xlu0 %v1066_v29, %s5543_s22 }
 0x25a   : > { %2429 = vrot.lane.b32.xlu1 %v1065_v33, %s5543_s22 }
 0x25c   : > { %2697 = vrot.lane.b32.xlu0 %v1063_v24, %s5544_s20 }
 0x25e   : > { %2705 = vrot.lane.b32.xlu1 %v5863_v13, %s5544_s20 }
 0x260   : > { %2701 = vrot.lane.b32.xlu0 %v1065_v33, %s5544_s20 }
 0x262   : > { %2699 = vrot.lane.b32.xlu1 %v1064_v25, %s5544_s20 }
 0x264   : > { %2977 = vrot.lane.b32.xlu0 %v5863_v13, %s5545_s26 }
 0x266   : > { %2703 = vrot.lane.b32.xlu1 %v1066_v29, %s5544_s20 }
 0x268   : > { %2971 = vrot.lane.b32.xlu0 %v1064_v25, %s5545_s26 }
 0x26a   : > { %2969 = vrot.lane.b32.xlu1 %v1063_v24, %s5545_s26 }
 0x26c   : > { %2975 = vrot.lane.b32.xlu0 %v1066_v29, %s5545_s26 }
 0x26e   : > { %2973 = vrot.lane.b32.xlu1 %v1065_v33, %s5545_s26 }
 0x270   : > { %1799 = vrot.lane.b32.xlu0 %v5900_v39, %s5540_s25  ;;  %s5548_s25 = smov 24  }
 0x272   : > { %1527 = vrot.lane.b32.xlu1 %v5900_v39, %s5539_s23  ;;  %s5547_s23 = smov 16  }
 0x274   : > { %2343 = vrot.lane.b32.xlu0 %v5900_v39, %s5542_s29  ;;  %s5550_s29 = smov 40  }
 0x276   : > { %2071 = vrot.lane.b32.xlu1 %v5900_v39, %s5541_s19  ;;  %s5549_s19 = smov 32  }
 0x27a   : > { %2615 = vrot.lane.b32.xlu1 %v5900_v39, %s5543_s22 }
 0x29c   : > { %v1336_v43 = vpop.permute.xlu1 %1335 }
 0x29d   : > { %4718 = vmatprep.mubr.msk.bf16.mxu1 %vm1068_vm2, %v1336_v43 }
 0x2a0   : > { %v1338_v44 = vpop.permute.xlu1 %1337 }
 0x2a1   : > { %4719 = vmatmul.mubr.msk.bf16.vlgmr.msra.gmra.mxu1 %vm1068_vm2, %v1338_v44 }
 0x2a2   : > { %v1342_v45 = vpop.permute.xlu0 %1341 }
 0x2a4   : > { %v1340_v46 = vpop.permute.xlu1 %1339 }
 0x2a5   : > { %4722 = vmatprep.mubr.msk.bf16.mxu1 %vm1068_vm2, %v1340_v46 }
 0x2a6   : > { %v1610_v22 = vpop.permute.xlu0 %1609 }
 0x2a8   : > { %v1618_v47 = vpop.permute.xlu1 %1617 }
 0x2a9   : > { %4723 = vmatmul.mubr.msk.bf16.gmra.mxu1 %vm1068_vm2, %v1342_v45  ;;  %4925 = vmatprep.subr.msk.bf16.mxu1 %vm1068_vm2, %v1618_v47  ;;  %v1632_v48 = vsel %vm1068_vm2, %v1618_v47, 0 }
 0x2aa   : > { %4737 = vmatpush3.bf16.xpose.msra.mxu1 %v1632_v48  ;;  %4738 = vmatprep.mubr.msk.bf16.mxu1 %vm1068_vm2, %v1610_v22  ;;  %v1614_v49 = vpop.permute.xlu0 %1613 }
 0x2ac   : > { %v1612_v52 = vpop.permute.xlu1 %1611 }
 0x2ae   : > { %v1890_v53 = vpop.permute.xlu0 %1889 }
 0x2af   : > { %4927 = vmatprep.subr.msk.bf16.mxu1 %vm1068_vm2, %v1890_v53  ;;  %v1904_v30 = vsel %vm1068_vm2, %v1890_v53, 0 }
 0x2b0   : > { %v1616_v54 = vpop.permute.xlu1 %1615 }
 0x2b1   : > { %4739 = vmatmul.mubr.msk.bf16.vlgmr.msra.gmra.mxu1 %vm1068_vm2, %v1612_v52 }
 0x2b2   : > { %4742 = vmatprep.mubr.msk.bf16.mxu1 %vm1068_vm2, %v1614_v49  ;;  %4757 = vmatpush3.bf16.xpose.msra.mxu1 %v1904_v30  ;;  %v1884_v55 = vpop.permute.xlu0 %1883 }
 0x2b4   : > { %v1882_v56 = vpop.permute.xlu1 %1881 }
 0x2b6   : > { %v1888_v57 = vpop.permute.xlu0 %1887 }
 0x2b8   : > { %v1886_v23 = vpop.permute.xlu1 %1885 }
 0x2b9   : > { %4743 = vmatmul.mubr.msk.bf16.gmra.mxu1 %vm1068_vm2, %v1616_v54 }
 0x2ba   : > { %4758 = vmatprep.mubr.msk.bf16.mxu1 %vm1068_vm2, %v1882_v56  ;;  %v2154_v58 = vpop.permute.xlu0 %2153 }
 0x2bc   : > { %v2162_v59 = vpop.permute.xlu1 %2161 }
 0x2bd   : > { %4929 = vmatprep.subr.msk.bf16.mxu1 %vm1068_vm2, %v2162_v59  ;;  %v2176_v61 = vsel %vm1068_vm2, %v2162_v59, 0 }
 0x2be   : > { %v2158_v31 = vpop.permute.xlu0 %2157 }
 0x2c0   : > { %v2156_v60 = vpop.permute.xlu1 %2155 }
 0x2c1   : > { %4759 = vmatmul.mubr.msk.bf16.vlgmr.msra.gmra.mxu1 %vm1068_vm2, %v1884_v55 }
 0x2c2   : > { %4777 = vmatpush3.bf16.xpose.msra.mxu1 %v2176_v61  ;;  %4762 = vmatprep.mubr.msk.bf16.mxu1 %vm1068_vm2, %v1886_v23  ;;  %v2434_v40 = vpop.permute.xlu0 %2433 }
 0x2c3   : > { %4931 = vmatprep.subr.msk.bf16.mxu1 %vm1068_vm2, %v2434_v40  ;;  %v2448_v2 = vsel %vm1068_vm2, %v2434_v40, 0 }
 0x2c4   : > { %v2160_v62 = vpop.permute.xlu1 %2159 }
 0x2c6   : > { %v2428_v0 = vpop.permute.xlu0 %2427 }
 0x2c8   : > { %v2426_v63 = vpop.permute.xlu1 %2425 }
 0x2c9   : > { %4763 = vmatmul.mubr.msk.bf16.gmra.mxu1 %vm1068_vm2, %v1888_v57 }
 0x2ca   : > { %4778 = vmatprep.mubr.msk.bf16.mxu1 %vm1068_vm2, %v2154_v58  ;;  %v2432_v41 = vpop.permute.xlu0 %2431 }
 0x2cc   : > { %v2430_v1 = vpop.permute.xlu1 %2429 }
 0x2ce   : > { %v2698_v5 = vpop.permute.xlu0 %2697 }
 0x2d0   : > { %v2706_v50 = vpop.permute.xlu1 %2705 }
 0x2d1   : > { %4779 = vmatmul.mubr.msk.bf16.vlgmr.msra.gmra.mxu1 %vm1068_vm2, %v2156_v60  ;;  %v2720_v9 = vsel %vm1068_vm2, %v2706_v50, 0 }
 0x2d2   : > { %4797 = vmatpush3.bf16.xpose.msra.mxu1 %v2448_v2  ;;  %4782 = vmatprep.mubr.msk.bf16.mxu1 %vm1068_vm2, %v2158_v31  ;;  %v2702_v51 = vpop.permute.xlu0 %2701 }
 0x2d3   : > { %4933 = vmatprep.subr.msk.bf16.mxu1 %vm1068_vm2, %v2706_v50 }
 0x2d4   : > { %v2700_v4 = vpop.permute.xlu1 %2699 }
 0x2d6   : > { %v2978_v10 = vpop.permute.xlu0 %2977 }
 0x2d7   : > { %v2992_v20 = vsel %vm1068_vm2, %v2978_v10, 0 }
 0x2d8   : > { %v2704_v6 = vpop.permute.xlu1 %2703 }
 0x2d9   : > { %4783 = vmatmul.mubr.msk.bf16.gmra.mxu1 %vm1068_vm2, %v2160_v62 }
 0x2da   : > { %4798 = vmatprep.mubr.msk.bf16.mxu1 %vm1068_vm2, %v2426_v63  ;;  %v2972_v43 = vpop.permute.xlu0 %2971 }
 0x2dc   : > { %v2970_v7 = vpop.permute.xlu1 %2969 }
 0x2de   : > { %v2976_v44 = vpop.permute.xlu0 %2975 }
 0x2e0   : > { %v2974_v8 = vpop.permute.xlu1 %2973 }
 0x2e1   : > { %4799 = vmatmul.mubr.msk.bf16.vlgmr.msra.gmra.mxu1 %vm1068_vm2, %v2428_v0 }
 0x2e2   : > { %4817 = vmatpush3.bf16.xpose.msra.mxu1 %v2720_v9  ;;  %4802 = vmatprep.mubr.msk.bf16.mxu1 %vm1068_vm2, %v2430_v1  ;;  %v6027_v61 = vpop.permute.xlu0 %1799 }
 0x2e3   : > { %4935 = vmatprep.subr.msk.bf16.mxu1 %vm1068_vm2, %v2978_v10 }
 0x2e4   : > { %v5959_v11 = vpop.permute.xlu1 %1527 }
 0x2e5   : > { %4924 = vmatprep.subr.msk.bf16.mxu0 %vm1262_vm3, %v5959_v11 }
 0x2e9   : > { %4803 = vmatmul.mubr.msk.bf16.gmra.mxu1 %vm1068_vm2, %v2432_v41  ;;  %v6037_v41 = vpop.permute.xlu1 %2071 }
 0x2ea   : > { %4818 = vmatprep.mubr.msk.bf16.mxu1 %vm1068_vm2, %v2698_v5  ;;  %7203 = vst [vmem:[#allocation10_spill] sm:$0xff] %v6037_v41  ;;  %v6041_v5 = vpop.permute.xlu0 %2343 }
 0x2eb   : > { %v4700_v12 = vpop.f32.mrf.mxu0  ;;  %7204 = vst [vmem:[#allocation11_spill] sm:$0xff] %v6041_v5 }
 0x2ec   : > { %v5965_v13 = vmul.f32 0.35355338, %v4700_v12 }
 0x2ed   : > { %v1118_v14 = vpop.f32.mrf.mxu0  ;;  %v6051_v10 = vpop.permute.xlu1 %2615 }
 0x2ee   : > { %v5967_v15 = vmul.f32 0.35355338, %v1118_v14  ;;  %v1163_v16 = vsel %vm1068_vm2, %v5965_v13, -inf  ;;  %7205 = vst [vmem:[#allocation12_spill] sm:$0xff] %v6051_v10 }
 0x2ef   : > { %1164 = vmax.xlane.f32.xlu0 %v1163_v16  ;;  %v4701_v18 = vpop.f32.mrf.mxu0 }
 0x2f0   : > { %v5971_v17 = vmul.f32 0.35355338, %v4701_v18  ;;  %v1157_v3 = vsel %vm1068_vm2, %v5967_v15, -inf }
 0x2f1   : > { %1158 = vmax.xlane.f32.xlu1 %v1157_v3  ;;  %v1121_v19 = vpop.f32.mrf.mxu0  ;;  %4819 = vmatmul.mubr.msk.bf16.vlgmr.msra.gmra.mxu1 %vm1068_vm2, %v2700_v4 }
 0x2f2   : > { %v5977_v21 = vmul.f32 0.35355338, %v1121_v19  ;;  %4837 = vmatpush3.bf16.xpose.msra.mxu1 %v2992_v20  ;;  %4822 = vmatprep.mubr.msk.bf16.mxu1 %vm1068_vm2, %v2702_v51  ;;  %v1166_v24 = vsel %vm1068_vm2, %v5971_v17, -inf }
 0x2f3   : > { %v4704_v25 = vpop.f32.mrf.mxu1  ;;  %1167 = vmax.xlane.f32.xlu0 %v1166_v24 }
 0x2f4   : > { %v5982_v26 = vmul.f32 0.35355338, %v4704_v25  ;;  %v1160_v32 = vsel %vm1068_vm2, %v5977_v21, -inf }
 0x2f5   : > { %v1134_v27 = vpop.f32.mrf.mxu1 }
 0x2f6   : > { %v5984_v28 = vmul.f32 0.35355338, %v1134_v27  ;;  %v1175_v29 = vsel %vm1068_vm2, %v5982_v26, -inf }
 0x2f7   : > { %v4705_v33 = vpop.f32.mrf.mxu1  ;;  %1176 = vmax.xlane.f32.xlu1 %v1175_v29  ;;  %1161 = vmax.xlane.f32.xlu0 %v1160_v32 }
 0x2f8   : > { %v5990_v34 = vmul.f32 0.35355338, %v4705_v33  ;;  %v1169_v37 = vsel %vm1068_vm2, %v5984_v28, -inf }
 0x2f9   : > { %v1137_v35 = vpop.f32.mrf.mxu1  ;;  %4823 = vmatmul.mubr.msk.bf16.gmra.mxu1 %vm1068_vm2, %v2704_v6 }
 0x2fa   : > { %v5993_v36 = vmul.f32 0.35355338, %v1137_v35  ;;  %4838 = vmatprep.mubr.msk.bf16.mxu1 %vm1068_vm2, %v2970_v7  ;;  %v1178_v38 = vsel %vm1068_vm2, %v5990_v34, -inf }
 0x2fb   : > { %1170 = vmax.xlane.f32.xlu1 %v1169_v37  ;;  %1179 = vmax.xlane.f32.xlu0 %v1178_v38 }
 0x2fc   : > { %v1172_v42 = vsel %vm1068_vm2, %v5993_v36, -inf }
 0x2ff   : > { %1173 = vmax.xlane.f32.xlu0 %v1172_v42 }
 0x301   : > { %4839 = vmatmul.mubr.msk.bf16.vlgmr.msra.gmra.mxu1 %vm1068_vm2, %v2972_v43 }
 0x302   : > { %4842 = vmatprep.mubr.msk.bf16.mxu1 %vm1068_vm2, %v2974_v8 }
 0x309   : > { %4843 = vmatmul.mubr.msk.bf16.gmra.mxu1 %vm1068_vm2, %v2976_v44 }
 0x361   : > { %v4720_v45 = vpop.f32.mrf.mxu1 }
 0x362   : > { %v6005_v46 = vmul.f32 0.35355338, %v4720_v45 }
 0x363   : > { %v1395_v22 = vpop.f32.mrf.mxu1 }
 0x364   : > { %v6007_v47 = vmul.f32 0.35355338, %v1395_v22  ;;  %v1440_v48 = vsel %vm1068_vm2, %v6005_v46, -inf }
 0x365   : > { %1441 = vmax.xlane.f32.xlu1 %v1440_v48  ;;  %v4721_v49 = vpop.f32.mrf.mxu1 }
 0x366   : > { %v6011_v52 = vmul.f32 0.35355338, %v4721_v49  ;;  %v1434_v30 = vsel %vm1068_vm2, %v6007_v47, -inf }
 0x367   : > { %v1398_v53 = vpop.f32.mrf.mxu1 }
 0x368   : > { %v6013_v54 = vmul.f32 0.35355338, %v1398_v53  ;;  %v1443_v55 = vsel %vm1068_vm2, %v6011_v52, -inf }
 0x369   : > { %1435 = vmax.xlane.f32.xlu1 %v1434_v30  ;;  %1444 = vmax.xlane.f32.xlu0 %v1443_v55  ;;  %v4724_v56 = vpop.f32.mrf.mxu1 }
 0x36a   : > { %v6019_v57 = vmul.f32 0.35355338, %v4724_v56  ;;  %v1437_v59 = vsel %vm1068_vm2, %v6013_v54, -inf }
 0x36b   : > { %v1411_v23 = vpop.f32.mrf.mxu1 }
 0x36c   : > { %v6021_v58 = vmul.f32 0.35355338, %v1411_v23  ;;  %v1452_v31 = vsel %vm1068_vm2, %v6019_v57, -inf }
 0x36d   : > { %1438 = vmax.xlane.f32.xlu0 %v1437_v59  ;;  %1453 = vmax.xlane.f32.xlu1 %v1452_v31  ;;  %v4725_v60 = vpop.f32.mrf.mxu1 }
 0x36e   : > { %v6029_v40 = vmul.f32 0.35355338, %v4725_v60  ;;  %v1446_v0 = vsel %vm1068_vm2, %v6021_v58, -inf }
 0x36f   : > { %v1414_v62 = vpop.f32.mrf.mxu1 }
 0x370   : > { %v6031_v63 = vmul.f32 0.35355338, %v1414_v62  ;;  %v1455_v1 = vsel %vm1068_vm2, %v6029_v40, -inf }
 0x371   : > { %1447 = vmax.xlane.f32.xlu1 %v1446_v0  ;;  %1456 = vmax.xlane.f32.xlu0 %v1455_v1  ;;  %v4740_v50 = vpop.f32.mrf.mxu1 }
 0x372   : > { %v6039_v2 = vmul.f32 0.35355338, %v4740_v50  ;;  %v1449_v51 = vsel %vm1068_vm2, %v6031_v63, -inf }
 0x373   : > { %v1668_v4 = vpop.f32.mrf.mxu1 }
 0x374   : > { %v6043_v6 = vmul.f32 0.35355338, %v1668_v4  ;;  %v1713_v7 = vsel %vm1068_vm2, %v6039_v2, -inf }
 0x375   : > { %1450 = vmax.xlane.f32.xlu0 %v1449_v51  ;;  %1714 = vmax.xlane.f32.xlu1 %v1713_v7  ;;  %v4741_v8 = vpop.f32.mrf.mxu1 }
 0x376   : > { %v6049_v9 = vmul.f32 0.35355338, %v4741_v8  ;;  %v1707_v18 = vsel %vm1068_vm2, %v6043_v6, -inf }
 0x377   : > { %v1671_v12 = vpop.f32.mrf.mxu1 }
 0x378   : > { %v6053_v14 = vmul.f32 0.35355338, %v1671_v12  ;;  %v1165_v16 = vpop.xlane.xlu0 %1164  ;;  %v1716_v3 = vsel %vm1068_vm2, %v6049_v9, -inf }
 0x379   : > { %1708 = vmax.xlane.f32.xlu1 %v1707_v18  ;;  %1717 = vmax.xlane.f32.xlu0 %v1716_v3  ;;  %v4744_v19 = vpop.f32.mrf.mxu1  ;;  %v1183_v24 = vsub.f32 %v5965_v13, %v1165_v16 }
 0x37a   : > { %v6059_v20 = vmul.f32 0.35355338, %v4744_v19  ;;  %v1159_v25 = vpop.xlane.xlu1 %1158  ;;  %v1710_v33 = vsel %vm1068_vm2, %v6053_v14, -inf }
 0x37b   : > { %v1684_v27 = vpop.f32.mrf.mxu1  ;;  %v1181_v38 = vsub.f32 %v5967_v15, %v1159_v25  ;;  %v1193_v43 = vmul.f32 1.442695, %v1183_v24 }
 0x37c   : > { %v6062_v29 = vmul.f32 0.35355338, %v1684_v27  ;;  %v1168_v32 = vpop.xlane.xlu0 %1167  ;;  %v1725_v35 = vsel %vm1068_vm2, %v6059_v20, -inf }
 0x37d   : > { %1711 = vmax.xlane.f32.xlu0 %v1710_v33  ;;  %1726 = vmax.xlane.f32.xlu1 %v1725_v35  ;;  %v4745_v37 = vpop.f32.mrf.mxu1  ;;  %v1184_v13 = vsub.f32 %v5971_v17, %v1168_v32  ;;  %v1189_v30 = vmul.f32 1.442695, %v1181_v38  ;;  %5177 = vpow2.f32 %v1193_v43 }
 0x37e   : > { %v6069_v42 = vmul.f32 0.35355338, %v4745_v37  ;;  %v1719_v22 = vsel %vm1068_vm2, %v6062_v29, -inf }
 0x37f   : > { %v1687_v44 = vpop.f32.mrf.mxu1  ;;  %v1195_v55 = vmul.f32 1.442695, %v1184_v13  ;;  %5179 = vpow2.f32 %v1189_v30 }
 0x380   : > { %v6072_v45 = vmul.f32 0.35355338, %v1687_v44  ;;  %v1728_v48 = vsel %vm1068_vm2, %v6069_v42, -inf  ;;  %v1162_v49 = vpop.xlane.xlu0 %1161  ;;  %v1177_v62 = vpop.xlane.xlu1 %1176 }
 0x381   : > { %1720 = vmax.xlane.f32.xlu1 %v1719_v22  ;;  %1729 = vmax.xlane.f32.xlu0 %v1728_v48  ;;  %v4760_v53 = vpop.f32.mrf.mxu1  ;;  %v1182_v17 = vsub.f32 %v5977_v21, %v1162_v49  ;;  %5181 = vpow2.f32 %v1195_v55  ;;  %v1187_v16 = vsub.f32 %v5982_v26, %v1177_v62 }
 0x382   : > { %v6078_v15 = vmul.f32 0.35355338, %v4760_v53  ;;  %v1722_v59 = vsel %vm1068_vm2, %v6072_v45, -inf }
 0x383   : > { %v1940_v56 = vpop.f32.mrf.mxu1  ;;  %v1191_v50 = vmul.f32 1.442695, %v1182_v17  ;;  %v1201_v33 = vmul.f32 1.442695, %v1187_v16 }
 0x384   : > { %v6081_v23 = vmul.f32 0.35355338, %v1940_v56  ;;  %v1985_v31 = vsel %vm1068_vm2, %v6078_v15, -inf  ;;  %v1180_v8 = vpop.xlane.xlu0 %1179  ;;  %v1171_v3 = vpop.xlane.xlu1 %1170 }
 0x385   : > { %1723 = vmax.xlane.f32.xlu0 %v1722_v59  ;;  %1986 = vmax.xlane.f32.xlu1 %v1985_v31  ;;  %v4761_v60 = vpop.f32.mrf.mxu1  ;;  %5183 = vpow2.f32 %v1191_v50  ;;  %v1185_v35 = vsub.f32 %v5984_v28, %v1171_v3  ;;  %v1188_v38 = vsub.f32 %v5990_v34, %v1180_v8 }
 0x386   : > { %v6087_v0 = vmul.f32 0.35355338, %v4761_v60  ;;  %v1979_v21 = vsel %vm1068_vm2, %v6081_v23, -inf  ;;  %5185 = vpow2.f32 %v1201_v33 }
 0x387   : > { %v1943_v1 = vpop.f32.mrf.mxu1  ;;  %v1197_v28 = vmul.f32 1.442695, %v1185_v35  ;;  %v1203_v34 = vmul.f32 1.442695, %v1188_v38 }
 0x388   : > { %v6089_v4 = vmul.f32 0.35355338, %v1943_v1  ;;  %v1988_v51 = vsel %vm1068_vm2, %v6087_v0, -inf  ;;  %v1174_v43 = vpop.xlane.xlu0 %1173 }
 0x389   : > { %1980 = vmax.xlane.f32.xlu1 %v1979_v21  ;;  %1989 = vmax.xlane.f32.xlu0 %v1988_v51  ;;  %v4764_v7 = vpop.f32.mrf.mxu1  ;;  %v1186_v53 = vsub.f32 %v5993_v36, %v1174_v43  ;;  %5187 = vpow2.f32 %v1197_v28 }
 0x38a   : > { %v6095_v12 = vmul.f32 0.35355338, %v4764_v7  ;;  %v1982_v24 = vsel %vm1068_vm2, %v6089_v4, -inf  ;;  %v6107_v37 = vpop.eup %5177  ;;  %5189 = vpow2.f32 %v1203_v34 }
 0x38b   : > { %v1956_v18 = vpop.f32.mrf.mxu1  ;;  %v1211_v17 = vsel %vm1068_vm2, %v6107_v37, 0.0  ;;  %v1199_v31 = vmul.f32 1.442695, %v1186_v53 }
 0x38c   : > { %v6098_v19 = vmul.f32 0.35355338, %v1956_v18  ;;  %v1997_v25 = vsel %vm1068_vm2, %v6095_v12, -inf  ;;  %v6116_v49 = vpop.eup %5179 }
 0x38d   : > { %1983 = vmax.xlane.f32.xlu0 %v1982_v24  ;;  %1998 = vmax.xlane.f32.xlu1 %v1997_v25  ;;  %v4765_v27 = vpop.f32.mrf.mxu1  ;;  %v1205_v36 = vsel %vm1068_vm2, %v6116_v49, 0.0  ;;  %5191 = vpow2.f32 %v1199_v31 }
 0x38e   : > { %v6104_v32 = vmul.f32 0.35355338, %v4765_v27  ;;  %v1991_v44 = vsel %vm1068_vm2, %v6098_v19, -inf  ;;  %v6119_v55 = vpop.eup %5181 }
 0x38f   : > { %v1959_v26 = vpop.f32.mrf.mxu1  ;;  %v1214_v1 = vsel %vm1068_vm2, %v6119_v55, 0.0 }
 0x390   : > { %v6110_v13 = vmul.f32 0.35355338, %v1959_v26  ;;  %v2000_v22 = vsel %vm1068_vm2, %v6104_v32, -inf }
 0x391   : > { %1992 = vmax.xlane.f32.xlu1 %v1991_v44  ;;  %2001 = vmax.xlane.f32.xlu0 %v2000_v22  ;;  %v4780_v48 = vpop.f32.mrf.mxu1 }
 0x392   : > { %v1994_v56 = vsel %vm1068_vm2, %v6110_v13, -inf  ;;  %v6125_v62 = vmul.f32 0.35355338, %v4780_v48  ;;  %v6131_v50 = vpop.eup %5183 }
 0x393   : > { %v2212_v30 = vpop.f32.mrf.mxu1  ;;  %v1208_v18 = vsel %vm1068_vm2, %v6131_v50, 0.0  ;;  %v6147_v35 = vpop.eup %5185 }
 0x394   : > { %v6133_v7 = vmul.f32 0.35355338, %v2212_v30  ;;  %v2257_v16 = vsel %vm1068_vm2, %v6125_v62, -inf  ;;  %7206 = vst [vmem:[#allocation13_spill] sm:$0xff] %v6147_v35  ;;  %v1223_v44 = vsel %vm1068_vm2, %v6147_v35, 0.0 }
 0x395   : > { %1995 = vmax.xlane.f32.xlu0 %v1994_v56  ;;  %v4781_v59 = vpop.f32.mrf.mxu1  ;;  %1212 = vadd.xlane.f32.xlu1 %v1211_v17 }
 0x396   : > { %v6135_v8 = vmul.f32 0.35355338, %v4781_v59  ;;  %v2251_v27 = vsel %vm1068_vm2, %v6133_v7, -inf  ;;  %v6149_v43 = vpop.eup %5187 }
 0x397   : > { %v2215_v60 = vpop.f32.mrf.mxu1  ;;  %v6155_v48 = vpop.eup %5189  ;;  %v1217_v56 = vsel %vm1068_vm2, %v6149_v43, 0.0 }
 0x398   : > { %v6141_v25 = vmul.f32 0.35355338, %v2215_v60  ;;  %v2260_v33 = vsel %vm1068_vm2, %v6135_v8, -inf  ;;  %v1226_v17 = vsel %vm1068_vm2, %v6155_v48, 0.0 }
 0x399   : > { %v4784_v21 = vpop.f32.mrf.mxu1  ;;  %1206 = vadd.xlane.f32.xlu1 %v1205_v36  ;;  %1215 = vadd.xlane.f32.xlu0 %v1214_v1 }
 0x39a   : > { %v2254_v22 = vsel %vm1068_vm2, %v6141_v25, -inf  ;;  %v6157_v30 = vpop.eup %5191  ;;  %v6159_v34 = vmul.f32 0.35355338, %v4784_v21 }
 0x39b   : > { %v2228_v51 = vpop.f32.mrf.mxu1  ;;  %7207 = vst [vmem:[#allocation14_spill] sm:$0xff] %v6157_v30  ;;  %v1220_v21 = vsel %vm1068_vm2, %v6157_v30, 0.0 }
 0x39c   : > { %v6165_v60 = vmul.f32 0.35355338, %v2228_v51  ;;  %v2269_v1 = vsel %vm1068_vm2, %v6159_v34, -inf }
 0x39d   : > { %v4785_v3 = vpop.f32.mrf.mxu1  ;;  %2258 = vmax.xlane.f32.xlu1 %v2257_v16  ;;  %1209 = vadd.xlane.f32.xlu0 %v1208_v18 }
 0x39e   : > { %v6167_v36 = vmul.f32 0.35355338, %v4785_v3  ;;  %v2263_v51 = vsel %vm1068_vm2, %v6165_v60, -inf }
 0x39f   : > { %v2231_v24 = vpop.f32.mrf.mxu1 }
 0x3a0   : > { %v2272_v3 = vsel %vm1068_vm2, %v6167_v36, -inf }
 0x3a1   : > { %v4800_v26 = vpop.f32.mrf.mxu1  ;;  %2252 = vmax.xlane.f32.xlu1 %v2251_v27  ;;  %2261 = vmax.xlane.f32.xlu0 %v2260_v33  ;;  %v6173_v27 = vmul.f32 0.35355338, %v2231_v24 }
 0x3a2   : > { %v6175_v33 = vmul.f32 0.35355338, %v4800_v26 }
 0x3a3   : > { %v2484_v38 = vpop.f32.mrf.mxu1  ;;  %v2266_v26 = vsel %vm1068_vm2, %v6173_v27, -inf }
 0x3a4   : > { %v2529_v24 = vsel %vm1068_vm2, %v6175_v33, -inf }
 0x3a5   : > { %v4801_v28 = vpop.f32.mrf.mxu1  ;;  %1224 = vadd.xlane.f32.xlu1 %v1223_v44  ;;  %2255 = vmax.xlane.f32.xlu0 %v2254_v22 }
 0x3a7   : > { %v2487_v53 = vpop.f32.mrf.mxu1 }
 0x3a8   : > { %v6189_v10 = vmul.f32 0.35355338, %v2487_v53 }
 0x3a9   : > { %v4804_v59 = vpop.f32.mrf.mxu1  ;;  %1218 = vadd.xlane.f32.xlu1 %v1217_v56  ;;  %1227 = vadd.xlane.f32.xlu0 %v1226_v17  ;;  %v6181_v56 = vmul.f32 0.35355338, %v2484_v38  ;;  %v6183_v17 = vmul.f32 0.35355338, %v4801_v28 }
 0x3aa   : > { %v6191_v5 = vmul.f32 0.35355338, %v4804_v59  ;;  %v2526_v59 = vsel %vm1068_vm2, %v6189_v10, -inf }
 0x3ab   : > { %v2500_v31 = vpop.f32.mrf.mxu1  ;;  %v2523_v38 = vsel %vm1068_vm2, %v6181_v56, -inf  ;;  %v2532_v28 = vsel %vm1068_vm2, %v6183_v17, -inf }
 0x3ac   : > { %7208 = vst [vmem:[#allocation15_spill] sm:$0xff] %v6191_v5  ;;  %v6197_v41 = vmul.f32 0.35355338, %v2500_v31  ;;  %v2541_v53 = vsel %vm1068_vm2, %v6191_v5, -inf }
 0x3ad   : > { %v4805_v16 = vpop.f32.mrf.mxu1  ;;  %2270 = vmax.xlane.f32.xlu1 %v2269_v1  ;;  %1221 = vadd.xlane.f32.xlu0 %v1220_v21 }
 0x3ae   : > { %7209 = vst [vmem:[#allocation16_spill] sm:$0xff] %v6197_v41  ;;  %v6199_v39 = vmul.f32 0.35355338, %v4805_v16  ;;  %v2535_v31 = vsel %vm1068_vm2, %v6197_v41, -inf }
 0x3af   : > { %v2503_v18 = vpop.f32.mrf.mxu1 }
 0x3b0   : > { %v6205_v35 = vmul.f32 0.35355338, %v2503_v18  ;;  %v2544_v16 = vsel %vm1068_vm2, %v6199_v39, -inf }
 0x3b1   : > { %v4820_v44 = vpop.f32.mrf.mxu1  ;;  %2264 = vmax.xlane.f32.xlu1 %v2263_v51  ;;  %2273 = vmax.xlane.f32.xlu0 %v2272_v3 }
 0x3b2   : > { %v6207_v30 = vmul.f32 0.35355338, %v4820_v44  ;;  %v2538_v18 = vsel %vm1068_vm2, %v6205_v35, -inf }
 0x3b3   : > { %v2756_v22 = vpop.f32.mrf.mxu1 }
 0x3b4   : > { %7210 = vst [vmem:[#allocation17_spill] sm:$0xff] %v6207_v30 }
 0x3b5   : > { %v4821_v1 = vpop.f32.mrf.mxu1  ;;  %2530 = vmax.xlane.f32.xlu1 %v2529_v24  ;;  %2267 = vmax.xlane.f32.xlu0 %v2266_v26 }
 0x3b6   : > { %v6215_v5 = vmul.f32 0.35355338, %v4821_v1 }
 0x3b7   : > { %v2759_v21 = vpop.f32.mrf.mxu1 }
 0x3b9   : > { %v4824_v51 = vpop.f32.mrf.mxu1  ;;  %2524 = vmax.xlane.f32.xlu1 %v2523_v38  ;;  %2533 = vmax.xlane.f32.xlu0 %v2532_v28  ;;  %v6213_v28 = vmul.f32 0.35355338, %v2756_v22  ;;  %v2804_v22 = vsel %vm1068_vm2, %v6215_v5, -inf }
 0x3ba   : > { %v6223_v41 = vmul.f32 0.35355338, %v4824_v51 }
 0x3bb   : > { %v2772_v3 = vpop.f32.mrf.mxu1  ;;  %7211 = vst [vmem:[#allocation18_spill] sm:$0xff] %v6213_v28 }
 0x3bc   : > { %7212 = vst [vmem:[#allocation19_spill] sm:$0xff] %v6223_v41 }
 0x3bd   : > { %v4825_v24 = vpop.f32.mrf.mxu1  ;;  %2542 = vmax.xlane.f32.xlu1 %v2541_v53  ;;  %2527 = vmax.xlane.f32.xlu0 %v2526_v59  ;;  %v2801_v53 = vsel %vm1068_vm2, %v6207_v30, -inf  ;;  %v6221_v59 = vmul.f32 0.35355338, %v2759_v21 }
 0x3be   : > { %v6231_v30 = vmul.f32 0.35355338, %v4825_v24 }
 0x3bf   : > { %v2775_v26 = vpop.f32.mrf.mxu1  ;;  %v2798_v21 = vsel %vm1068_vm2, %v6221_v59, -inf }
 0x3c1   : > { %v4840_v38 = vpop.f32.mrf.mxu1  ;;  %2536 = vmax.xlane.f32.xlu1 %v2535_v31  ;;  %2545 = vmax.xlane.f32.xlu0 %v2544_v16  ;;  %v2795_v31 = vsel %vm1068_vm2, %v6213_v28, -inf  ;;  %v6229_v16 = vmul.f32 0.35355338, %v2772_v3  ;;  %v2816_v3 = vsel %vm1068_vm2, %v6231_v30, -inf }
 0x3c2   : > { %v6239_v28 = vmul.f32 0.35355338, %v4840_v38 }
 0x3c3   : > { %v3028_v44 = vpop.f32.mrf.mxu1  ;;  %7213 = vst [vmem:[#allocation20_spill] sm:$0xff] %v6229_v16 }
 0x3c4   : > { %7214 = vst [vmem:[#allocation21_spill] sm:$0xff] %v6239_v28 }
 0x3c5   : > { %2802 = vmax.xlane.f32.xlu1 %v2801_v53  ;;  %2539 = vmax.xlane.f32.xlu0 %v2538_v18  ;;  %v4841_v1 = vpop.f32.mrf.mxu1  ;;  %v2813_v53 = vsel %vm1068_vm2, %v6223_v41, -inf  ;;  %v6237_v18 = vmul.f32 0.35355338, %v2775_v26 }
 0x3c6   : > { %v6247_v41 = vmul.f32 0.35355338, %v4841_v1 }
 0x3c7   : > { %v3031_v51 = vpop.f32.mrf.mxu1  ;;  %v2810_v26 = vsel %vm1068_vm2, %v6237_v18, -inf }
 0x3c8   : > { %7216 = vst [vmem:[#allocation23_spill] sm:$0xff] %v6247_v41 }
 0x3c9   : > { %2796 = vmax.xlane.f32.xlu1 %v2795_v31  ;;  %2805 = vmax.xlane.f32.xlu0 %v2804_v22  ;;  %v2807_v31 = vsel %vm1068_vm2, %v6229_v16, -inf  ;;  %v4844_v24 = vpop.f32.mrf.mxu1  ;;  %v6245_v22 = vmul.f32 0.35355338, %v3028_v44  ;;  %v3076_v44 = vsel %vm1068_vm2, %v6247_v41, -inf }
 0x3ca   : > { %v6255_v16 = vmul.f32 0.35355338, %v4844_v24 }
 0x3cb   : > { %7215 = vst [vmem:[#allocation22_spill] sm:$0xff] %v6245_v22  ;;  %v3044_v38 = vpop.f32.mrf.mxu1 }
 0x3cc   : > { %7218 = vst [vmem:[#allocation25_spill] sm:$0xff] %v6255_v16 }
 0x3cd   : > { %2814 = vmax.xlane.f32.xlu1 %v2813_v53  ;;  %2799 = vmax.xlane.f32.xlu0 %v2798_v21  ;;  %v3073_v53 = vsel %vm1068_vm2, %v6239_v28, -inf  ;;  %v6253_v21 = vmul.f32 0.35355338, %v3031_v51  ;;  %v4845_v1 = vpop.f32.mrf.mxu1 }
 0x3ce   : > { %v6263_v28 = vmul.f32 0.35355338, %v4845_v1 }
 0x3cf   : > { %7217 = vst [vmem:[#allocation24_spill] sm:$0xff] %v6253_v21  ;;  %v3070_v51 = vsel %vm1068_vm2, %v6253_v21, -inf  ;;  %v3047_v24 = vpop.f32.mrf.mxu1 }
 0x3d0   : > { %7220 = vst [vmem:[#allocation27_spill] sm:$0xff] %v6263_v28 }
 0x3d1   : > { %2808 = vmax.xlane.f32.xlu1 %v2807_v31  ;;  %2817 = vmax.xlane.f32.xlu0 %v2816_v3  ;;  %v3067_v31 = vsel %vm1068_vm2, %v6245_v22, -inf  ;;  %v6261_v3 = vmul.f32 0.35355338, %v3044_v38  ;;  %v3088_v38 = vsel %vm1068_vm2, %v6263_v28, -inf }
 0x3d3   : > { %7219 = vst [vmem:[#allocation26_spill] sm:$0xff] %v6261_v3  ;;  %v3079_v41 = vsel %vm1068_vm2, %v6261_v3, -inf }
 0x3d5   : > { %3074 = vmax.xlane.f32.xlu1 %v3073_v53  ;;  %2811 = vmax.xlane.f32.xlu0 %v2810_v26  ;;  %v3085_v53 = vsel %vm1068_vm2, %v6255_v16, -inf  ;;  %v6269_v26 = vmul.f32 0.35355338, %v3047_v24 }
 0x3d7   : > { %7221 = vst [vmem:[#allocation28_spill] sm:$0xff] %v6269_v26 }
 0x3d9   : > { %3068 = vmax.xlane.f32.xlu1 %v3067_v31  ;;  %3077 = vmax.xlane.f32.xlu0 %v3076_v44  ;;  %v3082_v31 = vsel %vm1068_vm2, %v6269_v26, -inf }
 0x3dd   : > { %3086 = vmax.xlane.f32.xlu1 %v3085_v53  ;;  %3071 = vmax.xlane.f32.xlu0 %v3070_v51 }
 0x3e1   : > { %3080 = vmax.xlane.f32.xlu1 %v3079_v41  ;;  %3089 = vmax.xlane.f32.xlu0 %v3088_v38 }
 0x3e5   : > { %3083 = vmax.xlane.f32.xlu0 %v3082_v31 }
 0x3ee   : > { %v1442_v44 = vpop.xlane.xlu1 %1441 }
 0x3ef   : > { %v1460_v1 = vsub.f32 %v6005_v46, %v1442_v44 }
 0x3f1   : > { %v1470_v16 = vmul.f32 1.442695, %v1460_v1 }
 0x3f2   : > { %v1436_v53 = vpop.xlane.xlu1 %1435  ;;  %v1445_v51 = vpop.xlane.xlu0 %1444 }
 0x3f3   : > { %5193 = vpow2.f32 %v1470_v16  ;;  %v1458_v24 = vsub.f32 %v6007_v47, %v1436_v53  ;;  %v1461_v3 = vsub.f32 %v6011_v52, %v1445_v51 }
 0x3f5   : > { %v1466_v21 = vmul.f32 1.442695, %v1458_v24  ;;  %v1472_v22 = vmul.f32 1.442695, %v1461_v3 }
 0x3f6   : > { %v1454_v28 = vpop.xlane.xlu1 %1453  ;;  %v1439_v41 = vpop.xlane.xlu0 %1438 }
 0x3f7   : > { %5195 = vpow2.f32 %v1466_v21  ;;  %v1464_v38 = vsub.f32 %v6019_v57, %v1454_v28  ;;  %v1459_v31 = vsub.f32 %v6013_v54, %v1439_v41 }
 0x3f8   : > { %5197 = vpow2.f32 %v1472_v22 }
 0x3f9   : > { %v1478_v26 = vmul.f32 1.442695, %v1464_v38  ;;  %v1468_v46 = vmul.f32 1.442695, %v1459_v31 }
 0x3fa   : > { %v1448_v44 = vpop.xlane.xlu1 %1447  ;;  %v1457_v1 = vpop.xlane.xlu0 %1456 }
 0x3fb   : > { %5199 = vpow2.f32 %v1478_v26  ;;  %v1462_v16 = vsub.f32 %v6021_v58, %v1448_v44  ;;  %v1465_v47 = vsub.f32 %v6029_v40, %v1457_v1 }
 0x3fc   : > { %5201 = vpow2.f32 %v1468_v46 }
 0x3fd   : > { %v1474_v52 = vmul.f32 1.442695, %v1462_v16  ;;  %v1480_v3 = vmul.f32 1.442695, %v1465_v47 }
 0x3fe   : > { %v1715_v53 = vpop.xlane.xlu1 %1714  ;;  %v1451_v51 = vpop.xlane.xlu0 %1450 }
 0x3ff   : > { %5203 = vpow2.f32 %v1474_v52  ;;  %v1733_v57 = vsub.f32 %v6039_v2, %v1715_v53  ;;  %v1463_v54 = vsub.f32 %v6031_v63, %v1451_v51 }
 0x400   : > { %v6286_v28 = vpop.eup %5193  ;;  %5205 = vpow2.f32 %v1480_v3 }
 0x401   : > { %v1743_v22 = vmul.f32 1.442695, %v1733_v57  ;;  %v1476_v21 = vmul.f32 1.442695, %v1463_v54  ;;  %v1488_v58 = vsel %vm1068_vm2, %v6286_v28, 0.0 }
 0x402   : > { %v1709_v26 = vpop.xlane.xlu1 %1708  ;;  %1489 = vadd.xlane.f32.xlu1 %v1488_v58  ;;  %v1718_v40 = vpop.xlane.xlu0 %1717 }
 0x403   : > { %5207 = vpow2.f32 %v1743_v22  ;;  %v1731_v24 = vsub.f32 %v6043_v6, %v1709_v26  ;;  %v1734_v41 = vsub.f32 %v6049_v9, %v1718_v40 }
 0x404   : > { %v6292_v38 = vpop.eup %5195  ;;  %5209 = vpow2.f32 %v1476_v21 }
 0x405   : > { %v6294_v63 = vpop.eup %5197  ;;  %v1739_v2 = vmul.f32 1.442695, %v1731_v24  ;;  %v1745_v31 = vmul.f32 1.442695, %v1734_v41  ;;  %v1482_v46 = vsel %vm1068_vm2, %v6292_v38, 0.0 }
 0x406   : > { %v1727_v44 = vpop.xlane.xlu1 %1726  ;;  %1483 = vadd.xlane.f32.xlu1 %v1482_v46  ;;  %v1491_v1 = vsel %vm1068_vm2, %v6294_v63, 0.0  ;;  %v1712_v16 = vpop.xlane.xlu0 %1711 }
 0x407   : > { %5211 = vpow2.f32 %v1739_v2  ;;  %v1737_v6 = vsub.f32 %v6059_v20, %v1727_v44  ;;  %1492 = vadd.xlane.f32.xlu0 %v1491_v1  ;;  %v1732_v9 = vsub.f32 %v6053_v14, %v1712_v16 }
 0x408   : > { %v6302_v47 = vpop.eup %5199  ;;  %5213 = vpow2.f32 %v1745_v31 }
 0x409   : > { %v6304_v52 = vpop.eup %5201  ;;  %v1751_v3 = vmul.f32 1.442695, %v1737_v6  ;;  %v1741_v53 = vmul.f32 1.442695, %v1732_v9  ;;  %v1500_v51 = vsel %vm1068_vm2, %v6302_v47, 0.0 }
 0x40a   : > { %v1721_v57 = vpop.xlane.xlu1 %1720  ;;  %1501 = vadd.xlane.f32.xlu1 %v1500_v51  ;;  %v1485_v54 = vsel %vm1068_vm2, %v6304_v52, 0.0  ;;  %v1730_v22 = vpop.xlane.xlu0 %1729 }
 0x40b   : > { %5215 = vpow2.f32 %v1751_v3  ;;  %v1735_v20 = vsub.f32 %v6062_v29, %v1721_v57  ;;  %1486 = vadd.xlane.f32.xlu0 %v1485_v54  ;;  %v1738_v14 = vsub.f32 %v6069_v42, %v1730_v22 }
 0x40c   : > { %v6312_v21 = vpop.eup %5203  ;;  %5217 = vpow2.f32 %v1741_v53 }
 0x40d   : > { %v6314_v58 = vpop.eup %5205  ;;  %v1747_v26 = vmul.f32 1.442695, %v1735_v20  ;;  %v1753_v40 = vmul.f32 1.442695, %v1738_v14  ;;  %v1494_v24 = vsel %vm1068_vm2, %v6312_v21, 0.0 }
 0x40e   : > { %v1987_v41 = vpop.xlane.xlu1 %1986  ;;  %1495 = vadd.xlane.f32.xlu1 %v1494_v24  ;;  %v1503_v2 = vsel %vm1068_vm2, %v6314_v58, 0.0  ;;  %v1724_v31 = vpop.xlane.xlu0 %1723 }
 0x40f   : > { %5219 = vpow2.f32 %v1747_v26  ;;  %v2005_v29 = vsub.f32 %v6078_v15, %v1987_v41  ;;  %1504 = vadd.xlane.f32.xlu0 %v1503_v2  ;;  %v1736_v42 = vsub.f32 %v6072_v45, %v1724_v31 }
 0x410   : > { %v6322_v46 = vpop.eup %5207  ;;  %5221 = vpow2.f32 %v1753_v40 }
 0x411   : > { %v6324_v44 = vpop.eup %5209  ;;  %v1749_v1 = vmul.f32 1.442695, %v1736_v42  ;;  %v1761_v16 = vsel %vm1068_vm2, %v6322_v46, 0.0  ;;  %v2015_v6 = vmul.f32 1.442695, %v2005_v29 }
 0x412   : > { %v1981_v9 = vpop.xlane.xlu1 %1980  ;;  %1762 = vadd.xlane.f32.xlu1 %v1761_v16  ;;  %v1497_v3 = vsel %vm1068_vm2, %v6324_v44, 0.0  ;;  %v1990_v53 = vpop.xlane.xlu0 %1989 }
 0x413   : > { %v2003_v15 = vsub.f32 %v6081_v23, %v1981_v9  ;;  %1498 = vadd.xlane.f32.xlu0 %v1497_v3  ;;  %5223 = vpow2.f32 %v1749_v1  ;;  %v2006_v22 = vsub.f32 %v6087_v0, %v1990_v53 }
 0x414   : > { %v6331_v45 = vpop.eup %5211  ;;  %5225 = vpow2.f32 %v2015_v6 }
 0x415   : > { %v6333_v51 = vpop.eup %5213  ;;  %v1755_v57 = vsel %vm1068_vm2, %v6331_v45, 0.0  ;;  %v2011_v54 = vmul.f32 1.442695, %v2003_v15  ;;  %v2017_v41 = vmul.f32 1.442695, %v2006_v22 }
 0x416   : > { %v1999_v20 = vpop.xlane.xlu1 %1998  ;;  %1756 = vadd.xlane.f32.xlu1 %v1755_v57  ;;  %v1764_v14 = vsel %vm1068_vm2, %v6333_v51, 0.0  ;;  %v1984_v26 = vpop.xlane.xlu0 %1983 }
 0x417   : > { %1765 = vadd.xlane.f32.xlu0 %v1764_v14  ;;  %5227 = vpow2.f32 %v2011_v54  ;;  %v2004_v2 = vsub.f32 %v6089_v4, %v1984_v26  ;;  %v2009_v42 = vsub.f32 %v6095_v12, %v1999_v20 }
 0x418   : > { %v6340_v23 = vpop.eup %5215  ;;  %5229 = vpow2.f32 %v2017_v41 }
 0x419   : > { %v6342_v40 = vpop.eup %5217  ;;  %v1773_v24 = vsel %vm1068_vm2, %v6340_v23, 0.0  ;;  %v2013_v4 = vmul.f32 1.442695, %v2004_v2  ;;  %v2023_v12 = vmul.f32 1.442695, %v2009_v42 }
 0x41a   : > { %v1993_v31 = vpop.xlane.xlu1 %1992  ;;  %1774 = vadd.xlane.f32.xlu1 %v1773_v24  ;;  %v1758_v0 = vsel %vm1068_vm2, %v6342_v40, 0.0  ;;  %v2002_v29 = vpop.xlane.xlu0 %2001 }
 0x41b   : > { %v2007_v1 = vsub.f32 %v6098_v19, %v1993_v31  ;;  %1759 = vadd.xlane.f32.xlu0 %v1758_v0  ;;  %v2010_v54 = vsub.f32 %v6104_v32, %v2002_v29 }
 0x41c   : > { %v6351_v16 = vpop.eup %5219 }
 0x41d   : > { %v6353_v6 = vpop.eup %5221  ;;  %v2019_v9 = vmul.f32 1.442695, %v2007_v1  ;;  %v1767_v3 = vsel %vm1068_vm2, %v6351_v16, 0.0  ;;  %v2025_v24 = vmul.f32 1.442695, %v2010_v54 }
 0x41e   : > { %1768 = vadd.xlane.f32.xlu1 %v1767_v3  ;;  %v1213_v53 = vpop.xlane.xlu1 %1212  ;;  %v1776_v15 = vsel %vm1068_vm2, %v6353_v6, 0.0  ;;  %v1996_v57 = vpop.xlane.xlu0 %1995 }
 0x41f   : > { %5231 = vpow2.f32 %v2019_v9  ;;  %1777 = vadd.xlane.f32.xlu0 %v1776_v15  ;;  %v2008_v41 = vsub.f32 %v6110_v13, %v1996_v57 }
 0x420   : > { %v6359_v19 = vpop.eup %5223  ;;  %5233 = vpow2.f32 %v2013_v4 }
 0x421   : > { %v1770_v20 = vsel %vm1068_vm2, %v6359_v19, 0.0  ;;  %v6364_v26 = vpop.eup %5225  ;;  %5235 = vpow2.f32 %v2023_v12  ;;  %v2021_v1 = vmul.f32 1.442695, %v2008_v41 }
 0x422   : > { %v1207_v22 = vpop.xlane.xlu1 %1206  ;;  %v1216_v14 = vpop.xlane.xlu0 %1215  ;;  %v2033_v31 = vsel %vm1068_vm2, %v6364_v26, 0.0 }
 0x423   : > { %1771 = vadd.xlane.f32.xlu0 %v1770_v20  ;;  %5237 = vrcp.f32 %v1207_v22 }
 0x424   : > { %5239 = vrcp.f32 %v1216_v14  ;;  %v6369_v0 = vpop.eup %5227 }
 0x425   : > { %5241 = vrcp.f32 %v1213_v53  ;;  %v2027_v3 = vsel %vm1068_vm2, %v6369_v0, 0.0  ;;  %v6374_v13 = vpop.eup %5229 }
 0x426   : > { %v2259_v2 = vpop.xlane.xlu1 %2258  ;;  %v1210_v32 = vpop.xlane.xlu0 %1209  ;;  %v2036_v20 = vsel %vm1068_vm2, %v6374_v13, 0.0 }
 0x427   : > { %v2277_v29 = vsub.f32 %v6125_v62, %v2259_v2  ;;  %2034 = vadd.xlane.f32.xlu0 %v2033_v31  ;;  %5243 = vrcp.f32 %v1210_v32 }
 0x428   : > { %5245 = vpow2.f32 %v2025_v24 }
 0x429   : > { %v2287_v42 = vmul.f32 1.442695, %v2277_v29 }
 0x42a   : > { %v2253_v9 = vpop.xlane.xlu1 %2252  ;;  %v2262_v4 = vpop.xlane.xlu0 %2261 }
 0x42b   : > { %5247 = vpow2.f32 %v2287_v42  ;;  %v2275_v53 = vsub.f32 %v6133_v7, %v2253_v9  ;;  %2028 = vadd.xlane.f32.xlu0 %v2027_v3  ;;  %v2278_v15 = vsub.f32 %v6135_v8, %v2262_v4 }
 0x42c   : > { %v6378_v57 = vpop.eup %5231  ;;  %5249 = vpow2.f32 %v2021_v1 }
 0x42d   : > { %v2283_v62 = vmul.f32 1.442695, %v2275_v53  ;;  %v2289_v12 = vmul.f32 1.442695, %v2278_v15  ;;  %v2039_v54 = vsel %vm1068_vm2, %v6378_v57, 0.0  ;;  %v6384_v24 = vpop.eup %5233 }
 0x42e   : > { %2040 = vadd.xlane.f32.xlu1 %v2039_v54  ;;  %v1225_v22 = vpop.xlane.xlu1 %1224  ;;  %v2256_v14 = vpop.xlane.xlu0 %2255  ;;  %v2030_v29 = vsel %vm1068_vm2, %v6384_v24, 0.0 }
 0x42f   : > { %5251 = vpow2.f32 %v2283_v62  ;;  %2037 = vadd.xlane.f32.xlu0 %v2036_v20  ;;  %v2276_v7 = vsub.f32 %v6141_v25, %v2256_v14  ;;  %v6387_v8 = vpop.eup %5235 }
 0x430   : > { %5253 = vpow2.f32 %v2289_v12  ;;  %v5238_v41 = vpop.eup %5237  ;;  %v2045_v15 = vsel %vm1068_vm2, %v6387_v8, 0.0 }
 0x431   : > { %v2285_v2 = vmul.f32 1.442695, %v2276_v7  ;;  %v5240_v31 = vpop.eup %5239  ;;  %v1237_v25 = vmul.f32 %v5238_v41, %v6116_v49 }
 0x432   : > { %v1219_v32 = vpop.xlane.xlu1 %1218  ;;  %v1228_v42 = vpop.xlane.xlu0 %1227  ;;  %v1240_v3 = vmul.f32 %v5240_v31, %v6119_v55 }
 0x433   : > { %v5242_v1 = vpop.eup %5241  ;;  %5255 = vpow2.f32 %v2285_v2  ;;  %2031 = vadd.xlane.f32.xlu0 %v2030_v29 }
 0x434   : > { %v5244_v9 = vpop.eup %5243  ;;  %5257 = vrcp.f32 %v1219_v32  ;;  %v1239_v12 = vmul.f32 %v5242_v1, %v6107_v37 }
 0x435   : > { %5259 = vrcp.f32 %v1228_v42  ;;  %v1238_v4 = vmul.f32 %v5244_v9, %v6131_v50  ;;  %v6397_v54 = vpop.eup %5245 }
 0x436   : > { %5261 = vrcp.f32 %v1225_v22  ;;  %v2271_v53 = vpop.xlane.xlu1 %2270  ;;  %v1222_v62 = vpop.xlane.xlu0 %1221  ;;  %v1246_v49 = vpack.c.bf16 %v1240_v3, %v1239_v12  ;;  %v2048_v37 = vsel %vm1068_vm2, %v6397_v54, 0.0 }
 0x437   : > { %v2281_v20 = vsub.f32 %v6159_v34, %v2271_v53  ;;  %2046 = vadd.xlane.f32.xlu0 %v2045_v15  ;;  %5263 = vrcp.f32 %v1222_v62  ;;  %v1245_v55 = vpack.c.bf16 %v1238_v4, %v1237_v25  ;;  %v1542_v34 = vsel %vm1262_vm3, %v5959_v11, 0 }
 0x438   : > { %v6400_v14 = vpop.eup %5247 }
 0x439   : > { %v2295_v7 = vmul.f32 1.442695, %v2281_v20  ;;  %4708 = vmatprep.mubr.msk.bf16.mxu0 %vm1068_vm2, %v1245_v55  ;;  %v2305_v50 = vsel %vm1068_vm2, %v6400_v14, 0.0  ;;  %v6410_v2 = vpop.eup %5249 }
 0x43a   : > { %2306 = vadd.xlane.f32.xlu1 %v2305_v50  ;;  %v2265_v22 = vpop.xlane.xlu1 %2264  ;;  %4709 = vmatmul.mubr.msk.bf16.vlgmr.msra.gmra.mxu0 %vm1068_vm2, %v1246_v49  ;;  %v2274_v41 = vpop.xlane.xlu0 %2273 }
 0x43b   : > { %5265 = vpow2.f32 %v2295_v7  ;;  %v2279_v31 = vsub.f32 %v6165_v60, %v2265_v22  ;;  %2049 = vadd.xlane.f32.xlu0 %v2048_v37  ;;  %4727 = vmatpush3.bf16.msra.mxu0 %v1542_v34  ;;  %v2282_v32 = vsub.f32 %v6167_v36, %v2274_v41  ;;  %v2042_v60 = vsel %vm1068_vm2, %v6410_v2, 0.0 }
 0x43c   : > { %v6414_v29 = vpop.eup %5251  ;;  %4926 = vmatprep.subr.msk.bf16.mxu0 %vm1262_vm3, %v6027_v61 }
 0x43d   : > { %v6418_v42 = vpop.eup %5253  ;;  %v2291_v1 = vmul.f32 1.442695, %v2279_v31  ;;  %v2297_v9 = vmul.f32 1.442695, %v2282_v32  ;;  %v2299_v11 = vsel %vm1068_vm2, %v6414_v29, 0.0 }
 0x43e   : > { %2300 = vadd.xlane.f32.xlu1 %v2299_v11  ;;  %v2531_v3 = vpop.xlane.xlu1 %2530  ;;  %v2268_v25 = vpop.xlane.xlu0 %2267  ;;  %v2308_v15 = vsel %vm1068_vm2, %v6418_v42, 0.0 }
 0x43f   : > { %5267 = vpow2.f32 %v2291_v1  ;;  %v2549_v36 = vsub.f32 %v6175_v33, %v2531_v3  ;;  %2043 = vadd.xlane.f32.xlu0 %v2042_v60  ;;  %v2280_v4 = vsub.f32 %v6173_v27, %v2268_v25  ;;  %v7222_v1 = vld [vmem:[#allocation14_spill] sm:$0xff]  ;;  %v7223_v60 = vld [vmem:[#allocation13_spill] sm:$0xff] }
 0x440   : > { %v6426_v53 = vpop.eup %5255  ;;  %5269 = vpow2.f32 %v2297_v9 }
 0x441   : > { %v5258_v62 = vpop.eup %5257  ;;  %v2559_v12 = vmul.f32 1.442695, %v2549_v36  ;;  %v2293_v20 = vmul.f32 1.442695, %v2280_v4  ;;  %v2302_v55 = vsel %vm1068_vm2, %v6426_v53, 0.0 }
 0x442   : > { %v5260_v49 = vpop.eup %5259  ;;  %v2525_v7 = vpop.xlane.xlu1 %2524  ;;  %2309 = vadd.xlane.f32.xlu1 %v2308_v15  ;;  %v1241_v34 = vmul.f32 %v5258_v62, %v6149_v43 }
 0x443   : > { %v2534_v50 = vpop.xlane.xlu0 %2533  ;;  %v5262_v33 = vpop.eup %5261  ;;  %5271 = vpow2.f32 %v2559_v12  ;;  %v2547_v27 = vsub.f32 %v6181_v56, %v2525_v7  ;;  %2303 = vadd.xlane.f32.xlu0 %v2302_v55  ;;  %v1244_v41 = vmul.f32 %v5260_v49, %v6155_v48  ;;  %v7225_v55 = vld [vmem:[#allocation16_spill] sm:$0xff] }
 0x444   : > { %v2550_v22 = vsub.f32 %v6183_v17, %v2534_v50  ;;  %v5264_v37 = vpop.eup %5263  ;;  %5273 = vpow2.f32 %v2293_v20  ;;  %v1243_v25 = vmul.f32 %v5262_v33, %v7223_v60  ;;  %v7224_v17 = vld [vmem:[#allocation15_spill] sm:$0xff] }
 0x445   : > { %v2555_v31 = vmul.f32 1.442695, %v2547_v27  ;;  %v1242_v9 = vmul.f32 %v5264_v37, %v7222_v1 }
 0x446   : > { %v2561_v32 = vmul.f32 1.442695, %v2550_v22  ;;  %v2543_v11 = vpop.xlane.xlu1 %2542  ;;  %v1248_v43 = vpack.c.bf16 %v1244_v41, %v1243_v25  ;;  %v7226_v41 = vld [vmem:[#allocation17_spill] sm:$0xff] }
 0x447   : > { %v2528_v3 = vpop.xlane.xlu0 %2527  ;;  %5275 = vpow2.f32 %v2555_v31  ;;  %v1247_v36 = vpack.c.bf16 %v1242_v9, %v1241_v34  ;;  %v2553_v15 = vsub.f32 %v7224_v17, %v2543_v11 }
 0x448   : > { %v2548_v56 = vsub.f32 %v6189_v10, %v2528_v3  ;;  %v6439_v4 = vpop.eup %5265  ;;  %5277 = vpow2.f32 %v2561_v32 }
 0x449   : > { %4712 = vmatprep.mubr.msk.bf16.mxu0 %vm1068_vm2, %v1247_v36  ;;  %v2317_v62 = vsel %vm1068_vm2, %v6439_v4, 0.0  ;;  %v2567_v7 = vmul.f32 1.442695, %v2553_v15  ;;  %v7227_v36 = vld [vmem:[#allocation18_spill] sm:$0xff] }
 0x44a   : > { %v2557_v48 = vmul.f32 1.442695, %v2548_v56  ;;  %v2537_v12 = vpop.xlane.xlu1 %2536  ;;  %2318 = vadd.xlane.f32.xlu1 %v2317_v62  ;;  %4713 = vmatmul.mubr.msk.bf16.gmra.mxu0 %vm1068_vm2, %v1248_v43 }
 0x44b   : > { %v2546_v20 = vpop.xlane.xlu0 %2545  ;;  %v2551_v10 = vsub.f32 %v7225_v55, %v2537_v12 }
 0x44c   : > { %v6447_v49 = vpop.eup %5267  ;;  %5279 = vpow2.f32 %v2557_v48  ;;  %v2554_v50 = vsub.f32 %v6199_v39, %v2546_v20 }
 0x44d   : > { %v2563_v33 = vmul.f32 1.442695, %v2551_v10  ;;  %v2311_v27 = vsel %vm1068_vm2, %v6447_v49, 0.0  ;;  %v6452_v22 = vpop.eup %5269 }
 0x44e   : > { %v2803_v37 = vpop.xlane.xlu1 %2802  ;;  %2312 = vadd.xlane.f32.xlu1 %v2311_v27  ;;  %v2569_v1 = vmul.f32 1.442695, %v2554_v50  ;;  %v2320_v3 = vsel %vm1068_vm2, %v6452_v22, 0.0 }
 0x44f   : > { %v2540_v34 = vpop.xlane.xlu0 %2539  ;;  %5281 = vpow2.f32 %v2563_v33  ;;  %v2821_v31 = vsub.f32 %v7226_v41, %v2803_v37 }
 0x450   : > { %v6455_v32 = vpop.eup %5271  ;;  %5283 = vpow2.f32 %v2567_v7  ;;  %v2552_v9 = vsub.f32 %v6205_v35, %v2540_v34 }
 0x451   : > { %v2831_v11 = vmul.f32 1.442695, %v2821_v31  ;;  %v2577_v39 = vsel %vm1068_vm2, %v6455_v32, 0.0  ;;  %v6462_v60 = vpop.eup %5273 }
 0x452   : > { %v2797_v25 = vpop.xlane.xlu1 %2796  ;;  %2578 = vadd.xlane.f32.xlu0 %v2577_v39  ;;  %2321 = vadd.xlane.f32.xlu1 %v2320_v3  ;;  %v2565_v35 = vmul.f32 1.442695, %v2552_v9  ;;  %v2314_v20 = vsel %vm1068_vm2, %v6462_v60, 0.0  ;;  %v7229_v9 = vld [vmem:[#allocation20_spill] sm:$0xff] }
 0x453   : > { %v2806_v56 = vpop.xlane.xlu0 %2805  ;;  %5285 = vpow2.f32 %v2831_v11  ;;  %v2819_v17 = vsub.f32 %v7227_v36, %v2797_v25 }
 0x454   : > { %v2822_v15 = vsub.f32 %v6215_v5, %v2806_v56  ;;  %v6466_v43 = vpop.eup %5275  ;;  %5287 = vpow2.f32 %v2569_v1  ;;  %v7228_v5 = vld [vmem:[#allocation19_spill] sm:$0xff] }
 0x455   : > { %v2827_v48 = vmul.f32 1.442695, %v2819_v17  ;;  %v2571_v12 = vsel %vm1068_vm2, %v6466_v43, 0.0  ;;  %v6472_v55 = vpop.eup %5277 }
 0x456   : > { %v2833_v62 = vmul.f32 1.442695, %v2822_v15  ;;  %v2815_v10 = vpop.xlane.xlu1 %2814  ;;  %2572 = vadd.xlane.f32.xlu0 %v2571_v12  ;;  %2315 = vadd.xlane.f32.xlu1 %v2314_v20  ;;  %v2580_v41 = vsel %vm1068_vm2, %v6472_v55, 0.0 }
 0x457   : > { %v2800_v7 = vpop.xlane.xlu0 %2799  ;;  %5289 = vpow2.f32 %v2827_v48  ;;  %v2825_v50 = vsub.f32 %v7228_v5, %v2815_v10 }
 0x458   : > { %v2820_v33 = vsub.f32 %v6221_v59, %v2800_v7  ;;  %5291 = vpow2.f32 %v2565_v35  ;;  %v7230_v35 = vld [vmem:[#allocation21_spill] sm:$0xff] }
 0x459   : > { %v6476_v27 = vpop.eup %5279  ;;  %5293 = vpow2.f32 %v2833_v62  ;;  %v2839_v37 = vmul.f32 1.442695, %v2825_v50 }
 0x45a   : > { %v2829_v34 = vmul.f32 1.442695, %v2820_v33  ;;  %v2809_v31 = vpop.xlane.xlu1 %2808  ;;  %2581 = vadd.xlane.f32.xlu0 %v2580_v41  ;;  %v2574_v59 = vsel %vm1068_vm2, %v6476_v27, 0.0  ;;  %v7232_v41 = vld [vmem:[#allocation23_spill] sm:$0xff] }
 0x45b   : > { %v2818_v1 = vpop.xlane.xlu0 %2817  ;;  %v2823_v11 = vsub.f32 %v7229_v9, %v2809_v31  ;;  %5295 = vpow2.f32 %v2839_v37  ;;  %v7231_v37 = vld [vmem:[#allocation22_spill] sm:$0xff] }
 0x45c   : > { %v6481_v39 = vpop.eup %5281  ;;  %5297 = vpow2.f32 %v2829_v34  ;;  %v2826_v56 = vsub.f32 %v6231_v30, %v2818_v1 }
 0x45d   : > { %v6485_v3 = vpop.eup %5283  ;;  %v2835_v25 = vmul.f32 1.442695, %v2823_v11  ;;  %v2583_v36 = vsel %vm1068_vm2, %v6481_v39, 0.0 }
 0x45e   : > { %v3075_v17 = vpop.xlane.xlu1 %3074  ;;  %2584 = vadd.xlane.f32.xlu1 %v2583_v36  ;;  %2575 = vadd.xlane.f32.xlu0 %v2574_v59  ;;  %v2589_v20 = vsel %vm1068_vm2, %v6485_v3, 0.0  ;;  %v2841_v30 = vmul.f32 1.442695, %v2826_v56 }
 0x45f   : > { %v2812_v15 = vpop.xlane.xlu0 %2811  ;;  %v3093_v48 = vsub.f32 %v7230_v35, %v3075_v17  ;;  %5299 = vpow2.f32 %v2835_v25  ;;  %v7233_v35 = vld [vmem:[#allocation24_spill] sm:$0xff] }
 0x460   : > { %v6491_v62 = vpop.eup %5285  ;;  %v2824_v12 = vsub.f32 %v6237_v18, %v2812_v15 }
 0x461   : > { %v6496_v10 = vpop.eup %5287  ;;  %v3103_v7 = vmul.f32 1.442695, %v3093_v48  ;;  %v2849_v5 = vsel %vm1068_vm2, %v6491_v62, 0.0 }
 0x462   : > { %v3069_v50 = vpop.xlane.xlu1 %3068  ;;  %2850 = vadd.xlane.f32.xlu1 %v2849_v5  ;;  %2590 = vadd.xlane.f32.xlu0 %v2589_v20  ;;  %v2837_v1 = vmul.f32 1.442695, %v2824_v12  ;;  %v2592_v9 = vsel %vm1068_vm2, %v6496_v10, 0.0  ;;  %v7234_v12 = vld [vmem:[#allocation25_spill] sm:$0xff] }
 0x463   : > { %v3078_v33 = vpop.xlane.xlu0 %3077  ;;  %5301 = vpow2.f32 %v3103_v7  ;;  %v3091_v34 = vsub.f32 %v7231_v37, %v3069_v50 }
 0x464   : > { %v3094_v18 = vsub.f32 %v7232_v41, %v3078_v33  ;;  %v6502_v31 = vpop.eup %5289  ;;  %5303 = vpow2.f32 %v2841_v30  ;;  %v7236_v41 = vld [vmem:[#allocation26_spill] sm:$0xff] }
 0x465   : > { %v6506_v11 = vpop.eup %5291  ;;  %v3099_v59 = vmul.f32 1.442695, %v3091_v34  ;;  %v2843_v56 = vsel %vm1068_vm2, %v6502_v31, 0.0 }
 0x466   : > { %v3105_v25 = vmul.f32 1.442695, %v3094_v18  ;;  %v6510_v36 = vpop.eup %5293  ;;  %v3087_v17 = vpop.xlane.xlu1 %3086  ;;  %2844 = vadd.xlane.f32.xlu1 %v2843_v56  ;;  %2593 = vadd.xlane.f32.xlu0 %v2592_v9  ;;  %v2586_v5 = vsel %vm1068_vm2, %v6506_v11, 0.0 }
 0x467   : > { %v3072_v15 = vpop.xlane.xlu0 %3071  ;;  %5305 = vpow2.f32 %v3099_v59  ;;  %v3097_v20 = vsub.f32 %v7234_v12, %v3087_v17  ;;  %v2852_v50 = vsel %vm1068_vm2, %v6510_v36, 0.0 }
 0x468   : > { %v3092_v48 = vsub.f32 %v7233_v35, %v3072_v15  ;;  %5307 = vpow2.f32 %v2837_v1  ;;  %v6514_v7 = vpop.eup %5295 }
 0x469   : > { %7235 = vst [vmem:[#allocation14_spill] sm:$0xff] %v6514_v7  ;;  %5309 = vpow2.f32 %v3105_v25  ;;  %v6520_v33 = vpop.eup %5297  ;;  %v3111_v1 = vmul.f32 1.442695, %v3097_v20  ;;  %v2861_v9 = vsel %vm1068_vm2, %v6514_v7, 0.0  ;;  %v7237_v25 = vld [vmem:[#allocation27_spill] sm:$0xff]  ;;  %v7240_v20 = vld [vmem:[#allocation28_spill] sm:$0xff] }
 0x46a   : > { %v3101_v30 = vmul.f32 1.442695, %v3092_v48  ;;  %v3081_v37 = vpop.xlane.xlu1 %3080  ;;  %2587 = vadd.xlane.f32.xlu0 %v2586_v5  ;;  %2853 = vadd.xlane.f32.xlu1 %v2852_v50  ;;  %v2846_v17 = vsel %vm1068_vm2, %v6520_v33, 0.0 }
 0x46b   : > { %v3090_v34 = vpop.xlane.xlu0 %3089  ;;  %v3095_v18 = vsub.f32 %v7236_v41, %v3081_v37 }
 0x46c   : > { %5311 = vpow2.f32 %v3101_v30  ;;  %v3098_v56 = vsub.f32 %v7237_v25, %v3090_v34  ;;  %v6528_v15 = vpop.eup %5299 }
 0x46d   : > { %v3107_v59 = vmul.f32 1.442695, %v3095_v18  ;;  %7238 = vst [vmem:[#allocation13_spill] sm:$0xff] %v6528_v15  ;;  %v2855_v30 = vsel %vm1068_vm2, %v6528_v15, 0.0 }
 0x46e   : > { %2862 = vadd.xlane.f32.xlu1 %v2861_v9  ;;  %2847 = vadd.xlane.f32.xlu0 %v2846_v17  ;;  %v3113_v12 = vmul.f32 1.442695, %v3098_v56 }
 0x46f   : > { %v3084_v35 = vpop.xlane.xlu0 %3083  ;;  %5313 = vpow2.f32 %v3107_v59 }
 0x470   : > { %v6530_v48 = vpop.eup %5301  ;;  %5315 = vpow2.f32 %v3111_v1  ;;  %v3096_v5 = vsub.f32 %v7240_v20, %v3084_v35 }
 0x471   : > { %7239 = vst [vmem:[#allocation15_spill] sm:$0xff] %v6530_v48  ;;  %v3121_v50 = vsel %vm1068_vm2, %v6530_v48, 0.0  ;;  %v6537_v37 = vpop.eup %5303  ;;  %5317 = vpow2.f32 %v3113_v12 }
 0x472   : > { %7241 = vst [vmem:[#allocation16_spill] sm:$0xff] %v6537_v37  ;;  %2856 = vadd.xlane.f32.xlu1 %v2855_v30  ;;  %3122 = vadd.xlane.f32.xlu0 %v3121_v50  ;;  %v3109_v18 = vmul.f32 1.442695, %v3096_v5  ;;  %v2864_v9 = vsel %vm1068_vm2, %v6537_v37, 0.0 }
 0x474   : > { %v6539_v34 = vpop.eup %5305  ;;  %5319 = vpow2.f32 %v3109_v18 }
 0x475   : > { %7242 = vst [vmem:[#allocation17_spill] sm:$0xff] %v6539_v34  ;;  %v6541_v41 = vpop.eup %5307  ;;  %v3115_v1 = vsel %vm1068_vm2, %v6539_v34, 0.0 }
 0x476   : > { %v6547_v59 = vpop.eup %5309  ;;  %3116 = vadd.xlane.f32.xlu0 %v3115_v1  ;;  %2865 = vadd.xlane.f32.xlu1 %v2864_v9  ;;  %v2858_v25 = vsel %vm1068_vm2, %v6541_v41, 0.0 }
 0x477   : > { %7243 = vst [vmem:[#allocation18_spill] sm:$0xff] %v6547_v59  ;;  %v3124_v56 = vsel %vm1068_vm2, %v6547_v59, 0.0 }
 0x479   : > { %v6553_v17 = vpop.eup %5311 }
 0x47a   : > { %7244 = vst [vmem:[#allocation19_spill] sm:$0xff] %v6553_v17  ;;  %2859 = vadd.xlane.f32.xlu1 %v2858_v25  ;;  %3125 = vadd.xlane.f32.xlu0 %v3124_v56  ;;  %v3118_v5 = vsel %vm1068_vm2, %v6553_v17, 0.0 }
 0x47c   : > { %v6555_v35 = vpop.eup %5313 }
 0x47d   : > { %7245 = vst [vmem:[#allocation20_spill] sm:$0xff] %v6555_v35  ;;  %v6557_v12 = vpop.eup %5315  ;;  %v3127_v20 = vsel %vm1068_vm2, %v6555_v35, 0.0 }
 0x47e   : > { %7246 = vst [vmem:[#allocation21_spill] sm:$0xff] %v6557_v12  ;;  %3128 = vadd.xlane.f32.xlu1 %v3127_v20  ;;  %3119 = vadd.xlane.f32.xlu0 %v3118_v5  ;;  %v3133_v30 = vsel %vm1068_vm2, %v6557_v12, 0.0  ;;  %v6565_v50 = vpop.eup %5317  ;;  %v7249_v20 = vld [vmem:[#allocation9_spill] sm:$0xff] }
 0x47f   : > { %7247 = vst [vmem:[#allocation22_spill] sm:$0xff] %v6565_v50  ;;  %v3136_v18 = vsel %vm1068_vm2, %v6565_v50, 0.0 }
 0x481   : > { %v6569_v1 = vpop.eup %5319 }
 0x482   : > { %3134 = vadd.xlane.f32.xlu0 %v3133_v30  ;;  %7248 = vst [vmem:[#allocation23_spill] sm:$0xff] %v6569_v1  ;;  %v3130_v9 = vsel %vm1068_vm2, %v6569_v1, 0.0 }
 0x486   : > { %3137 = vadd.xlane.f32.xlu0 %v3136_v18 }
 0x48a   : > { %3131 = vadd.xlane.f32.xlu0 %v3130_v9 }
 0x48b   : > { %v1490_v25 = vpop.xlane.xlu1 %1489 }
 0x48f   : > { %v1484_v56 = vpop.xlane.xlu1 %1483  ;;  %3159 = vrot.lane.b32.xlu1 %v7249_v20, %s5545_s26  ;;  %s5552_s26 = smov 56  }
 0x490   : > { %v1493_v5 = vpop.xlane.xlu0 %1492 }
 0x491   : > { %5321 = vrcp.f32 %v1493_v5 }
 0x492   : > { %5323 = vrcp.f32 %v1484_v56 }
 0x493   : > { %v1502_v12 = vpop.xlane.xlu1 %1501  ;;  %5325 = vrcp.f32 %v1490_v25 }
 0x494   : > { %v1487_v30 = vpop.xlane.xlu0 %1486 }
 0x495   : > { %5327 = vrcp.f32 %v1487_v30 }
 0x497   : > { %v1496_v50 = vpop.xlane.xlu1 %1495 }
 0x498   : > { %v1505_v35 = vpop.xlane.xlu0 %1504 }
 0x499   : > { %5329 = vrcp.f32 %v1505_v35 }
 0x49a   : > { %5331 = vrcp.f32 %v1496_v50 }
 0x49b   : > { %v1763_v18 = vpop.xlane.xlu1 %1762  ;;  %5333 = vrcp.f32 %v1502_v12 }
 0x49c   : > { %v1499_v48 = vpop.xlane.xlu0 %1498 }
 0x49d   : > { %5335 = vrcp.f32 %v1499_v48 }
 0x49e   : > { %v5322_v9 = vpop.eup %5321 }
 0x49f   : > { %v1757_v1 = vpop.xlane.xlu1 %1756  ;;  %v5324_v59 = vpop.eup %5323  ;;  %v1517_v25 = vmul.f32 %v5322_v9, %v6294_v63  ;;  %v1814_v63 = vsel %vm1262_vm3, %v6027_v61, 0 }
 0x4a0   : > { %v1766_v34 = vpop.xlane.xlu0 %1765  ;;  %2887 = vrot.lane.b32.xlu0 %v7249_v20, %s5544_s20  ;;  %v5326_v56 = vpop.eup %5325  ;;  %v1514_v35 = vmul.f32 %v5324_v59, %v6292_v38  ;;  %s7265_s20 = sld [smem:[#allocation30_spill]] }
 0x4a1   : > { %5337 = vrcp.f32 %v1766_v34  ;;  %v1516_v48 = vmul.f32 %v5326_v56, %v6286_v28  ;;  %v7250_v28 = vld [vmem:[#allocation10_spill] sm:$0xff] }
 0x4a2   : > { %v5328_v5 = vpop.eup %5327  ;;  %5339 = vrcp.f32 %v1757_v1 }
 0x4a3   : > { %v1775_v30 = vpop.xlane.xlu1 %1774  ;;  %v1515_v12 = vmul.f32 %v5328_v5, %v6304_v52  ;;  %5341 = vrcp.f32 %v1763_v18  ;;  %v1523_v17 = vpack.c.bf16 %v1517_v25, %v1516_v48 }
 0x4a4   : > { %v1760_v50 = vpop.xlane.xlu0 %1759 }
 0x4a5   : > { %5343 = vrcp.f32 %v1760_v50  ;;  %v1522_v7 = vpack.c.bf16 %v1515_v12, %v1514_v35 }
 0x4a6   : > { %v5330_v37 = vpop.eup %5329 }
 0x4a7   : > { %4728 = vmatprep.mubr.msk.bf16.mxu0 %vm1068_vm2, %v1522_v7  ;;  %v5332_v20 = vpop.eup %5331  ;;  %v1769_v15 = vpop.xlane.xlu1 %1768  ;;  %v1521_v59 = vmul.f32 %v5330_v37, %v6314_v58 }
 0x4a8   : > { %4729 = vmatmul.mubr.msk.bf16.vlgmr.msra.gmra.mxu0 %vm1068_vm2, %v1523_v17  ;;  %v1778_v38 = vpop.xlane.xlu0 %1777  ;;  %v5334_v34 = vpop.eup %5333  ;;  %v1518_v7 = vmul.f32 %v5332_v20, %v6312_v21  ;;  %v2086_v20 = vsel %vm1262_vm3, %v7250_v28, 0 }
 0x4a9   : > { %4747 = vmatpush3.bf16.msra.mxu0 %v1814_v63  ;;  %5345 = vrcp.f32 %v1778_v38  ;;  %v1520_v18 = vmul.f32 %v5334_v34, %v6302_v47 }
 0x4aa   : > { %v5336_v52 = vpop.eup %5335  ;;  %4928 = vmatprep.subr.msk.bf16.mxu0 %vm1262_vm3, %v7250_v28  ;;  %5347 = vrcp.f32 %v1769_v15 }
 0x4ab   : > { %v1519_v1 = vmul.f32 %v5336_v52, %v6324_v44  ;;  %5349 = vrcp.f32 %v1775_v30  ;;  %v1525_v9 = vpack.c.bf16 %v1521_v59, %v1520_v18 }
 0x4ac   : > { %v1772_v17 = vpop.xlane.xlu0 %1771 }
 0x4ad   : > { %5351 = vrcp.f32 %v1772_v17  ;;  %v1524_v61 = vpack.c.bf16 %v1519_v1, %v1518_v7 }
 0x4ae   : > { %v5338_v56 = vpop.eup %5337 }
 0x4af   : > { %4732 = vmatprep.mubr.msk.bf16.mxu0 %vm1068_vm2, %v1524_v61  ;;  %v5340_v5 = vpop.eup %5339  ;;  %v1790_v21 = vmul.f32 %v5338_v56, %v6333_v51 }
 0x4b0   : > { %4733 = vmatmul.mubr.msk.bf16.gmra.mxu0 %vm1068_vm2, %v1525_v9  ;;  %v2035_v25 = vpop.xlane.xlu0 %2034  ;;  %v5342_v58 = vpop.eup %5341  ;;  %v1787_v44 = vmul.f32 %v5340_v5, %v6331_v45 }
 0x4b1   : > { %v1789_v47 = vmul.f32 %v5342_v58, %v6322_v46 }
 0x4b2   : > { %v5344_v15 = vpop.eup %5343 }
 0x4b3   : > { %v1788_v37 = vmul.f32 %v5344_v15, %v6342_v40  ;;  %v1796_v12 = vpack.c.bf16 %v1790_v21, %v1789_v47  ;;  %v7251_v40 = vld [vmem:[#allocation11_spill] sm:$0xff] }
 0x4b4   : > { %v2029_v30 = vpop.xlane.xlu0 %2028 }
 0x4b5   : > { %v1795_v35 = vpack.c.bf16 %v1788_v37, %v1787_v44 }
 0x4b6   : > { %v5346_v48 = vpop.eup %5345 }
 0x4b7   : > { %4748 = vmatprep.mubr.msk.bf16.mxu0 %vm1068_vm2, %v1795_v35  ;;  %v5348_v50 = vpop.eup %5347  ;;  %v1794_v46 = vmul.f32 %v5346_v48, %v6353_v6  ;;  %v2041_v1 = vpop.xlane.xlu1 %2040 }
 0x4b8   : > { %4749 = vmatmul.mubr.msk.bf16.vlgmr.msra.gmra.mxu0 %vm1068_vm2, %v1796_v12  ;;  %v2038_v63 = vpop.xlane.xlu0 %2037  ;;  %v5350_v51 = vpop.eup %5349  ;;  %v1791_v38 = vmul.f32 %v5348_v50, %v6351_v16 }
 0x4b9   : > { %4767 = vmatpush3.bf16.msra.mxu0 %v2086_v20  ;;  %5353 = vrcp.f32 %v2038_v63  ;;  %v1793_v59 = vmul.f32 %v5350_v51, %v6340_v23 }
 0x4ba   : > { %v5352_v45 = vpop.eup %5351  ;;  %4930 = vmatprep.subr.msk.bf16.mxu0 %vm1262_vm3, %v7251_v40  ;;  %5355 = vrcp.f32 %v2029_v30  ;;  %v7252_v30 = vld [vmem:[#allocation12_spill] sm:$0xff] }
 0x4bb   : > { %v1792_v34 = vmul.f32 %v5352_v45, %v6359_v19  ;;  %5357 = vrcp.f32 %v2035_v25  ;;  %v1798_v7 = vpack.c.bf16 %v1794_v46, %v1793_v59 }
 0x4bc   : > { %v2032_v52 = vpop.xlane.xlu0 %2031 }
 0x4bd   : > { %5359 = vrcp.f32 %v2032_v52  ;;  %v1797_v28 = vpack.c.bf16 %v1792_v34, %v1791_v38 }
 0x4bf   : > { %4752 = vmatprep.mubr.msk.bf16.mxu0 %vm1068_vm2, %v1797_v28 }
 0x4c0   : > { %4753 = vmatmul.mubr.msk.bf16.gmra.mxu0 %vm1068_vm2, %v1798_v7  ;;  %v2047_v17 = vpop.xlane.xlu0 %2046 }
 0x4c3   : > { %v2307_v18 = vpop.xlane.xlu1 %2306 }
 0x4c4   : > { %v2050_v6 = vpop.xlane.xlu0 %2049 }
 0x4c5   : > { %5361 = vrcp.f32 %v2050_v6 }
 0x4c6   : > { %v5354_v61 = vpop.eup %5353  ;;  %5363 = vrcp.f32 %v2041_v1 }
 0x4c7   : > { %v2301_v16 = vpop.xlane.xlu1 %2300  ;;  %v5356_v19 = vpop.eup %5355  ;;  %5365 = vrcp.f32 %v2047_v17  ;;  %v2062_v5 = vmul.f32 %v5354_v61, %v6374_v13  ;;  %v2358_v13 = vsel %vm1262_vm3, %v7251_v40, 0 }
 0x4c8   : > { %v2044_v9 = vpop.xlane.xlu0 %2043  ;;  %v5358_v56 = vpop.eup %5357  ;;  %v2059_v58 = vmul.f32 %v5356_v19, %v6369_v0 }
 0x4c9   : > { %5367 = vrcp.f32 %v2044_v9  ;;  %v2061_v21 = vmul.f32 %v5358_v56, %v6364_v26 }
 0x4ca   : > { %v5360_v23 = vpop.eup %5359  ;;  %5369 = vrcp.f32 %v2301_v16 }
 0x4cb   : > { %v2310_v25 = vpop.xlane.xlu1 %2309  ;;  %v2060_v15 = vmul.f32 %v5360_v23, %v6384_v24  ;;  %v2068_v47 = vpack.c.bf16 %v2062_v5, %v2061_v21 }
 0x4cc   : > { %v2304_v44 = vpop.xlane.xlu0 %2303 }
 0x4cd   : > { %5371 = vrcp.f32 %v2304_v44  ;;  %v2067_v37 = vpack.c.bf16 %v2060_v15, %v2059_v58 }
 0x4ce   : > { %5373 = vrcp.f32 %v2310_v25 }
 0x4cf   : > { %4768 = vmatprep.mubr.msk.bf16.mxu0 %vm1068_vm2, %v2067_v37  ;;  %5375 = vrcp.f32 %v2307_v18 }
 0x4d0   : > { %4769 = vmatmul.mubr.msk.bf16.vlgmr.msra.gmra.mxu0 %vm1068_vm2, %v2068_v47 }
 0x4d1   : > { %4787 = vmatpush3.bf16.msra.mxu0 %v2358_v13 }
 0x4d2   : > { %4932 = vmatprep.subr.msk.bf16.mxu0 %vm1262_vm3, %v7252_v30  ;;  %v5362_v0 = vpop.eup %5361 }
 0x4d3   : > { %v2319_v24 = vpop.xlane.xlu1 %2318  ;;  %v5364_v26 = vpop.eup %5363  ;;  %v2066_v48 = vmul.f32 %v5362_v0, %v6397_v54 }
 0x4d4   : > { %v5366_v35 = vpop.eup %5365  ;;  %v2063_v20 = vmul.f32 %v5364_v26, %v6378_v57 }
 0x4d5   : > { %v2065_v45 = vmul.f32 %v5366_v35, %v6387_v8 }
 0x4d6   : > { %v5368_v12 = vpop.eup %5367 }
 0x4d7   : > { %v2313_v50 = vpop.xlane.xlu1 %2312  ;;  %v2064_v63 = vmul.f32 %v5368_v12, %v6410_v2  ;;  %v5370_v51 = vpop.eup %5369  ;;  %v2070_v38 = vpack.c.bf16 %v2066_v48, %v2065_v45 }
 0x4d8   : > { %v2331_v28 = vmul.f32 %v5370_v51, %v6414_v29 }
 0x4d9   : > { %v2069_v40 = vpack.c.bf16 %v2064_v63, %v2063_v20 }
 0x4da   : > { %v5372_v46 = vpop.eup %5371 }
 0x4db   : > { %v5374_v34 = vpop.eup %5373  ;;  %4772 = vmatprep.mubr.msk.bf16.mxu0 %vm1068_vm2, %v2069_v40  ;;  %v2322_v52 = vpop.xlane.xlu1 %2321  ;;  %v2332_v54 = vmul.f32 %v5372_v46, %v6426_v53  ;;  %v2630_v53 = vsel %vm1262_vm3, %v7252_v30, 0 }
 0x4dc   : > { %v2579_v59 = vpop.xlane.xlu0 %2578  ;;  %4773 = vmatmul.mubr.msk.bf16.gmra.mxu0 %vm1068_vm2, %v2070_v38  ;;  %v5376_v57 = vpop.eup %5375  ;;  %5377 = vrcp.f32 %v2322_v52  ;;  %v2334_v7 = vmul.f32 %v5374_v34, %v6418_v42 }
 0x4dd   : > { %v2339_v2 = vpack.c.bf16 %v2332_v54, %v2331_v28  ;;  %5379 = vrcp.f32 %v2313_v50  ;;  %v2333_v17 = vmul.f32 %v5376_v57, %v6400_v14 }
 0x4de   : > { %5381 = vrcp.f32 %v2319_v24 }
 0x4df   : > { %4788 = vmatprep.mubr.msk.bf16.mxu0 %vm1068_vm2, %v2339_v2  ;;  %v2316_v8 = vpop.xlane.xlu1 %2315  ;;  %v2340_v18 = vpack.c.bf16 %v2334_v7, %v2333_v17 }
 0x4e0   : > { %v2573_v1 = vpop.xlane.xlu0 %2572  ;;  %5383 = vrcp.f32 %v2316_v8 }
 0x4e4   : > { %v2582_v29 = vpop.xlane.xlu0 %2581  ;;  %4789 = vmatmul.mubr.msk.bf16.vlgmr.msra.gmra.mxu0 %vm1068_vm2, %v2340_v18 }
 0x4e5   : > { %4807 = vmatpush3.bf16.msra.mxu0 %v2630_v53  ;;  %5385 = vrcp.f32 %v2582_v29 }
 0x4e6   : > { %5387 = vrcp.f32 %v2573_v1 }
 0x4e7   : > { %v2585_v42 = vpop.xlane.xlu1 %2584  ;;  %5389 = vrcp.f32 %v2579_v59 }
 0x4e8   : > { %v2576_v6 = vpop.xlane.xlu0 %2575 }
 0x4e9   : > { %5391 = vrcp.f32 %v2576_v6  ;;  %v5378_v61 = vpop.eup %5377 }
 0x4ea   : > { %v5380_v16 = vpop.eup %5379  ;;  %v2338_v23 = vmul.f32 %v5378_v61, %v6452_v22 }
 0x4eb   : > { %v2851_v19 = vpop.xlane.xlu1 %2850  ;;  %v5382_v14 = vpop.eup %5381  ;;  %v2335_v5 = vmul.f32 %v5380_v16, %v6447_v49 }
 0x4ec   : > { %v2591_v9 = vpop.xlane.xlu0 %2590  ;;  %v2337_v21 = vmul.f32 %v5382_v14, %v6439_v4 }
 0x4ed   : > { %v5384_v56 = vpop.eup %5383 }
 0x4ee   : > { %v2336_v25 = vmul.f32 %v5384_v56, %v6462_v60  ;;  %v2342_v37 = vpack.c.bf16 %v2338_v23, %v2337_v21  ;;  %v7255_v21 = vld [vmem:[#allocation19_spill] sm:$0xff] }
 0x4ef   : > { %v2845_v58 = vpop.xlane.xlu1 %2844 }
 0x4f0   : > { %v2594_v15 = vpop.xlane.xlu0 %2593  ;;  %v2341_v44 = vpack.c.bf16 %v2336_v25, %v2335_v5 }
 0x4f1   : > { %5393 = vrcp.f32 %v2594_v15 }
 0x4f2   : > { %4792 = vmatprep.mubr.msk.bf16.mxu0 %vm1068_vm2, %v2341_v44  ;;  %v5386_v47 = vpop.eup %5385  ;;  %5395 = vrcp.f32 %v2585_v42 }
 0x4f3   : > { %v2854_v13 = vpop.xlane.xlu1 %2853  ;;  %4793 = vmatmul.mubr.msk.bf16.gmra.mxu0 %vm1068_vm2, %v2342_v37  ;;  %v5388_v22 = vpop.eup %5387  ;;  %5397 = vrcp.f32 %v2591_v9  ;;  %v2606_v0 = vmul.f32 %v5386_v47, %v6472_v55  ;;  %v7253_v9 = vld [vmem:[#allocation13_spill] sm:$0xff]  ;;  %v7256_v37 = vld [vmem:[#allocation14_spill] sm:$0xff] }
 0x4f4   : > { %v2588_v30 = vpop.xlane.xlu0 %2587  ;;  %v5390_v49 = vpop.eup %5389  ;;  %v2603_v26 = vmul.f32 %v5388_v22, %v6466_v43 }
 0x4f5   : > { %5399 = vrcp.f32 %v2588_v30  ;;  %v2605_v12 = vmul.f32 %v5390_v49, %v6455_v32 }
 0x4f6   : > { %v5392_v60 = vpop.eup %5391  ;;  %5401 = vrcp.f32 %v2845_v58  ;;  %v7254_v58 = vld [vmem:[#allocation16_spill] sm:$0xff] }
 0x4f7   : > { %v2863_v4 = vpop.xlane.xlu1 %2862  ;;  %v2604_v35 = vmul.f32 %v5392_v60, %v6476_v27  ;;  %v2612_v50 = vpack.c.bf16 %v2606_v0, %v2605_v12  ;;  %v7259_v12 = vld [vmem:[#allocation23_spill] sm:$0xff] }
 0x4f8   : > { %v2848_v24 = vpop.xlane.xlu0 %2847 }
 0x4f9   : > { %5403 = vrcp.f32 %v2848_v24  ;;  %v2611_v48 = vpack.c.bf16 %v2604_v35, %v2603_v26  ;;  %v7258_v26 = vld [vmem:[#allocation18_spill] sm:$0xff] }
 0x4fa   : > { %5405 = vrcp.f32 %v2854_v13  ;;  %v7257_v13 = vld [vmem:[#allocation17_spill] sm:$0xff] }
 0x4fb   : > { %4808 = vmatprep.mubr.msk.bf16.mxu0 %vm1068_vm2, %v2611_v48  ;;  %v2857_v20 = vpop.xlane.xlu1 %2856 }
 0x4fc   : > { %v3123_v63 = vpop.xlane.xlu0 %3122  ;;  %4809 = vmatmul.mubr.msk.bf16.vlgmr.msra.gmra.mxu0 %vm1068_vm2, %v2612_v50  ;;  %v7260_v50 = vld [vmem:[#allocation15_spill] sm:$0xff] }
 0x4fe   : > { %v5394_v51 = vpop.eup %5393 }
 0x4ff   : > { %v2866_v55 = vpop.xlane.xlu1 %2865  ;;  %v5396_v40 = vpop.eup %5395  ;;  %v2610_v43 = vmul.f32 %v5394_v51, %v6496_v10 }
 0x500   : > { %v3117_v45 = vpop.xlane.xlu0 %3116  ;;  %v5398_v46 = vpop.eup %5397  ;;  %v2607_v32 = vmul.f32 %v5396_v40, %v6481_v39 }
 0x501   : > { %v2609_v28 = vmul.f32 %v5398_v46, %v6485_v3 }
 0x502   : > { %v5400_v38 = vpop.eup %5399 }
 0x503   : > { %v2608_v34 = vmul.f32 %v5400_v38, %v6506_v11  ;;  %v5402_v52 = vpop.eup %5401  ;;  %v2860_v59 = vpop.xlane.xlu1 %2859  ;;  %v2614_v2 = vpack.c.bf16 %v2610_v43, %v2609_v28  ;;  %v7262_v38 = vld [vmem:[#allocation22_spill] sm:$0xff] }
 0x504   : > { %v3126_v27 = vpop.xlane.xlu0 %3125  ;;  %5407 = vrcp.f32 %v2860_v59  ;;  %v2875_v8 = vmul.f32 %v5402_v52, %v6502_v31  ;;  %v6679_v52 = vpop.f32.mrf.mxu0 }
 0x505   : > { %v2613_v54 = vpack.c.bf16 %v2608_v34, %v2607_v32  ;;  %5409 = vrcp.f32 %v2851_v19 }
 0x506   : > { %v5404_v57 = vpop.eup %5403  ;;  %5411 = vrcp.f32 %v2857_v20  ;;  %v6681_v59 = vpop.f32.mrf.mxu0 }
 0x507   : > { %4812 = vmatprep.mubr.msk.bf16.mxu0 %vm1068_vm2, %v2613_v54  ;;  %v2876_v10 = vmul.f32 %v5404_v57, %v6520_v33  ;;  %5413 = vrcp.f32 %v2866_v55  ;;  %v5406_v1 = vpop.eup %5405  ;;  %v3129_v17 = vpop.xlane.xlu1 %3128 }
 0x508   : > { %v3120_v7 = vpop.xlane.xlu0 %3119  ;;  %4813 = vmatmul.mubr.msk.bf16.gmra.mxu0 %vm1068_vm2, %v2614_v2  ;;  %v2878_v33 = vmul.f32 %v5406_v1, %v6510_v36  ;;  %v6683_v28 = vpop.f32.mrf.mxu0 }
 0x509   : > { %v2883_v39 = vpack.c.bf16 %v2876_v10, %v2875_v8  ;;  %5415 = vrcp.f32 %v3120_v7 }
 0x50a   : > { %5417 = vrcp.f32 %v2863_v4  ;;  %v6685_v54 = vpop.f32.mrf.mxu0 }
 0x50b   : > { %4828 = vmatprep.mubr.msk.bf16.mxu0 %vm1068_vm2, %v2883_v39  ;;  %5419 = vrcp.f32 %v3117_v45  ;;  %v3160_v19 = vpop.permute.xlu1 %3159 }
 0x50c   : > { %v3135_v3 = vpop.xlane.xlu0 %3134  ;;  %5421 = vrcp.f32 %v3126_v27  ;;  %v7263_v27 = vld [vmem:[#allocation21_spill] sm:$0xff]  ;;  %v6687_v57 = vpop.f32.mrf.mxu0 }
 0x50e   : > { %v6689_v2 = vpop.f32.mrf.mxu0 }
 0x510   : > { %v3138_v11 = vpop.xlane.xlu0 %3137  ;;  %v6691_v7 = vpop.f32.mrf.mxu0 }
 0x511   : > { %v5408_v29 = vpop.eup %5407 }
 0x512   : > { %v5410_v31 = vpop.eup %5409  ;;  %v2880_v6 = vmul.f32 %v5408_v29, %v6541_v41  ;;  %v3174_v41 = vsel %vm1262_vm3, %v3160_v19, 0  ;;  %v6693_v8 = vpop.f32.mrf.mxu0 }
 0x513   : > { %v5412_v53 = vpop.eup %5411  ;;  %v2877_v61 = vmul.f32 %v5410_v31, %v6491_v62 }
 0x514   : > { %v3132_v18 = vpop.xlane.xlu0 %3131  ;;  %v2879_v14 = vmul.f32 %v5412_v53, %v7253_v9  ;;  %v5414_v36 = vpop.eup %5413 }
 0x515   : > { %5423 = vrcp.f32 %v3132_v18  ;;  %v2884_v56 = vpack.c.bf16 %v2878_v33, %v2877_v61  ;;  %v2882_v15 = vmul.f32 %v5414_v36, %v7254_v58 }
 0x516   : > { %5425 = vrcp.f32 %v3123_v63  ;;  %v2885_v23 = vpack.c.bf16 %v2880_v6, %v2879_v14  ;;  %v5416_v5 = vpop.eup %5415  ;;  %v7261_v63 = vld [vmem:[#allocation20_spill] sm:$0xff] }
 0x517   : > { %5427 = vrcp.f32 %v3129_v17  ;;  %v5418_v62 = vpop.eup %5417  ;;  %v3148_v44 = vmul.f32 %v5416_v5, %v7255_v21 }
 0x518   : > { %v2888_v42 = vpop.permute.xlu0 %2887  ;;  %v5420_v25 = vpop.eup %5419  ;;  %5429 = vrcp.f32 %v3138_v11  ;;  %v2881_v47 = vmul.f32 %v5418_v62, %v7256_v37 }
 0x519   : > { %v2902_v16 = vsel %vm1262_vm3, %v2888_v42, 0  ;;  %4934 = vmatprep.subr.msk.bf16.mxu0 %vm1262_vm3, %v2888_v42  ;;  %5431 = vrcp.f32 %v3135_v3  ;;  %v3147_v30 = vmul.f32 %v5420_v25, %v7257_v13  ;;  %v5422_v49 = vpop.eup %5421 }
 0x51a   : > { %4827 = vmatpush3.bf16.msra.mxu0 %v2902_v16  ;;  %v2886_v22 = vpack.c.bf16 %v2882_v15, %v2881_v47  ;;  %v3150_v35 = vmul.f32 %v5422_v49, %v7258_v26 }
 0x51b   : > { %4936 = vmatprep.subr.msk.bf16.mxu0 %vm1262_vm3, %v3160_v19  ;;  %v3155_v60 = vpack.c.bf16 %v3148_v44, %v3147_v30 }
 0x51d   : > { %4829 = vmatmul.mubr.msk.bf16.vlgmr.msra.gmra.mxu0 %vm1068_vm2, %v2884_v56 }
 0x51e   : > { %4832 = vmatprep.mubr.msk.bf16.mxu0 %vm1068_vm2, %v2885_v23  ;;  %4847 = vmatpush3.bf16.msra.mxu0 %v3174_v41 }
 0x522   : > { %v5424_v0 = vpop.eup %5423 }
 0x523   : > { %v5426_v4 = vpop.eup %5425  ;;  %v3152_v48 = vmul.f32 %v5424_v0, %v7259_v12 }
 0x524   : > { %v5428_v24 = vpop.eup %5427  ;;  %v3149_v20 = vmul.f32 %v5426_v4, %v7260_v50 }
 0x525   : > { %4833 = vmatmul.mubr.msk.bf16.gmra.mxu0 %vm1068_vm2, %v2886_v22  ;;  %v3151_v51 = vmul.f32 %v5428_v24, %v7261_v63  ;;  %v5430_v45 = vpop.eup %5429 }
 0x526   : > { %4848 = vmatprep.mubr.msk.bf16.mxu0 %vm1068_vm2, %v3155_v60  ;;  %v3156_v55 = vpack.c.bf16 %v3150_v35, %v3149_v20  ;;  %v5432_v46 = vpop.eup %5431  ;;  %v3154_v43 = vmul.f32 %v5430_v45, %v7262_v38 }
 0x527   : > { %v3157_v40 = vpack.c.bf16 %v3152_v48, %v3151_v51  ;;  %v3153_v32 = vmul.f32 %v5432_v46, %v7263_v27 }
 0x529   : > { %v3158_v34 = vpack.c.bf16 %v3154_v43, %v3153_v32 }
 0x52d   : > { %4849 = vmatmul.mubr.msk.bf16.vlgmr.msra.gmra.mxu0 %vm1068_vm2, %v3156_v55 }
 0x52e   : > { %4852 = vmatprep.mubr.msk.bf16.mxu0 %vm1068_vm2, %v3157_v40 }
 0x535   : > { %4853 = vmatmul.mubr.msk.bf16.gmra.mxu0 %vm1068_vm2, %v3158_v34 }
 0x568   : > { %v4730_v10 = vpop.f32.mrf.mxu0 }
 0x56a   : > { %v1578_v39 = vpop.f32.mrf.mxu0 }
 0x56c   : > { %v4731_v3 = vpop.f32.mrf.mxu0 }
 0x56d   : > { %v4993_v11 = vpack.i.bf16 %v4731_v3, %v4730_v10 }
 0x56e   : > { %v1581_v1 = vpop.f32.mrf.mxu0 }
 0x56f   : > { %4994 = vrot.lane.b32.xlu0 %v4993_v11, %s7188_s1  ;;  %v4998_v18 = vpack.i.bf16 %v1581_v1, %v1578_v39  ;;  %v5150_v1 = vld [vmem:[%s7140_s8 + $0x18] sm:$0xff]  }
 0x570   : > { %v4734_v17 = vpop.f32.mrf.mxu0  ;;  %4856 = vmatprep.subr.bf16.mxu1 %v5150_v1 }
 0x571   : > { %4857 = vmatpush3.bf16.msra.mxu1 %v5150_v1 }
 0x572   : > { %v1594_v29 = vpop.f32.mrf.mxu0 }
 0x573   : > { %4999 = vrot.lane.b32.xlu0 %v4998_v18, %s7188_s1 }
 0x574   : > { %v4735_v31 = vpop.f32.mrf.mxu0 }
 0x575   : > { %v5003_v53 = vpack.i.bf16 %v4735_v31, %v4734_v17  ;;  %v5151_v17 = vld [vmem:[%s7140_s8 + $0x10] sm:$0xff]  }
 0x576   : > { %v1597_v33 = vpop.f32.mrf.mxu0  ;;  %4858 = vmatprep.subr.bf16.mxu1 %v5151_v17 }
 0x577   : > { %v5008_v42 = vpack.i.bf16 %v1597_v33, %v1594_v29  ;;  %5004 = vrot.lane.b32.xlu1 %v5003_v53, %s7188_s1  ;;  %4859 = vmatpush3.bf16.msra.mxu1 %v5151_v17 }
 0x578   : > { %v4750_v6 = vpop.f32.mrf.mxu0 }
 0x579   : > { %5009 = vrot.lane.b32.xlu0 %v5008_v42, %s7188_s1 }
 0x57a   : > { %v1850_v61 = vpop.f32.mrf.mxu0 }
 0x57c   : > { %v4751_v16 = vpop.f32.mrf.mxu0 }
 0x57d   : > { %v5013_v19 = vpack.i.bf16 %v4751_v16, %v4750_v6  ;;  %v5152_v16 = vld [vmem:[%s7140_s8 + $0x8] sm:$0xff]  }
 0x57e   : > { %v1853_v9 = vpop.f32.mrf.mxu0  ;;  %4860 = vmatprep.subr.bf16.mxu1 %v5152_v16 }
 0x57f   : > { %5014 = vrot.lane.b32.xlu0 %v5013_v19, %s5547_s23  ;;  %v5018_v56 = vpack.i.bf16 %v1853_v9, %v1850_v61  ;;  %4861 = vmatpush3.bf16.msra.mxu1 %v5152_v16 }
 0x580   : > { %v4754_v14 = vpop.f32.mrf.mxu0 }
 0x582   : > { %v1866_v36 = vpop.f32.mrf.mxu0 }
 0x583   : > { %5019 = vrot.lane.b32.xlu0 %v5018_v56, %s5547_s23 }
 0x584   : > { %v4755_v23 = vpop.f32.mrf.mxu0 }
 0x585   : > { %v5023_v5 = vpack.i.bf16 %v4755_v23, %v4754_v14  ;;  %v5153_v14 = vld [vmem:[%s7140_s8] sm:$0xff]  }
 0x586   : > { %v1869_v41 = vpop.f32.mrf.mxu0  ;;  %4862 = vmatprep.subr.bf16.mxu1 %v5153_v14 }
 0x587   : > { %v5028_v62 = vpack.i.bf16 %v1869_v41, %v1866_v36  ;;  %5024 = vrot.lane.b32.xlu1 %v5023_v5, %s5547_s23  ;;  %4863 = vmatpush3.bf16.msra.mxu1 %v5153_v14 }
 0x589   : > { %5029 = vrot.lane.b32.xlu0 %v5028_v62, %s5547_s23  ;;  %s5553_s23 = smov [#allocation2]  }
 0x590   : > { %v4770_v25 = vpop.f32.mrf.mxu0 }
 0x592   : > { %v2122_v58 = vpop.f32.mrf.mxu0 }
 0x594   : > { %v4771_v15 = vpop.f32.mrf.mxu0 }
 0x595   : > { %v5033_v21 = vpack.i.bf16 %v4771_v15, %v4770_v25 }
 0x596   : > { %v2125_v44 = vpop.f32.mrf.mxu0 }
 0x597   : > { %v5038_v37 = vpack.i.bf16 %v2125_v44, %v2122_v58  ;;  %5034 = vrot.lane.b32.xlu1 %v5033_v21, %s5548_s25 }
 0x599   : > { %5039 = vrot.lane.b32.xlu0 %v5038_v37, %s5548_s25 }
 0x59c   : > { %v4774_v47 = vpop.f32.mrf.mxu0 }
 0x59e   : > { %v2138_v13 = vpop.f32.mrf.mxu0 }
 0x5a0   : > { %v4775_v30 = vpop.f32.mrf.mxu0 }
 0x5a1   : > { %v5043_v22 = vpack.i.bf16 %v4775_v30, %v4774_v47 }
 0x5a2   : > { %v2141_v49 = vpop.f32.mrf.mxu0 }
 0x5a3   : > { %v5048_v60 = vpack.i.bf16 %v2141_v49, %v2138_v13  ;;  %5044 = vrot.lane.b32.xlu1 %v5043_v22, %s5548_s25 }
 0x5a4   : > { %v4790_v0 = vpop.f32.mrf.mxu0 }
 0x5a5   : > { %5049 = vrot.lane.b32.xlu0 %v5048_v60, %s5548_s25  ;;  %s5551_s25 = smov 48  }
 0x5a6   : > { %v2394_v4 = vpop.f32.mrf.mxu0 }
 0x5a8   : > { %v4791_v24 = vpop.f32.mrf.mxu0 }
 0x5a9   : > { %v5053_v26 = vpack.i.bf16 %v4791_v24, %v4790_v0 }
 0x5aa   : > { %v2397_v35 = vpop.f32.mrf.mxu0 }
 0x5ab   : > { %v5058_v12 = vpack.i.bf16 %v2397_v35, %v2394_v4  ;;  %5054 = vrot.lane.b32.xlu1 %v5053_v26, %s5549_s19 }
 0x5ad   : > { %5059 = vrot.lane.b32.xlu0 %v5058_v12, %s5549_s19 }
 0x5b3   : > { %v4794_v48 = vpop.f32.mrf.mxu0 }
 0x5b5   : > { %v2410_v50 = vpop.f32.mrf.mxu0 }
 0x5b7   : > { %v4795_v20 = vpop.f32.mrf.mxu0 }
 0x5b8   : > { %v5063_v63 = vpack.i.bf16 %v4795_v20, %v4794_v48 }
 0x5b9   : > { %v2413_v51 = vpop.f32.mrf.mxu0 }
 0x5ba   : > { %v5068_v55 = vpack.i.bf16 %v2413_v51, %v2410_v50  ;;  %5064 = vrot.lane.b32.xlu1 %v5063_v63, %s5549_s19 }
 0x5bc   : > { %v4810_v45 = vpop.f32.mrf.mxu0  ;;  %5069 = vrot.lane.b32.xlu0 %v5068_v55, %s5549_s19  ;;  %s7264_s19 = sshll.u32 %s5700_s24, 6 }
 0x5be   : > { %v2666_v40 = vpop.f32.mrf.mxu0 }
 0x5c0   : > { %v4811_v46 = vpop.f32.mrf.mxu0 }
 0x5c1   : > { %v5073_v38 = vpack.i.bf16 %v4811_v46, %v4810_v45 }
 0x5c2   : > { %v2669_v43 = vpop.f32.mrf.mxu0 }
 0x5c3   : > { %v5078_v27 = vpack.i.bf16 %v2669_v43, %v2666_v40  ;;  %5074 = vrot.lane.b32.xlu1 %v5073_v38, %s5550_s29 }
 0x5c5   : > { %5079 = vrot.lane.b32.xlu0 %v5078_v27, %s5550_s29 }
 0x5c8   : > { %v4814_v32 = vpop.f32.mrf.mxu0 }
 0x5ca   : > { %v2682_v34 = vpop.f32.mrf.mxu0 }
 0x5cc   : > { %v4815_v10 = vpop.f32.mrf.mxu0 }
 0x5cd   : > { %v5083_v39 = vpack.i.bf16 %v4815_v10, %v4814_v32 }
 0x5ce   : > { %v2685_v3 = vpop.f32.mrf.mxu0 }
 0x5cf   : > { %v5088_v11 = vpack.i.bf16 %v2685_v3, %v2682_v34  ;;  %5084 = vrot.lane.b32.xlu1 %v5083_v39, %s5550_s29 }
 0x5d1   : > { %5089 = vrot.lane.b32.xlu0 %v5088_v11, %s5550_s29 }
 0x5dd   : > { %v4830_v18 = vpop.f32.mrf.mxu0 }
 0x5df   : > { %v2938_v29 = vpop.f32.mrf.mxu0 }
 0x5e1   : > { %v4831_v31 = vpop.f32.mrf.mxu0  ;;  %v4995_v30 = vpop.permute.xlu0 %4994 }
 0x5e2   : > { %v5093_v53 = vpack.i.bf16 %v4831_v31, %v4830_v18  ;;  %v4997_v51 = vunpack.i.h.bf16 %v4995_v30  ;;  %v4996_v55 = vunpack.i.l.bf16 %v4995_v30 }
 0x5e3   : > { %v2941_v33 = vpop.f32.mrf.mxu0 }
 0x5e4   : > { %v5098_v42 = vpack.i.bf16 %v2941_v33, %v2938_v29  ;;  %5094 = vrot.lane.b32.xlu1 %v5093_v53, %s5551_s25  ;;  %v3468_v10 = vsel %vm1068_vm2, %v6683_v28, %v4997_v51  ;;  %v3467_v39 = vsel %vm1068_vm2, %v6679_v52, %v4996_v55 }
 0x5e5   : > { %v4834_v6 = vpop.f32.mrf.mxu0  ;;  %v5000_v22 = vpop.permute.xlu0 %4999 }
 0x5e6   : > { %5099 = vrot.lane.b32.xlu0 %v5098_v42, %s5551_s25  ;;  %v5002_v45 = vunpack.i.h.bf16 %v5000_v22  ;;  %v5001_v40 = vunpack.i.l.bf16 %v5000_v22 }
 0x5e7   : > { %v2954_v61 = vpop.f32.mrf.mxu0 }
 0x5e8   : > { %v3466_v1 = vsel %vm1068_vm2, %v6685_v54, %v5002_v45  ;;  %v3465_v17 = vsel %vm1068_vm2, %v6681_v59, %v5001_v40 }
 0x5e9   : > { %v4835_v19 = vpop.f32.mrf.mxu0  ;;  %v5005_v0 = vpop.permute.xlu1 %5004 }
 0x5ea   : > { %v5118_v58 = vpack.i.bf16 %v4835_v19, %v4834_v6  ;;  %v5007_v46 = vunpack.i.h.bf16 %v5005_v0  ;;  %v5006_v43 = vunpack.i.l.bf16 %v5005_v0 }
 0x5eb   : > { %v2957_v9 = vpop.f32.mrf.mxu0  ;;  %v5010_v49 = vpop.permute.xlu0 %5009 }
 0x5ec   : > { %v5113_v21 = vpack.i.bf16 %v2957_v9, %v2954_v61  ;;  %v5012_v27 = vunpack.i.h.bf16 %v5010_v49  ;;  %v5011_v32 = vunpack.i.l.bf16 %v5010_v49  ;;  %v3472_v18 = vsel %vm1068_vm2, %v6691_v7, %v5007_v46 }
 0x5ed   : > { %v4850_v56 = vpop.f32.mrf.mxu0  ;;  %v3471_v28 = vsel %vm1068_vm2, %v6687_v57, %v5006_v43 }
 0x5ee   : > { %v3470_v52 = vsel %vm1068_vm2, %v6693_v8, %v5012_v27  ;;  %v3469_v53 = vsel %vm1068_vm2, %v6689_v2, %v5011_v32 }
 0x5ef   : > { %v3210_v36 = vpop.f32.mrf.mxu0 }
 0x5f1   : > { %v4851_v23 = vpop.f32.mrf.mxu0  ;;  %v5015_v60 = vpop.permute.xlu0 %5014 }
 0x5f2   : > { %v5103_v5 = vpack.i.bf16 %v4851_v23, %v4850_v56  ;;  %v5017_v3 = vunpack.i.h.bf16 %v5015_v60  ;;  %v5016_v11 = vunpack.i.l.bf16 %v5015_v60 }
 0x5f3   : > { %v3213_v41 = vpop.f32.mrf.mxu0 }
 0x5f4   : > { %v5108_v62 = vpack.i.bf16 %v3213_v41, %v3210_v36  ;;  %5104 = vrot.lane.b32.xlu1 %v5103_v5, %s5552_s26  ;;  %v3475_v7 = vsel %vm629_vm0, %v3467_v39, %v5016_v11  ;;  %v3476_v16 = vsel %vm629_vm0, %v3468_v10, %v5017_v3 }
 0x5f5   : > { %v4854_v25 = vpop.f32.mrf.mxu0  ;;  %v5020_v4 = vpop.permute.xlu0 %5019 }
 0x5f6   : > { %5109 = vrot.lane.b32.xlu0 %v5108_v62, %s5552_s26  ;;  %v5021_v29 = vunpack.i.l.bf16 %v5020_v4  ;;  %v5022_v33 = vunpack.i.h.bf16 %v5020_v4 }
 0x5f7   : > { %v3226_v15 = vpop.f32.mrf.mxu0 }
 0x5f8   : > { %5119 = vrot.lane.b32.xlu1 %v5118_v58, %s5551_s25  ;;  %v3473_v57 = vsel %vm629_vm0, %v3465_v17, %v5021_v29  ;;  %v3474_v36 = vsel %vm629_vm0, %v3466_v1, %v5022_v33 }
 0x5f9   : > { %v4855_v44 = vpop.f32.mrf.mxu0  ;;  %v5025_v24 = vpop.permute.xlu1 %5024 }
 0x5fa   : > { %v5128_v37 = vpack.i.bf16 %v4855_v44, %v4854_v25  ;;  %5114 = vrot.lane.b32.xlu0 %v5113_v21, %s5551_s25  ;;  %v5027_v42 = vunpack.i.h.bf16 %v5025_v24  ;;  %v5026_v59 = vunpack.i.l.bf16 %v5025_v24  ;;  %s5479_s25 = sshll.u32 %s5553_s23, 4  ;;  %s5480_s25 = int_to_ptr.vmem [resolvable:$false] %s5479_s25 }
 0x5fb   : > { %v3229_v47 = vpop.f32.mrf.mxu0  ;;  %v5030_v26 = vpop.permute.xlu0 %5029 }
 0x5fc   : > { %v5123_v13 = vpack.i.bf16 %v3229_v47, %v3226_v15  ;;  %5129 = vrot.lane.b32.xlu1 %v5128_v37, %s5552_s26  ;;  %v5032_v6 = vunpack.i.h.bf16 %v5030_v26  ;;  %v5031_v61 = vunpack.i.l.bf16 %v5030_v26  ;;  %v3480_v25 = vsel %vm629_vm0, %v3472_v18, %v5027_v42 }
 0x5fd   : > { %v3479_v58 = vsel %vm629_vm0, %v3471_v28, %v5026_v59 }
 0x5fe   : > { %5124 = vrot.lane.b32.xlu0 %v5123_v13, %s5552_s26  ;;  %v3477_v15 = vsel %vm629_vm0, %v3469_v53, %v5031_v61  ;;  %v3478_v21 = vsel %vm629_vm0, %v3470_v52, %v5032_v6  ;;  %s7047_s26 = scalar_lea.vmem %s7265_s20, %s7264_s19 }
 0x609   : > { %v5035_v35 = vpop.permute.xlu1 %5034 }
 0x60a   : > { %v5037_v19 = vunpack.i.h.bf16 %v5035_v35  ;;  %v5036_v9 = vunpack.i.l.bf16 %v5035_v35 }
 0x60b   : > { %v6711_v12 = vpop.permute.xlu0 %5039 }
 0x60c   : > { %v5042_v8 = vunpack.i.h.bf16 %v6711_v12  ;;  %v5041_v2 = vunpack.i.l.bf16 %v6711_v12  ;;  %v3484_v44 = vsel %vm3481_vm4, %v3475_v7, %v5036_v9  ;;  %v3485_v37 = vsel %vm3481_vm4, %v3476_v16, %v5037_v19 }
 0x60e   : > { %v3482_v30 = vsel %vm3481_vm4, %v3473_v57, %v5041_v2  ;;  %v3483_v22 = vsel %vm3481_vm4, %v3474_v36, %v5042_v8 }
 0x615   : > { %v6713_v48 = vpop.permute.xlu1 %5044 }
 0x616   : > { %v5047_v14 = vunpack.i.h.bf16 %v6713_v48  ;;  %v5046_v23 = vunpack.i.l.bf16 %v6713_v48 }
 0x617   : > { %v6715_v50 = vpop.permute.xlu0 %5049 }
 0x618   : > { %v5051_v5 = vunpack.i.l.bf16 %v6715_v50  ;;  %v3489_v49 = vsel %vm3481_vm4, %v3480_v25, %v5047_v14  ;;  %v3488_v4 = vsel %vm3481_vm4, %v3479_v58, %v5046_v23  ;;  %v5052_v24 = vunpack.i.h.bf16 %v6715_v50 }
 0x61a   : > { %v3486_v26 = vsel %vm3481_vm4, %v3477_v15, %v5051_v5  ;;  %v3487_v23 = vsel %vm3481_vm4, %v3478_v21, %v5052_v24 }
 0x61d   : > { %v6717_v20 = vpop.permute.xlu1 %5054 }
 0x61e   : > { %v5056_v41 = vunpack.i.l.bf16 %v6717_v20  ;;  %v5057_v47 = vunpack.i.h.bf16 %v6717_v20 }
 0x61f   : > { %v6719_v63 = vpop.permute.xlu0 %5059 }
 0x620   : > { %v5061_v13 = vunpack.i.l.bf16 %v6719_v63  ;;  %v5062_v60 = vunpack.i.h.bf16 %v6719_v63  ;;  %v3493_v35 = vsel %vm3490_vm5, %v3484_v44, %v5056_v41  ;;  %v3494_v63 = vsel %vm3490_vm5, %v3485_v37, %v5057_v47 }
 0x622   : > { %v3491_v45 = vsel %vm3490_vm5, %v3482_v30, %v5061_v13  ;;  %v3492_v46 = vsel %vm3490_vm5, %v3483_v22, %v5062_v60 }
 0x62c   : > { %v6721_v38 = vpop.permute.xlu1 %5064 }
 0x62d   : > { %v5067_v43 = vunpack.i.h.bf16 %v6721_v38  ;;  %v5066_v39 = vunpack.i.l.bf16 %v6721_v38 }
 0x62e   : > { %v6723_v34 = vpop.permute.xlu0 %5069 }
 0x62f   : > { %v5072_v3 = vunpack.i.h.bf16 %v6723_v34  ;;  %v5071_v7 = vunpack.i.l.bf16 %v6723_v34  ;;  %v3498_v34 = vsel %vm3490_vm5, %v3489_v49, %v5067_v43  ;;  %v3497_v58 = vsel %vm3490_vm5, %v3488_v4, %v5066_v39 }
 0x635   : > { %v6735_v31 = vpop.permute.xlu1 %5074 }
 0x636   : > { %v5077_v48 = vunpack.i.h.bf16 %v6735_v31  ;;  %v5076_v20 = vunpack.i.l.bf16 %v6735_v31 }
 0x637   : > { %v6743_v54 = vpop.permute.xlu0 %5079 }
 0x638   : > { %v5082_v51 = vunpack.i.h.bf16 %v6743_v54  ;;  %v5081_v55 = vunpack.i.l.bf16 %v6743_v54  ;;  %v3502_v17 = vsel %vm3499_vm6, %v3493_v35, %v5076_v20  ;;  %v3503_v18 = vsel %vm3499_vm6, %v3494_v63, %v5077_v48 }
 0x63a   : > { %v3500_v29 = vsel %vm3499_vm6, %v3491_v45, %v5081_v55  ;;  %v3501_v31 = vsel %vm3499_vm6, %v3492_v46, %v5082_v51 }
 0x641   : > { %v6751_v56 = vpop.permute.xlu1 %5084 }
 0x642   : > { %v5087_v16 = vunpack.i.h.bf16 %v6751_v56  ;;  %v5086_v57 = vunpack.i.l.bf16 %v6751_v56  ;;  %v3495_v56 = vsel %vm3490_vm5, %v3486_v26, %v5071_v7  ;;  %v5469_v7 = vld [vmem:[%s5708_s21 + $0x20] sm:$0xff] }
 0x643   : > { %v6757_v62 = vpop.permute.xlu0 %5089 }
 0x644   : > { %v5092_v8 = vunpack.i.h.bf16 %v6757_v62  ;;  %v5091_v2 = vunpack.i.l.bf16 %v6757_v62  ;;  %v3496_v62 = vsel %vm3490_vm5, %v3487_v23, %v5072_v3  ;;  %v3507_v21 = vsel %vm3499_vm6, %v3498_v34, %v5087_v16  ;;  %v5471_v23 = vld [vmem:[%s5708_s21 + $0x28] sm:$0xff] }
 0x645   : > { %v3506_v30 = vsel %vm3499_vm6, %v3497_v58, %v5086_v57  ;;  %v5470_v57 = vld [vmem:[%s5708_s21 + $0x30] sm:$0xff] }
 0x646   : > { %v3504_v22 = vsel %vm3499_vm6, %v3495_v56, %v5091_v2  ;;  %v3505_v49 = vsel %vm3499_vm6, %v3496_v62, %v5092_v8 }
 0x656   : > { %v5095_v0 = vpop.permute.xlu1 %5094 }
 0x657   : > { %v5097_v40 = vunpack.i.h.bf16 %v5095_v0  ;;  %v5096_v50 = vunpack.i.l.bf16 %v5095_v0 }
 0x658   : > { %v5100_v12 = vpop.permute.xlu0 %5099 }
 0x659   : > { %v5102_v27 = vunpack.i.h.bf16 %v5100_v12  ;;  %v5101_v32 = vunpack.i.l.bf16 %v5100_v12  ;;  %v3511_v52 = vsel %vm3508_vm7, %v3502_v17, %v5096_v50  ;;  %v3512_v53 = vsel %vm3508_vm7, %v3503_v18, %v5097_v40  ;;  %v4468_v50 = vld [vmem:[%s7141_s9] ss:$0 sm:$0xff] }
 0x65b   : > { %v3509_v38 = vsel %vm3508_vm7, %v3500_v29, %v5101_v32  ;;  %v3510_v42 = vsel %vm3508_vm7, %v3501_v31, %v5102_v27 }
 0x666   : > { %v5105_v10 = vpop.permute.xlu1 %5104 }
 0x667   : > { %v5107_v11 = vunpack.i.h.bf16 %v5105_v10  ;;  %v5106_v1 = vunpack.i.l.bf16 %v5105_v10  ;;  %v5465_v10 = vld [vmem:[%s5708_s21] sm:$0xff] }
 0x668   : > { %v5110_v28 = vpop.permute.xlu0 %5109 }
 0x669   : > { %v5112_v33 = vunpack.i.h.bf16 %v5110_v28  ;;  %v5111_v54 = vunpack.i.l.bf16 %v5110_v28  ;;  %v3520_v59 = vsel %vm3517_vm8, %v3511_v52, %v5106_v1  ;;  %v3521_v6 = vsel %vm3517_vm8, %v3512_v53, %v5107_v11  ;;  %v5466_v1 = vld [vmem:[%s5708_s21 + $0x10] sm:$0xff]  ;;  %v5467_v28 = vld [vmem:[%s5708_s21 + $0x8] sm:$0xff]  ;;  %v5468_v53 = vld [vmem:[%s5708_s21 + $0x18] sm:$0xff] }
 0x66a   : > { %v5120_v61 = vpop.permute.xlu1 %5119  ;;  %v3535_v5 = vpack.c.bf16 %v3521_v6, %v3520_v59 }
 0x66b   : > { %v3518_v19 = vsel %vm3517_vm8, %v3509_v38, %v5111_v54  ;;  %v3519_v9 = vsel %vm3517_vm8, %v3510_v42, %v5112_v33  ;;  %v5122_v41 = vunpack.i.h.bf16 %v5120_v61  ;;  %v5121_v25 = vunpack.i.l.bf16 %v5120_v61 }
 0x66c   : > { %v3534_v14 = vpack.c.bf16 %v3519_v9, %v3518_v19  ;;  %v5115_v36 = vpop.permute.xlu0 %5114 }
 0x66d   : > { %v5117_v15 = vunpack.i.h.bf16 %v5115_v36  ;;  %v5116_v44 = vunpack.i.l.bf16 %v5115_v36  ;;  %v3516_v0 = vsel %vm3508_vm7, %v3507_v21, %v5122_v41  ;;  %v3515_v4 = vsel %vm3508_vm7, %v3506_v30, %v5121_v25  ;;  %v5472_v41 = vld [vmem:[%s5708_s21 + $0x38] sm:$0xff]  ;;  %s594_s21 = sand.u32 1, %s5527_s28  }
 0x66e   : > { %v5130_v37 = vpop.permute.xlu1 %5129  ;;  %4864 = vmatprep.mubr.msk.bf16.mxu1 %vm3569_vm9, %v3534_v14  ;;  %s4375_s1 = sshll.u32 %s594_s21, 6 }
 0x66f   : > { %v5132_v47 = vunpack.i.h.bf16 %v5130_v37  ;;  %v5131_v13 = vunpack.i.l.bf16 %v5130_v37  ;;  %4865 = vmatmul.mubr.msk.bf16.vlgmr.msra.gmra.mxu1 %vm3569_vm9, %v3535_v5  ;;  %v3513_v35 = vsel %vm3508_vm7, %v3504_v22, %v5116_v44  ;;  %v3514_v12 = vsel %vm3508_vm7, %v3505_v49, %v5117_v15  ;;  %s7057_s24 = scalar_lea.vmem [#allocation2], %s4375_s1  ;;  %s4511_s1 = sshll.u32 %s5671_s0, 10 }
 0x670   : > { %v5125_v60 = vpop.permute.xlu0 %5124  ;;  %s4285_s19 = sshll.u32 %s7057_s24, 4  ;;  %s7081_s20 = scalar_lea.hbm %s7150_s18, %s4511_s1  ;;  %s7085_s19 = int_to_ptr.vmem [resolvable:$true] %s4285_s19 }
 0x671   : > { %v5127_v24 = vunpack.i.h.bf16 %v5125_v60  ;;  %v5126_v26 = vunpack.i.l.bf16 %v5125_v60  ;;  %v3525_v48 = vsel %vm3517_vm8, %v3516_v0, %v5132_v47  ;;  %v3524_v20 = vsel %vm3517_vm8, %v3515_v4, %v5131_v13  ;;  %s7091_s0 = scalar_lea.sflag [#allocation3], %s594_s21  ;;  %s5481_s1 = scalar_lea.vmem %s5480_s25, 2048 }
 0x672   : > { %v3537_v45 = vpack.c.bf16 %v3525_v48, %v3524_v20  ;;  %p5482_p0 = scmp.lt.s32.totalorder %s7085_s19, %s5480_s25 }
 0x673   : > { %v3522_v51 = vsel %vm3517_vm8, %v3513_v35, %v5126_v26  ;;  %v3523_v55 = vsel %vm3517_vm8, %v3514_v12, %v5127_v24 }
 0x674   : > { %v3536_v63 = vpack.c.bf16 %v3523_v55, %v3522_v51 }
 0x676   : > { %4868 = vmatprep.mubr.msk.bf16.mxu1 %vm3569_vm9, %v3536_v63 }
 0x677   : > { %4869 = vmatmul.mubr.msk.bf16.gmra.mxu1 %vm3569_vm9, %v3537_v45 }
 0x72f   : > { %v4866_v40 = vpop.f32.mrf.mxu1 }
 0x730   : > { %v3625_v43 = vadd.f32 %v4866_v40, %v4468_v50 }
 0x731   : > { %v3616_v46 = vpop.f32.mrf.mxu1 }
 0x732   : > { %v3617_v27 = vadd.f32 %v4468_v50, %v3616_v46  ;;  %v6830_v17 = vadd.f32 %v5466_v1, %v3625_v43 }
 0x733   : > { %v4867_v32 = vpop.f32.mrf.mxu1 }
 0x734   : > { %v6827_v39 = vadd.f32 %v5465_v10, %v3617_v27  ;;  %v3628_v3 = vadd.f32 %v4867_v32, %v4468_v50  ;;  %v3661_v6 = vsel %vm629_vm0, %v6830_v17, 0.0 }
 0x735   : > { %v3619_v11 = vpop.f32.mrf.mxu1 }
 0x736   : > { %v3620_v18 = vadd.f32 %v4468_v50, %v3619_v11  ;;  %v3655_v29 = vsel %vm629_vm0, %v6827_v39, 0.0  ;;  %v6838_v33 = vadd.f32 %v5468_v53, %v3628_v3 }
 0x737   : > { %v4870_v31 = vpop.f32.mrf.mxu1  ;;  %3656 = vadd.xlane.f32.xlu0 %v3655_v29 }
 0x738   : > { %v6835_v52 = vadd.f32 %v5467_v28, %v3620_v18  ;;  %v3641_v38 = vadd.f32 %v4870_v31, %v4468_v50  ;;  %v3664_v9 = vsel %vm629_vm0, %v6838_v33, 0.0 }
 0x739   : > { %v3632_v54 = vpop.f32.mrf.mxu1 }
 0x73a   : > { %v3633_v42 = vadd.f32 %v4468_v50, %v3632_v54  ;;  %v3658_v59 = vsel %vm629_vm0, %v6835_v52, 0.0  ;;  %v6850_v8 = vadd.f32 %v5470_v57, %v3641_v38 }
 0x73b   : > { %v4871_v61 = vpop.f32.mrf.mxu1  ;;  %3659 = vadd.xlane.f32.xlu1 %v3658_v59  ;;  %3662 = vadd.xlane.f32.xlu0 %v3661_v6  ;;  %v5155_v59 = vld [vmem:[%s7144_s12] sm:$0xff]  }
 0x73c   : > { %v6845_v16 = vadd.f32 %v5469_v7, %v3633_v42  ;;  %v3644_v2 = vadd.f32 %v4871_v61, %v4468_v50  ;;  %v3673_v34 = vsel %vm629_vm0, %v6850_v8, 0.0  ;;  %v5154_v42 = vld [vmem:[%s7142_s10] sm:$0xff]   ;;  %4882 = vmatprep.subr.bf16.mxu1 %v5155_v59 }
 0x73d   : > { %v3635_v19 = vpop.f32.mrf.mxu1  ;;  %4872 = vmatprep.subr.bf16.mxu0 %v5154_v42  ;;  %4883 = vmatpush3.bf16.msra.mxu1 %v5155_v59 }
 0x73e   : > { %v3636_v14 = vadd.f32 %v4468_v50, %v3635_v19  ;;  %v3667_v36 = vsel %vm629_vm0, %v6845_v16, 0.0  ;;  %v6858_v25 = vadd.f32 %v5472_v41, %v3644_v2  ;;  %4873 = vmatpush3.bf16.msra.mxu0 %v5154_v42 }
 0x73f   : > { %3668 = vadd.xlane.f32.xlu1 %v3667_v36  ;;  %3665 = vadd.xlane.f32.xlu0 %v3664_v9 }
 0x740   : > { %v6855_v5 = vadd.f32 %v5471_v23, %v3636_v14  ;;  %v3676_v15 = vsel %vm629_vm0, %v6858_v25, 0.0 }
 0x742   : > { %v3670_v58 = vsel %vm629_vm0, %v6855_v5, 0.0 }
 0x743   : > { %3674 = vadd.xlane.f32.xlu1 %v3673_v34  ;;  %3671 = vadd.xlane.f32.xlu0 %v3670_v58 }
 0x747   : > { %3677 = vadd.xlane.f32.xlu0 %v3676_v15 }
 0x7c0   : > { %v3657_v44 = vpop.xlane.xlu0 %3656 }
 0x7c1   : > { %v3679_v37 = vmul.f32 0.0625, %v3657_v44 }
 0x7c3   : > { %v6867_v56 = vsub.f32 %v6827_v39, %v3679_v37 }
 0x7c4   : > { %v3660_v62 = vpop.xlane.xlu1 %3659  ;;  %v3663_v47 = vpop.xlane.xlu0 %3662 }
 0x7c5   : > { %v3680_v13 = vmul.f32 0.0625, %v3660_v62  ;;  %v3681_v21 = vmul.f32 0.0625, %v3663_v47  ;;  %v3695_v30 = vmul.f32 %v6867_v56, %v6867_v56 }
 0x7c7   : > { %v6872_v22 = vsub.f32 %v6835_v52, %v3680_v13  ;;  %v6875_v49 = vsub.f32 %v6830_v17, %v3681_v21  ;;  %v3703_v60 = vsel %vm629_vm0, %v3695_v30, 0.0 }
 0x7c8   : > { %v3669_v0 = vpop.xlane.xlu1 %3668  ;;  %3704 = vadd.xlane.f32.xlu1 %v3703_v60  ;;  %v3666_v4 = vpop.xlane.xlu0 %3665 }
 0x7c9   : > { %v3683_v24 = vmul.f32 0.0625, %v3669_v0  ;;  %v3682_v26 = vmul.f32 0.0625, %v3666_v4  ;;  %v3696_v35 = vmul.f32 %v6872_v22, %v6872_v22  ;;  %v3697_v12 = vmul.f32 %v6875_v49, %v6875_v49 }
 0x7cb   : > { %v6883_v48 = vsub.f32 %v6845_v16, %v3683_v24  ;;  %v6886_v20 = vsub.f32 %v6838_v33, %v3682_v26  ;;  %v3706_v51 = vsel %vm629_vm0, %v3696_v35, 0.0  ;;  %v3709_v55 = vsel %vm629_vm0, %v3697_v12, 0.0 }
 0x7cc   : > { %v3675_v63 = vpop.xlane.xlu1 %3674  ;;  %3707 = vadd.xlane.f32.xlu0 %v3706_v51  ;;  %3710 = vadd.xlane.f32.xlu1 %v3709_v55  ;;  %v3672_v45 = vpop.xlane.xlu0 %3671 }
 0x7cd   : > { %v3685_v40 = vmul.f32 0.0625, %v3675_v63  ;;  %v3684_v50 = vmul.f32 0.0625, %v3672_v45  ;;  %v3699_v46 = vmul.f32 %v6883_v48, %v6883_v48  ;;  %v3698_v43 = vmul.f32 %v6886_v20, %v6886_v20  ;;  %v5473_v63 = vld [vmem:[%s7201_s3] ss:$0 sm:$0xff] }
 0x7cf   : > { %v6895_v27 = vsub.f32 %v6850_v8, %v3685_v40  ;;  %v6898_v32 = vsub.f32 %v6855_v5, %v3684_v50  ;;  %v3715_v10 = vsel %vm629_vm0, %v3699_v46, 0.0  ;;  %v3712_v3 = vsel %vm629_vm0, %v3698_v43, 0.0 }
 0x7d0   : > { %3716 = vadd.xlane.f32.xlu1 %v3715_v10  ;;  %3713 = vadd.xlane.f32.xlu0 %v3712_v3  ;;  %v3678_v11 = vpop.xlane.xlu0 %3677 }
 0x7d1   : > { %v3686_v1 = vmul.f32 0.0625, %v3678_v11  ;;  %v3701_v18 = vmul.f32 %v6895_v27, %v6895_v27  ;;  %v3700_v29 = vmul.f32 %v6898_v32, %v6898_v32 }
 0x7d3   : > { %v6907_v31 = vsub.f32 %v6858_v25, %v3686_v1  ;;  %v3721_v28 = vsel %vm629_vm0, %v3701_v18, 0.0  ;;  %v3718_v53 = vsel %vm629_vm0, %v3700_v29, 0.0 }
 0x7d4   : > { %3722 = vadd.xlane.f32.xlu1 %v3721_v28  ;;  %3719 = vadd.xlane.f32.xlu0 %v3718_v53 }
 0x7d5   : > { %v3702_v54 = vmul.f32 %v6907_v31, %v6907_v31 }
 0x7d7   : > { %v3724_v38 = vsel %vm629_vm0, %v3702_v54, 0.0 }
 0x7d8   : > { %3725 = vadd.xlane.f32.xlu0 %v3724_v38 }
 0x851   : > { %v3705_v6 = vpop.xlane.xlu1 %3704 }
 0x852   : > { %v3727_v61 = vmul.f32 0.0625, %v3705_v6 }
 0x854   : > { %v3735_v7 = vadd.f32 1e-05, %v3727_v61 }
 0x855   : > { %v3711_v19 = vpop.xlane.xlu1 %3710  ;;  %v3708_v9 = vpop.xlane.xlu0 %3707 }
 0x856   : > { %5433 = vrsqrt.f32 %v3735_v7  ;;  %v3729_v57 = vmul.f32 0.0625, %v3711_v19  ;;  %v3728_v2 = vmul.f32 0.0625, %v3708_v9 }
 0x858   : > { %v3737_v14 = vadd.f32 1e-05, %v3729_v57  ;;  %v3736_v36 = vadd.f32 1e-05, %v3728_v2 }
 0x859   : > { %v3717_v23 = vpop.xlane.xlu1 %3716  ;;  %v3714_v41 = vpop.xlane.xlu0 %3713 }
 0x85a   : > { %5435 = vrsqrt.f32 %v3737_v14  ;;  %v3731_v34 = vmul.f32 0.0625, %v3717_v23  ;;  %v3730_v58 = vmul.f32 0.0625, %v3714_v41  ;;  %v5157_v14 = vld [vmem:[%s7146_s14 + $0x10] sm:$0xff]   ;;  %v5159_v23 = vld [vmem:[%s7146_s14] sm:$0xff]  }
 0x85b   : > { %5437 = vrsqrt.f32 %v3736_v36  ;;  %v5158_v36 = vld [vmem:[%s7146_s14 + $0x8] sm:$0xff]   ;;  %v4483_v41 = vld [vmem:[%s7145_s13] ss:$0 sm:$0xff] }
 0x85c   : > { %v3739_v15 = vadd.f32 1e-05, %v3731_v34  ;;  %v3738_v44 = vadd.f32 1e-05, %v3730_v58 }
 0x85d   : > { %v3723_v37 = vpop.xlane.xlu1 %3722  ;;  %v3720_v62 = vpop.xlane.xlu0 %3719 }
 0x85e   : > { %5439 = vrsqrt.f32 %v3739_v15  ;;  %v3733_v47 = vmul.f32 0.0625, %v3723_v37  ;;  %v3732_v13 = vmul.f32 0.0625, %v3720_v62 }
 0x85f   : > { %5441 = vrsqrt.f32 %v3738_v44 }
 0x860   : > { %v3741_v21 = vadd.f32 1e-05, %v3733_v47  ;;  %v3740_v30 = vadd.f32 1e-05, %v3732_v13 }
 0x861   : > { %v3726_v60 = vpop.xlane.xlu0 %3725 }
 0x862   : > { %5443 = vrsqrt.f32 %v3741_v21  ;;  %v3734_v0 = vmul.f32 0.0625, %v3726_v60 }
 0x863   : > { %v5434_v4 = vpop.eup %5433  ;;  %5445 = vrsqrt.f32 %v3740_v30 }
 0x864   : > { %v3742_v24 = vadd.f32 1e-05, %v3734_v0  ;;  %v3751_v26 = vmul.f32 %v5434_v4, %v6867_v56  ;;  %v5474_v56 = vld [vmem:[%s7136_s4] ss:$0 sm:$0xff] }
 0x866   : > { %5447 = vrsqrt.f32 %v3742_v24  ;;  %v3759_v45 = vmul.f32 %v5473_v63, %v3751_v26 }
 0x867   : > { %v5436_v35 = vpop.eup %5435 }
 0x868   : > { %v5438_v12 = vpop.eup %5437  ;;  %v3753_v51 = vmul.f32 %v5436_v35, %v6875_v49  ;;  %v3767_v3 = vadd.f32 %v5474_v56, %v3759_v45 }
 0x869   : > { %v3752_v55 = vmul.f32 %v5438_v12, %v6872_v22 }
 0x86a   : > { %v3761_v43 = vmul.f32 %v5473_v63, %v3753_v51 }
 0x86b   : > { %v5440_v40 = vpop.eup %5439  ;;  %v3760_v50 = vmul.f32 %v5473_v63, %v3752_v55 }
 0x86c   : > { %v5442_v46 = vpop.eup %5441  ;;  %v3755_v49 = vmul.f32 %v5440_v40, %v6883_v48  ;;  %v3769_v28 = vadd.f32 %v5474_v56, %v3761_v43 }
 0x86d   : > { %v3754_v10 = vmul.f32 %v5442_v46, %v6886_v20  ;;  %v3768_v11 = vadd.f32 %v5474_v56, %v3760_v50 }
 0x86e   : > { %v3763_v38 = vmul.f32 %v5473_v63, %v3755_v49 }
 0x86f   : > { %v5444_v22 = vpop.eup %5443  ;;  %v3762_v1 = vmul.f32 %v5473_v63, %v3754_v10  ;;  %v3777_v18 = vpack.c.bf16 %v3768_v11, %v3767_v3 }
 0x870   : > { %v5446_v29 = vpop.eup %5445  ;;  %v3757_v53 = vmul.f32 %v5444_v22, %v6895_v27  ;;  %v3771_v7 = vadd.f32 %v5474_v56, %v3763_v38 }
 0x871   : > { %4874 = vmatprep.mubr.msk.bf16.mxu0 %vm629_vm0, %v3777_v18  ;;  %4884 = vmatprep.mubr.msk.bf16.mxu1 %vm629_vm0, %v3777_v18  ;;  %v3770_v20 = vadd.f32 %v5474_v56, %v3762_v1  ;;  %v3756_v54 = vmul.f32 %v5446_v29, %v6898_v32 }
 0x872   : > { %v3765_v61 = vmul.f32 %v5473_v63, %v3757_v53 }
 0x873   : > { %v5448_v42 = vpop.eup %5447  ;;  %v3778_v59 = vpack.c.bf16 %v3770_v20, %v3769_v28  ;;  %v3764_v6 = vmul.f32 %v5473_v63, %v3756_v54 }
 0x874   : > { %v3758_v48 = vmul.f32 %v5448_v42, %v6907_v31  ;;  %v3773_v57 = vadd.f32 %v5474_v56, %v3765_v61  ;;  %v5156_v31 = vld [vmem:[%s7146_s14 + $0x18] sm:$0xff]  }
 0x875   : > { %4875 = vmatmul.mubr.msk.bf16.vlgmr.msra.gmra.mxu0 %vm629_vm0, %v3778_v59  ;;  %4885 = vmatmul.mubr.msk.bf16.vlgmr.msra.gmra.mxu1 %vm629_vm0, %v3778_v59  ;;  %v3772_v27 = vadd.f32 %v5474_v56, %v3764_v6 }
 0x876   : > { %v3766_v19 = vmul.f32 %v5473_v63, %v3758_v48  ;;  %4892 = vmatprep.subr.bf16.mxu0 %v5156_v31 }
 0x877   : > { %v3779_v9 = vpack.c.bf16 %v3772_v27, %v3771_v7  ;;  %4893 = vmatpush3.bf16.msra.mxu0 %v5156_v31 }
 0x878   : > { %v3774_v2 = vadd.f32 %v5474_v56, %v3766_v19  ;;  %4894 = vmatprep.subr.bf16.mxu0 %v5157_v14 }
 0x879   : > { %4878 = vmatprep.mubr.msk.bf16.mxu0 %vm629_vm0, %v3779_v9  ;;  %4888 = vmatprep.mubr.msk.bf16.mxu1 %vm629_vm0, %v3779_v9 }
 0x87a   : > { %v3780_v32 = vpack.c.bf16 %v3774_v2, %v3773_v57 }
 0x87b   : > { %4895 = vmatpush3.bf16.msra.mxu0 %v5157_v14 }
 0x87c   : > { %4896 = vmatprep.subr.bf16.mxu0 %v5158_v36 }
 0x87d   : > { %4879 = vmatmul.mubr.msk.bf16.gmra.mxu0 %vm629_vm0, %v3780_v32  ;;  %4889 = vmatmul.mubr.msk.bf16.gmra.mxu1 %vm629_vm0, %v3780_v32 }
 0x87f   : > { %4897 = vmatpush3.bf16.msra.mxu0 %v5158_v36 }
 0x880   : > { %4898 = vmatprep.subr.bf16.mxu0 %v5159_v23 }
 0x883   : > { %4899 = vmatpush3.bf16.msra.mxu0 %v5159_v23 }
 0x935   : > { %v4886_v34 = vpop.f32.mrf.mxu1  ;;  %v6986_v22 = vpop.f32.mrf.mxu0 }
 0x936   : > { %v6957_v58 = vadd.f32 %v4886_v34, %v4483_v41 }
 0x937   : > { %v3920_v15 = vpop.f32.mrf.mxu1  ;;  %v3840_v61 = vpop.f32.mrf.mxu0 }
 0x938   : > { %v3953_v44 = vmul.f32 %v6957_v58, %v6957_v58  ;;  %v6961_v37 = vadd.f32 %v4483_v41, %v3920_v15 }
 0x939   : > { %v4887_v62 = vpop.f32.mrf.mxu1  ;;  %v4877_v36 = vpop.f32.mrf.mxu0 }
 0x93a   : > { %v3961_v47 = vmul.f32 %v3953_v44, %v6957_v58  ;;  %v3951_v13 = vmul.f32 %v6961_v37, %v6961_v37  ;;  %v6966_v21 = vadd.f32 %v4887_v62, %v4483_v41 }
 0x93b   : > { %v3923_v30 = vpop.f32.mrf.mxu1 }
 0x93c   : > { %v3969_v60 = vmul.f32 0.044715, %v3961_v47  ;;  %v3959_v0 = vmul.f32 %v3951_v13, %v6961_v37  ;;  %v3954_v4 = vmul.f32 %v6966_v21, %v6966_v21  ;;  %v6971_v24 = vadd.f32 %v4483_v41, %v3923_v30  ;;  %v3843_v47 = vpop.f32.mrf.mxu0 }
 0x93d   : > { %v4890_v26 = vpop.f32.mrf.mxu1 }
 0x93e   : > { %v3977_v35 = vadd.f32 %v3969_v60, %v6957_v58  ;;  %v3967_v12 = vmul.f32 0.044715, %v3959_v0  ;;  %v3962_v51 = vmul.f32 %v3954_v4, %v6966_v21  ;;  %v3952_v55 = vmul.f32 %v6971_v24, %v6971_v24  ;;  %v4880_v4 = vpop.f32.mrf.mxu0 }
 0x93f   : > { %v6977_v63 = vadd.f32 %v4890_v26, %v4483_v41  ;;  %v3936_v45 = vpop.f32.mrf.mxu1 }
 0x940   : > { %v3985_v40 = vmul.f32 0.7978846, %v3977_v35  ;;  %v3975_v50 = vadd.f32 %v3967_v12, %v6961_v37  ;;  %v3970_v46 = vmul.f32 0.044715, %v3962_v51  ;;  %v3960_v43 = vmul.f32 %v3952_v55, %v6971_v24 }
 0x941   : > { %v3957_v10 = vmul.f32 %v6977_v63, %v6977_v63  ;;  %v6983_v56 = vadd.f32 %v4483_v41, %v3936_v45  ;;  %v4891_v3 = vpop.f32.mrf.mxu1 }
 0x942   : > { %5449 = vtanh.f32 %v3985_v40  ;;  %v3983_v11 = vmul.f32 0.7978846, %v3975_v50  ;;  %v3978_v49 = vadd.f32 %v3970_v46, %v6966_v21  ;;  %v3968_v1 = vmul.f32 0.044715, %v3960_v43  ;;  %v3856_v40 = vpop.f32.mrf.mxu0  ;;  %v4477_v43 = vld [vmem:[%s7143_s11] ss:$0 sm:$0xff] }
 0x943   : > { %v3965_v18 = vmul.f32 %v3957_v10, %v6977_v63  ;;  %v3955_v29 = vmul.f32 %v6983_v56, %v6983_v56  ;;  %v6991_v28 = vadd.f32 %v4891_v3, %v4483_v41  ;;  %v3939_v53 = vpop.f32.mrf.mxu1 }
 0x944   : > { %5451 = vtanh.f32 %v3983_v11  ;;  %v3986_v20 = vmul.f32 0.7978846, %v3978_v49  ;;  %v6993_v54 = vadd.f32 %v4483_v41, %v3939_v53  ;;  %v3976_v38 = vadd.f32 %v3968_v1, %v6971_v24 }
 0x945   : > { %v3973_v42 = vmul.f32 0.044715, %v3965_v18  ;;  %v3963_v59 = vmul.f32 %v3955_v29, %v6983_v56  ;;  %v3958_v6 = vmul.f32 %v6991_v28, %v6991_v28  ;;  %v3852_v1 = vadd.f32 %v4877_v36, %v4477_v43 }
 0x946   : > { %5453 = vtanh.f32 %v3986_v20  ;;  %v3956_v48 = vmul.f32 %v6993_v54, %v6993_v54  ;;  %v3984_v7 = vmul.f32 0.7978846, %v3976_v38  ;;  %v3841_v29 = vadd.f32 %v4477_v43, %v3840_v61 }
 0x947   : > { %v3981_v27 = vadd.f32 %v3973_v42, %v6977_v63  ;;  %v3971_v19 = vmul.f32 0.044715, %v3963_v59  ;;  %v3966_v9 = vmul.f32 %v3958_v6, %v6991_v28  ;;  %v3844_v53 = vadd.f32 %v4477_v43, %v3843_v47  ;;  %v4881_v42 = vpop.f32.mrf.mxu0 }
 0x948   : > { %v3964_v57 = vmul.f32 %v3956_v48, %v6993_v54  ;;  %5455 = vtanh.f32 %v3984_v7  ;;  %v3857_v36 = vadd.f32 %v4477_v43, %v3856_v40 }
 0x949   : > { %v3989_v2 = vmul.f32 0.7978846, %v3981_v27  ;;  %v3979_v32 = vadd.f32 %v3971_v19, %v6983_v56  ;;  %v3974_v31 = vmul.f32 0.044715, %v3966_v9 }
 0x94a   : > { %v3972_v14 = vmul.f32 0.044715, %v3964_v57 }
 0x94b   : > { %5457 = vtanh.f32 %v3989_v2  ;;  %v3987_v23 = vmul.f32 0.7978846, %v3979_v32  ;;  %v3982_v41 = vadd.f32 %v3974_v31, %v6991_v28  ;;  %v3859_v32 = vpop.f32.mrf.mxu0 }
 0x94c   : > { %v3980_v34 = vadd.f32 %v3972_v14, %v6993_v54 }
 0x94d   : > { %5459 = vtanh.f32 %v3987_v23  ;;  %v3990_v15 = vmul.f32 0.7978846, %v3982_v41  ;;  %v3868_v41 = vadd.f32 %v4881_v42, %v4477_v43 }
 0x94e   : > { %v3988_v44 = vmul.f32 0.7978846, %v3980_v34  ;;  %v3860_v34 = vadd.f32 %v4477_v43, %v3859_v32  ;;  %v626_v32 = vld [vmem:[%s7047_s26 + $0x30] sm:$0xff] }
 0x94f   : > { %v5450_v62 = vpop.eup %5449  ;;  %5461 = vtanh.f32 %v3990_v15 }
 0x950   : > { %5463 = vtanh.f32 %v3988_v44  ;;  %v4001_v30 = vadd.f32 1.0, %v5450_v62  ;;  %v3865_v44 = vadd.f32 %v4880_v4, %v4477_v43 }
 0x951   : > { %v5452_v13 = vpop.eup %5451 }
 0x952   : > { %v3999_v60 = vadd.f32 1.0, %v5452_v13  ;;  %v4009_v51 = vmul.f32 0.5, %v4001_v30 }
 0x953   : > { %v5454_v0 = vpop.eup %5453 }
 0x954   : > { %v4002_v26 = vadd.f32 1.0, %v5454_v0  ;;  %v4007_v35 = vmul.f32 0.5, %v3999_v60  ;;  %v4017_v49 = vmul.f32 %v4009_v51, %v6957_v58  ;;  %v4489_v0 = vld [vmem:[%s7147_s15] ss:$0 sm:$0xff] }
 0x955   : > { %v5456_v12 = vpop.eup %5455 }
 0x956   : > { %v4010_v55 = vmul.f32 0.5, %v4002_v26  ;;  %v4000_v45 = vadd.f32 1.0, %v5456_v12  ;;  %v4015_v10 = vmul.f32 %v4007_v35, %v6961_v37 }
 0x958   : > { %v5458_v50 = vpop.eup %5457  ;;  %v4018_v46 = vmul.f32 %v4010_v55, %v6966_v21  ;;  %v4008_v3 = vmul.f32 0.5, %v4000_v45  ;;  %v3849_v21 = vadd.f32 %v6986_v22, %v4477_v43  ;;  %v4023_v37 = vmul.f32 %v4015_v10, %v3841_v29 }
 0x959   : > { %v4005_v18 = vadd.f32 1.0, %v5458_v50 }
 0x95a   : > { %v5460_v11 = vpop.eup %5459  ;;  %v4016_v20 = vmul.f32 %v4008_v3, %v6971_v24  ;;  %v4026_v6 = vmul.f32 %v4018_v46, %v3852_v1  ;;  %v4025_v9 = vmul.f32 %v4017_v49, %v3849_v21 }
 0x95b   : > { %v4003_v38 = vadd.f32 1.0, %v5460_v11  ;;  %v4013_v57 = vmul.f32 0.5, %v4005_v18 }
 0x95c   : > { %v5462_v59 = vpop.eup %5461  ;;  %v4024_v19 = vmul.f32 %v4016_v20, %v3844_v53  ;;  %v4040_v31 = vpack.c.bf16 %v4026_v6, %v4025_v9  ;;  %v621_v9 = vld [vmem:[%s7047_s26 + $0x8] sm:$0xff] }
 0x95d   : > { %v5464_v48 = vpop.eup %5463  ;;  %v4011_v7 = vmul.f32 0.5, %v4003_v38  ;;  %v4006_v27 = vadd.f32 1.0, %v5462_v59  ;;  %v4021_v22 = vmul.f32 %v4013_v57, %v6977_v63  ;;  %v5160_v63 = vld [vmem:[%s7148_s16] sm:$0xff]  }
 0x95e   : > { %v4004_v58 = vadd.f32 1.0, %v5464_v48  ;;  %v4039_v61 = vpack.c.bf16 %v4024_v19, %v4023_v37  ;;  %4908 = vmatprep.subr.bf16.mxu1 %v5160_v63  ;;  %v620_v59 = vld [vmem:[%s7047_s26] sm:$0xff] }
 0x95f   : > { %v4014_v2 = vmul.f32 0.5, %v4006_v27  ;;  %v4019_v24 = vmul.f32 %v4011_v7, %v6983_v56  ;;  %v4029_v56 = vmul.f32 %v4021_v22, %v3865_v44  ;;  %4909 = vmatpush3.bf16.msra.mxu1 %v5160_v63  ;;  %v623_v7 = vld [vmem:[%s7047_s26 + $0x18] sm:$0xff] }
 0x960   : > { %v4012_v14 = vmul.f32 0.5, %v4004_v58  ;;  %4900 = vmatprep.mubr.msk.bf16.mxu0 %vm3569_vm9, %v4039_v61 }
 0x961   : > { %v4022_v23 = vmul.f32 %v4014_v2, %v6991_v28  ;;  %4901 = vmatmul.mubr.msk.bf16.vlgmr.msra.gmra.mxu0 %vm3569_vm9, %v4040_v31  ;;  %v4027_v62 = vmul.f32 %v4019_v24, %v3857_v36 }
 0x962   : > { %v4020_v15 = vmul.f32 %v4012_v14, %v6993_v54  ;;  %v624_v14 = vld [vmem:[%s7047_s26 + $0x20] sm:$0xff] }
 0x963   : > { %v4030_v13 = vmul.f32 %v4022_v23, %v3868_v41  ;;  %v627_v41 = vld [vmem:[%s7047_s26 + $0x38] sm:$0xff] }
 0x964   : > { %v4028_v47 = vmul.f32 %v4020_v15, %v3860_v34 }
 0x965   : > { %v4042_v60 = vpack.c.bf16 %v4030_v13, %v4029_v56 }
 0x966   : > { %v4041_v30 = vpack.c.bf16 %v4028_v47, %v4027_v62  ;;  %v625_v62 = vld [vmem:[%s7047_s26 + $0x28] sm:$0xff] }
 0x968   : > { %4904 = vmatprep.mubr.msk.bf16.mxu0 %vm3569_vm9, %v4041_v30 }
 0x969   : > { %4905 = vmatmul.mubr.msk.bf16.gmra.mxu0 %vm3569_vm9, %v4042_v60 }
 0xa21   : > { %v4902_v28 = vpop.f32.mrf.mxu0 }
 0xa22   : > { %v4129_v12 = vadd.f32 %v4902_v28, %v4489_v0 }
 0xa23   : > { %v4120_v54 = vpop.f32.mrf.mxu0 }
 0xa24   : > { %v4121_v26 = vadd.f32 %v4489_v0, %v4120_v54  ;;  %v4153_v43 = vadd.f32 %v4129_v12, %v6830_v17 }
 0xa25   : > { %v4903_v4 = vpop.f32.mrf.mxu0 }
 0xa26   : > { %v4132_v35 = vadd.f32 %v4903_v4, %v4489_v0  ;;  %v4151_v50 = vadd.f32 %v4121_v26, %v6827_v39 }
 0xa27   : > { %v4123_v51 = vpop.f32.mrf.mxu0 }
 0xa28   : > { %v4124_v55 = vadd.f32 %v4489_v0, %v4123_v51  ;;  %v4154_v45 = vadd.f32 %v4132_v35, %v6838_v33 }
 0xa29   : > { %v4906_v40 = vpop.f32.mrf.mxu0 }
 0xa2a   : > { %v4152_v46 = vadd.f32 %v4124_v55, %v6835_v52  ;;  %v4162_v11 = vpack.c.bf16 %v4154_v45, %v4153_v43  ;;  %v4145_v29 = vadd.f32 %v4906_v40, %v4489_v0 }
 0xa2b   : > { %v4136_v10 = vpop.f32.mrf.mxu0 }
 0xa2c   : > { %v4161_v3 = vpack.c.bf16 %v4152_v46, %v4151_v50  ;;  %v4137_v1 = vadd.f32 %v4489_v0, %v4136_v10  ;;  %v4157_v20 = vadd.f32 %v4145_v29, %v6850_v8  ;;  %v622_v8 = vld [vmem:[%s7047_s26 + $0x10] sm:$0xff]  ;;  %s5475_s26 = scalar_lea.vmem %s7085_s19, 1024 }
 0xa2d   : > { %v4907_v49 = vpop.f32.mrf.mxu0  ;;  %p5476_p11 = scmp.ne.s32.totalorder %s7085_s19, %s5475_s26  ;;  %p5483_p1 = scmp.lt.s32.totalorder %s5481_s1, %s5475_s26 }
 0xa2e   : > { %v4148_v18 = vadd.f32 %v4907_v49, %v4489_v0  ;;  %4910 = vmatprep.mubr.msk.bf16.mxu1 %vm629_vm0, %v4161_v3  ;;  %v4155_v17 = vadd.f32 %v4137_v1, %v6845_v16  ;;  %v4498_v16 = vld [vmem:[%s7149_s17] ss:$0 sm:$0xff] }
 0xa2f   : > { %v4139_v33 = vpop.f32.mrf.mxu0  ;;  %4911 = vmatmul.mubr.msk.bf16.vlgmr.msra.gmra.mxu1 %vm629_vm0, %v4162_v11  ;;  %p5477_p12 = pnand %p5476_p11, %p5688_p5  ;;  %p5484_p2 = por %p5483_p1, %p5482_p0 }
 0xa30   : > { %v4140_v39 = vadd.f32 %v4489_v0, %v4139_v33  ;;  %v4158_v52 = vadd.f32 %v4148_v18, %v6858_v25 }
 0xa31   : > { %p5478_p13 = pneg %p5477_p12 }
 0xa32   : > { %v4156_v53 = vadd.f32 %v4140_v39, %v6855_v5  ;;  %v4164_v42 = vpack.c.bf16 %v4158_v52, %v4157_v20 }
 0xa33   : > { %p5485_p3 = pnand %p5484_p2, %p5478_p13 }
 0xa34   : > { %v4163_v38 = vpack.c.bf16 %v4156_v53, %v4155_v17 }
 0xa36   : > { %4914 = vmatprep.mubr.msk.bf16.mxu1 %vm629_vm0, %v4163_v38 }
 0xa37   : > { %4915 = vmatmul.mubr.msk.bf16.gmra.mxu1 %vm629_vm0, %v4164_v42 }
 0xaef   : > { %v4912_v5 = vpop.f32.mrf.mxu1 }
 0xaf0   : > { %v4233_v25 = vadd.f32 %v4912_v5, %v4498_v16 }
 0xaf1   : > { %v4224_v21 = vpop.f32.mrf.mxu1 }
 0xaf2   : > { %v4257_v6 = vadd.f32 %v4233_v25, %v622_v8  ;;  %v4225_v48 = vadd.f32 %v4498_v16, %v4224_v21 }
 0xaf3   : > { %v4913_v27 = vpop.f32.mrf.mxu1 }
 0xaf4   : > { %4265 = vst.msk [vmem:[%s7057_s24 + $0x10] sm:$0xff] %vm629_vm0, %v4257_v6  ;;  %v4255_v37 = vadd.f32 %v4225_v48, %v620_v59  ;;  %v4236_v19 = vadd.f32 %v4913_v27, %v4498_v16 }
 0xaf5   : > { %v4227_v57 = vpop.f32.mrf.mxu1 }
 0xaf6   : > { %4263 = vst.msk [vmem:[%s7057_s24] sm:$0xff] %vm629_vm0, %v4255_v37  ;;  %v4258_v58 = vadd.f32 %v4236_v19, %v623_v7  ;;  %v4228_v2 = vadd.f32 %v4498_v16, %v4227_v57 }
 0xaf7   : > { %v4916_v61 = vpop.f32.mrf.mxu1 }
 0xaf8   : > { %4266 = vst.msk [vmem:[%s7057_s24 + $0x18] sm:$0xff] %vm629_vm0, %v4258_v58  ;;  %v4256_v31 = vadd.f32 %v4228_v2, %v621_v9  ;;  %v4249_v24 = vadd.f32 %v4916_v61, %v4498_v16 }
 0xaf9   : > { %v4240_v36 = vpop.f32.mrf.mxu1 }
 0xafa   : > { %4264 = vst.msk [vmem:[%s7057_s24 + $0x8] sm:$0xff] %vm629_vm0, %v4256_v31  ;;  %v4261_v23 = vadd.f32 %v4249_v24, %v626_v32  ;;  %v4241_v22 = vadd.f32 %v4498_v16, %v4240_v36 }
 0xafb   : > { %v4917_v34 = vpop.f32.mrf.mxu1 }
 0xafc   : > { %4269 = vst.msk [vmem:[%s7057_s24 + $0x30] sm:$0xff] %vm629_vm0, %v4261_v23  ;;  %v4259_v15 = vadd.f32 %v4241_v22, %v624_v14  ;;  %v4252_v44 = vadd.f32 %v4917_v34, %v4498_v16 }
 0xafd   : > { %v4243_v47 = vpop.f32.mrf.mxu1 }
 0xafe   : > { %4267 = vst.msk [vmem:[%s7057_s24 + $0x20] sm:$0xff] %vm629_vm0, %v4259_v15  ;;  %v4262_v13 = vadd.f32 %v4252_v44, %v627_v41  ;;  %v4244_v30 = vadd.f32 %v4498_v16, %v4243_v47 }
 0xb00   : > { %4270 = vst.msk [vmem:[%s7057_s24 + $0x38] sm:$0xff] %vm629_vm0, %v4262_v13  ;;  %v4260_v56 = vadd.f32 %v4244_v30, %v625_v62 }
 0xb02   : > { %4268 = vst.msk [vmem:[%s7057_s24 + $0x28] sm:$0xff] %vm629_vm0, %v4260_v56 }
 0xb03   : > { %5488 = shalt.err (!%p5485_p3)
}
 0xb04   : > { %s5489_s21 = scalar_lea.hbm %s7081_s20, 1024  ;;  %s5493_s22 = scalar_lea.hbm %s7150_s18, 2048 }
 0xb05   : > { %p5490_p4 = scmp.ne.s32.totalorder %s7081_s20, %s5489_s21  ;;  %p5494_p9 = scmp.lt.s32.totalorder %s7081_s20, %s7150_s18 }
 0xb06   : > { %p5495_p10 = scmp.lt.s32.totalorder %s5493_s22, %s5489_s21 }
 0xb07   : > { %p5491_p7 = pnand %p5490_p4, %p5688_p5 }
 0xb08   : > { %p5496_p11 = por %p5495_p10, %p5494_p9 }
 0xb09   : > { %p5492_p8 = pneg %p5491_p7 }
 0xb0b   : > { %p5497_p12 = pnand %p5496_p11, %p5492_p8 }
 0xb0d   : > { %5500 = shalt.err (!%p5497_p12)
}
 0xb0e   : > { %s5554_s26 = smov 128   ;;  %s7266_s25 = smov 8  }
 0xb0f   : > { %4937 = dma.vmem_to_hbm [thread:$0]  (%p5688_p5), %s7085_s19, 1024, %s7081_s20, %s7091_s0, %s5554_s26, %s5554_s26, %s7266_s25  }
 0xb10 PF: > { %p4943_p13 = scmp.ge.s32.totalorder %s5535_s30, 2  ;;  %s4300_s24 = sand.u32 1, %s5523_s27  }
 0xb11   : > { %s4301_s3 = scalar_lea.sflag [#allocation3], %s4300_s24 }
 0xb12   : > { %p4940_p0 = pnand %p4943_p13, %p5692_p6 }
 0xb14   : > { %p4941_p1 = pneg %p4940_p0 }
 0xb16   : > { %5518 = dma.done.wait (%p4941_p1), %s4301_s3, 1024  }
 0xb17   : > { %5520 = vsyncadd (%p4941_p1), %s4301_s3, 4294966272  ;;  %s7268_s30 = sld [smem:[#allocation6_spill]]  ;;  %s7271_s27 = smov %s5527_s28 }
 0xb18   : > { %s7269_s2 = sld [smem:[#allocation5_spill]] }
 0xb19   : > { %s7270_s29 = sld [smem:[#allocation7_spill]] }
 0xb1d   : > { %p28_p2 = scmp.ge.s32.totalorder %s7268_s30, 4  }
 0xb1e   : > { %s7272_s28 = smov %s7269_s2 }
 0xb1f   :  { %30 = sbr.rel (!%p28_p2) target bundleno = 8 (0x8), region = 133 }
 0xb24   :  { %4306 = vsyncpa [#allocation3], 1 }
 0xb25   :  { %4308 = vsyncpa [#allocation3 + $0x1], 1 }

</bundles_post_ra>
